<compile_context>
chip_gen: v7x
topology: tpu7x:2x2x1
jax: 0.10.0
libtpu: 0.0.40
codegen_flags: <defaults>
</compile_context>

<pallas_src>
import functools

import jax
import jax.numpy as jnp
from jax.experimental import pallas as pl
from jax.experimental.pallas import tpu as pltpu

N_HIDDEN = 128
N_LAYERS = 2
NUM_DIRECTIONS = 2
FC1_DIM = 150
FC2_DIM = 76          # == input_dim of the original MIMIC-III model
INPUT_DIM = 76

FC1_PAD = 256         # FC1 width padded to MXU/lane-friendly size
FC2_PAD = 128         # FC2 width padded so the output store is lane-dense (unmasked vst)


# --------------------------------------------------------------------------
# Fused kernel: layer0 (bi-LSTM) -> layer1 (bi-LSTM) -> fc1 -> ReLU -> fc2.
# Gate order follows PyTorch: i, f, g, o.  All buffers are 2D time-major
# slabs of shape (T*B, C) so every per-step slice is a full, aligned
# sublane tile (B is padded to a multiple of 8 by the wrapper).
# --------------------------------------------------------------------------
def _fused_lstm_predictor_kernel(
        x_ref,
        wih0f_ref, whh0f_ref, b0f_ref,
        wih0b_ref, whh0b_ref, b0b_ref,
        wih1f_ref, whh1f_ref, b1f_ref,
        wih1b_ref, whh1b_ref, b1b_ref,
        fc1w_ref, fc1b_ref, fc2w_ref, fc2b_ref,
        out_ref,
        gf_ref, gb_ref, seq0_ref, seq1_ref,
        *, T, B):
    H = N_HIDDEN

    def cell(gates, h_prev, c_prev, whh_ref):
        # recurrence only does h_prev @ W_hh; the x @ W_ih + b part is precomputed.
        g = gates + jnp.dot(h_prev, whh_ref[...], preferred_element_type=jnp.float32)
        i_g = jax.nn.sigmoid(g[:, 0 * H:1 * H])
        f_g = jax.nn.sigmoid(g[:, 1 * H:2 * H])
        g_g = jnp.tanh(g[:, 2 * H:3 * H])
        o_g = jax.nn.sigmoid(g[:, 3 * H:4 * H])
        c_new = f_g * c_prev + i_g * g_g
        h_new = o_g * jnp.tanh(c_new)
        return h_new, c_new

    def run_layer(whhf_ref, whhb_ref, out_seq_ref):
        hf = jnp.zeros((B, H), jnp.float32)
        cf = jnp.zeros((B, H), jnp.float32)
        hb = jnp.zeros((B, H), jnp.float32)
        cb = jnp.zeros((B, H), jnp.float32)
        # static (trace-time) unrolled time loop; fwd walks 0..T-1, bwd walks T-1..0.
        for t in range(T):
            tb = T - 1 - t
            hf, cf = cell(gf_ref[pl.ds(t * B, B), :], hf, cf, whhf_ref)
            hb, cb = cell(gb_ref[pl.ds(tb * B, B), :], hb, cb, whhb_ref)
            # write both directions directly into one lane-dense (., 2H) buffer.
            out_seq_ref[pl.ds(t * B, B), 0:H] = hf
            out_seq_ref[pl.ds(tb * B, B), H:2 * H] = hb

    # ---- layer 0: hoisted input projections (one big matmul per direction) ----
    x = x_ref[...]                                                       # (T*B, D)
    gf_ref[...] = (jnp.dot(x, wih0f_ref[...], preferred_element_type=jnp.float32)
                   + b0f_ref[...])
    gb_ref[...] = (jnp.dot(x, wih0b_ref[...], preferred_element_type=jnp.float32)
                   + b0b_ref[...])
    run_layer(whh0f_ref, whh0b_ref, seq0_ref)

    # ---- layer 1 ----
    h0 = seq0_ref[...]                                                   # (T*B, 2H)
    gf_ref[...] = (jnp.dot(h0, wih1f_ref[...], preferred_element_type=jnp.float32)
                   + b1f_ref[...])
    gb_ref[...] = (jnp.dot(h0, wih1b_ref[...], preferred_element_type=jnp.float32)
                   + b1b_ref[...])
    run_layer(whh1f_ref, whh1b_ref, seq1_ref)

    # ---- head: relu(h @ W1 + b1) @ W2 + b2  (dropout = identity in eval) ----
    h1 = seq1_ref[...]                                                   # (T*B, 2H)
    z = jnp.maximum(
        jnp.dot(h1, fc1w_ref[...], preferred_element_type=jnp.float32) + fc1b_ref[...],
        0.0)
    o = jnp.dot(z, fc2w_ref[...], preferred_element_type=jnp.float32) + fc2b_ref[...]
    out_ref[...] = o.astype(out_ref.dtype)


# --------------------------------------------------------------------------
# Parameter init (deterministic; PyTorch-style U(-1/sqrt(fan), 1/sqrt(fan)))
# --------------------------------------------------------------------------
def init_params(key, input_dim):
    params = {"lstm": []}
    k_lstm = 1.0 / float(N_HIDDEN) ** 0.5
    for layer in range(N_LAYERS):
        in_dim = input_dim if layer == 0 else N_HIDDEN * NUM_DIRECTIONS
        layer_p = {}
        for dname in ("fwd", "bwd"):
            key, k1, k2, k3, k4 = jax.random.split(key, 5)
            w_ih = jax.random.uniform(k1, (in_dim, 4 * N_HIDDEN), jnp.float32, -k_lstm, k_lstm)
            w_hh = jax.random.uniform(k2, (N_HIDDEN, 4 * N_HIDDEN), jnp.float32, -k_lstm, k_lstm)
            b_ih = jax.random.uniform(k3, (4 * N_HIDDEN,), jnp.float32, -k_lstm, k_lstm)
            b_hh = jax.random.uniform(k4, (4 * N_HIDDEN,), jnp.float32, -k_lstm, k_lstm)
            layer_p[dname] = {"w_ih": w_ih, "w_hh": w_hh,
                              "b": (b_ih + b_hh).reshape(1, 4 * N_HIDDEN)}
        params["lstm"].append(layer_p)

    key, k1, k2, k3, k4 = jax.random.split(key, 5)
    fan1 = N_HIDDEN * NUM_DIRECTIONS
    kb1 = 1.0 / float(fan1) ** 0.5
    fc1_w = jax.random.uniform(k1, (fan1, FC1_DIM), jnp.float32, -kb1, kb1)
    fc1_b = jax.random.uniform(k2, (FC1_DIM,), jnp.float32, -kb1, kb1)
    kb2 = 1.0 / float(FC1_DIM) ** 0.5
    fc2_w = jax.random.uniform(k3, (FC1_DIM, FC2_DIM), jnp.float32, -kb2, kb2)
    fc2_b = jax.random.uniform(k4, (FC2_DIM,), jnp.float32, -kb2, kb2)

    # Zero-pad the head to lane/MXU-friendly widths; padding contributes exactly 0
    # to the logical (150 / 76 wide) outputs, which are sliced back in the wrapper.
    params["fc1_w"] = jnp.zeros((fan1, FC1_PAD), jnp.float32).at[:, :FC1_DIM].set(fc1_w)
    params["fc1_b"] = jnp.zeros((1, FC1_PAD), jnp.float32).at[0, :FC1_DIM].set(fc1_b)
    params["fc2_w"] = jnp.zeros((FC1_PAD, FC2_PAD), jnp.float32).at[:FC1_DIM, :FC2_DIM].set(fc2_w)
    params["fc2_b"] = jnp.zeros((1, FC2_PAD), jnp.float32).at[0, :FC2_DIM].set(fc2_b)
    return params


# --------------------------------------------------------------------------
# Full forward pass (matches LSTMPredictor.forward, eval mode, zero h0/c0)
# --------------------------------------------------------------------------
def lstm_predictor_forward(params, x):
    # x: (B, T, D) float32 (PyTorch batch_first layout)
    B, T, D = x.shape

    # Pad batch to a full f32 sublane tile so every per-step slice/store in the
    # kernel is (8,128)-aligned and sublane occupancy is 8/8.
    B_pad = max(8, ((B + 7) // 8) * 8)
    x_tm = jnp.transpose(x, (1, 0, 2)).astype(jnp.float32)               # (T, B, D)
    x_pad = jnp.zeros((T, B_pad, D), jnp.float32).at[:, :B, :].set(x_tm)
    x_flat = x_pad.reshape(T * B_pad, D)                                 # time-major slab

    inputs = [x_flat]
    for layer in range(N_LAYERS):
        for dname in ("fwd", "bwd"):
            p = params["lstm"][layer][dname]
            inputs += [p["w_ih"], p["w_hh"], p["b"]]
    inputs += [params["fc1_w"], params["fc1_b"], params["fc2_w"], params["fc2_b"]]

    in_specs = [pl.BlockSpec(a.shape, lambda i: (0, 0)) for a in inputs]

    out_flat = pl.pallas_call(
        functools.partial(_fused_lstm_predictor_kernel, T=T, B=B_pad),
        out_shape=jax.ShapeDtypeStruct((T * B_pad, FC2_PAD), jnp.float32),
        grid_spec=pltpu.PrefetchScalarGridSpec(
            num_scalar_prefetch=0,
            grid=(1,),
            in_specs=in_specs,
            out_specs=pl.BlockSpec((T * B_pad, FC2_PAD), lambda i: (0, 0)),
            scratch_shapes=[
                pltpu.VMEM((T * B_pad, 4 * N_HIDDEN), jnp.float32),   # fwd gates
                pltpu.VMEM((T * B_pad, 4 * N_HIDDEN), jnp.float32),   # bwd gates
                pltpu.VMEM((T * B_pad, NUM_DIRECTIONS * N_HIDDEN), jnp.float32),  # layer0 out
                pltpu.VMEM((T * B_pad, NUM_DIRECTIONS * N_HIDDEN), jnp.float32),  # layer1 out
            ],
        ),
        compiler_params=pltpu.CompilerParams(
            dimension_semantics=("arbitrary",)),
    )(*inputs)

    # (T*B_pad, 128) -> (B, T, 76)
    out = out_flat.reshape(T, B_pad, FC2_PAD)[:, :B, :FC2_DIM].transpose(1, 0, 2)
    # TODO(synk): dropout (p=0.3 on fc1 output and between LSTM layers) is stochastic;
    # it is identity in eval mode, which is what we implement.
    return out


if __name__ == "__main__":
    key = jax.random.PRNGKey(0)
    key, pkey, xkey = jax.random.split(key, 3)

    B, T, D = 2, 8, INPUT_DIM
    params = init_params(pkey, D)
    x = jax.random.normal(xkey, (B, T, D), jnp.float32)

    fwd = jax.jit(functools.partial(lstm_predictor_forward, params))
    out = fwd(x)
    jax.block_until_ready(out)

    assert out.shape == (B, T, FC2_DIM), out.shape
    assert out.dtype == jnp.float32
    print("KERNEL_OK")
</pallas_src>

<mosaic_0001>
module attributes {stable_mosaic.version = 11 : i64} {
  func.func @_fused_lstm_predictor_kernel(%arg0: i32, %arg1: memref<64x76xf32, #tpu.memory_space<vmem>>, %arg2: memref<76x512xf32, #tpu.memory_space<vmem>>, %arg3: memref<128x512xf32, #tpu.memory_space<vmem>>, %arg4: memref<1x512xf32, #tpu.memory_space<vmem>>, %arg5: memref<76x512xf32, #tpu.memory_space<vmem>>, %arg6: memref<128x512xf32, #tpu.memory_space<vmem>>, %arg7: memref<1x512xf32, #tpu.memory_space<vmem>>, %arg8: memref<256x512xf32, #tpu.memory_space<vmem>>, %arg9: memref<128x512xf32, #tpu.memory_space<vmem>>, %arg10: memref<1x512xf32, #tpu.memory_space<vmem>>, %arg11: memref<256x512xf32, #tpu.memory_space<vmem>>, %arg12: memref<128x512xf32, #tpu.memory_space<vmem>>, %arg13: memref<1x512xf32, #tpu.memory_space<vmem>>, %arg14: memref<256x256xf32, #tpu.memory_space<vmem>>, %arg15: memref<1x256xf32, #tpu.memory_space<vmem>>, %arg16: memref<256x128xf32, #tpu.memory_space<vmem>>, %arg17: memref<1x128xf32, #tpu.memory_space<vmem>>, %arg18: memref<64x128xf32, #tpu.memory_space<vmem>>, %arg19: memref<64x512xf32, #tpu.memory_space<vmem>>, %arg20: memref<64x512xf32, #tpu.memory_space<vmem>>, %arg21: memref<64x256xf32, #tpu.memory_space<vmem>>, %arg22: memref<64x256xf32, #tpu.memory_space<vmem>>) attributes {dimension_semantics = [#tpu.dimension_semantics<arbitrary>], iteration_bounds = array<i64: 1>, scalar_prefetch = 0 : i64, scratch_operands = 4 : i64, tpu.core_type = #tpu.core_type<tc>, window_params = [{pipeline_mode = #tpu.pipeline_mode<synchronous>, transform_indices = @transform_0, window_bounds = array<i64: 64, 76>}, {pipeline_mode = #tpu.pipeline_mode<synchronous>, transform_indices = @transform_1, window_bounds = array<i64: 76, 512>}, {pipeline_mode = #tpu.pipeline_mode<synchronous>, transform_indices = @transform_2, window_bounds = array<i64: 128, 512>}, {pipeline_mode = #tpu.pipeline_mode<synchronous>, transform_indices = @transform_3, window_bounds = array<i64: 1, 512>}, {pipeline_mode = #tpu.pipeline_mode<synchronous>, transform_indices = @transform_4, window_bounds = array<i64: 76, 512>}, {pipeline_mode = #tpu.pipeline_mode<synchronous>, transform_indices = @transform_5, window_bounds = array<i64: 128, 512>}, {pipeline_mode = #tpu.pipeline_mode<synchronous>, transform_indices = @transform_6, window_bounds = array<i64: 1, 512>}, {pipeline_mode = #tpu.pipeline_mode<synchronous>, transform_indices = @transform_7, window_bounds = array<i64: 256, 512>}, {pipeline_mode = #tpu.pipeline_mode<synchronous>, transform_indices = @transform_8, window_bounds = array<i64: 128, 512>}, {pipeline_mode = #tpu.pipeline_mode<synchronous>, transform_indices = @transform_9, window_bounds = array<i64: 1, 512>}, {pipeline_mode = #tpu.pipeline_mode<synchronous>, transform_indices = @transform_10, window_bounds = array<i64: 256, 512>}, {pipeline_mode = #tpu.pipeline_mode<synchronous>, transform_indices = @transform_11, window_bounds = array<i64: 128, 512>}, {pipeline_mode = #tpu.pipeline_mode<synchronous>, transform_indices = @transform_12, window_bounds = array<i64: 1, 512>}, {pipeline_mode = #tpu.pipeline_mode<synchronous>, transform_indices = @transform_13, window_bounds = array<i64: 256, 256>}, {pipeline_mode = #tpu.pipeline_mode<synchronous>, transform_indices = @transform_14, window_bounds = array<i64: 1, 256>}, {pipeline_mode = #tpu.pipeline_mode<synchronous>, transform_indices = @transform_15, window_bounds = array<i64: 256, 128>}, {pipeline_mode = #tpu.pipeline_mode<synchronous>, transform_indices = @transform_16, window_bounds = array<i64: 1, 128>}, {pipeline_mode = #tpu.pipeline_mode<synchronous>, transform_indices = @transform_17, window_bounds = array<i64: 64, 128>}]} {
    %c0 = arith.constant 0 : index
    %c0_0 = arith.constant 0 : index
    %0 = vector.load %arg1[%c0, %c0_0] : memref<64x76xf32, #tpu.memory_space<vmem>>, vector<64x76xf32>
    %c0_1 = arith.constant 0 : index
    %c0_2 = arith.constant 0 : index
    %1 = vector.load %arg2[%c0_1, %c0_2] : memref<76x512xf32, #tpu.memory_space<vmem>>, vector<76x512xf32>
    %cst = arith.constant dense<0.000000e+00> : vector<64x512xf32>
    %2 = tpu.matmul %0, %1, %cst {dimension_numbers = #tpu.dot_dimension_numbers<[1], [0], [0], [1], [0, 0, 1, 1], [], []>} : vector<64x76xf32>, vector<76x512xf32>, vector<64x512xf32> -> vector<64x512xf32>
    %c0_3 = arith.constant 0 : index
    %c0_4 = arith.constant 0 : index
    %3 = vector.load %arg4[%c0_3, %c0_4] : memref<1x512xf32, #tpu.memory_space<vmem>>, vector<1x512xf32>
    %4 = vector.broadcast %3 : vector<1x512xf32> to vector<64x512xf32>
    %5 = arith.addf %2, %4 : vector<64x512xf32>
    %c0_5 = arith.constant 0 : index
    %c0_6 = arith.constant 0 : index
    %6 = vector.load %arg19[%c0_5, %c0_6] : memref<64x512xf32, #tpu.memory_space<vmem>>, vector<64x512xf32>
    tpu.vector_store %arg19[%c0_5, %c0_6], %5 {strides = array<i32>} : memref<64x512xf32, #tpu.memory_space<vmem>>, vector<64x512xf32>,
    %c0_7 = arith.constant 0 : index
    %c0_8 = arith.constant 0 : index
    %7 = vector.load %arg5[%c0_7, %c0_8] : memref<76x512xf32, #tpu.memory_space<vmem>>, vector<76x512xf32>
    %cst_9 = arith.constant dense<0.000000e+00> : vector<64x512xf32>
    %8 = tpu.matmul %0, %7, %cst_9 {dimension_numbers = #tpu.dot_dimension_numbers<[1], [0], [0], [1], [0, 0, 1, 1], [], []>} : vector<64x76xf32>, vector<76x512xf32>, vector<64x512xf32> -> vector<64x512xf32>
    %c0_10 = arith.constant 0 : index
    %c0_11 = arith.constant 0 : index
    %9 = vector.load %arg7[%c0_10, %c0_11] : memref<1x512xf32, #tpu.memory_space<vmem>>, vector<1x512xf32>
    %10 = vector.broadcast %9 : vector<1x512xf32> to vector<64x512xf32>
    %11 = arith.addf %8, %10 : vector<64x512xf32>
    %c0_12 = arith.constant 0 : index
    %c0_13 = arith.constant 0 : index
    %12 = vector.load %arg20[%c0_12, %c0_13] : memref<64x512xf32, #tpu.memory_space<vmem>>, vector<64x512xf32>
    tpu.vector_store %arg20[%c0_12, %c0_13], %11 {strides = array<i32>} : memref<64x512xf32, #tpu.memory_space<vmem>>, vector<64x512xf32>,
    %cst_14 = arith.constant 0.000000e+00 : f32
    %13 = vector.broadcast %cst_14 : f32 to vector<8x128xf32>
    %cst_15 = arith.constant 0.000000e+00 : f32
    %14 = vector.broadcast %cst_15 : f32 to vector<8x128xf32>
    %cst_16 = arith.constant 0.000000e+00 : f32
    %15 = vector.broadcast %cst_16 : f32 to vector<8x128xf32>
    %cst_17 = arith.constant 0.000000e+00 : f32
    %16 = vector.broadcast %cst_17 : f32 to vector<8x128xf32>
    %c0_18 = arith.constant 0 : index
    %c0_19 = arith.constant 0 : index
    %17 = vector.load %arg19[%c0_18, %c0_19] : memref<64x512xf32, #tpu.memory_space<vmem>>, vector<8x512xf32>
    %c0_20 = arith.constant 0 : index
    %c0_21 = arith.constant 0 : index
    %18 = vector.load %arg3[%c0_20, %c0_21] : memref<128x512xf32, #tpu.memory_space<vmem>>, vector<128x512xf32>
    %cst_22 = arith.constant dense<0.000000e+00> : vector<8x512xf32>
    %19 = tpu.matmul %13, %18, %cst_22 {dimension_numbers = #tpu.dot_dimension_numbers<[1], [0], [0], [1], [0, 0, 1, 1], [], []>} : vector<8x128xf32>, vector<128x512xf32>, vector<8x512xf32> -> vector<8x512xf32>
    %20 = arith.addf %17, %19 : vector<8x512xf32>
    %21 = vector.extract_strided_slice %20 {offsets = [0, 0], sizes = [8, 128], strides = [1, 1]} : vector<8x512xf32> to vector<8x128xf32>
    %22 = arith.negf %21 : vector<8x128xf32>
    %23 = math.exp %22 : vector<8x128xf32>
    %cst_23 = arith.constant 1.000000e+00 : f32
    %24 = vector.broadcast %cst_23 : f32 to vector<8x128xf32>
    %25 = arith.addf %24, %23 : vector<8x128xf32>
    %26 = arith.divf %24, %25 : vector<8x128xf32>
    %27 = vector.extract_strided_slice %20 {offsets = [0, 128], sizes = [8, 128], strides = [1, 1]} : vector<8x512xf32> to vector<8x128xf32>
    %28 = arith.negf %27 : vector<8x128xf32>
    %29 = math.exp %28 : vector<8x128xf32>
    %cst_24 = arith.constant 1.000000e+00 : f32
    %30 = vector.broadcast %cst_24 : f32 to vector<8x128xf32>
    %31 = arith.addf %30, %29 : vector<8x128xf32>
    %32 = arith.divf %30, %31 : vector<8x128xf32>
    %33 = vector.extract_strided_slice %20 {offsets = [0, 256], sizes = [8, 128], strides = [1, 1]} : vector<8x512xf32> to vector<8x128xf32>
    %34 = math.tanh %33 : vector<8x128xf32>
    %35 = vector.extract_strided_slice %20 {offsets = [0, 384], sizes = [8, 128], strides = [1, 1]} : vector<8x512xf32> to vector<8x128xf32>
    %36 = arith.negf %35 : vector<8x128xf32>
    %37 = math.exp %36 : vector<8x128xf32>
    %cst_25 = arith.constant 1.000000e+00 : f32
    %38 = vector.broadcast %cst_25 : f32 to vector<8x128xf32>
    %39 = arith.addf %38, %37 : vector<8x128xf32>
    %40 = arith.divf %38, %39 : vector<8x128xf32>
    %41 = arith.mulf %32, %14 : vector<8x128xf32>
    %42 = arith.mulf %26, %34 : vector<8x128xf32>
    %43 = arith.addf %41, %42 : vector<8x128xf32>
    %44 = math.tanh %43 : vector<8x128xf32>
    %45 = arith.mulf %40, %44 : vector<8x128xf32>
    %c56 = arith.constant 56 : index
    %c0_26 = arith.constant 0 : index
    %46 = vector.load %arg20[%c56, %c0_26] : memref<64x512xf32, #tpu.memory_space<vmem>>, vector<8x512xf32>
    %c0_27 = arith.constant 0 : index
    %c0_28 = arith.constant 0 : index
    %47 = vector.load %arg6[%c0_27, %c0_28] : memref<128x512xf32, #tpu.memory_space<vmem>>, vector<128x512xf32>
    %cst_29 = arith.constant dense<0.000000e+00> : vector<8x512xf32>
    %48 = tpu.matmul %15, %47, %cst_29 {dimension_numbers = #tpu.dot_dimension_numbers<[1], [0], [0], [1], [0, 0, 1, 1], [], []>} : vector<8x128xf32>, vector<128x512xf32>, vector<8x512xf32> -> vector<8x512xf32>
    %49 = arith.addf %46, %48 : vector<8x512xf32>
    %50 = vector.extract_strided_slice %49 {offsets = [0, 0], sizes = [8, 128], strides = [1, 1]} : vector<8x512xf32> to vector<8x128xf32>
    %51 = arith.negf %50 : vector<8x128xf32>
    %52 = math.exp %51 : vector<8x128xf32>
    %cst_30 = arith.constant 1.000000e+00 : f32
    %53 = vector.broadcast %cst_30 : f32 to vector<8x128xf32>
    %54 = arith.addf %53, %52 : vector<8x128xf32>
    %55 = arith.divf %53, %54 : vector<8x128xf32>
    %56 = vector.extract_strided_slice %49 {offsets = [0, 128], sizes = [8, 128], strides = [1, 1]} : vector<8x512xf32> to vector<8x128xf32>
    %57 = arith.negf %56 : vector<8x128xf32>
    %58 = math.exp %57 : vector<8x128xf32>
    %cst_31 = arith.constant 1.000000e+00 : f32
    %59 = vector.broadcast %cst_31 : f32 to vector<8x128xf32>
    %60 = arith.addf %59, %58 : vector<8x128xf32>
    %61 = arith.divf %59, %60 : vector<8x128xf32>
    %62 = vector.extract_strided_slice %49 {offsets = [0, 256], sizes = [8, 128], strides = [1, 1]} : vector<8x512xf32> to vector<8x128xf32>
    %63 = math.tanh %62 : vector<8x128xf32>
    %64 = vector.extract_strided_slice %49 {offsets = [0, 384], sizes = [8, 128], strides = [1, 1]} : vector<8x512xf32> to vector<8x128xf32>
    %65 = arith.negf %64 : vector<8x128xf32>
    %66 = math.exp %65 : vector<8x128xf32>
    %cst_32 = arith.constant 1.000000e+00 : f32
    %67 = vector.broadcast %cst_32 : f32 to vector<8x128xf32>
    %68 = arith.addf %67, %66 : vector<8x128xf32>
    %69 = arith.divf %67, %68 : vector<8x128xf32>
    %70 = arith.mulf %61, %16 : vector<8x128xf32>
    %71 = arith.mulf %55, %63 : vector<8x128xf32>
    %72 = arith.addf %70, %71 : vector<8x128xf32>
    %73 = math.tanh %72 : vector<8x128xf32>
    %74 = arith.mulf %69, %73 : vector<8x128xf32>
    %c0_33 = arith.constant 0 : index
    %c0_34 = arith.constant 0 : index
    %75 = vector.load %arg21[%c0_33, %c0_34] : memref<64x256xf32, #tpu.memory_space<vmem>>, vector<8x128xf32>
    tpu.vector_store %arg21[%c0_33, %c0_34], %45 {strides = array<i32>} : memref<64x256xf32, #tpu.memory_space<vmem>>, vector<8x128xf32>,
    %c56_35 = arith.constant 56 : index
    %c128 = arith.constant 128 : index
    %76 = vector.load %arg21[%c56_35, %c128] : memref<64x256xf32, #tpu.memory_space<vmem>>, vector<8x128xf32>
    tpu.vector_store %arg21[%c56_35, %c128], %74 {strides = array<i32>} : memref<64x256xf32, #tpu.memory_space<vmem>>, vector<8x128xf32>,
    %c8 = arith.constant 8 : index
    %c0_36 = arith.constant 0 : index
    %77 = vector.load %arg19[%c8, %c0_36] : memref<64x512xf32, #tpu.memory_space<vmem>>, vector<8x512xf32>
    %c0_37 = arith.constant 0 : index
    %c0_38 = arith.constant 0 : index
    %78 = vector.load %arg3[%c0_37, %c0_38] : memref<128x512xf32, #tpu.memory_space<vmem>>, vector<128x512xf32>
    %cst_39 = arith.constant dense<0.000000e+00> : vector<8x512xf32>
    %79 = tpu.matmul %45, %78, %cst_39 {dimension_numbers = #tpu.dot_dimension_numbers<[1], [0], [0], [1], [0, 0, 1, 1], [], []>} : vector<8x128xf32>, vector<128x512xf32>, vector<8x512xf32> -> vector<8x512xf32>
    %80 = arith.addf %77, %79 : vector<8x512xf32>
    %81 = vector.extract_strided_slice %80 {offsets = [0, 0], sizes = [8, 128], strides = [1, 1]} : vector<8x512xf32> to vector<8x128xf32>
    %82 = arith.negf %81 : vector<8x128xf32>
    %83 = math.exp %82 : vector<8x128xf32>
    %cst_40 = arith.constant 1.000000e+00 : f32
    %84 = vector.broadcast %cst_40 : f32 to vector<8x128xf32>
    %85 = arith.addf %84, %83 : vector<8x128xf32>
    %86 = arith.divf %84, %85 : vector<8x128xf32>
    %87 = vector.extract_strided_slice %80 {offsets = [0, 128], sizes = [8, 128], strides = [1, 1]} : vector<8x512xf32> to vector<8x128xf32>
    %88 = arith.negf %87 : vector<8x128xf32>
    %89 = math.exp %88 : vector<8x128xf32>
    %cst_41 = arith.constant 1.000000e+00 : f32
    %90 = vector.broadcast %cst_41 : f32 to vector<8x128xf32>
    %91 = arith.addf %90, %89 : vector<8x128xf32>
    %92 = arith.divf %90, %91 : vector<8x128xf32>
    %93 = vector.extract_strided_slice %80 {offsets = [0, 256], sizes = [8, 128], strides = [1, 1]} : vector<8x512xf32> to vector<8x128xf32>
    %94 = math.tanh %93 : vector<8x128xf32>
    %95 = vector.extract_strided_slice %80 {offsets = [0, 384], sizes = [8, 128], strides = [1, 1]} : vector<8x512xf32> to vector<8x128xf32>
    %96 = arith.negf %95 : vector<8x128xf32>
    %97 = math.exp %96 : vector<8x128xf32>
    %cst_42 = arith.constant 1.000000e+00 : f32
    %98 = vector.broadcast %cst_42 : f32 to vector<8x128xf32>
    %99 = arith.addf %98, %97 : vector<8x128xf32>
    %100 = arith.divf %98, %99 : vector<8x128xf32>
    %101 = arith.mulf %92, %43 : vector<8x128xf32>
    %102 = arith.mulf %86, %94 : vector<8x128xf32>
    %103 = arith.addf %101, %102 : vector<8x128xf32>
    %104 = math.tanh %103 : vector<8x128xf32>
    %105 = arith.mulf %100, %104 : vector<8x128xf32>
    %c48 = arith.constant 48 : index
    %c0_43 = arith.constant 0 : index
    %106 = vector.load %arg20[%c48, %c0_43] : memref<64x512xf32, #tpu.memory_space<vmem>>, vector<8x512xf32>
    %c0_44 = arith.constant 0 : index
    %c0_45 = arith.constant 0 : index
    %107 = vector.load %arg6[%c0_44, %c0_45] : memref<128x512xf32, #tpu.memory_space<vmem>>, vector<128x512xf32>
    %cst_46 = arith.constant dense<0.000000e+00> : vector<8x512xf32>
    %108 = tpu.matmul %74, %107, %cst_46 {dimension_numbers = #tpu.dot_dimension_numbers<[1], [0], [0], [1], [0, 0, 1, 1], [], []>} : vector<8x128xf32>, vector<128x512xf32>, vector<8x512xf32> -> vector<8x512xf32>
    %109 = arith.addf %106, %108 : vector<8x512xf32>
    %110 = vector.extract_strided_slice %109 {offsets = [0, 0], sizes = [8, 128], strides = [1, 1]} : vector<8x512xf32> to vector<8x128xf32>
    %111 = arith.negf %110 : vector<8x128xf32>
    %112 = math.exp %111 : vector<8x128xf32>
    %cst_47 = arith.constant 1.000000e+00 : f32
    %113 = vector.broadcast %cst_47 : f32 to vector<8x128xf32>
    %114 = arith.addf %113, %112 : vector<8x128xf32>
    %115 = arith.divf %113, %114 : vector<8x128xf32>
    %116 = vector.extract_strided_slice %109 {offsets = [0, 128], sizes = [8, 128], strides = [1, 1]} : vector<8x512xf32> to vector<8x128xf32>
    %117 = arith.negf %116 : vector<8x128xf32>
    %118 = math.exp %117 : vector<8x128xf32>
    %cst_48 = arith.constant 1.000000e+00 : f32
    %119 = vector.broadcast %cst_48 : f32 to vector<8x128xf32>
    %120 = arith.addf %119, %118 : vector<8x128xf32>
    %121 = arith.divf %119, %120 : vector<8x128xf32>
    %122 = vector.extract_strided_slice %109 {offsets = [0, 256], sizes = [8, 128], strides = [1, 1]} : vector<8x512xf32> to vector<8x128xf32>
    %123 = math.tanh %122 : vector<8x128xf32>
    %124 = vector.extract_strided_slice %109 {offsets = [0, 384], sizes = [8, 128], strides = [1, 1]} : vector<8x512xf32> to vector<8x128xf32>
    %125 = arith.negf %124 : vector<8x128xf32>
    %126 = math.exp %125 : vector<8x128xf32>
    %cst_49 = arith.constant 1.000000e+00 : f32
    %127 = vector.broadcast %cst_49 : f32 to vector<8x128xf32>
    %128 = arith.addf %127, %126 : vector<8x128xf32>
    %129 = arith.divf %127, %128 : vector<8x128xf32>
    %130 = arith.mulf %121, %72 : vector<8x128xf32>
    %131 = arith.mulf %115, %123 : vector<8x128xf32>
    %132 = arith.addf %130, %131 : vector<8x128xf32>
    %133 = math.tanh %132 : vector<8x128xf32>
    %134 = arith.mulf %129, %133 : vector<8x128xf32>
    %c8_50 = arith.constant 8 : index
    %c0_51 = arith.constant 0 : index
    %135 = vector.load %arg21[%c8_50, %c0_51] : memref<64x256xf32, #tpu.memory_space<vmem>>, vector<8x128xf32>
    tpu.vector_store %arg21[%c8_50, %c0_51], %105 {strides = array<i32>} : memref<64x256xf32, #tpu.memory_space<vmem>>, vector<8x128xf32>,
    %c48_52 = arith.constant 48 : index
    %c128_53 = arith.constant 128 : index
    %136 = vector.load %arg21[%c48_52, %c128_53] : memref<64x256xf32, #tpu.memory_space<vmem>>, vector<8x128xf32>
    tpu.vector_store %arg21[%c48_52, %c128_53], %134 {strides = array<i32>} : memref<64x256xf32, #tpu.memory_space<vmem>>, vector<8x128xf32>,
    %c16 = arith.constant 16 : index
    %c0_54 = arith.constant 0 : index
    %137 = vector.load %arg19[%c16, %c0_54] : memref<64x512xf32, #tpu.memory_space<vmem>>, vector<8x512xf32>
    %c0_55 = arith.constant 0 : index
    %c0_56 = arith.constant 0 : index
    %138 = vector.load %arg3[%c0_55, %c0_56] : memref<128x512xf32, #tpu.memory_space<vmem>>, vector<128x512xf32>
    %cst_57 = arith.constant dense<0.000000e+00> : vector<8x512xf32>
    %139 = tpu.matmul %105, %138, %cst_57 {dimension_numbers = #tpu.dot_dimension_numbers<[1], [0], [0], [1], [0, 0, 1, 1], [], []>} : vector<8x128xf32>, vector<128x512xf32>, vector<8x512xf32> -> vector<8x512xf32>
    %140 = arith.addf %137, %139 : vector<8x512xf32>
    %141 = vector.extract_strided_slice %140 {offsets = [0, 0], sizes = [8, 128], strides = [1, 1]} : vector<8x512xf32> to vector<8x128xf32>
    %142 = arith.negf %141 : vector<8x128xf32>
    %143 = math.exp %142 : vector<8x128xf32>
    %cst_58 = arith.constant 1.000000e+00 : f32
    %144 = vector.broadcast %cst_58 : f32 to vector<8x128xf32>
    %145 = arith.addf %144, %143 : vector<8x128xf32>
    %146 = arith.divf %144, %145 : vector<8x128xf32>
    %147 = vector.extract_strided_slice %140 {offsets = [0, 128], sizes = [8, 128], strides = [1, 1]} : vector<8x512xf32> to vector<8x128xf32>
    %148 = arith.negf %147 : vector<8x128xf32>
    %149 = math.exp %148 : vector<8x128xf32>
    %cst_59 = arith.constant 1.000000e+00 : f32
    %150 = vector.broadcast %cst_59 : f32 to vector<8x128xf32>
    %151 = arith.addf %150, %149 : vector<8x128xf32>
    %152 = arith.divf %150, %151 : vector<8x128xf32>
    %153 = vector.extract_strided_slice %140 {offsets = [0, 256], sizes = [8, 128], strides = [1, 1]} : vector<8x512xf32> to vector<8x128xf32>
    %154 = math.tanh %153 : vector<8x128xf32>
    %155 = vector.extract_strided_slice %140 {offsets = [0, 384], sizes = [8, 128], strides = [1, 1]} : vector<8x512xf32> to vector<8x128xf32>
    %156 = arith.negf %155 : vector<8x128xf32>
    %157 = math.exp %156 : vector<8x128xf32>
    %cst_60 = arith.constant 1.000000e+00 : f32
    %158 = vector.broadcast %cst_60 : f32 to vector<8x128xf32>
    %159 = arith.addf %158, %157 : vector<8x128xf32>
    %160 = arith.divf %158, %159 : vector<8x128xf32>
    %161 = arith.mulf %152, %103 : vector<8x128xf32>
    %162 = arith.mulf %146, %154 : vector<8x128xf32>
    %163 = arith.addf %161, %162 : vector<8x128xf32>
    %164 = math.tanh %163 : vector<8x128xf32>
    %165 = arith.mulf %160, %164 : vector<8x128xf32>
    %c40 = arith.constant 40 : index
    %c0_61 = arith.constant 0 : index
    %166 = vector.load %arg20[%c40, %c0_61] : memref<64x512xf32, #tpu.memory_space<vmem>>, vector<8x512xf32>
    %c0_62 = arith.constant 0 : index
    %c0_63 = arith.constant 0 : index
    %167 = vector.load %arg6[%c0_62, %c0_63] : memref<128x512xf32, #tpu.memory_space<vmem>>, vector<128x512xf32>
    %cst_64 = arith.constant dense<0.000000e+00> : vector<8x512xf32>
    %168 = tpu.matmul %134, %167, %cst_64 {dimension_numbers = #tpu.dot_dimension_numbers<[1], [0], [0], [1], [0, 0, 1, 1], [], []>} : vector<8x128xf32>, vector<128x512xf32>, vector<8x512xf32> -> vector<8x512xf32>
    %169 = arith.addf %166, %168 : vector<8x512xf32>
    %170 = vector.extract_strided_slice %169 {offsets = [0, 0], sizes = [8, 128], strides = [1, 1]} : vector<8x512xf32> to vector<8x128xf32>
    %171 = arith.negf %170 : vector<8x128xf32>
    %172 = math.exp %171 : vector<8x128xf32>
    %cst_65 = arith.constant 1.000000e+00 : f32
    %173 = vector.broadcast %cst_65 : f32 to vector<8x128xf32>
    %174 = arith.addf %173, %172 : vector<8x128xf32>
    %175 = arith.divf %173, %174 : vector<8x128xf32>
    %176 = vector.extract_strided_slice %169 {offsets = [0, 128], sizes = [8, 128], strides = [1, 1]} : vector<8x512xf32> to vector<8x128xf32>
    %177 = arith.negf %176 : vector<8x128xf32>
    %178 = math.exp %177 : vector<8x128xf32>
    %cst_66 = arith.constant 1.000000e+00 : f32
    %179 = vector.broadcast %cst_66 : f32 to vector<8x128xf32>
    %180 = arith.addf %179, %178 : vector<8x128xf32>
    %181 = arith.divf %179, %180 : vector<8x128xf32>
    %182 = vector.extract_strided_slice %169 {offsets = [0, 256], sizes = [8, 128], strides = [1, 1]} : vector<8x512xf32> to vector<8x128xf32>
    %183 = math.tanh %182 : vector<8x128xf32>
    %184 = vector.extract_strided_slice %169 {offsets = [0, 384], sizes = [8, 128], strides = [1, 1]} : vector<8x512xf32> to vector<8x128xf32>
    %185 = arith.negf %184 : vector<8x128xf32>
    %186 = math.exp %185 : vector<8x128xf32>
    %cst_67 = arith.constant 1.000000e+00 : f32
    %187 = vector.broadcast %cst_67 : f32 to vector<8x128xf32>
    %188 = arith.addf %187, %186 : vector<8x128xf32>
    %189 = arith.divf %187, %188 : vector<8x128xf32>
    %190 = arith.mulf %181, %132 : vector<8x128xf32>
    %191 = arith.mulf %175, %183 : vector<8x128xf32>
    %192 = arith.addf %190, %191 : vector<8x128xf32>
    %193 = math.tanh %192 : vector<8x128xf32>
    %194 = arith.mulf %189, %193 : vector<8x128xf32>
    %c16_68 = arith.constant 16 : index
    %c0_69 = arith.constant 0 : index
    %195 = vector.load %arg21[%c16_68, %c0_69] : memref<64x256xf32, #tpu.memory_space<vmem>>, vector<8x128xf32>
    tpu.vector_store %arg21[%c16_68, %c0_69], %165 {strides = array<i32>} : memref<64x256xf32, #tpu.memory_space<vmem>>, vector<8x128xf32>,
    %c40_70 = arith.constant 40 : index
    %c128_71 = arith.constant 128 : index
    %196 = vector.load %arg21[%c40_70, %c128_71] : memref<64x256xf32, #tpu.memory_space<vmem>>, vector<8x128xf32>
    tpu.vector_store %arg21[%c40_70, %c128_71], %194 {strides = array<i32>} : memref<64x256xf32, #tpu.memory_space<vmem>>, vector<8x128xf32>,
    %c24 = arith.constant 24 : index
    %c0_72 = arith.constant 0 : index
    %197 = vector.load %arg19[%c24, %c0_72] : memref<64x512xf32, #tpu.memory_space<vmem>>, vector<8x512xf32>
    %c0_73 = arith.constant 0 : index
    %c0_74 = arith.constant 0 : index
    %198 = vector.load %arg3[%c0_73, %c0_74] : memref<128x512xf32, #tpu.memory_space<vmem>>, vector<128x512xf32>
    %cst_75 = arith.constant dense<0.000000e+00> : vector<8x512xf32>
    %199 = tpu.matmul %165, %198, %cst_75 {dimension_numbers = #tpu.dot_dimension_numbers<[1], [0], [0], [1], [0, 0, 1, 1], [], []>} : vector<8x128xf32>, vector<128x512xf32>, vector<8x512xf32> -> vector<8x512xf32>
    %200 = arith.addf %197, %199 : vector<8x512xf32>
    %201 = vector.extract_strided_slice %200 {offsets = [0, 0], sizes = [8, 128], strides = [1, 1]} : vector<8x512xf32> to vector<8x128xf32>
    %202 = arith.negf %201 : vector<8x128xf32>
    %203 = math.exp %202 : vector<8x128xf32>
    %cst_76 = arith.constant 1.000000e+00 : f32
    %204 = vector.broadcast %cst_76 : f32 to vector<8x128xf32>
    %205 = arith.addf %204, %203 : vector<8x128xf32>
    %206 = arith.divf %204, %205 : vector<8x128xf32>
    %207 = vector.extract_strided_slice %200 {offsets = [0, 128], sizes = [8, 128], strides = [1, 1]} : vector<8x512xf32> to vector<8x128xf32>
    %208 = arith.negf %207 : vector<8x128xf32>
    %209 = math.exp %208 : vector<8x128xf32>
    %cst_77 = arith.constant 1.000000e+00 : f32
    %210 = vector.broadcast %cst_77 : f32 to vector<8x128xf32>
    %211 = arith.addf %210, %209 : vector<8x128xf32>
    %212 = arith.divf %210, %211 : vector<8x128xf32>
    %213 = vector.extract_strided_slice %200 {offsets = [0, 256], sizes = [8, 128], strides = [1, 1]} : vector<8x512xf32> to vector<8x128xf32>
    %214 = math.tanh %213 : vector<8x128xf32>
    %215 = vector.extract_strided_slice %200 {offsets = [0, 384], sizes = [8, 128], strides = [1, 1]} : vector<8x512xf32> to vector<8x128xf32>
    %216 = arith.negf %215 : vector<8x128xf32>
    %217 = math.exp %216 : vector<8x128xf32>
    %cst_78 = arith.constant 1.000000e+00 : f32
    %218 = vector.broadcast %cst_78 : f32 to vector<8x128xf32>
    %219 = arith.addf %218, %217 : vector<8x128xf32>
    %220 = arith.divf %218, %219 : vector<8x128xf32>
    %221 = arith.mulf %212, %163 : vector<8x128xf32>
    %222 = arith.mulf %206, %214 : vector<8x128xf32>
    %223 = arith.addf %221, %222 : vector<8x128xf32>
    %224 = math.tanh %223 : vector<8x128xf32>
    %225 = arith.mulf %220, %224 : vector<8x128xf32>
    %c32 = arith.constant 32 : index
    %c0_79 = arith.constant 0 : index
    %226 = vector.load %arg20[%c32, %c0_79] : memref<64x512xf32, #tpu.memory_space<vmem>>, vector<8x512xf32>
    %c0_80 = arith.constant 0 : index
    %c0_81 = arith.constant 0 : index
    %227 = vector.load %arg6[%c0_80, %c0_81] : memref<128x512xf32, #tpu.memory_space<vmem>>, vector<128x512xf32>
    %cst_82 = arith.constant dense<0.000000e+00> : vector<8x512xf32>
    %228 = tpu.matmul %194, %227, %cst_82 {dimension_numbers = #tpu.dot_dimension_numbers<[1], [0], [0], [1], [0, 0, 1, 1], [], []>} : vector<8x128xf32>, vector<128x512xf32>, vector<8x512xf32> -> vector<8x512xf32>
    %229 = arith.addf %226, %228 : vector<8x512xf32>
    %230 = vector.extract_strided_slice %229 {offsets = [0, 0], sizes = [8, 128], strides = [1, 1]} : vector<8x512xf32> to vector<8x128xf32>
    %231 = arith.negf %230 : vector<8x128xf32>
    %232 = math.exp %231 : vector<8x128xf32>
    %cst_83 = arith.constant 1.000000e+00 : f32
    %233 = vector.broadcast %cst_83 : f32 to vector<8x128xf32>
    %234 = arith.addf %233, %232 : vector<8x128xf32>
    %235 = arith.divf %233, %234 : vector<8x128xf32>
    %236 = vector.extract_strided_slice %229 {offsets = [0, 128], sizes = [8, 128], strides = [1, 1]} : vector<8x512xf32> to vector<8x128xf32>
    %237 = arith.negf %236 : vector<8x128xf32>
    %238 = math.exp %237 : vector<8x128xf32>
    %cst_84 = arith.constant 1.000000e+00 : f32
    %239 = vector.broadcast %cst_84 : f32 to vector<8x128xf32>
    %240 = arith.addf %239, %238 : vector<8x128xf32>
    %241 = arith.divf %239, %240 : vector<8x128xf32>
    %242 = vector.extract_strided_slice %229 {offsets = [0, 256], sizes = [8, 128], strides = [1, 1]} : vector<8x512xf32> to vector<8x128xf32>
    %243 = math.tanh %242 : vector<8x128xf32>
    %244 = vector.extract_strided_slice %229 {offsets = [0, 384], sizes = [8, 128], strides = [1, 1]} : vector<8x512xf32> to vector<8x128xf32>
    %245 = arith.negf %244 : vector<8x128xf32>
    %246 = math.exp %245 : vector<8x128xf32>
    %cst_85 = arith.constant 1.000000e+00 : f32
    %247 = vector.broadcast %cst_85 : f32 to vector<8x128xf32>
    %248 = arith.addf %247, %246 : vector<8x128xf32>
    %249 = arith.divf %247, %248 : vector<8x128xf32>
    %250 = arith.mulf %241, %192 : vector<8x128xf32>
    %251 = arith.mulf %235, %243 : vector<8x128xf32>
    %252 = arith.addf %250, %251 : vector<8x128xf32>
    %253 = math.tanh %252 : vector<8x128xf32>
    %254 = arith.mulf %249, %253 : vector<8x128xf32>
    %c24_86 = arith.constant 24 : index
    %c0_87 = arith.constant 0 : index
    %255 = vector.load %arg21[%c24_86, %c0_87] : memref<64x256xf32, #tpu.memory_space<vmem>>, vector<8x128xf32>
    tpu.vector_store %arg21[%c24_86, %c0_87], %225 {strides = array<i32>} : memref<64x256xf32, #tpu.memory_space<vmem>>, vector<8x128xf32>,
    %c32_88 = arith.constant 32 : index
    %c128_89 = arith.constant 128 : index
    %256 = vector.load %arg21[%c32_88, %c128_89] : memref<64x256xf32, #tpu.memory_space<vmem>>, vector<8x128xf32>
    tpu.vector_store %arg21[%c32_88, %c128_89], %254 {strides = array<i32>} : memref<64x256xf32, #tpu.memory_space<vmem>>, vector<8x128xf32>,
    %c32_90 = arith.constant 32 : index
    %c0_91 = arith.constant 0 : index
    %257 = vector.load %arg19[%c32_90, %c0_91] : memref<64x512xf32, #tpu.memory_space<vmem>>, vector<8x512xf32>
    %c0_92 = arith.constant 0 : index
    %c0_93 = arith.constant 0 : index
    %258 = vector.load %arg3[%c0_92, %c0_93] : memref<128x512xf32, #tpu.memory_space<vmem>>, vector<128x512xf32>
    %cst_94 = arith.constant dense<0.000000e+00> : vector<8x512xf32>
    %259 = tpu.matmul %225, %258, %cst_94 {dimension_numbers = #tpu.dot_dimension_numbers<[1], [0], [0], [1], [0, 0, 1, 1], [], []>} : vector<8x128xf32>, vector<128x512xf32>, vector<8x512xf32> -> vector<8x512xf32>
    %260 = arith.addf %257, %259 : vector<8x512xf32>
    %261 = vector.extract_strided_slice %260 {offsets = [0, 0], sizes = [8, 128], strides = [1, 1]} : vector<8x512xf32> to vector<8x128xf32>
    %262 = arith.negf %261 : vector<8x128xf32>
    %263 = math.exp %262 : vector<8x128xf32>
    %cst_95 = arith.constant 1.000000e+00 : f32
    %264 = vector.broadcast %cst_95 : f32 to vector<8x128xf32>
    %265 = arith.addf %264, %263 : vector<8x128xf32>
    %266 = arith.divf %264, %265 : vector<8x128xf32>
    %267 = vector.extract_strided_slice %260 {offsets = [0, 128], sizes = [8, 128], strides = [1, 1]} : vector<8x512xf32> to vector<8x128xf32>
    %268 = arith.negf %267 : vector<8x128xf32>
    %269 = math.exp %268 : vector<8x128xf32>
    %cst_96 = arith.constant 1.000000e+00 : f32
    %270 = vector.broadcast %cst_96 : f32 to vector<8x128xf32>
    %271 = arith.addf %270, %269 : vector<8x128xf32>
    %272 = arith.divf %270, %271 : vector<8x128xf32>
    %273 = vector.extract_strided_slice %260 {offsets = [0, 256], sizes = [8, 128], strides = [1, 1]} : vector<8x512xf32> to vector<8x128xf32>
    %274 = math.tanh %273 : vector<8x128xf32>
    %275 = vector.extract_strided_slice %260 {offsets = [0, 384], sizes = [8, 128], strides = [1, 1]} : vector<8x512xf32> to vector<8x128xf32>
    %276 = arith.negf %275 : vector<8x128xf32>
    %277 = math.exp %276 : vector<8x128xf32>
    %cst_97 = arith.constant 1.000000e+00 : f32
    %278 = vector.broadcast %cst_97 : f32 to vector<8x128xf32>
    %279 = arith.addf %278, %277 : vector<8x128xf32>
    %280 = arith.divf %278, %279 : vector<8x128xf32>
    %281 = arith.mulf %272, %223 : vector<8x128xf32>
    %282 = arith.mulf %266, %274 : vector<8x128xf32>
    %283 = arith.addf %281, %282 : vector<8x128xf32>
    %284 = math.tanh %283 : vector<8x128xf32>
    %285 = arith.mulf %280, %284 : vector<8x128xf32>
    %c24_98 = arith.constant 24 : index
    %c0_99 = arith.constant 0 : index
    %286 = vector.load %arg20[%c24_98, %c0_99] : memref<64x512xf32, #tpu.memory_space<vmem>>, vector<8x512xf32>
    %c0_100 = arith.constant 0 : index
    %c0_101 = arith.constant 0 : index
    %287 = vector.load %arg6[%c0_100, %c0_101] : memref<128x512xf32, #tpu.memory_space<vmem>>, vector<128x512xf32>
    %cst_102 = arith.constant dense<0.000000e+00> : vector<8x512xf32>
    %288 = tpu.matmul %254, %287, %cst_102 {dimension_numbers = #tpu.dot_dimension_numbers<[1], [0], [0], [1], [0, 0, 1, 1], [], []>} : vector<8x128xf32>, vector<128x512xf32>, vector<8x512xf32> -> vector<8x512xf32>
    %289 = arith.addf %286, %288 : vector<8x512xf32>
    %290 = vector.extract_strided_slice %289 {offsets = [0, 0], sizes = [8, 128], strides = [1, 1]} : vector<8x512xf32> to vector<8x128xf32>
    %291 = arith.negf %290 : vector<8x128xf32>
    %292 = math.exp %291 : vector<8x128xf32>
    %cst_103 = arith.constant 1.000000e+00 : f32
    %293 = vector.broadcast %cst_103 : f32 to vector<8x128xf32>
    %294 = arith.addf %293, %292 : vector<8x128xf32>
    %295 = arith.divf %293, %294 : vector<8x128xf32>
    %296 = vector.extract_strided_slice %289 {offsets = [0, 128], sizes = [8, 128], strides = [1, 1]} : vector<8x512xf32> to vector<8x128xf32>
    %297 = arith.negf %296 : vector<8x128xf32>
    %298 = math.exp %297 : vector<8x128xf32>
    %cst_104 = arith.constant 1.000000e+00 : f32
    %299 = vector.broadcast %cst_104 : f32 to vector<8x128xf32>
    %300 = arith.addf %299, %298 : vector<8x128xf32>
    %301 = arith.divf %299, %300 : vector<8x128xf32>
    %302 = vector.extract_strided_slice %289 {offsets = [0, 256], sizes = [8, 128], strides = [1, 1]} : vector<8x512xf32> to vector<8x128xf32>
    %303 = math.tanh %302 : vector<8x128xf32>
    %304 = vector.extract_strided_slice %289 {offsets = [0, 384], sizes = [8, 128], strides = [1, 1]} : vector<8x512xf32> to vector<8x128xf32>
    %305 = arith.negf %304 : vector<8x128xf32>
    %306 = math.exp %305 : vector<8x128xf32>
    %cst_105 = arith.constant 1.000000e+00 : f32
    %307 = vector.broadcast %cst_105 : f32 to vector<8x128xf32>
    %308 = arith.addf %307, %306 : vector<8x128xf32>
    %309 = arith.divf %307, %308 : vector<8x128xf32>
    %310 = arith.mulf %301, %252 : vector<8x128xf32>
    %311 = arith.mulf %295, %303 : vector<8x128xf32>
    %312 = arith.addf %310, %311 : vector<8x128xf32>
    %313 = math.tanh %312 : vector<8x128xf32>
    %314 = arith.mulf %309, %313 : vector<8x128xf32>
    %c32_106 = arith.constant 32 : index
    %c0_107 = arith.constant 0 : index
    %315 = vector.load %arg21[%c32_106, %c0_107] : memref<64x256xf32, #tpu.memory_space<vmem>>, vector<8x128xf32>
    tpu.vector_store %arg21[%c32_106, %c0_107], %285 {strides = array<i32>} : memref<64x256xf32, #tpu.memory_space<vmem>>, vector<8x128xf32>,
    %c24_108 = arith.constant 24 : index
    %c128_109 = arith.constant 128 : index
    %316 = vector.load %arg21[%c24_108, %c128_109] : memref<64x256xf32, #tpu.memory_space<vmem>>, vector<8x128xf32>
    tpu.vector_store %arg21[%c24_108, %c128_109], %314 {strides = array<i32>} : memref<64x256xf32, #tpu.memory_space<vmem>>, vector<8x128xf32>,
    %c40_110 = arith.constant 40 : index
    %c0_111 = arith.constant 0 : index
    %317 = vector.load %arg19[%c40_110, %c0_111] : memref<64x512xf32, #tpu.memory_space<vmem>>, vector<8x512xf32>
    %c0_112 = arith.constant 0 : index
    %c0_113 = arith.constant 0 : index
    %318 = vector.load %arg3[%c0_112, %c0_113] : memref<128x512xf32, #tpu.memory_space<vmem>>, vector<128x512xf32>
    %cst_114 = arith.constant dense<0.000000e+00> : vector<8x512xf32>
    %319 = tpu.matmul %285, %318, %cst_114 {dimension_numbers = #tpu.dot_dimension_numbers<[1], [0], [0], [1], [0, 0, 1, 1], [], []>} : vector<8x128xf32>, vector<128x512xf32>, vector<8x512xf32> -> vector<8x512xf32>
    %320 = arith.addf %317, %319 : vector<8x512xf32>
    %321 = vector.extract_strided_slice %320 {offsets = [0, 0], sizes = [8, 128], strides = [1, 1]} : vector<8x512xf32> to vector<8x128xf32>
    %322 = arith.negf %321 : vector<8x128xf32>
    %323 = math.exp %322 : vector<8x128xf32>
    %cst_115 = arith.constant 1.000000e+00 : f32
    %324 = vector.broadcast %cst_115 : f32 to vector<8x128xf32>
    %325 = arith.addf %324, %323 : vector<8x128xf32>
    %326 = arith.divf %324, %325 : vector<8x128xf32>
    %327 = vector.extract_strided_slice %320 {offsets = [0, 128], sizes = [8, 128], strides = [1, 1]} : vector<8x512xf32> to vector<8x128xf32>
    %328 = arith.negf %327 : vector<8x128xf32>
    %329 = math.exp %328 : vector<8x128xf32>
    %cst_116 = arith.constant 1.000000e+00 : f32
    %330 = vector.broadcast %cst_116 : f32 to vector<8x128xf32>
    %331 = arith.addf %330, %329 : vector<8x128xf32>
    %332 = arith.divf %330, %331 : vector<8x128xf32>
    %333 = vector.extract_strided_slice %320 {offsets = [0, 256], sizes = [8, 128], strides = [1, 1]} : vector<8x512xf32> to vector<8x128xf32>
    %334 = math.tanh %333 : vector<8x128xf32>
    %335 = vector.extract_strided_slice %320 {offsets = [0, 384], sizes = [8, 128], strides = [1, 1]} : vector<8x512xf32> to vector<8x128xf32>
    %336 = arith.negf %335 : vector<8x128xf32>
    %337 = math.exp %336 : vector<8x128xf32>
    %cst_117 = arith.constant 1.000000e+00 : f32
    %338 = vector.broadcast %cst_117 : f32 to vector<8x128xf32>
    %339 = arith.addf %338, %337 : vector<8x128xf32>
    %340 = arith.divf %338, %339 : vector<8x128xf32>
    %341 = arith.mulf %332, %283 : vector<8x128xf32>
    %342 = arith.mulf %326, %334 : vector<8x128xf32>
    %343 = arith.addf %341, %342 : vector<8x128xf32>
    %344 = math.tanh %343 : vector<8x128xf32>
    %345 = arith.mulf %340, %344 : vector<8x128xf32>
    %c16_118 = arith.constant 16 : index
    %c0_119 = arith.constant 0 : index
    %346 = vector.load %arg20[%c16_118, %c0_119] : memref<64x512xf32, #tpu.memory_space<vmem>>, vector<8x512xf32>
    %c0_120 = arith.constant 0 : index
    %c0_121 = arith.constant 0 : index
    %347 = vector.load %arg6[%c0_120, %c0_121] : memref<128x512xf32, #tpu.memory_space<vmem>>, vector<128x512xf32>
    %cst_122 = arith.constant dense<0.000000e+00> : vector<8x512xf32>
    %348 = tpu.matmul %314, %347, %cst_122 {dimension_numbers = #tpu.dot_dimension_numbers<[1], [0], [0], [1], [0, 0, 1, 1], [], []>} : vector<8x128xf32>, vector<128x512xf32>, vector<8x512xf32> -> vector<8x512xf32>
    %349 = arith.addf %346, %348 : vector<8x512xf32>
    %350 = vector.extract_strided_slice %349 {offsets = [0, 0], sizes = [8, 128], strides = [1, 1]} : vector<8x512xf32> to vector<8x128xf32>
    %351 = arith.negf %350 : vector<8x128xf32>
    %352 = math.exp %351 : vector<8x128xf32>
    %cst_123 = arith.constant 1.000000e+00 : f32
    %353 = vector.broadcast %cst_123 : f32 to vector<8x128xf32>
    %354 = arith.addf %353, %352 : vector<8x128xf32>
    %355 = arith.divf %353, %354 : vector<8x128xf32>
    %356 = vector.extract_strided_slice %349 {offsets = [0, 128], sizes = [8, 128], strides = [1, 1]} : vector<8x512xf32> to vector<8x128xf32>
    %357 = arith.negf %356 : vector<8x128xf32>
    %358 = math.exp %357 : vector<8x128xf32>
    %cst_124 = arith.constant 1.000000e+00 : f32
    %359 = vector.broadcast %cst_124 : f32 to vector<8x128xf32>
    %360 = arith.addf %359, %358 : vector<8x128xf32>
    %361 = arith.divf %359, %360 : vector<8x128xf32>
    %362 = vector.extract_strided_slice %349 {offsets = [0, 256], sizes = [8, 128], strides = [1, 1]} : vector<8x512xf32> to vector<8x128xf32>
    %363 = math.tanh %362 : vector<8x128xf32>
    %364 = vector.extract_strided_slice %349 {offsets = [0, 384], sizes = [8, 128], strides = [1, 1]} : vector<8x512xf32> to vector<8x128xf32>
    %365 = arith.negf %364 : vector<8x128xf32>
    %366 = math.exp %365 : vector<8x128xf32>
    %cst_125 = arith.constant 1.000000e+00 : f32
    %367 = vector.broadcast %cst_125 : f32 to vector<8x128xf32>
    %368 = arith.addf %367, %366 : vector<8x128xf32>
    %369 = arith.divf %367, %368 : vector<8x128xf32>
    %370 = arith.mulf %361, %312 : vector<8x128xf32>
    %371 = arith.mulf %355, %363 : vector<8x128xf32>
    %372 = arith.addf %370, %371 : vector<8x128xf32>
    %373 = math.tanh %372 : vector<8x128xf32>
    %374 = arith.mulf %369, %373 : vector<8x128xf32>
    %c40_126 = arith.constant 40 : index
    %c0_127 = arith.constant 0 : index
    %375 = vector.load %arg21[%c40_126, %c0_127] : memref<64x256xf32, #tpu.memory_space<vmem>>, vector<8x128xf32>
    tpu.vector_store %arg21[%c40_126, %c0_127], %345 {strides = array<i32>} : memref<64x256xf32, #tpu.memory_space<vmem>>, vector<8x128xf32>,
    %c16_128 = arith.constant 16 : index
    %c128_129 = arith.constant 128 : index
    %376 = vector.load %arg21[%c16_128, %c128_129] : memref<64x256xf32, #tpu.memory_space<vmem>>, vector<8x128xf32>
    tpu.vector_store %arg21[%c16_128, %c128_129], %374 {strides = array<i32>} : memref<64x256xf32, #tpu.memory_space<vmem>>, vector<8x128xf32>,
    %c48_130 = arith.constant 48 : index
    %c0_131 = arith.constant 0 : index
    %377 = vector.load %arg19[%c48_130, %c0_131] : memref<64x512xf32, #tpu.memory_space<vmem>>, vector<8x512xf32>
    %c0_132 = arith.constant 0 : index
    %c0_133 = arith.constant 0 : index
    %378 = vector.load %arg3[%c0_132, %c0_133] : memref<128x512xf32, #tpu.memory_space<vmem>>, vector<128x512xf32>
    %cst_134 = arith.constant dense<0.000000e+00> : vector<8x512xf32>
    %379 = tpu.matmul %345, %378, %cst_134 {dimension_numbers = #tpu.dot_dimension_numbers<[1], [0], [0], [1], [0, 0, 1, 1], [], []>} : vector<8x128xf32>, vector<128x512xf32>, vector<8x512xf32> -> vector<8x512xf32>
    %380 = arith.addf %377, %379 : vector<8x512xf32>
    %381 = vector.extract_strided_slice %380 {offsets = [0, 0], sizes = [8, 128], strides = [1, 1]} : vector<8x512xf32> to vector<8x128xf32>
    %382 = arith.negf %381 : vector<8x128xf32>
    %383 = math.exp %382 : vector<8x128xf32>
    %cst_135 = arith.constant 1.000000e+00 : f32
    %384 = vector.broadcast %cst_135 : f32 to vector<8x128xf32>
    %385 = arith.addf %384, %383 : vector<8x128xf32>
    %386 = arith.divf %384, %385 : vector<8x128xf32>
    %387 = vector.extract_strided_slice %380 {offsets = [0, 128], sizes = [8, 128], strides = [1, 1]} : vector<8x512xf32> to vector<8x128xf32>
    %388 = arith.negf %387 : vector<8x128xf32>
    %389 = math.exp %388 : vector<8x128xf32>
    %cst_136 = arith.constant 1.000000e+00 : f32
    %390 = vector.broadcast %cst_136 : f32 to vector<8x128xf32>
    %391 = arith.addf %390, %389 : vector<8x128xf32>
    %392 = arith.divf %390, %391 : vector<8x128xf32>
    %393 = vector.extract_strided_slice %380 {offsets = [0, 256], sizes = [8, 128], strides = [1, 1]} : vector<8x512xf32> to vector<8x128xf32>
    %394 = math.tanh %393 : vector<8x128xf32>
    %395 = vector.extract_strided_slice %380 {offsets = [0, 384], sizes = [8, 128], strides = [1, 1]} : vector<8x512xf32> to vector<8x128xf32>
    %396 = arith.negf %395 : vector<8x128xf32>
    %397 = math.exp %396 : vector<8x128xf32>
    %cst_137 = arith.constant 1.000000e+00 : f32
    %398 = vector.broadcast %cst_137 : f32 to vector<8x128xf32>
    %399 = arith.addf %398, %397 : vector<8x128xf32>
    %400 = arith.divf %398, %399 : vector<8x128xf32>
    %401 = arith.mulf %392, %343 : vector<8x128xf32>
    %402 = arith.mulf %386, %394 : vector<8x128xf32>
    %403 = arith.addf %401, %402 : vector<8x128xf32>
    %404 = math.tanh %403 : vector<8x128xf32>
    %405 = arith.mulf %400, %404 : vector<8x128xf32>
    %c8_138 = arith.constant 8 : index
    %c0_139 = arith.constant 0 : index
    %406 = vector.load %arg20[%c8_138, %c0_139] : memref<64x512xf32, #tpu.memory_space<vmem>>, vector<8x512xf32>
    %c0_140 = arith.constant 0 : index
    %c0_141 = arith.constant 0 : index
    %407 = vector.load %arg6[%c0_140, %c0_141] : memref<128x512xf32, #tpu.memory_space<vmem>>, vector<128x512xf32>
    %cst_142 = arith.constant dense<0.000000e+00> : vector<8x512xf32>
    %408 = tpu.matmul %374, %407, %cst_142 {dimension_numbers = #tpu.dot_dimension_numbers<[1], [0], [0], [1], [0, 0, 1, 1], [], []>} : vector<8x128xf32>, vector<128x512xf32>, vector<8x512xf32> -> vector<8x512xf32>
    %409 = arith.addf %406, %408 : vector<8x512xf32>
    %410 = vector.extract_strided_slice %409 {offsets = [0, 0], sizes = [8, 128], strides = [1, 1]} : vector<8x512xf32> to vector<8x128xf32>
    %411 = arith.negf %410 : vector<8x128xf32>
    %412 = math.exp %411 : vector<8x128xf32>
    %cst_143 = arith.constant 1.000000e+00 : f32
    %413 = vector.broadcast %cst_143 : f32 to vector<8x128xf32>
    %414 = arith.addf %413, %412 : vector<8x128xf32>
    %415 = arith.divf %413, %414 : vector<8x128xf32>
    %416 = vector.extract_strided_slice %409 {offsets = [0, 128], sizes = [8, 128], strides = [1, 1]} : vector<8x512xf32> to vector<8x128xf32>
    %417 = arith.negf %416 : vector<8x128xf32>
    %418 = math.exp %417 : vector<8x128xf32>
    %cst_144 = arith.constant 1.000000e+00 : f32
    %419 = vector.broadcast %cst_144 : f32 to vector<8x128xf32>
    %420 = arith.addf %419, %418 : vector<8x128xf32>
    %421 = arith.divf %419, %420 : vector<8x128xf32>
    %422 = vector.extract_strided_slice %409 {offsets = [0, 256], sizes = [8, 128], strides = [1, 1]} : vector<8x512xf32> to vector<8x128xf32>
    %423 = math.tanh %422 : vector<8x128xf32>
    %424 = vector.extract_strided_slice %409 {offsets = [0, 384], sizes = [8, 128], strides = [1, 1]} : vector<8x512xf32> to vector<8x128xf32>
    %425 = arith.negf %424 : vector<8x128xf32>
    %426 = math.exp %425 : vector<8x128xf32>
    %cst_145 = arith.constant 1.000000e+00 : f32
    %427 = vector.broadcast %cst_145 : f32 to vector<8x128xf32>
    %428 = arith.addf %427, %426 : vector<8x128xf32>
    %429 = arith.divf %427, %428 : vector<8x128xf32>
    %430 = arith.mulf %421, %372 : vector<8x128xf32>
    %431 = arith.mulf %415, %423 : vector<8x128xf32>
    %432 = arith.addf %430, %431 : vector<8x128xf32>
    %433 = math.tanh %432 : vector<8x128xf32>
    %434 = arith.mulf %429, %433 : vector<8x128xf32>
    %c48_146 = arith.constant 48 : index
    %c0_147 = arith.constant 0 : index
    %435 = vector.load %arg21[%c48_146, %c0_147] : memref<64x256xf32, #tpu.memory_space<vmem>>, vector<8x128xf32>
    tpu.vector_store %arg21[%c48_146, %c0_147], %405 {strides = array<i32>} : memref<64x256xf32, #tpu.memory_space<vmem>>, vector<8x128xf32>,
    %c8_148 = arith.constant 8 : index
    %c128_149 = arith.constant 128 : index
    %436 = vector.load %arg21[%c8_148, %c128_149] : memref<64x256xf32, #tpu.memory_space<vmem>>, vector<8x128xf32>
    tpu.vector_store %arg21[%c8_148, %c128_149], %434 {strides = array<i32>} : memref<64x256xf32, #tpu.memory_space<vmem>>, vector<8x128xf32>,
    %c56_150 = arith.constant 56 : index
    %c0_151 = arith.constant 0 : index
    %437 = vector.load %arg19[%c56_150, %c0_151] : memref<64x512xf32, #tpu.memory_space<vmem>>, vector<8x512xf32>
    %c0_152 = arith.constant 0 : index
    %c0_153 = arith.constant 0 : index
    %438 = vector.load %arg3[%c0_152, %c0_153] : memref<128x512xf32, #tpu.memory_space<vmem>>, vector<128x512xf32>
    %cst_154 = arith.constant dense<0.000000e+00> : vector<8x512xf32>
    %439 = tpu.matmul %405, %438, %cst_154 {dimension_numbers = #tpu.dot_dimension_numbers<[1], [0], [0], [1], [0, 0, 1, 1], [], []>} : vector<8x128xf32>, vector<128x512xf32>, vector<8x512xf32> -> vector<8x512xf32>
    %440 = arith.addf %437, %439 : vector<8x512xf32>
    %441 = vector.extract_strided_slice %440 {offsets = [0, 0], sizes = [8, 128], strides = [1, 1]} : vector<8x512xf32> to vector<8x128xf32>
    %442 = arith.negf %441 : vector<8x128xf32>
    %443 = math.exp %442 : vector<8x128xf32>
    %cst_155 = arith.constant 1.000000e+00 : f32
    %444 = vector.broadcast %cst_155 : f32 to vector<8x128xf32>
    %445 = arith.addf %444, %443 : vector<8x128xf32>
    %446 = arith.divf %444, %445 : vector<8x128xf32>
    %447 = vector.extract_strided_slice %440 {offsets = [0, 128], sizes = [8, 128], strides = [1, 1]} : vector<8x512xf32> to vector<8x128xf32>
    %448 = arith.negf %447 : vector<8x128xf32>
    %449 = math.exp %448 : vector<8x128xf32>
    %cst_156 = arith.constant 1.000000e+00 : f32
    %450 = vector.broadcast %cst_156 : f32 to vector<8x128xf32>
    %451 = arith.addf %450, %449 : vector<8x128xf32>
    %452 = arith.divf %450, %451 : vector<8x128xf32>
    %453 = vector.extract_strided_slice %440 {offsets = [0, 256], sizes = [8, 128], strides = [1, 1]} : vector<8x512xf32> to vector<8x128xf32>
    %454 = math.tanh %453 : vector<8x128xf32>
    %455 = vector.extract_strided_slice %440 {offsets = [0, 384], sizes = [8, 128], strides = [1, 1]} : vector<8x512xf32> to vector<8x128xf32>
    %456 = arith.negf %455 : vector<8x128xf32>
    %457 = math.exp %456 : vector<8x128xf32>
    %cst_157 = arith.constant 1.000000e+00 : f32
    %458 = vector.broadcast %cst_157 : f32 to vector<8x128xf32>
    %459 = arith.addf %458, %457 : vector<8x128xf32>
    %460 = arith.divf %458, %459 : vector<8x128xf32>
    %461 = arith.mulf %452, %403 : vector<8x128xf32>
    %462 = arith.mulf %446, %454 : vector<8x128xf32>
    %463 = arith.addf %461, %462 : vector<8x128xf32>
    %464 = math.tanh %463 : vector<8x128xf32>
    %465 = arith.mulf %460, %464 : vector<8x128xf32>
    %c0_158 = arith.constant 0 : index
    %c0_159 = arith.constant 0 : index
    %466 = vector.load %arg20[%c0_158, %c0_159] : memref<64x512xf32, #tpu.memory_space<vmem>>, vector<8x512xf32>
    %c0_160 = arith.constant 0 : index
    %c0_161 = arith.constant 0 : index
    %467 = vector.load %arg6[%c0_160, %c0_161] : memref<128x512xf32, #tpu.memory_space<vmem>>, vector<128x512xf32>
    %cst_162 = arith.constant dense<0.000000e+00> : vector<8x512xf32>
    %468 = tpu.matmul %434, %467, %cst_162 {dimension_numbers = #tpu.dot_dimension_numbers<[1], [0], [0], [1], [0, 0, 1, 1], [], []>} : vector<8x128xf32>, vector<128x512xf32>, vector<8x512xf32> -> vector<8x512xf32>
    %469 = arith.addf %466, %468 : vector<8x512xf32>
    %470 = vector.extract_strided_slice %469 {offsets = [0, 0], sizes = [8, 128], strides = [1, 1]} : vector<8x512xf32> to vector<8x128xf32>
    %471 = arith.negf %470 : vector<8x128xf32>
    %472 = math.exp %471 : vector<8x128xf32>
    %cst_163 = arith.constant 1.000000e+00 : f32
    %473 = vector.broadcast %cst_163 : f32 to vector<8x128xf32>
    %474 = arith.addf %473, %472 : vector<8x128xf32>
    %475 = arith.divf %473, %474 : vector<8x128xf32>
    %476 = vector.extract_strided_slice %469 {offsets = [0, 128], sizes = [8, 128], strides = [1, 1]} : vector<8x512xf32> to vector<8x128xf32>
    %477 = arith.negf %476 : vector<8x128xf32>
    %478 = math.exp %477 : vector<8x128xf32>
    %cst_164 = arith.constant 1.000000e+00 : f32
    %479 = vector.broadcast %cst_164 : f32 to vector<8x128xf32>
    %480 = arith.addf %479, %478 : vector<8x128xf32>
    %481 = arith.divf %479, %480 : vector<8x128xf32>
    %482 = vector.extract_strided_slice %469 {offsets = [0, 256], sizes = [8, 128], strides = [1, 1]} : vector<8x512xf32> to vector<8x128xf32>
    %483 = math.tanh %482 : vector<8x128xf32>
    %484 = vector.extract_strided_slice %469 {offsets = [0, 384], sizes = [8, 128], strides = [1, 1]} : vector<8x512xf32> to vector<8x128xf32>
    %485 = arith.negf %484 : vector<8x128xf32>
    %486 = math.exp %485 : vector<8x128xf32>
    %cst_165 = arith.constant 1.000000e+00 : f32
    %487 = vector.broadcast %cst_165 : f32 to vector<8x128xf32>
    %488 = arith.addf %487, %486 : vector<8x128xf32>
    %489 = arith.divf %487, %488 : vector<8x128xf32>
    %490 = arith.mulf %481, %432 : vector<8x128xf32>
    %491 = arith.mulf %475, %483 : vector<8x128xf32>
    %492 = arith.addf %490, %491 : vector<8x128xf32>
    %493 = math.tanh %492 : vector<8x128xf32>
    %494 = arith.mulf %489, %493 : vector<8x128xf32>
    %c56_166 = arith.constant 56 : index
    %c0_167 = arith.constant 0 : index
    %495 = vector.load %arg21[%c56_166, %c0_167] : memref<64x256xf32, #tpu.memory_space<vmem>>, vector<8x128xf32>
    tpu.vector_store %arg21[%c56_166, %c0_167], %465 {strides = array<i32>} : memref<64x256xf32, #tpu.memory_space<vmem>>, vector<8x128xf32>,
    %c0_168 = arith.constant 0 : index
    %c128_169 = arith.constant 128 : index
    %496 = vector.load %arg21[%c0_168, %c128_169] : memref<64x256xf32, #tpu.memory_space<vmem>>, vector<8x128xf32>
    tpu.vector_store %arg21[%c0_168, %c128_169], %494 {strides = array<i32>} : memref<64x256xf32, #tpu.memory_space<vmem>>, vector<8x128xf32>,
    %c0_170 = arith.constant 0 : index
    %c0_171 = arith.constant 0 : index
    %497 = vector.load %arg21[%c0_170, %c0_171] : memref<64x256xf32, #tpu.memory_space<vmem>>, vector<64x256xf32>
    %c0_172 = arith.constant 0 : index
    %c0_173 = arith.constant 0 : index
    %498 = vector.load %arg8[%c0_172, %c0_173] : memref<256x512xf32, #tpu.memory_space<vmem>>, vector<256x512xf32>
    %cst_174 = arith.constant dense<0.000000e+00> : vector<64x512xf32>
    %499 = tpu.matmul %497, %498, %cst_174 {dimension_numbers = #tpu.dot_dimension_numbers<[1], [0], [0], [1], [0, 0, 1, 1], [], []>} : vector<64x256xf32>, vector<256x512xf32>, vector<64x512xf32> -> vector<64x512xf32>
    %c0_175 = arith.constant 0 : index
    %c0_176 = arith.constant 0 : index
    %500 = vector.load %arg10[%c0_175, %c0_176] : memref<1x512xf32, #tpu.memory_space<vmem>>, vector<1x512xf32>
    %501 = vector.broadcast %500 : vector<1x512xf32> to vector<64x512xf32>
    %502 = arith.addf %499, %501 : vector<64x512xf32>
    %c0_177 = arith.constant 0 : index
    %c0_178 = arith.constant 0 : index
    %503 = vector.load %arg19[%c0_177, %c0_178] : memref<64x512xf32, #tpu.memory_space<vmem>>, vector<64x512xf32>
    tpu.vector_store %arg19[%c0_177, %c0_178], %502 {strides = array<i32>} : memref<64x512xf32, #tpu.memory_space<vmem>>, vector<64x512xf32>,
    %c0_179 = arith.constant 0 : index
    %c0_180 = arith.constant 0 : index
    %504 = vector.load %arg11[%c0_179, %c0_180] : memref<256x512xf32, #tpu.memory_space<vmem>>, vector<256x512xf32>
    %cst_181 = arith.constant dense<0.000000e+00> : vector<64x512xf32>
    %505 = tpu.matmul %497, %504, %cst_181 {dimension_numbers = #tpu.dot_dimension_numbers<[1], [0], [0], [1], [0, 0, 1, 1], [], []>} : vector<64x256xf32>, vector<256x512xf32>, vector<64x512xf32> -> vector<64x512xf32>
    %c0_182 = arith.constant 0 : index
    %c0_183 = arith.constant 0 : index
    %506 = vector.load %arg13[%c0_182, %c0_183] : memref<1x512xf32, #tpu.memory_space<vmem>>, vector<1x512xf32>
    %507 = vector.broadcast %506 : vector<1x512xf32> to vector<64x512xf32>
    %508 = arith.addf %505, %507 : vector<64x512xf32>
    %c0_184 = arith.constant 0 : index
    %c0_185 = arith.constant 0 : index
    %509 = vector.load %arg20[%c0_184, %c0_185] : memref<64x512xf32, #tpu.memory_space<vmem>>, vector<64x512xf32>
    tpu.vector_store %arg20[%c0_184, %c0_185], %508 {strides = array<i32>} : memref<64x512xf32, #tpu.memory_space<vmem>>, vector<64x512xf32>,
    %cst_186 = arith.constant 0.000000e+00 : f32
    %510 = vector.broadcast %cst_186 : f32 to vector<8x128xf32>
    %cst_187 = arith.constant 0.000000e+00 : f32
    %511 = vector.broadcast %cst_187 : f32 to vector<8x128xf32>
    %cst_188 = arith.constant 0.000000e+00 : f32
    %512 = vector.broadcast %cst_188 : f32 to vector<8x128xf32>
    %cst_189 = arith.constant 0.000000e+00 : f32
    %513 = vector.broadcast %cst_189 : f32 to vector<8x128xf32>
    %c0_190 = arith.constant 0 : index
    %c0_191 = arith.constant 0 : index
    %514 = vector.load %arg19[%c0_190, %c0_191] : memref<64x512xf32, #tpu.memory_space<vmem>>, vector<8x512xf32>
    %c0_192 = arith.constant 0 : index
    %c0_193 = arith.constant 0 : index
    %515 = vector.load %arg9[%c0_192, %c0_193] : memref<128x512xf32, #tpu.memory_space<vmem>>, vector<128x512xf32>
    %cst_194 = arith.constant dense<0.000000e+00> : vector<8x512xf32>
    %516 = tpu.matmul %510, %515, %cst_194 {dimension_numbers = #tpu.dot_dimension_numbers<[1], [0], [0], [1], [0, 0, 1, 1], [], []>} : vector<8x128xf32>, vector<128x512xf32>, vector<8x512xf32> -> vector<8x512xf32>
    %517 = arith.addf %514, %516 : vector<8x512xf32>
    %518 = vector.extract_strided_slice %517 {offsets = [0, 0], sizes = [8, 128], strides = [1, 1]} : vector<8x512xf32> to vector<8x128xf32>
    %519 = arith.negf %518 : vector<8x128xf32>
    %520 = math.exp %519 : vector<8x128xf32>
    %cst_195 = arith.constant 1.000000e+00 : f32
    %521 = vector.broadcast %cst_195 : f32 to vector<8x128xf32>
    %522 = arith.addf %521, %520 : vector<8x128xf32>
    %523 = arith.divf %521, %522 : vector<8x128xf32>
    %524 = vector.extract_strided_slice %517 {offsets = [0, 128], sizes = [8, 128], strides = [1, 1]} : vector<8x512xf32> to vector<8x128xf32>
    %525 = arith.negf %524 : vector<8x128xf32>
    %526 = math.exp %525 : vector<8x128xf32>
    %cst_196 = arith.constant 1.000000e+00 : f32
    %527 = vector.broadcast %cst_196 : f32 to vector<8x128xf32>
    %528 = arith.addf %527, %526 : vector<8x128xf32>
    %529 = arith.divf %527, %528 : vector<8x128xf32>
    %530 = vector.extract_strided_slice %517 {offsets = [0, 256], sizes = [8, 128], strides = [1, 1]} : vector<8x512xf32> to vector<8x128xf32>
    %531 = math.tanh %530 : vector<8x128xf32>
    %532 = vector.extract_strided_slice %517 {offsets = [0, 384], sizes = [8, 128], strides = [1, 1]} : vector<8x512xf32> to vector<8x128xf32>
    %533 = arith.negf %532 : vector<8x128xf32>
    %534 = math.exp %533 : vector<8x128xf32>
    %cst_197 = arith.constant 1.000000e+00 : f32
    %535 = vector.broadcast %cst_197 : f32 to vector<8x128xf32>
    %536 = arith.addf %535, %534 : vector<8x128xf32>
    %537 = arith.divf %535, %536 : vector<8x128xf32>
    %538 = arith.mulf %529, %511 : vector<8x128xf32>
    %539 = arith.mulf %523, %531 : vector<8x128xf32>
    %540 = arith.addf %538, %539 : vector<8x128xf32>
    %541 = math.tanh %540 : vector<8x128xf32>
    %542 = arith.mulf %537, %541 : vector<8x128xf32>
    %c56_198 = arith.constant 56 : index
    %c0_199 = arith.constant 0 : index
    %543 = vector.load %arg20[%c56_198, %c0_199] : memref<64x512xf32, #tpu.memory_space<vmem>>, vector<8x512xf32>
    %c0_200 = arith.constant 0 : index
    %c0_201 = arith.constant 0 : index
    %544 = vector.load %arg12[%c0_200, %c0_201] : memref<128x512xf32, #tpu.memory_space<vmem>>, vector<128x512xf32>
    %cst_202 = arith.constant dense<0.000000e+00> : vector<8x512xf32>
    %545 = tpu.matmul %512, %544, %cst_202 {dimension_numbers = #tpu.dot_dimension_numbers<[1], [0], [0], [1], [0, 0, 1, 1], [], []>} : vector<8x128xf32>, vector<128x512xf32>, vector<8x512xf32> -> vector<8x512xf32>
    %546 = arith.addf %543, %545 : vector<8x512xf32>
    %547 = vector.extract_strided_slice %546 {offsets = [0, 0], sizes = [8, 128], strides = [1, 1]} : vector<8x512xf32> to vector<8x128xf32>
    %548 = arith.negf %547 : vector<8x128xf32>
    %549 = math.exp %548 : vector<8x128xf32>
    %cst_203 = arith.constant 1.000000e+00 : f32
    %550 = vector.broadcast %cst_203 : f32 to vector<8x128xf32>
    %551 = arith.addf %550, %549 : vector<8x128xf32>
    %552 = arith.divf %550, %551 : vector<8x128xf32>
    %553 = vector.extract_strided_slice %546 {offsets = [0, 128], sizes = [8, 128], strides = [1, 1]} : vector<8x512xf32> to vector<8x128xf32>
    %554 = arith.negf %553 : vector<8x128xf32>
    %555 = math.exp %554 : vector<8x128xf32>
    %cst_204 = arith.constant 1.000000e+00 : f32
    %556 = vector.broadcast %cst_204 : f32 to vector<8x128xf32>
    %557 = arith.addf %556, %555 : vector<8x128xf32>
    %558 = arith.divf %556, %557 : vector<8x128xf32>
    %559 = vector.extract_strided_slice %546 {offsets = [0, 256], sizes = [8, 128], strides = [1, 1]} : vector<8x512xf32> to vector<8x128xf32>
    %560 = math.tanh %559 : vector<8x128xf32>
    %561 = vector.extract_strided_slice %546 {offsets = [0, 384], sizes = [8, 128], strides = [1, 1]} : vector<8x512xf32> to vector<8x128xf32>
    %562 = arith.negf %561 : vector<8x128xf32>
    %563 = math.exp %562 : vector<8x128xf32>
    %cst_205 = arith.constant 1.000000e+00 : f32
    %564 = vector.broadcast %cst_205 : f32 to vector<8x128xf32>
    %565 = arith.addf %564, %563 : vector<8x128xf32>
    %566 = arith.divf %564, %565 : vector<8x128xf32>
    %567 = arith.mulf %558, %513 : vector<8x128xf32>
    %568 = arith.mulf %552, %560 : vector<8x128xf32>
    %569 = arith.addf %567, %568 : vector<8x128xf32>
    %570 = math.tanh %569 : vector<8x128xf32>
    %571 = arith.mulf %566, %570 : vector<8x128xf32>
    %c0_206 = arith.constant 0 : index
    %c0_207 = arith.constant 0 : index
    %572 = vector.load %arg22[%c0_206, %c0_207] : memref<64x256xf32, #tpu.memory_space<vmem>>, vector<8x128xf32>
    tpu.vector_store %arg22[%c0_206, %c0_207], %542 {strides = array<i32>} : memref<64x256xf32, #tpu.memory_space<vmem>>, vector<8x128xf32>,
    %c56_208 = arith.constant 56 : index
    %c128_209 = arith.constant 128 : index
    %573 = vector.load %arg22[%c56_208, %c128_209] : memref<64x256xf32, #tpu.memory_space<vmem>>, vector<8x128xf32>
    tpu.vector_store %arg22[%c56_208, %c128_209], %571 {strides = array<i32>} : memref<64x256xf32, #tpu.memory_space<vmem>>, vector<8x128xf32>,
    %c8_210 = arith.constant 8 : index
    %c0_211 = arith.constant 0 : index
    %574 = vector.load %arg19[%c8_210, %c0_211] : memref<64x512xf32, #tpu.memory_space<vmem>>, vector<8x512xf32>
    %c0_212 = arith.constant 0 : index
    %c0_213 = arith.constant 0 : index
    %575 = vector.load %arg9[%c0_212, %c0_213] : memref<128x512xf32, #tpu.memory_space<vmem>>, vector<128x512xf32>
    %cst_214 = arith.constant dense<0.000000e+00> : vector<8x512xf32>
    %576 = tpu.matmul %542, %575, %cst_214 {dimension_numbers = #tpu.dot_dimension_numbers<[1], [0], [0], [1], [0, 0, 1, 1], [], []>} : vector<8x128xf32>, vector<128x512xf32>, vector<8x512xf32> -> vector<8x512xf32>
    %577 = arith.addf %574, %576 : vector<8x512xf32>
    %578 = vector.extract_strided_slice %577 {offsets = [0, 0], sizes = [8, 128], strides = [1, 1]} : vector<8x512xf32> to vector<8x128xf32>
    %579 = arith.negf %578 : vector<8x128xf32>
    %580 = math.exp %579 : vector<8x128xf32>
    %cst_215 = arith.constant 1.000000e+00 : f32
    %581 = vector.broadcast %cst_215 : f32 to vector<8x128xf32>
    %582 = arith.addf %581, %580 : vector<8x128xf32>
    %583 = arith.divf %581, %582 : vector<8x128xf32>
    %584 = vector.extract_strided_slice %577 {offsets = [0, 128], sizes = [8, 128], strides = [1, 1]} : vector<8x512xf32> to vector<8x128xf32>
    %585 = arith.negf %584 : vector<8x128xf32>
    %586 = math.exp %585 : vector<8x128xf32>
    %cst_216 = arith.constant 1.000000e+00 : f32
    %587 = vector.broadcast %cst_216 : f32 to vector<8x128xf32>
    %588 = arith.addf %587, %586 : vector<8x128xf32>
    %589 = arith.divf %587, %588 : vector<8x128xf32>
    %590 = vector.extract_strided_slice %577 {offsets = [0, 256], sizes = [8, 128], strides = [1, 1]} : vector<8x512xf32> to vector<8x128xf32>
    %591 = math.tanh %590 : vector<8x128xf32>
    %592 = vector.extract_strided_slice %577 {offsets = [0, 384], sizes = [8, 128], strides = [1, 1]} : vector<8x512xf32> to vector<8x128xf32>
    %593 = arith.negf %592 : vector<8x128xf32>
    %594 = math.exp %593 : vector<8x128xf32>
    %cst_217 = arith.constant 1.000000e+00 : f32
    %595 = vector.broadcast %cst_217 : f32 to vector<8x128xf32>
    %596 = arith.addf %595, %594 : vector<8x128xf32>
    %597 = arith.divf %595, %596 : vector<8x128xf32>
    %598 = arith.mulf %589, %540 : vector<8x128xf32>
    %599 = arith.mulf %583, %591 : vector<8x128xf32>
    %600 = arith.addf %598, %599 : vector<8x128xf32>
    %601 = math.tanh %600 : vector<8x128xf32>
    %602 = arith.mulf %597, %601 : vector<8x128xf32>
    %c48_218 = arith.constant 48 : index
    %c0_219 = arith.constant 0 : index
    %603 = vector.load %arg20[%c48_218, %c0_219] : memref<64x512xf32, #tpu.memory_space<vmem>>, vector<8x512xf32>
    %c0_220 = arith.constant 0 : index
    %c0_221 = arith.constant 0 : index
    %604 = vector.load %arg12[%c0_220, %c0_221] : memref<128x512xf32, #tpu.memory_space<vmem>>, vector<128x512xf32>
    %cst_222 = arith.constant dense<0.000000e+00> : vector<8x512xf32>
    %605 = tpu.matmul %571, %604, %cst_222 {dimension_numbers = #tpu.dot_dimension_numbers<[1], [0], [0], [1], [0, 0, 1, 1], [], []>} : vector<8x128xf32>, vector<128x512xf32>, vector<8x512xf32> -> vector<8x512xf32>
    %606 = arith.addf %603, %605 : vector<8x512xf32>
    %607 = vector.extract_strided_slice %606 {offsets = [0, 0], sizes = [8, 128], strides = [1, 1]} : vector<8x512xf32> to vector<8x128xf32>
    %608 = arith.negf %607 : vector<8x128xf32>
    %609 = math.exp %608 : vector<8x128xf32>
    %cst_223 = arith.constant 1.000000e+00 : f32
    %610 = vector.broadcast %cst_223 : f32 to vector<8x128xf32>
    %611 = arith.addf %610, %609 : vector<8x128xf32>
    %612 = arith.divf %610, %611 : vector<8x128xf32>
    %613 = vector.extract_strided_slice %606 {offsets = [0, 128], sizes = [8, 128], strides = [1, 1]} : vector<8x512xf32> to vector<8x128xf32>
    %614 = arith.negf %613 : vector<8x128xf32>
    %615 = math.exp %614 : vector<8x128xf32>
    %cst_224 = arith.constant 1.000000e+00 : f32
    %616 = vector.broadcast %cst_224 : f32 to vector<8x128xf32>
    %617 = arith.addf %616, %615 : vector<8x128xf32>
    %618 = arith.divf %616, %617 : vector<8x128xf32>
    %619 = vector.extract_strided_slice %606 {offsets = [0, 256], sizes = [8, 128], strides = [1, 1]} : vector<8x512xf32> to vector<8x128xf32>
    %620 = math.tanh %619 : vector<8x128xf32>
    %621 = vector.extract_strided_slice %606 {offsets = [0, 384], sizes = [8, 128], strides = [1, 1]} : vector<8x512xf32> to vector<8x128xf32>
    %622 = arith.negf %621 : vector<8x128xf32>
    %623 = math.exp %622 : vector<8x128xf32>
    %cst_225 = arith.constant 1.000000e+00 : f32
    %624 = vector.broadcast %cst_225 : f32 to vector<8x128xf32>
    %625 = arith.addf %624, %623 : vector<8x128xf32>
    %626 = arith.divf %624, %625 : vector<8x128xf32>
    %627 = arith.mulf %618, %569 : vector<8x128xf32>
    %628 = arith.mulf %612, %620 : vector<8x128xf32>
    %629 = arith.addf %627, %628 : vector<8x128xf32>
    %630 = math.tanh %629 : vector<8x128xf32>
    %631 = arith.mulf %626, %630 : vector<8x128xf32>
    %c8_226 = arith.constant 8 : index
    %c0_227 = arith.constant 0 : index
    %632 = vector.load %arg22[%c8_226, %c0_227] : memref<64x256xf32, #tpu.memory_space<vmem>>, vector<8x128xf32>
    tpu.vector_store %arg22[%c8_226, %c0_227], %602 {strides = array<i32>} : memref<64x256xf32, #tpu.memory_space<vmem>>, vector<8x128xf32>,
    %c48_228 = arith.constant 48 : index
    %c128_229 = arith.constant 128 : index
    %633 = vector.load %arg22[%c48_228, %c128_229] : memref<64x256xf32, #tpu.memory_space<vmem>>, vector<8x128xf32>
    tpu.vector_store %arg22[%c48_228, %c128_229], %631 {strides = array<i32>} : memref<64x256xf32, #tpu.memory_space<vmem>>, vector<8x128xf32>,
    %c16_230 = arith.constant 16 : index
    %c0_231 = arith.constant 0 : index
    %634 = vector.load %arg19[%c16_230, %c0_231] : memref<64x512xf32, #tpu.memory_space<vmem>>, vector<8x512xf32>
    %c0_232 = arith.constant 0 : index
    %c0_233 = arith.constant 0 : index
    %635 = vector.load %arg9[%c0_232, %c0_233] : memref<128x512xf32, #tpu.memory_space<vmem>>, vector<128x512xf32>
    %cst_234 = arith.constant dense<0.000000e+00> : vector<8x512xf32>
    %636 = tpu.matmul %602, %635, %cst_234 {dimension_numbers = #tpu.dot_dimension_numbers<[1], [0], [0], [1], [0, 0, 1, 1], [], []>} : vector<8x128xf32>, vector<128x512xf32>, vector<8x512xf32> -> vector<8x512xf32>
    %637 = arith.addf %634, %636 : vector<8x512xf32>
    %638 = vector.extract_strided_slice %637 {offsets = [0, 0], sizes = [8, 128], strides = [1, 1]} : vector<8x512xf32> to vector<8x128xf32>
    %639 = arith.negf %638 : vector<8x128xf32>
    %640 = math.exp %639 : vector<8x128xf32>
    %cst_235 = arith.constant 1.000000e+00 : f32
    %641 = vector.broadcast %cst_235 : f32 to vector<8x128xf32>
    %642 = arith.addf %641, %640 : vector<8x128xf32>
    %643 = arith.divf %641, %642 : vector<8x128xf32>
    %644 = vector.extract_strided_slice %637 {offsets = [0, 128], sizes = [8, 128], strides = [1, 1]} : vector<8x512xf32> to vector<8x128xf32>
    %645 = arith.negf %644 : vector<8x128xf32>
    %646 = math.exp %645 : vector<8x128xf32>
    %cst_236 = arith.constant 1.000000e+00 : f32
    %647 = vector.broadcast %cst_236 : f32 to vector<8x128xf32>
    %648 = arith.addf %647, %646 : vector<8x128xf32>
    %649 = arith.divf %647, %648 : vector<8x128xf32>
    %650 = vector.extract_strided_slice %637 {offsets = [0, 256], sizes = [8, 128], strides = [1, 1]} : vector<8x512xf32> to vector<8x128xf32>
    %651 = math.tanh %650 : vector<8x128xf32>
    %652 = vector.extract_strided_slice %637 {offsets = [0, 384], sizes = [8, 128], strides = [1, 1]} : vector<8x512xf32> to vector<8x128xf32>
    %653 = arith.negf %652 : vector<8x128xf32>
    %654 = math.exp %653 : vector<8x128xf32>
    %cst_237 = arith.constant 1.000000e+00 : f32
    %655 = vector.broadcast %cst_237 : f32 to vector<8x128xf32>
    %656 = arith.addf %655, %654 : vector<8x128xf32>
    %657 = arith.divf %655, %656 : vector<8x128xf32>
    %658 = arith.mulf %649, %600 : vector<8x128xf32>
    %659 = arith.mulf %643, %651 : vector<8x128xf32>
    %660 = arith.addf %658, %659 : vector<8x128xf32>
    %661 = math.tanh %660 : vector<8x128xf32>
    %662 = arith.mulf %657, %661 : vector<8x128xf32>
    %c40_238 = arith.constant 40 : index
    %c0_239 = arith.constant 0 : index
    %663 = vector.load %arg20[%c40_238, %c0_239] : memref<64x512xf32, #tpu.memory_space<vmem>>, vector<8x512xf32>
    %c0_240 = arith.constant 0 : index
    %c0_241 = arith.constant 0 : index
    %664 = vector.load %arg12[%c0_240, %c0_241] : memref<128x512xf32, #tpu.memory_space<vmem>>, vector<128x512xf32>
    %cst_242 = arith.constant dense<0.000000e+00> : vector<8x512xf32>
    %665 = tpu.matmul %631, %664, %cst_242 {dimension_numbers = #tpu.dot_dimension_numbers<[1], [0], [0], [1], [0, 0, 1, 1], [], []>} : vector<8x128xf32>, vector<128x512xf32>, vector<8x512xf32> -> vector<8x512xf32>
    %666 = arith.addf %663, %665 : vector<8x512xf32>
    %667 = vector.extract_strided_slice %666 {offsets = [0, 0], sizes = [8, 128], strides = [1, 1]} : vector<8x512xf32> to vector<8x128xf32>
    %668 = arith.negf %667 : vector<8x128xf32>
    %669 = math.exp %668 : vector<8x128xf32>
    %cst_243 = arith.constant 1.000000e+00 : f32
    %670 = vector.broadcast %cst_243 : f32 to vector<8x128xf32>
    %671 = arith.addf %670, %669 : vector<8x128xf32>
    %672 = arith.divf %670, %671 : vector<8x128xf32>
    %673 = vector.extract_strided_slice %666 {offsets = [0, 128], sizes = [8, 128], strides = [1, 1]} : vector<8x512xf32> to vector<8x128xf32>
    %674 = arith.negf %673 : vector<8x128xf32>
    %675 = math.exp %674 : vector<8x128xf32>
    %cst_244 = arith.constant 1.000000e+00 : f32
    %676 = vector.broadcast %cst_244 : f32 to vector<8x128xf32>
    %677 = arith.addf %676, %675 : vector<8x128xf32>
    %678 = arith.divf %676, %677 : vector<8x128xf32>
    %679 = vector.extract_strided_slice %666 {offsets = [0, 256], sizes = [8, 128], strides = [1, 1]} : vector<8x512xf32> to vector<8x128xf32>
    %680 = math.tanh %679 : vector<8x128xf32>
    %681 = vector.extract_strided_slice %666 {offsets = [0, 384], sizes = [8, 128], strides = [1, 1]} : vector<8x512xf32> to vector<8x128xf32>
    %682 = arith.negf %681 : vector<8x128xf32>
    %683 = math.exp %682 : vector<8x128xf32>
    %cst_245 = arith.constant 1.000000e+00 : f32
    %684 = vector.broadcast %cst_245 : f32 to vector<8x128xf32>
    %685 = arith.addf %684, %683 : vector<8x128xf32>
    %686 = arith.divf %684, %685 : vector<8x128xf32>
    %687 = arith.mulf %678, %629 : vector<8x128xf32>
    %688 = arith.mulf %672, %680 : vector<8x128xf32>
    %689 = arith.addf %687, %688 : vector<8x128xf32>
    %690 = math.tanh %689 : vector<8x128xf32>
    %691 = arith.mulf %686, %690 : vector<8x128xf32>
    %c16_246 = arith.constant 16 : index
    %c0_247 = arith.constant 0 : index
    %692 = vector.load %arg22[%c16_246, %c0_247] : memref<64x256xf32, #tpu.memory_space<vmem>>, vector<8x128xf32>
    tpu.vector_store %arg22[%c16_246, %c0_247], %662 {strides = array<i32>} : memref<64x256xf32, #tpu.memory_space<vmem>>, vector<8x128xf32>,
    %c40_248 = arith.constant 40 : index
    %c128_249 = arith.constant 128 : index
    %693 = vector.load %arg22[%c40_248, %c128_249] : memref<64x256xf32, #tpu.memory_space<vmem>>, vector<8x128xf32>
    tpu.vector_store %arg22[%c40_248, %c128_249], %691 {strides = array<i32>} : memref<64x256xf32, #tpu.memory_space<vmem>>, vector<8x128xf32>,
    %c24_250 = arith.constant 24 : index
    %c0_251 = arith.constant 0 : index
    %694 = vector.load %arg19[%c24_250, %c0_251] : memref<64x512xf32, #tpu.memory_space<vmem>>, vector<8x512xf32>
    %c0_252 = arith.constant 0 : index
    %c0_253 = arith.constant 0 : index
    %695 = vector.load %arg9[%c0_252, %c0_253] : memref<128x512xf32, #tpu.memory_space<vmem>>, vector<128x512xf32>
    %cst_254 = arith.constant dense<0.000000e+00> : vector<8x512xf32>
    %696 = tpu.matmul %662, %695, %cst_254 {dimension_numbers = #tpu.dot_dimension_numbers<[1], [0], [0], [1], [0, 0, 1, 1], [], []>} : vector<8x128xf32>, vector<128x512xf32>, vector<8x512xf32> -> vector<8x512xf32>
    %697 = arith.addf %694, %696 : vector<8x512xf32>
    %698 = vector.extract_strided_slice %697 {offsets = [0, 0], sizes = [8, 128], strides = [1, 1]} : vector<8x512xf32> to vector<8x128xf32>
    %699 = arith.negf %698 : vector<8x128xf32>
    %700 = math.exp %699 : vector<8x128xf32>
    %cst_255 = arith.constant 1.000000e+00 : f32
    %701 = vector.broadcast %cst_255 : f32 to vector<8x128xf32>
    %702 = arith.addf %701, %700 : vector<8x128xf32>
    %703 = arith.divf %701, %702 : vector<8x128xf32>
    %704 = vector.extract_strided_slice %697 {offsets = [0, 128], sizes = [8, 128], strides = [1, 1]} : vector<8x512xf32> to vector<8x128xf32>
    %705 = arith.negf %704 : vector<8x128xf32>
    %706 = math.exp %705 : vector<8x128xf32>
    %cst_256 = arith.constant 1.000000e+00 : f32
    %707 = vector.broadcast %cst_256 : f32 to vector<8x128xf32>
    %708 = arith.addf %707, %706 : vector<8x128xf32>
    %709 = arith.divf %707, %708 : vector<8x128xf32>
    %710 = vector.extract_strided_slice %697 {offsets = [0, 256], sizes = [8, 128], strides = [1, 1]} : vector<8x512xf32> to vector<8x128xf32>
    %711 = math.tanh %710 : vector<8x128xf32>
    %712 = vector.extract_strided_slice %697 {offsets = [0, 384], sizes = [8, 128], strides = [1, 1]} : vector<8x512xf32> to vector<8x128xf32>
    %713 = arith.negf %712 : vector<8x128xf32>
    %714 = math.exp %713 : vector<8x128xf32>
    %cst_257 = arith.constant 1.000000e+00 : f32
    %715 = vector.broadcast %cst_257 : f32 to vector<8x128xf32>
    %716 = arith.addf %715, %714 : vector<8x128xf32>
    %717 = arith.divf %715, %716 : vector<8x128xf32>
    %718 = arith.mulf %709, %660 : vector<8x128xf32>
    %719 = arith.mulf %703, %711 : vector<8x128xf32>
    %720 = arith.addf %718, %719 : vector<8x128xf32>
    %721 = math.tanh %720 : vector<8x128xf32>
    %722 = arith.mulf %717, %721 : vector<8x128xf32>
    %c32_258 = arith.constant 32 : index
    %c0_259 = arith.constant 0 : index
    %723 = vector.load %arg20[%c32_258, %c0_259] : memref<64x512xf32, #tpu.memory_space<vmem>>, vector<8x512xf32>
    %c0_260 = arith.constant 0 : index
    %c0_261 = arith.constant 0 : index
    %724 = vector.load %arg12[%c0_260, %c0_261] : memref<128x512xf32, #tpu.memory_space<vmem>>, vector<128x512xf32>
    %cst_262 = arith.constant dense<0.000000e+00> : vector<8x512xf32>
    %725 = tpu.matmul %691, %724, %cst_262 {dimension_numbers = #tpu.dot_dimension_numbers<[1], [0], [0], [1], [0, 0, 1, 1], [], []>} : vector<8x128xf32>, vector<128x512xf32>, vector<8x512xf32> -> vector<8x512xf32>
    %726 = arith.addf %723, %725 : vector<8x512xf32>
    %727 = vector.extract_strided_slice %726 {offsets = [0, 0], sizes = [8, 128], strides = [1, 1]} : vector<8x512xf32> to vector<8x128xf32>
    %728 = arith.negf %727 : vector<8x128xf32>
    %729 = math.exp %728 : vector<8x128xf32>
    %cst_263 = arith.constant 1.000000e+00 : f32
    %730 = vector.broadcast %cst_263 : f32 to vector<8x128xf32>
    %731 = arith.addf %730, %729 : vector<8x128xf32>
    %732 = arith.divf %730, %731 : vector<8x128xf32>
    %733 = vector.extract_strided_slice %726 {offsets = [0, 128], sizes = [8, 128], strides = [1, 1]} : vector<8x512xf32> to vector<8x128xf32>
    %734 = arith.negf %733 : vector<8x128xf32>
    %735 = math.exp %734 : vector<8x128xf32>
    %cst_264 = arith.constant 1.000000e+00 : f32
    %736 = vector.broadcast %cst_264 : f32 to vector<8x128xf32>
    %737 = arith.addf %736, %735 : vector<8x128xf32>
    %738 = arith.divf %736, %737 : vector<8x128xf32>
    %739 = vector.extract_strided_slice %726 {offsets = [0, 256], sizes = [8, 128], strides = [1, 1]} : vector<8x512xf32> to vector<8x128xf32>
    %740 = math.tanh %739 : vector<8x128xf32>
    %741 = vector.extract_strided_slice %726 {offsets = [0, 384], sizes = [8, 128], strides = [1, 1]} : vector<8x512xf32> to vector<8x128xf32>
    %742 = arith.negf %741 : vector<8x128xf32>
    %743 = math.exp %742 : vector<8x128xf32>
    %cst_265 = arith.constant 1.000000e+00 : f32
    %744 = vector.broadcast %cst_265 : f32 to vector<8x128xf32>
    %745 = arith.addf %744, %743 : vector<8x128xf32>
    %746 = arith.divf %744, %745 : vector<8x128xf32>
    %747 = arith.mulf %738, %689 : vector<8x128xf32>
    %748 = arith.mulf %732, %740 : vector<8x128xf32>
    %749 = arith.addf %747, %748 : vector<8x128xf32>
    %750 = math.tanh %749 : vector<8x128xf32>
    %751 = arith.mulf %746, %750 : vector<8x128xf32>
    %c24_266 = arith.constant 24 : index
    %c0_267 = arith.constant 0 : index
    %752 = vector.load %arg22[%c24_266, %c0_267] : memref<64x256xf32, #tpu.memory_space<vmem>>, vector<8x128xf32>
    tpu.vector_store %arg22[%c24_266, %c0_267], %722 {strides = array<i32>} : memref<64x256xf32, #tpu.memory_space<vmem>>, vector<8x128xf32>,
    %c32_268 = arith.constant 32 : index
    %c128_269 = arith.constant 128 : index
    %753 = vector.load %arg22[%c32_268, %c128_269] : memref<64x256xf32, #tpu.memory_space<vmem>>, vector<8x128xf32>
    tpu.vector_store %arg22[%c32_268, %c128_269], %751 {strides = array<i32>} : memref<64x256xf32, #tpu.memory_space<vmem>>, vector<8x128xf32>,
    %c32_270 = arith.constant 32 : index
    %c0_271 = arith.constant 0 : index
    %754 = vector.load %arg19[%c32_270, %c0_271] : memref<64x512xf32, #tpu.memory_space<vmem>>, vector<8x512xf32>
    %c0_272 = arith.constant 0 : index
    %c0_273 = arith.constant 0 : index
    %755 = vector.load %arg9[%c0_272, %c0_273] : memref<128x512xf32, #tpu.memory_space<vmem>>, vector<128x512xf32>
    %cst_274 = arith.constant dense<0.000000e+00> : vector<8x512xf32>
    %756 = tpu.matmul %722, %755, %cst_274 {dimension_numbers = #tpu.dot_dimension_numbers<[1], [0], [0], [1], [0, 0, 1, 1], [], []>} : vector<8x128xf32>, vector<128x512xf32>, vector<8x512xf32> -> vector<8x512xf32>
    %757 = arith.addf %754, %756 : vector<8x512xf32>
    %758 = vector.extract_strided_slice %757 {offsets = [0, 0], sizes = [8, 128], strides = [1, 1]} : vector<8x512xf32> to vector<8x128xf32>
    %759 = arith.negf %758 : vector<8x128xf32>
    %760 = math.exp %759 : vector<8x128xf32>
    %cst_275 = arith.constant 1.000000e+00 : f32
    %761 = vector.broadcast %cst_275 : f32 to vector<8x128xf32>
    %762 = arith.addf %761, %760 : vector<8x128xf32>
    %763 = arith.divf %761, %762 : vector<8x128xf32>
    %764 = vector.extract_strided_slice %757 {offsets = [0, 128], sizes = [8, 128], strides = [1, 1]} : vector<8x512xf32> to vector<8x128xf32>
    %765 = arith.negf %764 : vector<8x128xf32>
    %766 = math.exp %765 : vector<8x128xf32>
    %cst_276 = arith.constant 1.000000e+00 : f32
    %767 = vector.broadcast %cst_276 : f32 to vector<8x128xf32>
    %768 = arith.addf %767, %766 : vector<8x128xf32>
    %769 = arith.divf %767, %768 : vector<8x128xf32>
    %770 = vector.extract_strided_slice %757 {offsets = [0, 256], sizes = [8, 128], strides = [1, 1]} : vector<8x512xf32> to vector<8x128xf32>
    %771 = math.tanh %770 : vector<8x128xf32>
    %772 = vector.extract_strided_slice %757 {offsets = [0, 384], sizes = [8, 128], strides = [1, 1]} : vector<8x512xf32> to vector<8x128xf32>
    %773 = arith.negf %772 : vector<8x128xf32>
    %774 = math.exp %773 : vector<8x128xf32>
    %cst_277 = arith.constant 1.000000e+00 : f32
    %775 = vector.broadcast %cst_277 : f32 to vector<8x128xf32>
    %776 = arith.addf %775, %774 : vector<8x128xf32>
    %777 = arith.divf %775, %776 : vector<8x128xf32>
    %778 = arith.mulf %769, %720 : vector<8x128xf32>
    %779 = arith.mulf %763, %771 : vector<8x128xf32>
    %780 = arith.addf %778, %779 : vector<8x128xf32>
    %781 = math.tanh %780 : vector<8x128xf32>
    %782 = arith.mulf %777, %781 : vector<8x128xf32>
    %c24_278 = arith.constant 24 : index
    %c0_279 = arith.constant 0 : index
    %783 = vector.load %arg20[%c24_278, %c0_279] : memref<64x512xf32, #tpu.memory_space<vmem>>, vector<8x512xf32>
    %c0_280 = arith.constant 0 : index
    %c0_281 = arith.constant 0 : index
    %784 = vector.load %arg12[%c0_280, %c0_281] : memref<128x512xf32, #tpu.memory_space<vmem>>, vector<128x512xf32>
    %cst_282 = arith.constant dense<0.000000e+00> : vector<8x512xf32>
    %785 = tpu.matmul %751, %784, %cst_282 {dimension_numbers = #tpu.dot_dimension_numbers<[1], [0], [0], [1], [0, 0, 1, 1], [], []>} : vector<8x128xf32>, vector<128x512xf32>, vector<8x512xf32> -> vector<8x512xf32>
    %786 = arith.addf %783, %785 : vector<8x512xf32>
    %787 = vector.extract_strided_slice %786 {offsets = [0, 0], sizes = [8, 128], strides = [1, 1]} : vector<8x512xf32> to vector<8x128xf32>
    %788 = arith.negf %787 : vector<8x128xf32>
    %789 = math.exp %788 : vector<8x128xf32>
    %cst_283 = arith.constant 1.000000e+00 : f32
    %790 = vector.broadcast %cst_283 : f32 to vector<8x128xf32>
    %791 = arith.addf %790, %789 : vector<8x128xf32>
    %792 = arith.divf %790, %791 : vector<8x128xf32>
    %793 = vector.extract_strided_slice %786 {offsets = [0, 128], sizes = [8, 128], strides = [1, 1]} : vector<8x512xf32> to vector<8x128xf32>
    %794 = arith.negf %793 : vector<8x128xf32>
    %795 = math.exp %794 : vector<8x128xf32>
    %cst_284 = arith.constant 1.000000e+00 : f32
    %796 = vector.broadcast %cst_284 : f32 to vector<8x128xf32>
    %797 = arith.addf %796, %795 : vector<8x128xf32>
    %798 = arith.divf %796, %797 : vector<8x128xf32>
    %799 = vector.extract_strided_slice %786 {offsets = [0, 256], sizes = [8, 128], strides = [1, 1]} : vector<8x512xf32> to vector<8x128xf32>
    %800 = math.tanh %799 : vector<8x128xf32>
    %801 = vector.extract_strided_slice %786 {offsets = [0, 384], sizes = [8, 128], strides = [1, 1]} : vector<8x512xf32> to vector<8x128xf32>
    %802 = arith.negf %801 : vector<8x128xf32>
    %803 = math.exp %802 : vector<8x128xf32>
    %cst_285 = arith.constant 1.000000e+00 : f32
    %804 = vector.broadcast %cst_285 : f32 to vector<8x128xf32>
    %805 = arith.addf %804, %803 : vector<8x128xf32>
    %806 = arith.divf %804, %805 : vector<8x128xf32>
    %807 = arith.mulf %798, %749 : vector<8x128xf32>
    %808 = arith.mulf %792, %800 : vector<8x128xf32>
    %809 = arith.addf %807, %808 : vector<8x128xf32>
    %810 = math.tanh %809 : vector<8x128xf32>
    %811 = arith.mulf %806, %810 : vector<8x128xf32>
    %c32_286 = arith.constant 32 : index
    %c0_287 = arith.constant 0 : index
    %812 = vector.load %arg22[%c32_286, %c0_287] : memref<64x256xf32, #tpu.memory_space<vmem>>, vector<8x128xf32>
    tpu.vector_store %arg22[%c32_286, %c0_287], %782 {strides = array<i32>} : memref<64x256xf32, #tpu.memory_space<vmem>>, vector<8x128xf32>,
    %c24_288 = arith.constant 24 : index
    %c128_289 = arith.constant 128 : index
    %813 = vector.load %arg22[%c24_288, %c128_289] : memref<64x256xf32, #tpu.memory_space<vmem>>, vector<8x128xf32>
    tpu.vector_store %arg22[%c24_288, %c128_289], %811 {strides = array<i32>} : memref<64x256xf32, #tpu.memory_space<vmem>>, vector<8x128xf32>,
    %c40_290 = arith.constant 40 : index
    %c0_291 = arith.constant 0 : index
    %814 = vector.load %arg19[%c40_290, %c0_291] : memref<64x512xf32, #tpu.memory_space<vmem>>, vector<8x512xf32>
    %c0_292 = arith.constant 0 : index
    %c0_293 = arith.constant 0 : index
    %815 = vector.load %arg9[%c0_292, %c0_293] : memref<128x512xf32, #tpu.memory_space<vmem>>, vector<128x512xf32>
    %cst_294 = arith.constant dense<0.000000e+00> : vector<8x512xf32>
    %816 = tpu.matmul %782, %815, %cst_294 {dimension_numbers = #tpu.dot_dimension_numbers<[1], [0], [0], [1], [0, 0, 1, 1], [], []>} : vector<8x128xf32>, vector<128x512xf32>, vector<8x512xf32> -> vector<8x512xf32>
    %817 = arith.addf %814, %816 : vector<8x512xf32>
    %818 = vector.extract_strided_slice %817 {offsets = [0, 0], sizes = [8, 128], strides = [1, 1]} : vector<8x512xf32> to vector<8x128xf32>
    %819 = arith.negf %818 : vector<8x128xf32>
    %820 = math.exp %819 : vector<8x128xf32>
    %cst_295 = arith.constant 1.000000e+00 : f32
    %821 = vector.broadcast %cst_295 : f32 to vector<8x128xf32>
    %822 = arith.addf %821, %820 : vector<8x128xf32>
    %823 = arith.divf %821, %822 : vector<8x128xf32>
    %824 = vector.extract_strided_slice %817 {offsets = [0, 128], sizes = [8, 128], strides = [1, 1]} : vector<8x512xf32> to vector<8x128xf32>
    %825 = arith.negf %824 : vector<8x128xf32>
    %826 = math.exp %825 : vector<8x128xf32>
    %cst_296 = arith.constant 1.000000e+00 : f32
    %827 = vector.broadcast %cst_296 : f32 to vector<8x128xf32>
    %828 = arith.addf %827, %826 : vector<8x128xf32>
    %829 = arith.divf %827, %828 : vector<8x128xf32>
    %830 = vector.extract_strided_slice %817 {offsets = [0, 256], sizes = [8, 128], strides = [1, 1]} : vector<8x512xf32> to vector<8x128xf32>
    %831 = math.tanh %830 : vector<8x128xf32>
    %832 = vector.extract_strided_slice %817 {offsets = [0, 384], sizes = [8, 128], strides = [1, 1]} : vector<8x512xf32> to vector<8x128xf32>
    %833 = arith.negf %832 : vector<8x128xf32>
    %834 = math.exp %833 : vector<8x128xf32>
    %cst_297 = arith.constant 1.000000e+00 : f32
    %835 = vector.broadcast %cst_297 : f32 to vector<8x128xf32>
    %836 = arith.addf %835, %834 : vector<8x128xf32>
    %837 = arith.divf %835, %836 : vector<8x128xf32>
    %838 = arith.mulf %829, %780 : vector<8x128xf32>
    %839 = arith.mulf %823, %831 : vector<8x128xf32>
    %840 = arith.addf %838, %839 : vector<8x128xf32>
    %841 = math.tanh %840 : vector<8x128xf32>
    %842 = arith.mulf %837, %841 : vector<8x128xf32>
    %c16_298 = arith.constant 16 : index
    %c0_299 = arith.constant 0 : index
    %843 = vector.load %arg20[%c16_298, %c0_299] : memref<64x512xf32, #tpu.memory_space<vmem>>, vector<8x512xf32>
    %c0_300 = arith.constant 0 : index
    %c0_301 = arith.constant 0 : index
    %844 = vector.load %arg12[%c0_300, %c0_301] : memref<128x512xf32, #tpu.memory_space<vmem>>, vector<128x512xf32>
    %cst_302 = arith.constant dense<0.000000e+00> : vector<8x512xf32>
    %845 = tpu.matmul %811, %844, %cst_302 {dimension_numbers = #tpu.dot_dimension_numbers<[1], [0], [0], [1], [0, 0, 1, 1], [], []>} : vector<8x128xf32>, vector<128x512xf32>, vector<8x512xf32> -> vector<8x512xf32>
    %846 = arith.addf %843, %845 : vector<8x512xf32>
    %847 = vector.extract_strided_slice %846 {offsets = [0, 0], sizes = [8, 128], strides = [1, 1]} : vector<8x512xf32> to vector<8x128xf32>
    %848 = arith.negf %847 : vector<8x128xf32>
    %849 = math.exp %848 : vector<8x128xf32>
    %cst_303 = arith.constant 1.000000e+00 : f32
    %850 = vector.broadcast %cst_303 : f32 to vector<8x128xf32>
    %851 = arith.addf %850, %849 : vector<8x128xf32>
    %852 = arith.divf %850, %851 : vector<8x128xf32>
    %853 = vector.extract_strided_slice %846 {offsets = [0, 128], sizes = [8, 128], strides = [1, 1]} : vector<8x512xf32> to vector<8x128xf32>
    %854 = arith.negf %853 : vector<8x128xf32>
    %855 = math.exp %854 : vector<8x128xf32>
    %cst_304 = arith.constant 1.000000e+00 : f32
    %856 = vector.broadcast %cst_304 : f32 to vector<8x128xf32>
    %857 = arith.addf %856, %855 : vector<8x128xf32>
    %858 = arith.divf %856, %857 : vector<8x128xf32>
    %859 = vector.extract_strided_slice %846 {offsets = [0, 256], sizes = [8, 128], strides = [1, 1]} : vector<8x512xf32> to vector<8x128xf32>
    %860 = math.tanh %859 : vector<8x128xf32>
    %861 = vector.extract_strided_slice %846 {offsets = [0, 384], sizes = [8, 128], strides = [1, 1]} : vector<8x512xf32> to vector<8x128xf32>
    %862 = arith.negf %861 : vector<8x128xf32>
    %863 = math.exp %862 : vector<8x128xf32>
    %cst_305 = arith.constant 1.000000e+00 : f32
    %864 = vector.broadcast %cst_305 : f32 to vector<8x128xf32>
    %865 = arith.addf %864, %863 : vector<8x128xf32>
    %866 = arith.divf %864, %865 : vector<8x128xf32>
    %867 = arith.mulf %858, %809 : vector<8x128xf32>
    %868 = arith.mulf %852, %860 : vector<8x128xf32>
    %869 = arith.addf %867, %868 : vector<8x128xf32>
    %870 = math.tanh %869 : vector<8x128xf32>
    %871 = arith.mulf %866, %870 : vector<8x128xf32>
    %c40_306 = arith.constant 40 : index
    %c0_307 = arith.constant 0 : index
    %872 = vector.load %arg22[%c40_306, %c0_307] : memref<64x256xf32, #tpu.memory_space<vmem>>, vector<8x128xf32>
    tpu.vector_store %arg22[%c40_306, %c0_307], %842 {strides = array<i32>} : memref<64x256xf32, #tpu.memory_space<vmem>>, vector<8x128xf32>,
    %c16_308 = arith.constant 16 : index
    %c128_309 = arith.constant 128 : index
    %873 = vector.load %arg22[%c16_308, %c128_309] : memref<64x256xf32, #tpu.memory_space<vmem>>, vector<8x128xf32>
    tpu.vector_store %arg22[%c16_308, %c128_309], %871 {strides = array<i32>} : memref<64x256xf32, #tpu.memory_space<vmem>>, vector<8x128xf32>,
    %c48_310 = arith.constant 48 : index
    %c0_311 = arith.constant 0 : index
    %874 = vector.load %arg19[%c48_310, %c0_311] : memref<64x512xf32, #tpu.memory_space<vmem>>, vector<8x512xf32>
    %c0_312 = arith.constant 0 : index
    %c0_313 = arith.constant 0 : index
    %875 = vector.load %arg9[%c0_312, %c0_313] : memref<128x512xf32, #tpu.memory_space<vmem>>, vector<128x512xf32>
    %cst_314 = arith.constant dense<0.000000e+00> : vector<8x512xf32>
    %876 = tpu.matmul %842, %875, %cst_314 {dimension_numbers = #tpu.dot_dimension_numbers<[1], [0], [0], [1], [0, 0, 1, 1], [], []>} : vector<8x128xf32>, vector<128x512xf32>, vector<8x512xf32> -> vector<8x512xf32>
    %877 = arith.addf %874, %876 : vector<8x512xf32>
    %878 = vector.extract_strided_slice %877 {offsets = [0, 0], sizes = [8, 128], strides = [1, 1]} : vector<8x512xf32> to vector<8x128xf32>
    %879 = arith.negf %878 : vector<8x128xf32>
    %880 = math.exp %879 : vector<8x128xf32>
    %cst_315 = arith.constant 1.000000e+00 : f32
    %881 = vector.broadcast %cst_315 : f32 to vector<8x128xf32>
    %882 = arith.addf %881, %880 : vector<8x128xf32>
    %883 = arith.divf %881, %882 : vector<8x128xf32>
    %884 = vector.extract_strided_slice %877 {offsets = [0, 128], sizes = [8, 128], strides = [1, 1]} : vector<8x512xf32> to vector<8x128xf32>
    %885 = arith.negf %884 : vector<8x128xf32>
    %886 = math.exp %885 : vector<8x128xf32>
    %cst_316 = arith.constant 1.000000e+00 : f32
    %887 = vector.broadcast %cst_316 : f32 to vector<8x128xf32>
    %888 = arith.addf %887, %886 : vector<8x128xf32>
    %889 = arith.divf %887, %888 : vector<8x128xf32>
    %890 = vector.extract_strided_slice %877 {offsets = [0, 256], sizes = [8, 128], strides = [1, 1]} : vector<8x512xf32> to vector<8x128xf32>
    %891 = math.tanh %890 : vector<8x128xf32>
    %892 = vector.extract_strided_slice %877 {offsets = [0, 384], sizes = [8, 128], strides = [1, 1]} : vector<8x512xf32> to vector<8x128xf32>
    %893 = arith.negf %892 : vector<8x128xf32>
    %894 = math.exp %893 : vector<8x128xf32>
    %cst_317 = arith.constant 1.000000e+00 : f32
    %895 = vector.broadcast %cst_317 : f32 to vector<8x128xf32>
    %896 = arith.addf %895, %894 : vector<8x128xf32>
    %897 = arith.divf %895, %896 : vector<8x128xf32>
    %898 = arith.mulf %889, %840 : vector<8x128xf32>
    %899 = arith.mulf %883, %891 : vector<8x128xf32>
    %900 = arith.addf %898, %899 : vector<8x128xf32>
    %901 = math.tanh %900 : vector<8x128xf32>
    %902 = arith.mulf %897, %901 : vector<8x128xf32>
    %c8_318 = arith.constant 8 : index
    %c0_319 = arith.constant 0 : index
    %903 = vector.load %arg20[%c8_318, %c0_319] : memref<64x512xf32, #tpu.memory_space<vmem>>, vector<8x512xf32>
    %c0_320 = arith.constant 0 : index
    %c0_321 = arith.constant 0 : index
    %904 = vector.load %arg12[%c0_320, %c0_321] : memref<128x512xf32, #tpu.memory_space<vmem>>, vector<128x512xf32>
    %cst_322 = arith.constant dense<0.000000e+00> : vector<8x512xf32>
    %905 = tpu.matmul %871, %904, %cst_322 {dimension_numbers = #tpu.dot_dimension_numbers<[1], [0], [0], [1], [0, 0, 1, 1], [], []>} : vector<8x128xf32>, vector<128x512xf32>, vector<8x512xf32> -> vector<8x512xf32>
    %906 = arith.addf %903, %905 : vector<8x512xf32>
    %907 = vector.extract_strided_slice %906 {offsets = [0, 0], sizes = [8, 128], strides = [1, 1]} : vector<8x512xf32> to vector<8x128xf32>
    %908 = arith.negf %907 : vector<8x128xf32>
    %909 = math.exp %908 : vector<8x128xf32>
    %cst_323 = arith.constant 1.000000e+00 : f32
    %910 = vector.broadcast %cst_323 : f32 to vector<8x128xf32>
    %911 = arith.addf %910, %909 : vector<8x128xf32>
    %912 = arith.divf %910, %911 : vector<8x128xf32>
    %913 = vector.extract_strided_slice %906 {offsets = [0, 128], sizes = [8, 128], strides = [1, 1]} : vector<8x512xf32> to vector<8x128xf32>
    %914 = arith.negf %913 : vector<8x128xf32>
    %915 = math.exp %914 : vector<8x128xf32>
    %cst_324 = arith.constant 1.000000e+00 : f32
    %916 = vector.broadcast %cst_324 : f32 to vector<8x128xf32>
    %917 = arith.addf %916, %915 : vector<8x128xf32>
    %918 = arith.divf %916, %917 : vector<8x128xf32>
    %919 = vector.extract_strided_slice %906 {offsets = [0, 256], sizes = [8, 128], strides = [1, 1]} : vector<8x512xf32> to vector<8x128xf32>
    %920 = math.tanh %919 : vector<8x128xf32>
    %921 = vector.extract_strided_slice %906 {offsets = [0, 384], sizes = [8, 128], strides = [1, 1]} : vector<8x512xf32> to vector<8x128xf32>
    %922 = arith.negf %921 : vector<8x128xf32>
    %923 = math.exp %922 : vector<8x128xf32>
    %cst_325 = arith.constant 1.000000e+00 : f32
    %924 = vector.broadcast %cst_325 : f32 to vector<8x128xf32>
    %925 = arith.addf %924, %923 : vector<8x128xf32>
    %926 = arith.divf %924, %925 : vector<8x128xf32>
    %927 = arith.mulf %918, %869 : vector<8x128xf32>
    %928 = arith.mulf %912, %920 : vector<8x128xf32>
    %929 = arith.addf %927, %928 : vector<8x128xf32>
    %930 = math.tanh %929 : vector<8x128xf32>
    %931 = arith.mulf %926, %930 : vector<8x128xf32>
    %c48_326 = arith.constant 48 : index
    %c0_327 = arith.constant 0 : index
    %932 = vector.load %arg22[%c48_326, %c0_327] : memref<64x256xf32, #tpu.memory_space<vmem>>, vector<8x128xf32>
    tpu.vector_store %arg22[%c48_326, %c0_327], %902 {strides = array<i32>} : memref<64x256xf32, #tpu.memory_space<vmem>>, vector<8x128xf32>,
    %c8_328 = arith.constant 8 : index
    %c128_329 = arith.constant 128 : index
    %933 = vector.load %arg22[%c8_328, %c128_329] : memref<64x256xf32, #tpu.memory_space<vmem>>, vector<8x128xf32>
    tpu.vector_store %arg22[%c8_328, %c128_329], %931 {strides = array<i32>} : memref<64x256xf32, #tpu.memory_space<vmem>>, vector<8x128xf32>,
    %c56_330 = arith.constant 56 : index
    %c0_331 = arith.constant 0 : index
    %934 = vector.load %arg19[%c56_330, %c0_331] : memref<64x512xf32, #tpu.memory_space<vmem>>, vector<8x512xf32>
    %c0_332 = arith.constant 0 : index
    %c0_333 = arith.constant 0 : index
    %935 = vector.load %arg9[%c0_332, %c0_333] : memref<128x512xf32, #tpu.memory_space<vmem>>, vector<128x512xf32>
    %cst_334 = arith.constant dense<0.000000e+00> : vector<8x512xf32>
    %936 = tpu.matmul %902, %935, %cst_334 {dimension_numbers = #tpu.dot_dimension_numbers<[1], [0], [0], [1], [0, 0, 1, 1], [], []>} : vector<8x128xf32>, vector<128x512xf32>, vector<8x512xf32> -> vector<8x512xf32>
    %937 = arith.addf %934, %936 : vector<8x512xf32>
    %938 = vector.extract_strided_slice %937 {offsets = [0, 0], sizes = [8, 128], strides = [1, 1]} : vector<8x512xf32> to vector<8x128xf32>
    %939 = arith.negf %938 : vector<8x128xf32>
    %940 = math.exp %939 : vector<8x128xf32>
    %cst_335 = arith.constant 1.000000e+00 : f32
    %941 = vector.broadcast %cst_335 : f32 to vector<8x128xf32>
    %942 = arith.addf %941, %940 : vector<8x128xf32>
    %943 = arith.divf %941, %942 : vector<8x128xf32>
    %944 = vector.extract_strided_slice %937 {offsets = [0, 128], sizes = [8, 128], strides = [1, 1]} : vector<8x512xf32> to vector<8x128xf32>
    %945 = arith.negf %944 : vector<8x128xf32>
    %946 = math.exp %945 : vector<8x128xf32>
    %cst_336 = arith.constant 1.000000e+00 : f32
    %947 = vector.broadcast %cst_336 : f32 to vector<8x128xf32>
    %948 = arith.addf %947, %946 : vector<8x128xf32>
    %949 = arith.divf %947, %948 : vector<8x128xf32>
    %950 = vector.extract_strided_slice %937 {offsets = [0, 256], sizes = [8, 128], strides = [1, 1]} : vector<8x512xf32> to vector<8x128xf32>
    %951 = math.tanh %950 : vector<8x128xf32>
    %952 = vector.extract_strided_slice %937 {offsets = [0, 384], sizes = [8, 128], strides = [1, 1]} : vector<8x512xf32> to vector<8x128xf32>
    %953 = arith.negf %952 : vector<8x128xf32>
    %954 = math.exp %953 : vector<8x128xf32>
    %cst_337 = arith.constant 1.000000e+00 : f32
    %955 = vector.broadcast %cst_337 : f32 to vector<8x128xf32>
    %956 = arith.addf %955, %954 : vector<8x128xf32>
    %957 = arith.divf %955, %956 : vector<8x128xf32>
    %958 = arith.mulf %949, %900 : vector<8x128xf32>
    %959 = arith.mulf %943, %951 : vector<8x128xf32>
    %960 = arith.addf %958, %959 : vector<8x128xf32>
    %961 = math.tanh %960 : vector<8x128xf32>
    %962 = arith.mulf %957, %961 : vector<8x128xf32>
    %c0_338 = arith.constant 0 : index
    %c0_339 = arith.constant 0 : index
    %963 = vector.load %arg20[%c0_338, %c0_339] : memref<64x512xf32, #tpu.memory_space<vmem>>, vector<8x512xf32>
    %c0_340 = arith.constant 0 : index
    %c0_341 = arith.constant 0 : index
    %964 = vector.load %arg12[%c0_340, %c0_341] : memref<128x512xf32, #tpu.memory_space<vmem>>, vector<128x512xf32>
    %cst_342 = arith.constant dense<0.000000e+00> : vector<8x512xf32>
    %965 = tpu.matmul %931, %964, %cst_342 {dimension_numbers = #tpu.dot_dimension_numbers<[1], [0], [0], [1], [0, 0, 1, 1], [], []>} : vector<8x128xf32>, vector<128x512xf32>, vector<8x512xf32> -> vector<8x512xf32>
    %966 = arith.addf %963, %965 : vector<8x512xf32>
    %967 = vector.extract_strided_slice %966 {offsets = [0, 0], sizes = [8, 128], strides = [1, 1]} : vector<8x512xf32> to vector<8x128xf32>
    %968 = arith.negf %967 : vector<8x128xf32>
    %969 = math.exp %968 : vector<8x128xf32>
    %cst_343 = arith.constant 1.000000e+00 : f32
    %970 = vector.broadcast %cst_343 : f32 to vector<8x128xf32>
    %971 = arith.addf %970, %969 : vector<8x128xf32>
    %972 = arith.divf %970, %971 : vector<8x128xf32>
    %973 = vector.extract_strided_slice %966 {offsets = [0, 128], sizes = [8, 128], strides = [1, 1]} : vector<8x512xf32> to vector<8x128xf32>
    %974 = arith.negf %973 : vector<8x128xf32>
    %975 = math.exp %974 : vector<8x128xf32>
    %cst_344 = arith.constant 1.000000e+00 : f32
    %976 = vector.broadcast %cst_344 : f32 to vector<8x128xf32>
    %977 = arith.addf %976, %975 : vector<8x128xf32>
    %978 = arith.divf %976, %977 : vector<8x128xf32>
    %979 = vector.extract_strided_slice %966 {offsets = [0, 256], sizes = [8, 128], strides = [1, 1]} : vector<8x512xf32> to vector<8x128xf32>
    %980 = math.tanh %979 : vector<8x128xf32>
    %981 = vector.extract_strided_slice %966 {offsets = [0, 384], sizes = [8, 128], strides = [1, 1]} : vector<8x512xf32> to vector<8x128xf32>
    %982 = arith.negf %981 : vector<8x128xf32>
    %983 = math.exp %982 : vector<8x128xf32>
    %cst_345 = arith.constant 1.000000e+00 : f32
    %984 = vector.broadcast %cst_345 : f32 to vector<8x128xf32>
    %985 = arith.addf %984, %983 : vector<8x128xf32>
    %986 = arith.divf %984, %985 : vector<8x128xf32>
    %987 = arith.mulf %978, %929 : vector<8x128xf32>
    %988 = arith.mulf %972, %980 : vector<8x128xf32>
    %989 = arith.addf %987, %988 : vector<8x128xf32>
    %990 = math.tanh %989 : vector<8x128xf32>
    %991 = arith.mulf %986, %990 : vector<8x128xf32>
    %c56_346 = arith.constant 56 : index
    %c0_347 = arith.constant 0 : index
    %992 = vector.load %arg22[%c56_346, %c0_347] : memref<64x256xf32, #tpu.memory_space<vmem>>, vector<8x128xf32>
    tpu.vector_store %arg22[%c56_346, %c0_347], %962 {strides = array<i32>} : memref<64x256xf32, #tpu.memory_space<vmem>>, vector<8x128xf32>,
    %c0_348 = arith.constant 0 : index
    %c128_349 = arith.constant 128 : index
    %993 = vector.load %arg22[%c0_348, %c128_349] : memref<64x256xf32, #tpu.memory_space<vmem>>, vector<8x128xf32>
    tpu.vector_store %arg22[%c0_348, %c128_349], %991 {strides = array<i32>} : memref<64x256xf32, #tpu.memory_space<vmem>>, vector<8x128xf32>,
    %c0_350 = arith.constant 0 : index
    %c0_351 = arith.constant 0 : index
    %994 = vector.load %arg22[%c0_350, %c0_351] : memref<64x256xf32, #tpu.memory_space<vmem>>, vector<64x256xf32>
    %c0_352 = arith.constant 0 : index
    %c0_353 = arith.constant 0 : index
    %995 = vector.load %arg14[%c0_352, %c0_353] : memref<256x256xf32, #tpu.memory_space<vmem>>, vector<256x256xf32>
    %cst_354 = arith.constant dense<0.000000e+00> : vector<64x256xf32>
    %996 = tpu.matmul %994, %995, %cst_354 {dimension_numbers = #tpu.dot_dimension_numbers<[1], [0], [0], [1], [0, 0, 1, 1], [], []>} : vector<64x256xf32>, vector<256x256xf32>, vector<64x256xf32> -> vector<64x256xf32>
    %c0_355 = arith.constant 0 : index
    %c0_356 = arith.constant 0 : index
    %997 = vector.load %arg15[%c0_355, %c0_356] : memref<1x256xf32, #tpu.memory_space<vmem>>, vector<1x256xf32>
    %998 = vector.broadcast %997 : vector<1x256xf32> to vector<64x256xf32>
    %999 = arith.addf %996, %998 : vector<64x256xf32>
    %cst_357 = arith.constant 0.000000e+00 : f32
    %1000 = vector.broadcast %cst_357 : f32 to vector<64x256xf32>
    %1001 = arith.maximumf %999, %1000 : vector<64x256xf32>
    %c0_358 = arith.constant 0 : index
    %c0_359 = arith.constant 0 : index
    %1002 = vector.load %arg16[%c0_358, %c0_359] : memref<256x128xf32, #tpu.memory_space<vmem>>, vector<256x128xf32>
    %cst_360 = arith.constant dense<0.000000e+00> : vector<64x128xf32>
    %1003 = tpu.matmul %1001, %1002, %cst_360 {dimension_numbers = #tpu.dot_dimension_numbers<[1], [0], [0], [1], [0, 0, 1, 1], [], []>} : vector<64x256xf32>, vector<256x128xf32>, vector<64x128xf32> -> vector<64x128xf32>
    %c0_361 = arith.constant 0 : index
    %c0_362 = arith.constant 0 : index
    %1004 = vector.load %arg17[%c0_361, %c0_362] : memref<1x128xf32, #tpu.memory_space<vmem>>, vector<1x128xf32>
    %1005 = vector.broadcast %1004 : vector<1x128xf32> to vector<64x128xf32>
    %1006 = arith.addf %1003, %1005 : vector<64x128xf32>
    %c0_363 = arith.constant 0 : index
    %c0_364 = arith.constant 0 : index
    %1007 = vector.load %arg18[%c0_363, %c0_364] : memref<64x128xf32, #tpu.memory_space<vmem>>, vector<64x128xf32>
    tpu.vector_store %arg18[%c0_363, %c0_364], %1006 {strides = array<i32>} : memref<64x128xf32, #tpu.memory_space<vmem>>, vector<64x128xf32>,
    return
  }
  func.func @transform_0(%arg0: i32) -> (i32, i32) {
    %c0_i32 = arith.constant 0 : i32
    %c0_i32_0 = arith.constant 0 : i32
    %c0_i32_1 = arith.constant 0 : i32
    return %c0_i32, %c0_i32_0 : i32, i32
  }
  func.func @transform_1(%arg0: i32) -> (i32, i32) {
    %c0_i32 = arith.constant 0 : i32
    %c0_i32_0 = arith.constant 0 : i32
    %c0_i32_1 = arith.constant 0 : i32
    return %c0_i32, %c0_i32_0 : i32, i32
  }
  func.func @transform_2(%arg0: i32) -> (i32, i32) {
    %c0_i32 = arith.constant 0 : i32
    %c0_i32_0 = arith.constant 0 : i32
    %c0_i32_1 = arith.constant 0 : i32
    return %c0_i32, %c0_i32_0 : i32, i32
  }
  func.func @transform_3(%arg0: i32) -> (i32, i32) {
    %c0_i32 = arith.constant 0 : i32
    %c0_i32_0 = arith.constant 0 : i32
    %c0_i32_1 = arith.constant 0 : i32
    return %c0_i32, %c0_i32_0 : i32, i32
  }
  func.func @transform_4(%arg0: i32) -> (i32, i32) {
    %c0_i32 = arith.constant 0 : i32
    %c0_i32_0 = arith.constant 0 : i32
    %c0_i32_1 = arith.constant 0 : i32
    return %c0_i32, %c0_i32_0 : i32, i32
  }
  func.func @transform_5(%arg0: i32) -> (i32, i32) {
    %c0_i32 = arith.constant 0 : i32
    %c0_i32_0 = arith.constant 0 : i32
    %c0_i32_1 = arith.constant 0 : i32
    return %c0_i32, %c0_i32_0 : i32, i32
  }
  func.func @transform_6(%arg0: i32) -> (i32, i32) {
    %c0_i32 = arith.constant 0 : i32
    %c0_i32_0 = arith.constant 0 : i32
    %c0_i32_1 = arith.constant 0 : i32
    return %c0_i32, %c0_i32_0 : i32, i32
  }
  func.func @transform_7(%arg0: i32) -> (i32, i32) {
    %c0_i32 = arith.constant 0 : i32
    %c0_i32_0 = arith.constant 0 : i32
    %c0_i32_1 = arith.constant 0 : i32
    return %c0_i32, %c0_i32_0 : i32, i32
  }
  func.func @transform_8(%arg0: i32) -> (i32, i32) {
    %c0_i32 = arith.constant 0 : i32
    %c0_i32_0 = arith.constant 0 : i32
    %c0_i32_1 = arith.constant 0 : i32
    return %c0_i32, %c0_i32_0 : i32, i32
  }
  func.func @transform_9(%arg0: i32) -> (i32, i32) {
    %c0_i32 = arith.constant 0 : i32
    %c0_i32_0 = arith.constant 0 : i32
    %c0_i32_1 = arith.constant 0 : i32
    return %c0_i32, %c0_i32_0 : i32, i32
  }
  func.func @transform_10(%arg0: i32) -> (i32, i32) {
    %c0_i32 = arith.constant 0 : i32
    %c0_i32_0 = arith.constant 0 : i32
    %c0_i32_1 = arith.constant 0 : i32
    return %c0_i32, %c0_i32_0 : i32, i32
  }
  func.func @transform_11(%arg0: i32) -> (i32, i32) {
    %c0_i32 = arith.constant 0 : i32
    %c0_i32_0 = arith.constant 0 : i32
    %c0_i32_1 = arith.constant 0 : i32
    return %c0_i32, %c0_i32_0 : i32, i32
  }
  func.func @transform_12(%arg0: i32) -> (i32, i32) {
    %c0_i32 = arith.constant 0 : i32
    %c0_i32_0 = arith.constant 0 : i32
    %c0_i32_1 = arith.constant 0 : i32
    return %c0_i32, %c0_i32_0 : i32, i32
  }
  func.func @transform_13(%arg0: i32) -> (i32, i32) {
    %c0_i32 = arith.constant 0 : i32
    %c0_i32_0 = arith.constant 0 : i32
    %c0_i32_1 = arith.constant 0 : i32
    return %c0_i32, %c0_i32_0 : i32, i32
  }
  func.func @transform_14(%arg0: i32) -> (i32, i32) {
    %c0_i32 = arith.constant 0 : i32
    %c0_i32_0 = arith.constant 0 : i32
    %c0_i32_1 = arith.constant 0 : i32
    return %c0_i32, %c0_i32_0 : i32, i32
  }
  func.func @transform_15(%arg0: i32) -> (i32, i32) {
    %c0_i32 = arith.constant 0 : i32
    %c0_i32_0 = arith.constant 0 : i32
    %c0_i32_1 = arith.constant 0 : i32
    return %c0_i32, %c0_i32_0 : i32, i32
  }
  func.func @transform_16(%arg0: i32) -> (i32, i32) {
    %c0_i32 = arith.constant 0 : i32
    %c0_i32_0 = arith.constant 0 : i32
    %c0_i32_1 = arith.constant 0 : i32
    return %c0_i32, %c0_i32_0 : i32, i32
  }
  func.func @transform_17(%arg0: i32) -> (i32, i32) {
    %c0_i32 = arith.constant 0 : i32
    %c0_i32_0 = arith.constant 0 : i32
    %c0_i32_1 = arith.constant 0 : i32
    return %c0_i32, %c0_i32_0 : i32, i32
  }
}

</mosaic_0001>

<bundles_post_ra>
// kernel: lstm_predictor_forward.1
= control target key start
LH: loop header
LB: loop body
LE: loop exit
PB: predicated region body
PF: predicated region fallthrough
CT: control target
= control target key end

     0   :  { %s16574_s0 = inlined_call_operand.vmem [shape: f32[64,76], index: 0, kind: input, shape index: {}]   ;;  %s16575_s1 = inlined_call_operand.hbm [shape: f32[76,512], index: 1, kind: input, shape index: {}]   ;;  %s16576_s2 = inlined_call_operand.hbm [shape: f32[128,512], index: 2, kind: input, shape index: {}]   ;;  %s16577_s3 = inlined_call_operand.vmem [shape: f32[1,512], index: 3, kind: input, shape index: {}]   ;;  %s16578_s4 = inlined_call_operand.hbm [shape: f32[76,512], index: 4, kind: input, shape index: {}]   ;;  %s16579_s5 = inlined_call_operand.hbm [shape: f32[128,512], index: 5, kind: input, shape index: {}]   ;;  %s16580_s6 = inlined_call_operand.vmem [shape: f32[1,512], index: 6, kind: input, shape index: {}]   ;;  %s16581_s7 = inlined_call_operand.hbm [shape: f32[256,512], index: 7, kind: input, shape index: {}]   ;;  %s16582_s8 = inlined_call_operand.hbm [shape: f32[128,512], index: 8, kind: input, shape index: {}]   ;;  %s16583_s9 = inlined_call_operand.vmem [shape: f32[1,512], index: 9, kind: input, shape index: {}]   ;;  %s16584_s10 = inlined_call_operand.hbm [shape: f32[256,512], index: 10, kind: input, shape index: {}]   ;;  %s16585_s11 = inlined_call_operand.hbm [shape: f32[128,512], index: 11, kind: input, shape index: {}]   ;;  %s16586_s12 = inlined_call_operand.vmem [shape: f32[1,512], index: 12, kind: input, shape index: {}]   ;;  %s16587_s13 = inlined_call_operand.hbm [shape: f32[256,256], index: 13, kind: input, shape index: {}]   ;;  %s16588_s14 = inlined_call_operand.vmem [shape: f32[1,256], index: 14, kind: input, shape index: {}]   ;;  %s16589_s15 = inlined_call_operand.hbm [shape: f32[256,128], index: 15, kind: input, shape index: {}]   ;;  %s16590_s16 = inlined_call_operand.vmem [shape: f32[1,128], index: 16, kind: input, shape index: {}]   ;;  %s16591_s17 = inlined_call_operand.vmem [shape: f32[64,128], index: 17, kind: output, shape index: {}]  }
   0x1   :  { %16788 = sst [smem:[#allocation68_spill]] %s16574_s0 }
   0x2   :  { %16789 = sst [smem:[#allocation69_spill]] %s16575_s1 }
   0x3   :  { %22 = vsyncpa [#allocation7], 0 }
   0x4   :  { %23 = vsyncpa [#allocation9], 0 }
   0x5   :  { %24 = vsyncpa [#allocation12], 0 }
   0x6   :  { %25 = vsyncpa [#allocation15], 0 }
   0x7   :  { %26 = vsyncpa [#allocation18], 0 }
   0x8   :  { %27 = vsyncpa [#allocation21], 0  ;;  %s13462_s24 = smov [#allocation8]   ;;  %s13463_s26 = smov [#allocation11]  }
   0x9   :  { %s47_s25 = sshll.u32 %s13462_s24, 4  ;;  %s73_s27 = sshll.u32 %s13463_s26, 4  ;;  %s48_s25 = int_to_ptr.vmem [resolvable:$true] %s47_s25  ;;  %s13570_s27 = int_to_ptr.vmem [resolvable:$true] %s73_s27 }
   0xa   :  { %s13230_s0 = scalar_lea.hbm %s16576_s2, 8192 }
   0xb   :  { %p13231_p0 = scmp.ne.s32.totalorder %s16576_s2, %s13230_s0  ;;  %p13234_p1 = scmp.lt.u32.totalorder %s13230_s0, %s16576_s2 }
   0xd   :  { %p13236_p2 = pnand %p13234_p1, %p13231_p0 }
   0xf   :  { %13239 = shalt.err (!%p13236_p2)
}
  0x10   :  { %s13240_s20 = scalar_lea.vmem %s48_s25, 8192  ;;  %p13245_p4 = scmp.lt.s32.totalorder %s48_s25, %s48_s25 }
  0x11   :  { %p13241_p3 = scmp.ne.s32.totalorder %s48_s25, %s13240_s20  ;;  %p13246_p5 = scmp.lt.s32.totalorder %s13240_s20, %s13240_s20 }
  0x13   :  { %p13247_p6 = por %p13246_p5, %p13245_p4 }
  0x15   :  { %p13248_p7 = pnand %p13247_p6, %p13241_p3 }
  0x17   :  { %13251 = shalt.err (!%p13248_p7)
}
  0x18   :  { %s13464_s21 = smov 512   ;;  %s13465_s22 = smov 32  }
  0x19   :  { %53 = dma.hbm_to_vmem [thread:$0]  %s16576_s2, 8192, %s48_s25, [#allocation9], %s13464_s21, %s13464_s21, %s13465_s22  }
  0x1a   :  { %s13252_s29 = scalar_lea.hbm %s16579_s5, 8192 }
  0x1b   :  { %p13253_p8 = scmp.ne.s32.totalorder %s16579_s5, %s13252_s29  ;;  %p13256_p9 = scmp.lt.u32.totalorder %s13252_s29, %s16579_s5 }
  0x1d   :  { %p13258_p10 = pnand %p13256_p9, %p13253_p8 }
  0x1f   :  { %13261 = shalt.err (!%p13258_p10)
}
  0x20   :  { %s13262_s1 = scalar_lea.vmem %s13570_s27, 8192  ;;  %p13267_p12 = scmp.lt.s32.totalorder %s13570_s27, %s13570_s27 }
  0x21   :  { %p13263_p11 = scmp.ne.s32.totalorder %s13570_s27, %s13262_s1  ;;  %p13268_p13 = scmp.lt.s32.totalorder %s13262_s1, %s13262_s1 }
  0x23   :  { %p13269_p0 = por %p13268_p13, %p13267_p12 }
  0x25   :  { %p13270_p1 = pnand %p13269_p0, %p13263_p11 }
  0x27   :  { %13273 = shalt.err (!%p13270_p1)
}
  0x28   :  { %79 = dma.hbm_to_vmem [thread:$0]  %s16579_s5, 8192, %s13570_s27, [#allocation12], %s13464_s21, %s13464_s21, %s13465_s22  }
  0x29   :  { %s13466_s20 = smov [#allocation14]   ;;  %s13467_s24 = smov [#allocation17]  }
  0x2a   :  { %s99_s23 = sshll.u32 %s13466_s20, 4  ;;  %s125_s26 = sshll.u32 %s13467_s24, 4  ;;  %s100_s23 = int_to_ptr.vmem [resolvable:$true] %s99_s23  ;;  %s13607_s26 = int_to_ptr.vmem [resolvable:$true] %s125_s26 }
  0x2b   :  { %s13274_s0 = scalar_lea.hbm %s16582_s8, 8192 }
  0x2c   :  { %p13275_p2 = scmp.ne.s32.totalorder %s16582_s8, %s13274_s0  ;;  %p13278_p3 = scmp.lt.u32.totalorder %s13274_s0, %s16582_s8 }
  0x2e   :  { %p13280_p4 = pnand %p13278_p3, %p13275_p2 }
  0x30   :  { %13283 = shalt.err (!%p13280_p4)
}
  0x31   :  { %s13284_s5 = scalar_lea.vmem %s100_s23, 8192  ;;  %p13289_p6 = scmp.lt.s32.totalorder %s100_s23, %s100_s23 }
  0x32   :  { %p13285_p5 = scmp.ne.s32.totalorder %s100_s23, %s13284_s5  ;;  %p13290_p7 = scmp.lt.s32.totalorder %s13284_s5, %s13284_s5 }
  0x34   :  { %p13291_p8 = por %p13290_p7, %p13289_p6 }
  0x36   :  { %p13292_p9 = pnand %p13291_p8, %p13285_p5 }
  0x38   :  { %13295 = shalt.err (!%p13292_p9)
}
  0x39   :  { %105 = dma.hbm_to_vmem [thread:$0]  %s16582_s8, 8192, %s100_s23, [#allocation15], %s13464_s21, %s13464_s21, %s13465_s22  }
  0x3a   :  { %s13296_s24 = scalar_lea.hbm %s16585_s11, 8192 }
  0x3b   :  { %p13297_p10 = scmp.ne.s32.totalorder %s16585_s11, %s13296_s24  ;;  %p13300_p11 = scmp.lt.u32.totalorder %s13296_s24, %s16585_s11 }
  0x3d   :  { %p13302_p12 = pnand %p13300_p11, %p13297_p10 }
  0x3f   :  { %13305 = shalt.err (!%p13302_p12)
}
  0x40   :  { %s13306_s18 = scalar_lea.vmem %s13607_s26, 8192  ;;  %p13311_p0 = scmp.lt.s32.totalorder %s13607_s26, %s13607_s26 }
  0x41   :  { %p13307_p13 = scmp.ne.s32.totalorder %s13607_s26, %s13306_s18  ;;  %p13312_p1 = scmp.lt.s32.totalorder %s13306_s18, %s13306_s18 }
  0x43   :  { %p13313_p2 = por %p13312_p1, %p13311_p0 }
  0x45   :  { %p13314_p3 = pnand %p13313_p2, %p13307_p13 }
  0x47   :  { %13317 = shalt.err (!%p13314_p3)
}
  0x48   :  { %131 = dma.hbm_to_vmem [thread:$0]  %s16585_s11, 8192, %s13607_s26, [#allocation18], %s13464_s21, %s13464_s21, %s13465_s22  }
  0x49   :  { %s13468_s19 = smov [#allocation6]   ;;  %s13469_s5 = smov [#allocation10]  }
  0x4a   :  { %s35_s1 = sshll.u32 %s13468_s19, 4  ;;  %s61_s27 = sshll.u32 %s13469_s5, 4  ;;  %s36_s1 = int_to_ptr.vmem [resolvable:$true] %s35_s1  ;;  %s13644_s27 = int_to_ptr.vmem [resolvable:$true] %s61_s27 }
  0x4b   :  { %s16790_s20 = sld [smem:[#allocation69_spill]] }
  0x51   :  { %s13318_s24 = scalar_lea.hbm %s16790_s20, 5120 }
  0x52   :  { %p13319_p4 = scmp.ne.s32.totalorder %s16790_s20, %s13318_s24  ;;  %p13322_p5 = scmp.lt.u32.totalorder %s13318_s24, %s16790_s20 }
  0x54   :  { %p13324_p6 = pnand %p13322_p5, %p13319_p4 }
  0x56   :  { %13327 = shalt.err (!%p13324_p6)
}
  0x57   :  { %s13328_s11 = scalar_lea.vmem %s36_s1, 5120  ;;  %p13333_p8 = scmp.lt.s32.totalorder %s36_s1, %s36_s1 }
  0x58   :  { %p13329_p7 = scmp.ne.s32.totalorder %s36_s1, %s13328_s11  ;;  %p13334_p9 = scmp.lt.s32.totalorder %s13328_s11, %s13328_s11 }
  0x5a   :  { %p13335_p10 = por %p13334_p9, %p13333_p8 }
  0x5c   :  { %p13336_p11 = pnand %p13335_p10, %p13329_p7 }
  0x5e   :  { %13339 = shalt.err (!%p13336_p11)
}
  0x5f   :  { %41 = dma.hbm_to_vmem [thread:$0]  %s16790_s20, 5120, %s36_s1, [#allocation7], %s13464_s21, %s13464_s21, %s13465_s22  }
  0x60   :  { %s13340_s19 = scalar_lea.hbm %s16578_s4, 5120 }
  0x61   :  { %p13341_p12 = scmp.ne.s32.totalorder %s16578_s4, %s13340_s19  ;;  %p13344_p13 = scmp.lt.u32.totalorder %s13340_s19, %s16578_s4 }
  0x63   :  { %p13346_p0 = pnand %p13344_p13, %p13341_p12 }
  0x65   :  { %13349 = shalt.err (!%p13346_p0)
}
  0x66   :  { %s13350_s28 = scalar_lea.vmem %s13644_s27, 5120  ;;  %p13355_p2 = scmp.lt.s32.totalorder %s13644_s27, %s13644_s27 }
  0x67   :  { %p13351_p1 = scmp.ne.s32.totalorder %s13644_s27, %s13350_s28  ;;  %p13356_p3 = scmp.lt.s32.totalorder %s13350_s28, %s13350_s28 }
  0x69   :  { %p13357_p4 = por %p13356_p3, %p13355_p2 }
  0x6b   :  { %p13358_p5 = pnand %p13357_p4, %p13351_p1 }
  0x6d   :  { %13361 = shalt.err (!%p13358_p5)
}
  0x6e   :  { %67 = dma.hbm_to_vmem [thread:$0]  %s16578_s4, 5120, %s13644_s27, [#allocation9], %s13464_s21, %s13464_s21, %s13465_s22  }
  0x6f   :  { %s13470_s29 = smov [#allocation13]   ;;  %s13471_s30 = smov [#allocation16]  }
  0x70   :  { %s87_s0 = sshll.u32 %s13470_s29, 4  ;;  %s113_s11 = sshll.u32 %s13471_s30, 4  ;;  %s88_s0 = int_to_ptr.vmem [resolvable:$true] %s87_s0  ;;  %s13681_s11 = int_to_ptr.vmem [resolvable:$true] %s113_s11 }
  0x71   :  { %s13362_s8 = scalar_lea.hbm %s16581_s7, 16384 }
  0x72   :  { %p13363_p6 = scmp.ne.s32.totalorder %s16581_s7, %s13362_s8  ;;  %p13366_p7 = scmp.lt.u32.totalorder %s13362_s8, %s16581_s7 }
  0x74   :  { %p13368_p8 = pnand %p13366_p7, %p13363_p6 }
  0x76   :  { %13371 = shalt.err (!%p13368_p8)
}
  0x77   :  { %s13372_s4 = scalar_lea.vmem %s88_s0, 16384  ;;  %p13377_p10 = scmp.lt.s32.totalorder %s88_s0, %s88_s0 }
  0x78   :  { %p13373_p9 = scmp.ne.s32.totalorder %s88_s0, %s13372_s4  ;;  %p13378_p11 = scmp.lt.s32.totalorder %s13372_s4, %s13372_s4 }
  0x7a   :  { %p13379_p12 = por %p13378_p11, %p13377_p10 }
  0x7c   :  { %p13380_p13 = pnand %p13379_p12, %p13373_p9 }
  0x7e   :  { %13383 = shalt.err (!%p13380_p13)
}
  0x7f   :  { %93 = dma.hbm_to_vmem [thread:$0]  %s16581_s7, 16384, %s88_s0, [#allocation12], %s13464_s21, %s13464_s21, %s13465_s22  }
  0x80   :  { %s13384_s1 = scalar_lea.hbm %s16584_s10, 16384 }
  0x81   :  { %p13385_p0 = scmp.ne.s32.totalorder %s16584_s10, %s13384_s1  ;;  %p13388_p1 = scmp.lt.u32.totalorder %s13384_s1, %s16584_s10 }
  0x83   :  { %p13390_p2 = pnand %p13388_p1, %p13385_p0 }
  0x85   :  { %13393 = shalt.err (!%p13390_p2)
}
  0x86   :  { %s13394_s18 = scalar_lea.vmem %s13681_s11, 16384  ;;  %p13399_p4 = scmp.lt.s32.totalorder %s13681_s11, %s13681_s11 }
  0x87   :  { %p13395_p3 = scmp.ne.s32.totalorder %s13681_s11, %s13394_s18  ;;  %p13400_p5 = scmp.lt.s32.totalorder %s13394_s18, %s13394_s18 }
  0x89   :  { %p13401_p6 = por %p13400_p5, %p13399_p4 }
  0x8b   :  { %p13402_p7 = pnand %p13401_p6, %p13395_p3 }
  0x8d   :  { %13405 = shalt.err (!%p13402_p7)
}
  0x8e   :  { %119 = dma.hbm_to_vmem [thread:$0]  %s16584_s10, 16384, %s13681_s11, [#allocation15], %s13464_s21, %s13464_s21, %s13465_s22  }
  0x8f   :  { %s13472_s8 = smov [#allocation19]   ;;  %s13406_s2 = scalar_lea.hbm %s16587_s13, 8192 }
  0x90   :  { %s139_s23 = sshll.u32 %s13472_s8, 4  ;;  %p13407_p8 = scmp.ne.s32.totalorder %s16587_s13, %s13406_s2  ;;  %s140_s23 = int_to_ptr.vmem [resolvable:$true] %s139_s23 }
  0x91   :  { %p13410_p9 = scmp.lt.u32.totalorder %s13406_s2, %s16587_s13 }
  0x93   :  { %p13412_p10 = pnand %p13410_p9, %p13407_p8 }
  0x95   :  { %13415 = shalt.err (!%p13412_p10)
}
  0x96   :  { %s13416_s28 = scalar_lea.vmem %s140_s23, 8192  ;;  %p13421_p12 = scmp.lt.s32.totalorder %s140_s23, %s140_s23 }
  0x97   :  { %p13417_p11 = scmp.ne.s32.totalorder %s140_s23, %s13416_s28  ;;  %p13422_p13 = scmp.lt.s32.totalorder %s13416_s28, %s13416_s28 }
  0x99   :  { %p13423_p0 = por %p13422_p13, %p13421_p12 }
  0x9b   :  { %p13424_p1 = pnand %p13423_p0, %p13417_p11 }
  0x9d   :  { %13427 = shalt.err (!%p13424_p1)
}
  0x9e   :  { %s13473_s10 = smov 256   ;;  %s13474_s21 = smov 16  }
  0x9f   :  { %145 = dma.hbm_to_vmem [thread:$0]  %s16587_s13, 8192, %s140_s23, [#allocation18], %s13473_s10, %s13473_s10, %s13474_s21  }
  0xa0   :  { %s13475_s1 = smov [#allocation20]   ;;  %s13428_s26 = scalar_lea.hbm %s16589_s15, 4096 }
  0xa1   :  { %s153_s20 = sshll.u32 %s13475_s1, 4  ;;  %p13429_p2 = scmp.ne.s32.totalorder %s16589_s15, %s13428_s26  ;;  %s154_s20 = int_to_ptr.vmem [resolvable:$true] %s153_s20 }
  0xa2   :  { %p13432_p3 = scmp.lt.u32.totalorder %s13428_s26, %s16589_s15 }
  0xa4   :  { %p13434_p4 = pnand %p13432_p3, %p13429_p2 }
  0xa6   :  { %13437 = shalt.err (!%p13434_p4)
}
  0xa7   :  { %s13438_s19 = scalar_lea.vmem %s154_s20, 4096  ;;  %p13443_p6 = scmp.lt.s32.totalorder %s154_s20, %s154_s20 }
  0xa8   :  { %p13439_p5 = scmp.ne.s32.totalorder %s154_s20, %s13438_s19  ;;  %p13444_p7 = scmp.lt.s32.totalorder %s13438_s19, %s13438_s19 }
  0xaa   :  { %p13445_p8 = por %p13444_p7, %p13443_p6 }
  0xac   :  { %p13446_p9 = pnand %p13445_p8, %p13439_p5 }
  0xae   :  { %13449 = shalt.err (!%p13446_p9)
}
  0xaf   :  { %s13476_s13 = smov 128   ;;  %s13477_s23 = smov 8  }
  0xb0   :  { %159 = dma.hbm_to_vmem [thread:$0]  %s16589_s15, 4096, %s154_s20, [#allocation21], %s13476_s13, %s13476_s13, %s13477_s23  }
  0xb1   :  { %13450 = dma.done.wait [#allocation7], 5120  }
  0xb2   :  { %13451 = vsyncadd [#allocation7], 4294962176 }
  0xb3   :  { %13452 = dma.done.wait [#allocation9], 13312  }
  0xb4   :  { %13453 = vsyncadd [#allocation9], 4294953984 }
  0xb5   :  { %13454 = dma.done.wait [#allocation12], 24576  }
  0xb6   :  { %13455 = vsyncadd [#allocation12], 4294942720 }
  0xb7   :  { %13456 = dma.done.wait [#allocation15], 24576  }
  0xb8   :  { %13457 = vsyncadd [#allocation15], 4294942720 }
  0xb9   :  { %13458 = dma.done.wait [#allocation18], 16384  }
  0xba   :  { %13459 = vsyncadd [#allocation18], 4294950912 }
  0xbb   :  { %13460 = dma.done.wait [#allocation21], 4096  }
  0xbc   :  { %13461 = vsyncadd [#allocation21], 4294963200  ;;  %v16594_v0 = vmov 0.0   ;;  %v201_v1 = vld [vmem:[#allocation6 + $0x8] sm:$0xff]  ;;  %v200_v3 = vld [vmem:[#allocation6] sm:$0xff]  ;;  %vm287_vm0 = vcmask 1043456  }
  0xbd   :  { %364 = vmatprep.mubr.f32.mxu0 %v16594_v0  ;;  %394 = vmatprep.mubr.f32.mxu1 %v16594_v0  ;;  %v205_v2 = vld [vmem:[#allocation6 + $0x28] sm:$0xff]  ;;  %v204_v5 = vld [vmem:[#allocation6 + $0x20] sm:$0xff]  ;;  %vm13479_vm1 = vmmov 1   ;;  %v203_v31 = vld [vmem:[#allocation6 + $0x18] sm:$0xff]  ;;  %s16793_s27 = sld [smem:[#allocation68_spill]]  ;;  %vm262_vm3 = vcmask 621568  }
  0xbe   :  { %v9946_v4 = vpack.c.bf16 %v205_v2, %v201_v1  ;;  %v209_v6 = vld [vmem:[#allocation6 + $0x48] sm:$0xff]  ;;  %v9948_v8 = vpack.c.bf16 %v204_v5, %v200_v3  ;;  %v208_v10 = vld [vmem:[#allocation6 + $0x40] sm:$0xff]  ;;  %vm13744_vm2 = vmpackc.low %vm287_vm0, %vm13479_vm1 }
  0xbf   :  { %v213_v7 = vld [vmem:[#allocation6 + $0x68] sm:$0xff]  ;;  %v212_v11 = vld [vmem:[#allocation6 + $0x60] sm:$0xff]  ;;  %v207_v32 = vld [vmem:[#allocation6 + $0x38] sm:$0xff] }
  0xc0   :  { %v9950_v9 = vpack.c.bf16 %v213_v7, %v209_v6  ;;  %v217_v12 = vld [vmem:[#allocation6 + $0x88] sm:$0xff]  ;;  %9947 = vmatprep.subr.bf16.mxu0 %v9946_v4  ;;  %12434 = vmatprep.subr.bf16.mxu1 %v9946_v4  ;;  %v9952_v14 = vpack.c.bf16 %v212_v11, %v208_v10  ;;  %v216_v16 = vld [vmem:[#allocation6 + $0x80] sm:$0xff]  ;;  %v202_v36 = vld [vmem:[#allocation6 + $0x10] sm:$0xff]  ;;  %v9968_v37 = vpack.c.bf16 %v207_v32, %v203_v31 }
  0xc1   :  { %v221_v13 = vld [vmem:[#allocation6 + $0xa8] sm:$0xff]  ;;  %9949 = vmatpush1.bf16.msra.mxu0 %v9948_v8  ;;  %12439 = vmatpush1.bf16.msra.mxu1 %v9948_v8  ;;  %v220_v17 = vld [vmem:[#allocation6 + $0xa0] sm:$0xff]  ;;  %v206_v39 = vld [vmem:[#allocation6 + $0x30] sm:$0xff] }
  0xc2   :  { %9951 = vmatprep.subr.bf16.mxu0 %v9950_v9  ;;  %12435 = vmatprep.subr.bf16.mxu1 %v9950_v9  ;;  %v9954_v15 = vpack.c.bf16 %v221_v13, %v217_v12  ;;  %v225_v18 = vld [vmem:[#allocation6 + $0xc8] sm:$0xff]  ;;  %v9956_v20 = vpack.c.bf16 %v220_v17, %v216_v16  ;;  %v224_v22 = vld [vmem:[#allocation6 + $0xc0] sm:$0xff]  ;;  %v211_v42 = vld [vmem:[#allocation6 + $0x58] sm:$0xff]  ;;  %v9970_v48 = vpack.c.bf16 %v206_v39, %v202_v36 }
  0xc3   :  { %v229_v19 = vld [vmem:[#allocation6 + $0xe8] sm:$0xff]  ;;  %v228_v23 = vld [vmem:[#allocation6 + $0xe0] sm:$0xff]  ;;  %v215_v43 = vld [vmem:[#allocation6 + $0x78] sm:$0xff] }
  0xc4   :  { %v9958_v21 = vpack.c.bf16 %v229_v19, %v225_v18  ;;  %v233_v24 = vld [vmem:[#allocation6 + $0x108] sm:$0xff]  ;;  %v9960_v26 = vpack.c.bf16 %v228_v23, %v224_v22  ;;  %v232_v29 = vld [vmem:[#allocation6 + $0x100] sm:$0xff]  ;;  %v210_v50 = vld [vmem:[#allocation6 + $0x50] sm:$0xff]  ;;  %v9972_v51 = vpack.c.bf16 %v215_v43, %v211_v42 }
  0xc5   :  { %9953 = vmatpush1.bf16.msra.mxu0 %v9952_v14  ;;  %12440 = vmatpush1.bf16.msra.mxu1 %v9952_v14  ;;  %v237_v25 = vld [vmem:[#allocation6 + $0x128] sm:$0xf]  ;;  %v236_v30 = vld [vmem:[#allocation6 + $0x120] sm:$0xf]  ;;  %v214_v52 = vld [vmem:[#allocation6 + $0x70] sm:$0xff] }
  0xc6   :  { %9955 = vmatprep.subr.bf16.mxu0 %v9954_v15  ;;  %12436 = vmatprep.subr.bf16.mxu1 %v9954_v15  ;;  %v9962_v28 = vpack.c.bf16 %v237_v25, %v233_v24  ;;  %v559_v33 = vld [vmem:[#allocation10 + $0x8] sm:$0xff]  ;;  %v9965_v35 = vpack.c.bf16 %v236_v30, %v232_v29  ;;  %v558_v40 = vld [vmem:[#allocation10] sm:$0xff]  ;;  %v219_v56 = vld [vmem:[#allocation6 + $0x98] sm:$0xff]  ;;  %v9974_v61 = vpack.c.bf16 %v214_v52, %v210_v50 }
  0xc7   :  { %v563_v34 = vld [vmem:[#allocation10 + $0x28] sm:$0xff]  ;;  %v562_v41 = vld [vmem:[#allocation10 + $0x20] sm:$0xff]  ;;  %v223_v57 = vld [vmem:[#allocation6 + $0xb8] sm:$0xff] }
  0xc8   :  { %v9990_v38 = vpack.c.bf16 %v563_v34, %v559_v33  ;;  %v567_v44 = vld [vmem:[#allocation10 + $0x48] sm:$0xff]  ;;  %v13759_v46 = vld [vmem:[%s16793_s27] sm:$0xff]  ;;  %v9992_v49 = vpack.c.bf16 %v562_v41, %v558_v40  ;;  %v218_v63 = vld [vmem:[#allocation6 + $0x90] sm:$0xff]  ;;  %v9976_v2 = vpack.c.bf16 %v223_v57, %v219_v56 }
  0xc9   :  { %9957 = vmatpush1.bf16.msra.mxu0 %v9956_v20  ;;  %12441 = vmatpush1.bf16.msra.mxu1 %v9956_v20  ;;  %v571_v45 = vld [vmem:[#allocation10 + $0x68] sm:$0xff]  ;;  %v566_v53 = vld [vmem:[#allocation10 + $0x40] sm:$0xff]  ;;  %v13778_v1 = vld [vmem:[%s16793_s27 + $0x30] sm:$0xff] }
  0xca   :  { %9959 = vmatprep.subr.bf16.mxu0 %v9958_v21  ;;  %12437 = vmatprep.subr.bf16.mxu1 %v9958_v21  ;;  %v13764_v47 = vld [vmem:[%s16793_s27 + $0x28] sm:$0xff]  ;;  %v570_v54 = vld [vmem:[#allocation10 + $0x60] sm:$0xff]  ;;  %v9994_v55 = vpack.c.bf16 %v571_v45, %v567_v44  ;;  %v222_v3 = vld [vmem:[#allocation6 + $0xb0] sm:$0xff] }
  0xcb   :  { %v575_v58 = vld [vmem:[#allocation10 + $0x88] sm:$0xff]  ;;  %v9996_v62 = vpack.c.bf16 %v570_v54, %v566_v53  ;;  %v574_v4 = vld [vmem:[#allocation10 + $0x80] sm:$0xff]  ;;  %v227_v7 = vld [vmem:[#allocation6 + $0xd8] sm:$0xff]  ;;  %v9978_v12 = vpack.c.bf16 %v222_v3, %v218_v63 }
  0xcc   :  { %v579_v59 = vld [vmem:[#allocation10 + $0xa8] sm:$0xff]  ;;  %v578_v5 = vld [vmem:[#allocation10 + $0xa0] sm:$0xff]  ;;  %v231_v8 = vld [vmem:[#allocation6 + $0xf8] sm:$0xff] }
  0xcd   :  { %9961 = vmatpush1.bf16.msra.mxu0 %v9960_v26  ;;  %12442 = vmatpush1.bf16.msra.mxu1 %v9960_v26  ;;  %v13773_v60 = vld [vmem:[%s16793_s27 + $0x8] sm:$0xff]  ;;  %v9998_v6 = vpack.c.bf16 %v579_v59, %v575_v58  ;;  %v13789_v11 = vld [vmem:[%s16793_s27 + $0x10] sm:$0xff]  ;;  %v10000_v13 = vpack.c.bf16 %v578_v5, %v574_v4  ;;  %v13794_v15 = vld [vmem:[%s16793_s27 + $0x38] sm:$0xff]  ;;  %v9980_v16 = vpack.c.bf16 %v231_v8, %v227_v7 }
  0xce   :  { %9964 = vmatprep.subr.msk.bf16.mxu0 %vm13744_vm2, %v9962_v28  ;;  %12438 = vmatprep.subr.msk.bf16.mxu1 %vm13744_vm2, %v9962_v28  ;;  %v583_v9 = vld [vmem:[#allocation10 + $0xc8] sm:$0xff]  ;;  %v226_v14 = vld [vmem:[#allocation6 + $0xd0] sm:$0xff]  ;;  %v582_v18 = vld [vmem:[#allocation10 + $0xc0] sm:$0xff] }
  0xcf   :  { %v587_v10 = vld [vmem:[#allocation10 + $0xe8] sm:$0xff]  ;;  %v230_v17 = vld [vmem:[#allocation6 + $0xf0] sm:$0xff]  ;;  %v586_v19 = vld [vmem:[#allocation10 + $0xe0] sm:$0xff] }
  0xd0   :  { %v10002_v20 = vpack.c.bf16 %v587_v10, %v583_v9  ;;  %v235_v21 = vld [vmem:[#allocation6 + $0x118] sm:$0xff]  ;;  %v591_v23 = vld [vmem:[#allocation10 + $0x108] sm:$0xff]  ;;  %v9982_v26 = vpack.c.bf16 %v230_v17, %v226_v14  ;;  %v10004_v28 = vpack.c.bf16 %v586_v19, %v582_v18  ;;  %v234_v29 = vld [vmem:[#allocation6 + $0x110] sm:$0xff] }
  0xd1   :  { %9967 = vmatpush1.bf16.msk.msra.mxu0 %vm13744_vm2, %v9965_v35  ;;  %12443 = vmatpush1.bf16.msk.msra.mxu1 %vm13744_vm2, %v9965_v35  ;;  %v239_v22 = vld [vmem:[#allocation6 + $0x138] sm:$0xf]  ;;  %v595_v24 = vld [vmem:[#allocation10 + $0x128] sm:$0xf]  ;;  %v238_v31 = vld [vmem:[#allocation6 + $0x130] sm:$0xf] }
  0xd2   :  { %9969 = vmatprep.subr.bf16.mxu1 %v9968_v37  ;;  %9991 = vmatprep.subr.bf16.mxu0 %v9990_v38  ;;  %v13805_v25 = vld [vmem:[%s16793_s27 + $0x18] sm:$0xff]  ;;  %v9984_v30 = vpack.c.bf16 %v239_v22, %v235_v21  ;;  %v590_v32 = vld [vmem:[#allocation10 + $0x100] sm:$0xff]  ;;  %v10006_v34 = vpack.c.bf16 %v595_v24, %v591_v23  ;;  %v895_v37 = vld [vmem:[#allocation8 + $0x8] sm:$0xff]  ;;  %v9987_v40 = vpack.c.bf16 %v238_v31, %v234_v29 }
  0xd3   :  { %v594_v33 = vld [vmem:[#allocation10 + $0x120] sm:$0xf]  ;;  %v561_v35 = vld [vmem:[#allocation10 + $0x18] sm:$0xff]  ;;  %v899_v38 = vld [vmem:[#allocation8 + $0x28] sm:$0xff] }
  0xd4   :  { %9755 = vmatmul.mubr.msk.f32.vlgmr.msra.gmra.mrb[0].mxu0 %vm262_vm3, %v13759_v46  ;;  %9760 = vmatmul.mubr.msk.f32.vlgmr.msra.gmra.mrb[0].mxu1 %vm262_vm3, %v13764_v47  ;;  %v565_v36 = vld [vmem:[#allocation10 + $0x38] sm:$0xff]  ;;  %v13814_v39 = vld [vmem:[%s16793_s27 + $0x20] sm:$0xff]  ;;  %v10009_v41 = vpack.c.bf16 %v594_v33, %v590_v32  ;;  %v560_v42 = vld [vmem:[#allocation10 + $0x10] sm:$0xff] }
  0xd5   :  { %9971 = vmatpush1.bf16.msra.mxu1 %v9970_v48  ;;  %9993 = vmatpush1.bf16.msra.mxu0 %v9992_v49  ;;  %v10012_v43 = vpack.c.bf16 %v565_v36, %v561_v35  ;;  %v564_v44 = vld [vmem:[#allocation10 + $0x30] sm:$0xff]  ;;  %v894_v45 = vld [vmem:[#allocation8] sm:$0xff]  ;;  %v13821_v49 = vpack.c.bf16 %v899_v38, %v895_v37  ;;  %v903_v50 = vld [vmem:[#allocation8 + $0x48] sm:$0xff] }
  0xd6   :  { %370 = vmatprep.mubr.f32.mxu0 %v16594_v0  ;;  %9973 = vmatprep.subr.bf16.mxu1 %v9972_v51  ;;  %v898_v48 = vld [vmem:[#allocation8 + $0x20] sm:$0xff]  ;;  %v907_v51 = vld [vmem:[#allocation8 + $0x68] sm:$0xff]  ;;  %v569_v52 = vld [vmem:[#allocation10 + $0x58] sm:$0xff]  ;;  %v10014_v54 = vpack.c.bf16 %v564_v44, %v560_v42 }
  0xd7   :  { %9995 = vmatprep.subr.bf16.mxu0 %v9994_v55  ;;  %400 = vmatprep.mubr.f32.mxu1 %v16594_v0  ;;  %v573_v53 = vld [vmem:[#allocation10 + $0x78] sm:$0xff]  ;;  %v13829_v55 = vpack.c.bf16 %v898_v48, %v894_v45  ;;  %v902_v56 = vld [vmem:[#allocation8 + $0x40] sm:$0xff]  ;;  %v13833_v58 = vpack.c.bf16 %v907_v51, %v903_v50  ;;  %v911_v63 = vld [vmem:[#allocation8 + $0x88] sm:$0xff] }
  0xd8   :  { %9756 = vmatmul.mubr.msk.f32.gmra.mrb[2].mxu0 %vm262_vm3, %v13773_v60  ;;  %9761 = vmatmul.mubr.msk.f32.gmra.mrb[2].mxu1 %vm262_vm3, %v13778_v1  ;;  %v906_v57 = vld [vmem:[#allocation8 + $0x60] sm:$0xff]  ;;  %v10016_v59 = vpack.c.bf16 %v573_v53, %v569_v52  ;;  %v577_v3 = vld [vmem:[#allocation10 + $0x98] sm:$0xff]  ;;  %v919_v10 = vld [vmem:[#allocation8 + $0xc8] sm:$0xff] }
  0xd9   :  { %9975 = vmatpush1.bf16.msra.mxu1 %v9974_v61  ;;  %9997 = vmatpush1.bf16.msra.mxu0 %v9996_v62  ;;  %v568_v61 = vld [vmem:[#allocation10 + $0x50] sm:$0xff]  ;;  %v581_v4 = vld [vmem:[#allocation10 + $0xb8] sm:$0xff]  ;;  %v13840_v5 = vpack.c.bf16 %v906_v57, %v902_v56  ;;  %v910_v7 = vld [vmem:[#allocation8 + $0x80] sm:$0xff] }
  0xda   :  { %376 = vmatprep.mubr.f32.mxu0 %v16594_v0  ;;  %9977 = vmatprep.subr.bf16.mxu1 %v9976_v2  ;;  %v572_v62 = vld [vmem:[#allocation10 + $0x70] sm:$0xff]  ;;  %v915_v2 = vld [vmem:[#allocation8 + $0xa8] sm:$0xff]  ;;  %v914_v8 = vld [vmem:[#allocation8 + $0xa0] sm:$0xff] }
  0xdb   :  { %9999 = vmatprep.subr.bf16.mxu0 %v9998_v6  ;;  %406 = vmatprep.mubr.f32.mxu1 %v16594_v0  ;;  %v10018_v6 = vpack.c.bf16 %v572_v62, %v568_v61  ;;  %v13845_v9 = vpack.c.bf16 %v915_v2, %v911_v63  ;;  %v576_v14 = vld [vmem:[#allocation10 + $0x90] sm:$0xff]  ;;  %v13853_v17 = vpack.c.bf16 %v914_v8, %v910_v7  ;;  %v918_v19 = vld [vmem:[#allocation8 + $0xc0] sm:$0xff]  ;;  %v927_v22 = vld [vmem:[#allocation8 + $0x108] sm:$0xff] }
  0xdc   :  { %9757 = vmatmul.mubr.msk.f32.gmra.mrb[4].mxu0 %vm262_vm3, %v13789_v11  ;;  %9762 = vmatmul.mubr.msk.f32.gmra.mrb[4].mxu1 %vm262_vm3, %v13794_v15  ;;  %v931_v23 = vld [vmem:[#allocation8 + $0x128] sm:$0xff]  ;;  %v585_v24 = vld [vmem:[#allocation10 + $0xd8] sm:$0xff]  ;;  %v930_v31 = vld [vmem:[#allocation8 + $0x120] sm:$0xff] }
  0xdd   :  { %9979 = vmatpush1.bf16.msra.mxu1 %v9978_v12  ;;  %10001 = vmatpush1.bf16.msra.mxu0 %v10000_v13  ;;  %v923_v12 = vld [vmem:[#allocation8 + $0xe8] sm:$0xff]  ;;  %v10020_v13 = vpack.c.bf16 %v581_v4, %v577_v3  ;;  %v13869_v29 = vpack.c.bf16 %v931_v23, %v927_v22  ;;  %v584_v35 = vld [vmem:[#allocation10 + $0xd0] sm:$0xff]  ;;  %v593_v45 = vld [vmem:[#allocation10 + $0x118] sm:$0xff] }
  0xde   :  { %382 = vmatprep.mubr.f32.mxu0 %v16594_v0  ;;  %9981 = vmatprep.subr.bf16.mxu1 %v9980_v16  ;;  %v580_v16 = vld [vmem:[#allocation10 + $0xb0] sm:$0xff]  ;;  %v13856_v18 = vpack.c.bf16 %v923_v12, %v919_v10  ;;  %v935_v33 = vld [vmem:[#allocation8 + $0x148] sm:$0xff]  ;;  %v597_v48 = vld [vmem:[#allocation10 + $0x138] sm:$0xf] }
  0xdf   :  { %10003 = vmatprep.subr.bf16.mxu0 %v10002_v20  ;;  %477 = vmatprep.mubr.f32.mxu1 %v16594_v0  ;;  %v922_v20 = vld [vmem:[#allocation8 + $0xe0] sm:$0xff]  ;;  %v10022_v21 = vpack.c.bf16 %v580_v16, %v576_v14  ;;  %v588_v36 = vld [vmem:[#allocation10 + $0xf0] sm:$0xff]  ;;  %v947_v44 = vld [vmem:[#allocation8 + $0x1a8] sm:$0xff] }
  0xe0   :  { %9758 = vmatmul.mubr.msk.f32.gmra.mrb[6].mxu0 %vm262_vm3, %v13805_v25  ;;  %v10026_v42 = vpack.c.bf16 %v588_v36, %v584_v35  ;;  %v942_v52 = vld [vmem:[#allocation8 + $0x180] sm:$0xff]  ;;  %v592_v56 = vld [vmem:[#allocation10 + $0x110] sm:$0xff]  ;;  %v955_v61 = vld [vmem:[#allocation8 + $0x1e8] sm:$0xff] }
  0xe1   :  { %9983 = vmatpush1.bf16.msra.mxu1 %v9982_v26  ;;  %10005 = vmatpush1.bf16.msra.mxu0 %v10004_v28  ;;  %v589_v26 = vld [vmem:[#allocation10 + $0xf8] sm:$0xff]  ;;  %v13865_v28 = vpack.c.bf16 %v922_v20, %v918_v19  ;;  %v946_v53 = vld [vmem:[#allocation8 + $0x1a0] sm:$0xff]  ;;  %v596_v57 = vld [vmem:[#allocation10 + $0x130] sm:$0xf] }
  0xe2   :  { %388 = vmatprep.mubr.f32.mxu0 %v16594_v0  ;;  %9986 = vmatprep.subr.msk.bf16.mxu1 %vm13744_vm2, %v9984_v30  ;;  %v926_v30 = vld [vmem:[#allocation8 + $0x100] sm:$0xff]  ;;  %v10024_v32 = vpack.c.bf16 %v589_v26, %v585_v24  ;;  %v897_v62 = vld [vmem:[#allocation8 + $0x18] sm:$0xff]  ;;  %v13901_v2 = vpack.c.bf16 %v946_v53, %v942_v52  ;;  %v10031_v3 = vpack.c.bf16 %v596_v57, %v592_v56  ;;  %v1133_v10 = vld [vmem:[#allocation11 + $0x8] sm:$0xff] }
  0xe3   :  { %10008 = vmatprep.subr.msk.bf16.mxu0 %vm13744_vm2, %v10006_v34  ;;  %v939_v34 = vld [vmem:[#allocation8 + $0x168] sm:$0xff]  ;;  %v13877_v37 = vpack.c.bf16 %v930_v31, %v926_v30  ;;  %v901_v63 = vld [vmem:[#allocation8 + $0x38] sm:$0xff]  ;;  %v950_v4 = vld [vmem:[#allocation8 + $0x1c0] sm:$0xff] }
  0xe4   :  { %9759 = vmatmul.mubr.msk.f32.gmra.mrb[8].mxu0 %vm262_vm3, %v13814_v39  ;;  %v13881_v38 = vpack.c.bf16 %v939_v34, %v935_v33  ;;  %v13909_v8 = vpack.c.bf16 %v901_v63, %v897_v62  ;;  %v1137_v12 = vld [vmem:[#allocation11 + $0x28] sm:$0xff]  ;;  %v896_v14 = vld [vmem:[#allocation8 + $0x10] sm:$0xff]  ;;  %v1132_v20 = vld [vmem:[#allocation11] sm:$0xff] }
  0xe5   :  { %9989 = vmatpush1.bf16.msk.msra.mxu1 %vm13744_vm2, %v9987_v40  ;;  %10011 = vmatpush1.bf16.msk.msra.mxu0 %vm13744_vm2, %v10009_v41  ;;  %v934_v40 = vld [vmem:[#allocation8 + $0x140] sm:$0xff]  ;;  %v900_v16 = vld [vmem:[#allocation8 + $0x30] sm:$0xff]  ;;  %v13922_v19 = vpack.c.bf16 %v1137_v12, %v1133_v10  ;;  %v905_v22 = vld [vmem:[#allocation8 + $0x58] sm:$0xff] }
  0xe6   :  { %696 = vmatprep.mubr.f32.mxu0 %v16594_v0  ;;  %10013 = vmatprep.subr.bf16.mxu1 %v10012_v43  ;;  %v938_v41 = vld [vmem:[#allocation8 + $0x160] sm:$0xff]  ;;  %v943_v43 = vld [vmem:[#allocation8 + $0x188] sm:$0xff]  ;;  %v909_v23 = vld [vmem:[#allocation8 + $0x78] sm:$0xff]  ;;  %v13932_v26 = vpack.c.bf16 %v900_v16, %v896_v14 }
  0xe7   :  { %10035 = vmatprep.subr.bf16.mxu0 %v13821_v49  ;;  %v13889_v50 = vpack.c.bf16 %v938_v41, %v934_v40  ;;  %v13893_v51 = vpack.c.bf16 %v947_v44, %v943_v43  ;;  %v1141_v24 = vld [vmem:[#allocation11 + $0x48] sm:$0xff]  ;;  %v904_v31 = vld [vmem:[#allocation8 + $0x50] sm:$0xff]  ;;  %v1140_v34 = vld [vmem:[#allocation11 + $0x40] sm:$0xff] }
  0xe8   :  { %9765 = vmatmul.mubr.msk.f32.vlgmr.msra.gmra.mrb[6].mxu1 %vm262_vm3, %v13759_v46  ;;  %9775 = vmatmul.mubr.msk.f32.vlgmr.msra.gmra.mrb[10].mxu0 %vm262_vm3, %v13759_v46  ;;  %v1145_v27 = vld [vmem:[#allocation11 + $0x68] sm:$0xff]  ;;  %v908_v33 = vld [vmem:[#allocation8 + $0x70] sm:$0xff]  ;;  %v1144_v35 = vld [vmem:[#allocation11 + $0x60] sm:$0xff] }
  0xe9   :  { %10015 = vmatpush1.bf16.msra.mxu1 %v10014_v54  ;;  %10037 = vmatpush1.bf16.msra.mxu0 %v13829_v55  ;;  %v10028_v54 = vpack.c.bf16 %v597_v48, %v593_v45  ;;  %v13940_v36 = vpack.c.bf16 %v1145_v27, %v1141_v24  ;;  %v913_v40 = vld [vmem:[#allocation8 + $0x98] sm:$0xff]  ;;  %v1153_v43 = vld [vmem:[#allocation11 + $0xa8] sm:$0xff]  ;;  %v13947_v44 = vpack.c.bf16 %v908_v33, %v904_v31  ;;  %v912_v48 = vld [vmem:[#allocation8 + $0x90] sm:$0xff] }
  0xea   :  { %483 = vmatprep.mubr.f32.mxu1 %v16594_v0  ;;  %702 = vmatprep.mubr.f32.mxu0 %v16594_v0  ;;  %v917_v41 = vld [vmem:[#allocation8 + $0xb8] sm:$0xff]  ;;  %v13949_v45 = vpack.c.bf16 %v1144_v35, %v1140_v34  ;;  %v1148_v53 = vld [vmem:[#allocation11 + $0x80] sm:$0xff]  ;;  %v1161_v62 = vld [vmem:[#allocation11 + $0xe8] sm:$0xff] }
  0xeb   :  { %10039 = vmatprep.subr.bf16.mxu0 %v13833_v58  ;;  %10017 = vmatprep.subr.bf16.mxu1 %v10016_v59  ;;  %v951_v59 = vld [vmem:[#allocation8 + $0x1c8] sm:$0xff]  ;;  %v13953_v52 = vpack.c.bf16 %v917_v41, %v913_v40  ;;  %v921_v57 = vld [vmem:[#allocation8 + $0xd8] sm:$0xff]  ;;  %v924_v10 = vld [vmem:[#allocation8 + $0xf0] sm:$0xff] }
  0xec   :  { %9766 = vmatmul.mubr.msk.f32.gmra.mrb[8].mxu1 %vm262_vm3, %v13773_v60  ;;  %9776 = vmatmul.mubr.msk.f32.gmra.mrb[12].mxu0 %vm262_vm3, %v13773_v60  ;;  %v13907_v7 = vpack.c.bf16 %v955_v61, %v951_v59  ;;  %v925_v59 = vld [vmem:[#allocation8 + $0xf8] sm:$0xff]  ;;  %v1157_v61 = vld [vmem:[#allocation11 + $0xc8] sm:$0xff]  ;;  %v1156_v12 = vld [vmem:[#allocation11 + $0xc0] sm:$0xff] }
  0xed   :  { %10041 = vmatpush1.bf16.msra.mxu0 %v13840_v5  ;;  %489 = vmatprep.mubr.f32.mxu1 %v16594_v0  ;;  %v13972_v14 = vpack.c.bf16 %v1161_v62, %v1157_v61  ;;  %v929_v16 = vld [vmem:[#allocation8 + $0x118] sm:$0xff]  ;;  %v928_v27 = vld [vmem:[#allocation8 + $0x110] sm:$0xff]  ;;  %v1164_v34 = vld [vmem:[#allocation11 + $0x100] sm:$0xff] }
  0xee   :  { %708 = vmatprep.mubr.f32.mxu0 %v16594_v0  ;;  %10019 = vmatpush1.bf16.msra.mxu1 %v10018_v6  ;;  %v954_v6 = vld [vmem:[#allocation8 + $0x1e0] sm:$0xff]  ;;  %v932_v33 = vld [vmem:[#allocation8 + $0x130] sm:$0xff]  ;;  %v937_v40 = vld [vmem:[#allocation8 + $0x158] sm:$0xff] }
  0xef   :  { %10043 = vmatprep.subr.bf16.mxu0 %v13845_v9  ;;  %10021 = vmatprep.subr.bf16.mxu1 %v10020_v13  ;;  %v13917_v13 = vpack.c.bf16 %v954_v6, %v950_v4  ;;  %v920_v4 = vld [vmem:[#allocation8 + $0xd0] sm:$0xff]  ;;  %v13969_v6 = vpack.c.bf16 %v925_v59, %v921_v57  ;;  %v941_v41 = vld [vmem:[#allocation8 + $0x178] sm:$0xff]  ;;  %v1172_v59 = vld [vmem:[#allocation11 + $0x140] sm:$0xff] }
  0xf0   :  { %9767 = vmatmul.mubr.msk.f32.gmra.mrb[10].mxu1 %vm262_vm3, %v13789_v11  ;;  %9777 = vmatmul.mubr.msk.f32.gmra.mrb[14].mxu0 %vm262_vm3, %v13789_v11  ;;  %v940_v57 = vld [vmem:[#allocation8 + $0x170] sm:$0xff]  ;;  %v945_v62 = vld [vmem:[#allocation8 + $0x198] sm:$0xff] }
  0xf1   :  { %10045 = vmatpush1.bf16.msra.mxu0 %v13853_v17  ;;  %495 = vmatprep.mubr.f32.mxu1 %v16594_v0 }
  0xf2   :  { %714 = vmatprep.mubr.f32.mxu0 %v16594_v0  ;;  %10047 = vmatprep.subr.bf16.mxu0 %v13856_v18 }
  0xf3   :  { %10023 = vmatpush1.bf16.msra.mxu1 %v10022_v21  ;;  %v1136_v21 = vld [vmem:[#allocation11 + $0x20] sm:$0xff] }
  0xf4   :  { %9768 = vmatmul.mubr.msk.f32.gmra.mrb[12].mxu1 %vm262_vm3, %v13805_v25  ;;  %9778 = vmatmul.mubr.msk.f32.gmra.mrb[16].mxu0 %vm262_vm3, %v13805_v25  ;;  %v13934_v30 = vpack.c.bf16 %v1136_v21, %v1132_v20  ;;  %v933_v20 = vld [vmem:[#allocation8 + $0x138] sm:$0xff]  ;;  %v1165_v21 = vld [vmem:[#allocation11 + $0x108] sm:$0xff] }
  0xf5   :  { %10049 = vmatpush1.bf16.msra.mxu0 %v13865_v28  ;;  %501 = vmatprep.mubr.f32.mxu1 %v16594_v0  ;;  %v13984_v31 = vpack.c.bf16 %v933_v20, %v929_v16  ;;  %v944_v20 = vld [vmem:[#allocation8 + $0x190] sm:$0xff] }
  0xf6   :  { %720 = vmatprep.mubr.f32.mxu0 %v16594_v0  ;;  %10051 = vmatprep.subr.bf16.mxu0 %v13869_v29 }
  0xf7   :  { %10025 = vmatprep.subr.bf16.mxu1 %v10024_v32  ;;  %v13938_v32 = vpack.c.bf16 %v909_v23, %v905_v22  ;;  %v1169_v22 = vld [vmem:[#allocation11 + $0x128] sm:$0xff]  ;;  %v13978_v23 = vpack.c.bf16 %v924_v10, %v920_v4  ;;  %v949_v4 = vld [vmem:[#allocation8 + $0x1b8] sm:$0xff] }
  0xf8   :  { %9769 = vmatmul.mubr.msk.f32.gmra.mrb[14].mxu1 %vm262_vm3, %v13814_v39  ;;  %9779 = vmatmul.mubr.msk.f32.gmra.mrb[18].mxu0 %vm262_vm3, %v13814_v39  ;;  %v13987_v35 = vpack.c.bf16 %v1169_v22, %v1165_v21  ;;  %v1181_v10 = vld [vmem:[#allocation11 + $0x188] sm:$0xff]  ;;  %v14014_v21 = vpack.c.bf16 %v949_v4, %v945_v62  ;;  %v948_v22 = vld [vmem:[#allocation8 + $0x1b0] sm:$0xff]  ;;  %v1135_v4 = vld [vmem:[#allocation11 + $0x18] sm:$0xff] }
  0xf9   :  { %10053 = vmatpush1.bf16.msra.mxu0 %v13877_v37  ;;  %507 = vmatprep.mubr.f32.mxu1 %v16594_v0 }
  0xfa   :  { %726 = vmatprep.mubr.f32.mxu0 %v16594_v0  ;;  %10055 = vmatprep.subr.bf16.mxu0 %v13881_v38 }
  0xfb   :  { %10027 = vmatpush1.bf16.msra.mxu1 %v10026_v42  ;;  %v1149_v42 = vld [vmem:[#allocation11 + $0x88] sm:$0xff] }
  0xfc   :  { %9770 = vmatmul.mubr.msk.f32.gmra.mrb[16].mxu1 %vm262_vm3, %v13764_v47  ;;  %9780 = vmatmul.mubr.msk.f32.gmra.mrb[20].mxu0 %vm262_vm3, %v13764_v47  ;;  %v13956_v56 = vpack.c.bf16 %v1153_v43, %v1149_v42  ;;  %v1173_v42 = vld [vmem:[#allocation11 + $0x148] sm:$0xff] }
  0xfd   :  { %10057 = vmatpush1.bf16.msra.mxu0 %v13889_v50  ;;  %513 = vmatprep.mubr.f32.mxu1 %v16594_v0  ;;  %v1177_v43 = vld [vmem:[#allocation11 + $0x168] sm:$0xff] }
  0xfe   :  { %732 = vmatprep.mubr.f32.mxu0 %v16594_v0  ;;  %10059 = vmatprep.subr.bf16.mxu0 %v13893_v51  ;;  %v14002_v61 = vpack.c.bf16 %v1177_v43, %v1173_v42  ;;  %v14023_v42 = vpack.c.bf16 %v948_v22, %v944_v20 }
  0xff   :  { %10030 = vmatprep.subr.msk.bf16.mxu1 %vm13744_vm2, %v10028_v54  ;;  %v1152_v54 = vld [vmem:[#allocation11 + $0xa0] sm:$0xff] }
 0x100   :  { %9771 = vmatmul.mubr.msk.f32.gmra.mrb[18].mxu1 %vm262_vm3, %v13778_v1  ;;  %9781 = vmatmul.mubr.msk.f32.gmra.mrb[22].mxu0 %vm262_vm3, %v13778_v1 }
 0x101   :  { %10061 = vmatpush1.bf16.msra.mxu0 %v13901_v2  ;;  %519 = vmatprep.mubr.f32.mxu1 %v16594_v0 }
 0x102   :  { %738 = vmatprep.mubr.f32.mxu0 %v16594_v0  ;;  %10033 = vmatpush1.bf16.msk.msra.mxu1 %vm13744_vm2, %v10031_v3  ;;  %v13965_v3 = vpack.c.bf16 %v1152_v54, %v1148_v53  ;;  %v936_v53 = vld [vmem:[#allocation8 + $0x150] sm:$0xff]  ;;  %v13999_v54 = vpack.c.bf16 %v941_v41, %v937_v40  ;;  %v1189_v40 = vld [vmem:[#allocation11 + $0x1c8] sm:$0xff] }
 0x103   :  { %10063 = vmatprep.subr.bf16.mxu0 %v13907_v7  ;;  %10067 = vmatprep.subr.bf16.mxu1 %v13909_v8  ;;  %v1193_v41 = vld [vmem:[#allocation11 + $0x1e8] sm:$0xff] }
 0x104   :  { %9772 = vmatmul.mubr.msk.f32.gmra.mrb[20].mxu1 %vm262_vm3, %v13794_v15  ;;  %9782 = vmatmul.mubr.msk.f32.gmra.mrb[24].mxu0 %vm262_vm3, %v13794_v15  ;;  %v14032_v62 = vpack.c.bf16 %v1193_v41, %v1189_v40  ;;  %v1142_v41 = vld [vmem:[#allocation11 + $0x50] sm:$0xff] }
 0x105   :  { %10065 = vmatpush1.bf16.msra.mxu0 %v13917_v13  ;;  %809 = vmatprep.mubr.f32.mxu1 %v16594_v0 }
 0x106   :  { %1022 = vmatprep.mubr.f32.mxu0 %v16594_v0  ;;  %10099 = vmatprep.subr.bf16.mxu0 %v13922_v19 }
 0x108   :  { %9785 = vmatmul.mubr.msk.f32.vlgmr.msra.gmra.mrb[22].mxu1 %vm262_vm3, %v13759_v46  ;;  %1023 = vmatmul.mubr.f32.vlgmr.msra.gmra.mrb[0].mxu0 %v16594_v0  ;;  %v916_v46 = vld [vmem:[#allocation8 + $0xb0] sm:$0xff] }
 0x109   :  { %10069 = vmatpush1.bf16.msra.mxu1 %v13932_v26  ;;  %10101 = vmatpush1.bf16.msra.mxu0 %v13934_v30  ;;  %v13963_v63 = vpack.c.bf16 %v916_v46, %v912_v48  ;;  %v13993_v48 = vpack.c.bf16 %v932_v33, %v928_v27  ;;  %v1180_v27 = vld [vmem:[#allocation11 + $0x180] sm:$0xff] }
 0x10a   :  { %815 = vmatprep.mubr.f32.mxu1 %v16594_v0  ;;  %10071 = vmatprep.subr.bf16.mxu1 %v13938_v32 }
 0x10b   :  { %10103 = vmatprep.subr.bf16.mxu0 %v13940_v36  ;;  %1260 = vmatprep.mubr.f32.mxu0 %v16594_v0 }
 0x10c   :  { %9786 = vmatmul.mubr.msk.f32.gmra.mrb[24].mxu1 %vm262_vm3, %v13773_v60  ;;  %v1160_v60 = vld [vmem:[#allocation11 + $0xe0] sm:$0xff] }
 0x10d   :  { %10073 = vmatpush1.bf16.msra.mxu1 %v13947_v44  ;;  %10105 = vmatpush1.bf16.msra.mxu0 %v13949_v45  ;;  %v13980_v24 = vpack.c.bf16 %v1160_v60, %v1156_v12  ;;  %v1185_v12 = vld [vmem:[#allocation11 + $0x1a8] sm:$0xff]  ;;  %v14008_v60 = vpack.c.bf16 %v940_v57, %v936_v53  ;;  %v952_v53 = vld [vmem:[#allocation8 + $0x1d0] sm:$0xff] }
 0x10e   :  { %821 = vmatprep.mubr.f32.mxu1 %v16594_v0  ;;  %10075 = vmatprep.subr.bf16.mxu1 %v13953_v52  ;;  %v14017_v33 = vpack.c.bf16 %v1185_v12, %v1181_v10  ;;  %v1139_v10 = vld [vmem:[#allocation11 + $0x38] sm:$0xff] }
 0x10f   :  { %10107 = vmatprep.subr.bf16.mxu0 %v13956_v56  ;;  %v14044_v22 = vpack.c.bf16 %v1139_v10, %v1135_v4  ;;  %v1150_v4 = vld [vmem:[#allocation11 + $0x90] sm:$0xff] }
 0x110   :  { %9787 = vmatmul.mubr.msk.f32.gmra.mrb[26].mxu1 %vm262_vm3, %v13789_v11  ;;  %v1168_v11 = vld [vmem:[#allocation11 + $0x120] sm:$0xff]  ;;  %v1154_v10 = vld [vmem:[#allocation11 + $0xb0] sm:$0xff] }
 0x111   :  { %10077 = vmatpush1.bf16.msra.mxu1 %v13963_v63  ;;  %10109 = vmatpush1.bf16.msra.mxu0 %v13965_v3  ;;  %v13995_v46 = vpack.c.bf16 %v1168_v11, %v1164_v34  ;;  %v953_v34 = vld [vmem:[#allocation8 + $0x1d8] sm:$0xff] }
 0x112   :  { %827 = vmatprep.mubr.f32.mxu1 %v16594_v0  ;;  %10079 = vmatprep.subr.bf16.mxu1 %v13969_v6  ;;  %v957_v11 = vld [vmem:[#allocation8 + $0x1f8] sm:$0xff] }
 0x113   :  { %10111 = vmatprep.subr.bf16.mxu0 %v13972_v14  ;;  %v14029_v57 = vpack.c.bf16 %v957_v11, %v953_v34  ;;  %v1143_v34 = vld [vmem:[#allocation11 + $0x58] sm:$0xff] }
 0x114   :  { %9788 = vmatmul.mubr.msk.f32.gmra.mrb[28].mxu1 %vm262_vm3, %v13805_v25  ;;  %v1176_v25 = vld [vmem:[#allocation11 + $0x160] sm:$0xff] }
 0x115   :  { %10081 = vmatpush1.bf16.msra.mxu1 %v13978_v23  ;;  %10113 = vmatpush1.bf16.msra.mxu0 %v13980_v24  ;;  %v14010_v16 = vpack.c.bf16 %v1176_v25, %v1172_v59  ;;  %v956_v59 = vld [vmem:[#allocation8 + $0x1f0] sm:$0xff]  ;;  %v1188_v25 = vld [vmem:[#allocation11 + $0x1c0] sm:$0xff] }
 0x116   :  { %833 = vmatprep.mubr.f32.mxu1 %v16594_v0  ;;  %10083 = vmatprep.subr.bf16.mxu1 %v13984_v31  ;;  %v14038_v12 = vpack.c.bf16 %v956_v59, %v952_v53  ;;  %v1146_v53 = vld [vmem:[#allocation11 + $0x70] sm:$0xff]  ;;  %v1151_v59 = vld [vmem:[#allocation11 + $0x98] sm:$0xff] }
 0x117   :  { %10115 = vmatprep.subr.bf16.mxu0 %v13987_v35 }
 0x118   :  { %9789 = vmatmul.mubr.msk.f32.gmra.mrb[30].mxu1 %vm262_vm3, %v13814_v39  ;;  %v1184_v39 = vld [vmem:[#allocation11 + $0x1a0] sm:$0xff] }
 0x119   :  { %10085 = vmatpush1.bf16.msra.mxu1 %v13993_v48  ;;  %10117 = vmatpush1.bf16.msra.mxu0 %v13995_v46  ;;  %v14025_v43 = vpack.c.bf16 %v1184_v39, %v1180_v27  ;;  %v1134_v27 = vld [vmem:[#allocation11 + $0x10] sm:$0xff] }
 0x11a   :  { %839 = vmatprep.mubr.f32.mxu1 %v16594_v0  ;;  %10087 = vmatprep.subr.bf16.mxu1 %v13999_v54  ;;  %v1138_v39 = vld [vmem:[#allocation11 + $0x30] sm:$0xff] }
 0x11b   :  { %10119 = vmatprep.subr.bf16.mxu0 %v14002_v61  ;;  %v14051_v11 = vpack.c.bf16 %v1138_v39, %v1134_v27  ;;  %v1159_v27 = vld [vmem:[#allocation11 + $0xd8] sm:$0xff]  ;;  %v14071_v39 = vpack.c.bf16 %v1154_v10, %v1150_v4  ;;  %v1170_v4 = vld [vmem:[#allocation11 + $0x130] sm:$0xff] }
 0x11c   :  { %9790 = vmatmul.mubr.msk.f32.gmra.mrb[32].mxu1 %vm262_vm3, %v13764_v47  ;;  %v1192_v47 = vld [vmem:[#allocation11 + $0x1e0] sm:$0xff]  ;;  %v1175_v10 = vld [vmem:[#allocation11 + $0x158] sm:$0xff] }
 0x11d   :  { %10089 = vmatpush1.bf16.msra.mxu1 %v14008_v60  ;;  %10121 = vmatpush1.bf16.msra.mxu0 %v14010_v16  ;;  %v14040_v20 = vpack.c.bf16 %v1192_v47, %v1188_v25  ;;  %v1155_v25 = vld [vmem:[#allocation11 + $0xb8] sm:$0xff] }
 0x11e   :  { %845 = vmatprep.mubr.f32.mxu1 %v16594_v0  ;;  %10091 = vmatprep.subr.bf16.mxu1 %v14014_v21  ;;  %v14065_v47 = vpack.c.bf16 %v1155_v25, %v1151_v59  ;;  %v1166_v25 = vld [vmem:[#allocation11 + $0x110] sm:$0xff] }
 0x11f   :  { %10123 = vmatprep.subr.bf16.mxu0 %v14017_v33 }
 0x120   :  { %9791 = vmatmul.mubr.msk.f32.gmra.mrb[34].mxu1 %vm262_vm3, %v13778_v1  ;;  %v1147_v1 = vld [vmem:[#allocation11 + $0x78] sm:$0xff] }
 0x121   :  { %10093 = vmatpush1.bf16.msra.mxu1 %v14023_v42  ;;  %10125 = vmatpush1.bf16.msra.mxu0 %v14025_v43  ;;  %v14055_v40 = vpack.c.bf16 %v1147_v1, %v1143_v34  ;;  %v1158_v1 = vld [vmem:[#allocation11 + $0xd0] sm:$0xff] }
 0x122   :  { %851 = vmatprep.mubr.f32.mxu1 %v16594_v0  ;;  %10095 = vmatprep.subr.bf16.mxu1 %v14029_v57 }
 0x123   :  { %10127 = vmatprep.subr.bf16.mxu0 %v14032_v62 }
 0x124   :  { %9792 = vmatmul.mubr.msk.f32.gmra.mrb[36].mxu1 %vm262_vm3, %v13794_v15  ;;  %v14061_v15 = vpack.c.bf16 %v1146_v53, %v1142_v41  ;;  %v1162_v41 = vld [vmem:[#allocation11 + $0xf0] sm:$0xff]  ;;  %v1167_v53 = vld [vmem:[#allocation11 + $0x118] sm:$0xff] }
 0x125   :  { %10097 = vmatpush1.bf16.msra.mxu1 %v14038_v12  ;;  %10129 = vmatpush1.bf16.msra.mxu0 %v14040_v20 }
 0x126   :  { %1093 = vmatprep.mubr.f32.mxu1 %v16594_v0  ;;  %10131 = vmatprep.subr.bf16.mxu1 %v14044_v22 }
 0x127   :  { %10163 = vmatprep.subr.bf16.mxu0 %v13821_v49  ;;  %v1163_v49 = vld [vmem:[#allocation11 + $0xf8] sm:$0xff] }
 0x128   :  { %1094 = vmatmul.mubr.f32.vlgmr.msra.gmra.mrb[6].mxu1 %v16594_v0  ;;  %1261 = vmatmul.mubr.f32.vlgmr.msra.gmra.mrb[24].mxu0 %v16594_v0  ;;  %v14074_v34 = vpack.c.bf16 %v1163_v49, %v1159_v27  ;;  %v1179_v27 = vld [vmem:[#allocation11 + $0x178] sm:$0xff]  ;;  %v1174_v49 = vld [vmem:[#allocation11 + $0x150] sm:$0xff] }
 0x129   :  { %10133 = vmatpush1.bf16.msra.mxu1 %v14051_v11  ;;  %1331 = vmatprep.mubr.f32.mxu1 %v16594_v0 }
 0x12a   :  { %10135 = vmatprep.subr.bf16.mxu1 %v14055_v40  ;;  %10165 = vmatpush1.bf16.msra.mxu0 %v13829_v55  ;;  %v1171_v55 = vld [vmem:[#allocation11 + $0x138] sm:$0xff] }
 0x12b   :  { %10167 = vmatprep.subr.bf16.mxu0 %v13833_v58  ;;  %1500 = vmatprep.mubr.f32.mxu0 %v16594_v0  ;;  %v14079_v58 = vpack.c.bf16 %v1162_v41, %v1158_v1  ;;  %v14082_v59 = vpack.c.bf16 %v1171_v55, %v1167_v53  ;;  %v1178_v1 = vld [vmem:[#allocation11 + $0x170] sm:$0xff]  ;;  %v1183_v41 = vld [vmem:[#allocation11 + $0x198] sm:$0xff] }
 0x12c   :  { %v1187_v53 = vld [vmem:[#allocation11 + $0x1b8] sm:$0xff]  ;;  %v1182_v55 = vld [vmem:[#allocation11 + $0x190] sm:$0xff] }
 0x12d   :  { %10137 = vmatpush1.bf16.msra.mxu1 %v14061_v15 }
 0x12e   :  { %10139 = vmatprep.subr.bf16.mxu1 %v14065_v47  ;;  %10169 = vmatpush1.bf16.msra.mxu0 %v13840_v5  ;;  %v14087_v5 = vpack.c.bf16 %v1170_v4, %v1166_v25  ;;  %v1186_v25 = vld [vmem:[#allocation11 + $0x1b0] sm:$0xff]  ;;  %v1191_v4 = vld [vmem:[#allocation11 + $0x1d8] sm:$0xff] }
 0x12f   :  { %10171 = vmatprep.subr.bf16.mxu0 %v13845_v9  ;;  %v14090_v9 = vpack.c.bf16 %v1179_v27, %v1175_v10  ;;  %v1195_v10 = vld [vmem:[#allocation11 + $0x1f8] sm:$0xff]  ;;  %v1190_v27 = vld [vmem:[#allocation11 + $0x1d0] sm:$0xff] }
 0x131   :  { %10141 = vmatpush1.bf16.msra.mxu1 %v14071_v39 }
 0x132   :  { %10143 = vmatprep.subr.bf16.mxu1 %v14074_v34  ;;  %10173 = vmatpush1.bf16.msra.mxu0 %v13853_v17  ;;  %v14095_v17 = vpack.c.bf16 %v1178_v1, %v1174_v49  ;;  %v1194_v49 = vld [vmem:[#allocation11 + $0x1f0] sm:$0xff] }
 0x133   :  { %10175 = vmatprep.subr.bf16.mxu0 %v13856_v18  ;;  %v14098_v18 = vpack.c.bf16 %v1187_v53, %v1183_v41 }
 0x135   :  { %10145 = vmatpush1.bf16.msra.mxu1 %v14079_v58 }
 0x136   :  { %10147 = vmatprep.subr.bf16.mxu1 %v14082_v59  ;;  %10177 = vmatpush1.bf16.msra.mxu0 %v13865_v28  ;;  %v14103_v28 = vpack.c.bf16 %v1186_v25, %v1182_v55 }
 0x137   :  { %10179 = vmatprep.subr.bf16.mxu0 %v13869_v29  ;;  %v14106_v29 = vpack.c.bf16 %v1195_v10, %v1191_v4  ;;  %v598_v10 = vld [vmem:[%s16580_s6] sm:$0xf] }
 0x139   :  { %10149 = vmatpush1.bf16.msra.mxu1 %v14087_v5 }
 0x13a   :  { %10151 = vmatprep.subr.bf16.mxu1 %v14090_v9  ;;  %10181 = vmatpush1.bf16.msra.mxu0 %v13877_v37  ;;  %v14111_v37 = vpack.c.bf16 %v1194_v49, %v1190_v27 }
 0x13b   :  { %10183 = vmatprep.subr.bf16.mxu0 %v13881_v38 }
 0x13d   :  { %10153 = vmatpush1.bf16.msra.mxu1 %v14095_v17 }
 0x13e   :  { %10155 = vmatprep.subr.bf16.mxu1 %v14098_v18  ;;  %10185 = vmatpush1.bf16.msra.mxu0 %v13889_v50 }
 0x13f   :  { %10187 = vmatprep.subr.bf16.mxu0 %v13893_v51 }
 0x141   :  { %10157 = vmatpush1.bf16.msra.mxu1 %v14103_v28 }
 0x142   :  { %10159 = vmatprep.subr.bf16.mxu1 %v14106_v29  ;;  %10189 = vmatpush1.bf16.msra.mxu0 %v13901_v2 }
 0x143   :  { %10191 = vmatprep.subr.bf16.mxu0 %v13907_v7 }
 0x145   :  { %10161 = vmatpush1.bf16.msra.mxu1 %v14111_v37 }
 0x146   :  { %10195 = vmatprep.subr.bf16.mxu1 %v13909_v8  ;;  %10193 = vmatpush1.bf16.msra.mxu0 %v13917_v13  ;;  %v242_v13 = vlaneseq }
 0x147   :  { %10227 = vmatprep.subr.bf16.mxu0 %v13922_v19 }
 0x148   :  { %1332 = vmatmul.mubr.f32.vlgmr.msra.gmra.mrb[36].mxu1 %v16594_v0  ;;  %v243_v19 = vshrl.u32 %v242_v13, 7 }
 0x149   :  { %10197 = vmatpush1.bf16.msra.mxu1 %v13932_v26  ;;  %1571 = vmatprep.mubr.f32.mxu1 %v16594_v0 }
 0x14a   :  { %10199 = vmatprep.subr.bf16.mxu1 %v13938_v32 }
 0x14d   :  { %10201 = vmatpush1.bf16.msra.mxu1 %v13947_v44  ;;  %v14150_v44 = vsub.s32 1, %v243_v19 }
 0x14e   :  { %10203 = vmatprep.subr.bf16.mxu1 %v13953_v52  ;;  %v240_v52 = vld [vmem:[%s16577_s3] sm:$0xf] }
 0x14f   :  { %16800 = vst [vmem:[#allocation34_spill] sm:$0xff] %v14150_v44 }
 0x151   :  { %10205 = vmatpush1.bf16.msra.mxu1 %v13963_v63  ;;  %v14155_v63 = vsub.s32 0, %v243_v19 }
 0x152   :  { %10207 = vmatprep.subr.bf16.mxu1 %v13969_v6  ;;  %v14158_v6 = vrot.slane %v240_v52, %v14150_v44 }
 0x153   :  { %16801 = vst [vmem:[#allocation35_spill] sm:$0xff] %v14155_v63 }
 0x154   :  { %16802 = vst [vmem:[#allocation36_spill] sm:$0xff] %v14158_v6 }
 0x155   :  { %10209 = vmatpush1.bf16.msra.mxu1 %v13978_v23  ;;  %v14161_v23 = vrot.slane %v240_v52, %v14155_v63 }
 0x156   :  { %10211 = vmatprep.subr.bf16.mxu1 %v13984_v31 }
 0x159   :  { %10213 = vmatpush1.bf16.msra.mxu1 %v13993_v48 }
 0x15a   :  { %10215 = vmatprep.subr.bf16.mxu1 %v13999_v54 }
 0x15d   :  { %10217 = vmatpush1.bf16.msra.mxu1 %v14008_v60 }
 0x15e   :  { %10219 = vmatprep.subr.bf16.mxu1 %v14014_v21  ;;  %v14165_v21 = vsub.s32 2, %v243_v19 }
 0x160   :  { %16803 = vst [vmem:[#allocation37_spill] sm:$0xff] %v14165_v21  ;;  %v14170_v1 = vrot.slane %v240_v52, %v14165_v21  ;;  %v14192_v0 = vrot.slane %v598_v10, %v14165_v21 }
 0x161   :  { %10221 = vmatpush1.bf16.msra.mxu1 %v14023_v42 }
 0x162   :  { %10223 = vmatprep.subr.bf16.mxu1 %v14029_v57  ;;  %v14167_v57 = vsub.s32 3, %v243_v19  ;;  %16805 = vst [vmem:[#allocation39_spill] sm:$0xff] %v14170_v1 }
 0x164   :  { %16804 = vst [vmem:[#allocation38_spill] sm:$0xff] %v14167_v57  ;;  %v14173_v53 = vrot.slane %v240_v52, %v14167_v57 }
 0x165   :  { %10225 = vmatpush1.bf16.msra.mxu1 %v14038_v12 }
 0x166   :  { %10259 = vmatprep.subr.bf16.mxu1 %v14044_v22  ;;  %16806 = vst [vmem:[#allocation40_spill] sm:$0xff] %v14173_v53 }
 0x1a7   :  { %v14138_v38 = vpop.f32.mrb[0].mxu1 }
 0x1a8   :  { %16794 = vst [vmem:[#allocation28_spill] sm:$0xff] %v14138_v38  ;;  %v14140_v50 = vpop.f32.mrb[1].mxu1 }
 0x1a9   :  { %16795 = vst [vmem:[#allocation29_spill] sm:$0xff] %v14140_v50 }
 0x1ab   :  { %v14142_v51 = vpop.f32.mrb[2].mxu1 }
 0x1ac   :  { %16796 = vst [vmem:[#allocation30_spill] sm:$0xff] %v14142_v51  ;;  %v14144_v2 = vpop.f32.mrb[3].mxu1 }
 0x1ad   :  { %16797 = vst [vmem:[#allocation31_spill] sm:$0xff] %v14144_v2 }
 0x1af   :  { %v14146_v7 = vpop.f32.mrb[4].mxu1 }
 0x1b0   :  { %16798 = vst [vmem:[#allocation32_spill] sm:$0xff] %v14146_v7  ;;  %v14148_v8 = vpop.f32.mrb[5].mxu1 }
 0x1b1   :  { %16799 = vst [vmem:[#allocation33_spill] sm:$0xff] %v14148_v8 }
 0x1db   :  { %v1024_v26 = vpop.f32.mrb[0].mxu0 }
 0x1dc   :  { %v1026_v32 = vpop.f32.mrb[1].mxu0  ;;  %v12444_v48 = vadd.f32 %v1024_v26, %v14161_v23  ;;  %v14181_v26 = vrot.slane %v598_v10, %v14150_v44 }
 0x1dd   :  { %v12445_v31 = vadd.f32 %v1026_v32, %v14158_v6  ;;  %v14184_v32 = vrot.slane %v598_v10, %v14155_v63 }
 0x1de   :  { %v9793_v60 = vmul.f32 -1.442695, %v12444_v48  ;;  %16807 = vst [vmem:[#allocation41_spill] sm:$0xff] %v14181_v26 }
 0x1df   :  { %v9794_v54 = vmul.f32 -1.442695, %v12445_v31  ;;  %16808 = vst [vmem:[#allocation42_spill] sm:$0xff] %v14184_v32 }
 0x1e1   :  { %12718 = vpow2.f32 %v9794_v54 }
 0x1e2   :  { %12720 = vpow2.f32 %v9793_v60 }
 0x1eb   :  { %v12719_v42 = vpop.eup %12718 }
 0x1ec   :  { %v12721_v12 = vpop.eup %12720  ;;  %v1113_v22 = vadd.f32 1.0, %v12719_v42 }
 0x1ed   :  { %v1107_v41 = vadd.f32 1.0, %v12721_v12 }
 0x1ee   :  { %12722 = vrcp.f32 %v1113_v22 }
 0x1ef   :  { %12724 = vrcp.f32 %v1107_v41 }
 0x1f8   :  { %v12723_v48 = vpop.eup %12722 }
 0x1f9   :  { %v12725_v54 = vpop.eup %12724  ;;  %v1123_v22 = vmul.f32 0.0, %v12723_v48  ;;  %v14195_v48 = vrot.slane %v598_v10, %v14167_v57 }
 0x1fb   :  { %v1095_v55 = vpop.f32.mrb[6].mxu1  ;;  %v1262_v25 = vpop.f32.mrb[24].mxu0  ;;  %16809 = vst [vmem:[#allocation43_spill] sm:$0xff] %v14195_v48 }
 0x1fc   :  { %v12466_v4 = vadd.f32 %v1095_v55, %v14170_v1  ;;  %v1097_v27 = vpop.f32.mrb[7].mxu1  ;;  %v1264_v49 = vpop.f32.mrb[25].mxu0  ;;  %v12496_v31 = vadd.f32 %v1262_v25, %v14184_v32 }
 0x1fd   :  { %v12467_v13 = vadd.f32 %v1097_v27, %v14173_v53  ;;  %v12497_v52 = vadd.f32 %v1264_v49, %v14181_v26 }
 0x1fe   :  { %12726 = vtanh.f32 %v12466_v4  ;;  %v9796_v12 = vmul.f32 -1.442695, %v12496_v31 }
 0x1ff   :  { %v9795_v19 = vmul.f32 -1.442695, %v12467_v13  ;;  %v9797_v60 = vmul.f32 -1.442695, %v12497_v52 }
 0x201   :  { %12728 = vpow2.f32 %v9795_v19 }
 0x202   :  { %12730 = vpow2.f32 %v9797_v60 }
 0x203   :  { %12732 = vpow2.f32 %v9796_v12 }
 0x208   :  { %v12727_v42 = vpop.eup %12726 }
 0x209   :  { %v1124_v41 = vmul.f32 %v12727_v42, %v12725_v54 }
 0x20b   :  { %v12729_v55 = vpop.eup %12728  ;;  %v14188_v4 = vadd.f32 %v1124_v41, %v1123_v22  ;;  %v16811_v41 = vmov 0.0  }
 0x20c   :  { %v1120_v27 = vadd.f32 1.0, %v12729_v55  ;;  %v12731_v13 = vpop.eup %12730 }
 0x20d   :  { %12734 = vtanh.f32 %v14188_v4  ;;  %v12733_v49 = vpop.eup %12732  ;;  %v1351_v25 = vadd.f32 1.0, %v12731_v13  ;;  %v1860_v13 = vld [vmem:[#allocation8 + $0x50] sm:$0xff] }
 0x20e   :  { %12736 = vrcp.f32 %v1120_v27  ;;  %v1345_v31 = vadd.f32 1.0, %v12733_v49  ;;  %v1864_v49 = vld [vmem:[#allocation8 + $0x70] sm:$0xff] }
 0x20f   :  { %12738 = vrcp.f32 %v1351_v25  ;;  %v1867_v25 = vld [vmem:[#allocation8 + $0x88] sm:$0xff] }
 0x210   :  { %12740 = vrcp.f32 %v1345_v31  ;;  %v1869_v31 = vld [vmem:[#allocation8 + $0x98] sm:$0xff] }
 0x217   :  { %v12735_v19 = vpop.eup %12734 }
 0x218   :  { %v12737_v52 = vpop.eup %12736 }
 0x219   :  { %v14197_v54 = vmul.f32 %v12737_v52, %v12735_v19  ;;  %v14263_v19 = vpack.c.bf16 %v1864_v49, %v1860_v13  ;;  %v1871_v52 = vld [vmem:[#allocation8 + $0xa8] sm:$0xff] }
 0x21b   :  { %16810 = vst [vmem:[#allocation44_spill] sm:$0xff] %v14197_v54  ;;  %v1333_v60 = vpop.f32.mrb[36].mxu1  ;;  %1501 = vmatmul.mubr.f32.vlgmr.msra.gmra.mrb[2].mxu0 %v14197_v54  ;;  %1572 = vmatmul.mubr.f32.vlgmr.msra.gmra.mrb[8].mxu1 %v14197_v54 }
 0x21c   :  { %v12512_v42 = vadd.f32 %v1333_v60, %v14192_v0  ;;  %v1335_v12 = vpop.f32.mrb[37].mxu1  ;;  %10229 = vmatpush1.bf16.msra.mxu0 %v13934_v30  ;;  %10261 = vmatpush1.bf16.msra.mxu1 %v14051_v11  ;;  %v12739_v30 = vpop.eup %12738  ;;  %v14268_v60 = vpack.c.bf16 %v1871_v52, %v1867_v25  ;;  %v1884_v25 = vld [vmem:[#allocation8 + $0x110] sm:$0xff] }
 0x21d   :  { %v12513_v22 = vadd.f32 %v1335_v12, %v14195_v48  ;;  %10231 = vmatprep.subr.bf16.mxu0 %v13940_v36  ;;  %10263 = vmatprep.subr.bf16.mxu1 %v14055_v40  ;;  %v12741_v36 = vpop.eup %12740  ;;  %v1361_v40 = vmul.f32 0.0, %v12739_v30  ;;  %v1866_v12 = vld [vmem:[#allocation8 + $0x80] sm:$0xff]  ;;  %v1888_v52 = vld [vmem:[#allocation8 + $0x130] sm:$0xff] }
 0x21e   :  { %12742 = vtanh.f32 %v12512_v42  ;;  %1738 = vmatprep.mubr.f32.mxu0 %v16811_v41  ;;  %1809 = vmatprep.mubr.f32.mxu1 %v16811_v41  ;;  %v1873_v42 = vld [vmem:[#allocation8 + $0xb8] sm:$0xff] }
 0x21f   :  { %v9798_v10 = vmul.f32 -1.442695, %v12513_v22  ;;  %v1870_v22 = vld [vmem:[#allocation8 + $0xa0] sm:$0xff] }
 0x220   :  { %10233 = vmatpush1.bf16.msra.mxu0 %v13949_v45  ;;  %10265 = vmatpush1.bf16.msra.mxu1 %v14061_v15  ;;  %v1854_v15 = vld [vmem:[#allocation8 + $0x20] sm:$0xff]  ;;  %v14272_v30 = vpack.c.bf16 %v1870_v22, %v1866_v12  ;;  %v1895_v12 = vld [vmem:[#allocation8 + $0x168] sm:$0xff]  ;;  %v1893_v22 = vld [vmem:[#allocation8 + $0x158] sm:$0xff] }
 0x221   :  { %12744 = vpow2.f32 %v9798_v10  ;;  %10235 = vmatprep.subr.bf16.mxu0 %v13956_v56  ;;  %10267 = vmatprep.subr.bf16.mxu1 %v14065_v47  ;;  %v14270_v10 = vpack.c.bf16 %v1873_v42, %v1869_v31  ;;  %v14299_v31 = vpack.c.bf16 %v1888_v52, %v1884_v25  ;;  %v1891_v42 = vld [vmem:[#allocation8 + $0x148] sm:$0xff] }
 0x224   :  { %10237 = vmatpush1.bf16.msra.mxu0 %v13965_v3  ;;  %10269 = vmatpush1.bf16.msra.mxu1 %v14071_v39  ;;  %v1852_v39 = vld [vmem:[#allocation8 + $0x10] sm:$0xff] }
 0x225   :  { %10239 = vmatprep.subr.bf16.mxu0 %v13972_v14  ;;  %10271 = vmatprep.subr.bf16.mxu1 %v14074_v34  ;;  %v1856_v34 = vld [vmem:[#allocation8 + $0x30] sm:$0xff] }
 0x228   :  { %v12743_v11 = vpop.eup %12742  ;;  %10241 = vmatpush1.bf16.msra.mxu0 %v13980_v24  ;;  %10273 = vmatpush1.bf16.msra.mxu1 %v14079_v58  ;;  %v14251_v58 = vpack.c.bf16 %v1856_v34, %v1852_v39  ;;  %v1883_v34 = vld [vmem:[#allocation8 + $0x108] sm:$0xff] }
 0x229   :  { %v1362_v55 = vmul.f32 %v12743_v11, %v12741_v36  ;;  %10243 = vmatprep.subr.bf16.mxu0 %v13987_v35  ;;  %10275 = vmatprep.subr.bf16.mxu1 %v14082_v59  ;;  %v1859_v59 = vld [vmem:[#allocation8 + $0x48] sm:$0xff]  ;;  %v1868_v36 = vld [vmem:[#allocation8 + $0x90] sm:$0xff] }
 0x22a   :  { %v1872_v11 = vld [vmem:[#allocation8 + $0xb0] sm:$0xff] }
 0x22b   :  { %v12745_v45 = vpop.eup %12744  ;;  %v14221_v56 = vadd.f32 %v1362_v55, %v1361_v40  ;;  %v14275_v40 = vpack.c.bf16 %v1872_v11, %v1868_v36  ;;  %v1875_v55 = vld [vmem:[#allocation8 + $0xc8] sm:$0xff]  ;;  %v14304_v36 = vpack.c.bf16 %v1895_v12, %v1891_v42  ;;  %v1897_v11 = vld [vmem:[#allocation8 + $0x178] sm:$0xff]  ;;  %v1900_v42 = vld [vmem:[#allocation8 + $0x190] sm:$0xff] }
 0x22c   :  { %v1358_v3 = vadd.f32 1.0, %v12745_v45  ;;  %10245 = vmatpush1.bf16.msra.mxu0 %v13995_v46  ;;  %10277 = vmatpush1.bf16.msra.mxu1 %v14087_v5  ;;  %v1851_v46 = vld [vmem:[#allocation8 + $0x8] sm:$0xff]  ;;  %v1904_v12 = vld [vmem:[#allocation8 + $0x1b0] sm:$0xff] }
 0x22d   :  { %12746 = vtanh.f32 %v14221_v56  ;;  %10247 = vmatprep.subr.bf16.mxu0 %v14002_v61  ;;  %10279 = vmatprep.subr.bf16.mxu1 %v14090_v9  ;;  %v1855_v61 = vld [vmem:[#allocation8 + $0x28] sm:$0xff]  ;;  %v1861_v9 = vld [vmem:[#allocation8 + $0x58] sm:$0xff] }
 0x22e   :  { %12748 = vrcp.f32 %v1358_v3  ;;  %v1863_v5 = vld [vmem:[#allocation8 + $0x68] sm:$0xff]  ;;  %v1877_v3 = vld [vmem:[#allocation8 + $0xd8] sm:$0xff] }
 0x22f   :  { %v1879_v45 = vld [vmem:[#allocation8 + $0xe8] sm:$0xff] }
 0x230   :  { %10249 = vmatpush1.bf16.msra.mxu0 %v14010_v16  ;;  %10281 = vmatpush1.bf16.msra.mxu1 %v14095_v17  ;;  %v1853_v16 = vld [vmem:[#allocation8 + $0x18] sm:$0xff]  ;;  %v14256_v17 = vpack.c.bf16 %v1863_v5, %v1859_v59  ;;  %v1887_v59 = vld [vmem:[#allocation8 + $0x128] sm:$0xff] }
 0x231   :  { %10251 = vmatprep.subr.bf16.mxu0 %v14017_v33  ;;  %10283 = vmatprep.subr.bf16.mxu1 %v14098_v18  ;;  %v14244_v33 = vpack.c.bf16 %v1855_v61, %v1851_v46  ;;  %v1865_v18 = vld [vmem:[#allocation8 + $0x78] sm:$0xff]  ;;  %v1874_v46 = vld [vmem:[#allocation8 + $0xc0] sm:$0xff] }
 0x232   :  { %v1878_v61 = vld [vmem:[#allocation8 + $0xe0] sm:$0xff]  ;;  %v1885_v5 = vld [vmem:[#allocation8 + $0x118] sm:$0xff] }
 0x234   :  { %10253 = vmatpush1.bf16.msra.mxu0 %v14025_v43  ;;  %10285 = vmatpush1.bf16.msra.mxu1 %v14103_v28  ;;  %v1857_v43 = vld [vmem:[#allocation8 + $0x38] sm:$0xff]  ;;  %v1858_v28 = vld [vmem:[#allocation8 + $0x40] sm:$0xff] }
 0x235   :  { %10255 = vmatprep.subr.bf16.mxu0 %v14032_v62  ;;  %10287 = vmatprep.subr.bf16.mxu1 %v14106_v29  ;;  %v1850_v62 = vld [vmem:[#allocation8] sm:$0xff]  ;;  %v14246_v47 = vpack.c.bf16 %v1857_v43, %v1853_v16  ;;  %v14284_v43 = vpack.c.bf16 %v1878_v61, %v1874_v46  ;;  %v1892_v46 = vld [vmem:[#allocation8 + $0x150] sm:$0xff] }
 0x236   :  { %v1862_v29 = vld [vmem:[#allocation8 + $0x60] sm:$0xff]  ;;  %v1896_v61 = vld [vmem:[#allocation8 + $0x170] sm:$0xff] }
 0x237   :  { %v12747_v14 = vpop.eup %12746  ;;  %v14260_v27 = vpack.c.bf16 %v1862_v29, %v1858_v28  ;;  %v1882_v28 = vld [vmem:[#allocation8 + $0x100] sm:$0xff] }
 0x238   :  { %v12749_v24 = vpop.eup %12748  ;;  %10257 = vmatpush1.bf16.msra.mxu0 %v14040_v20  ;;  %10289 = vmatpush1.bf16.msra.mxu1 %v14111_v37  ;;  %v14248_v20 = vpack.c.bf16 %v1854_v15, %v1850_v62  ;;  %v14258_v37 = vpack.c.bf16 %v1865_v18, %v1861_v9  ;;  %v1876_v62 = vld [vmem:[#allocation8 + $0xd0] sm:$0xff]  ;;  %v14292_v9 = vpack.c.bf16 %v1887_v59, %v1883_v34  ;;  %v1889_v18 = vld [vmem:[#allocation8 + $0x138] sm:$0xff]  ;;  %v1886_v29 = vld [vmem:[#allocation8 + $0x120] sm:$0xff] }
 0x239   :  { %v14236_v35 = vmul.f32 %v12749_v24, %v12747_v14  ;;  %10291 = vmatprep.subr.bf16.mxu0 %v14244_v33  ;;  %10323 = vmatprep.subr.bf16.mxu1 %v14246_v47  ;;  %v14280_v14 = vpack.c.bf16 %v1879_v45, %v1875_v55  ;;  %v1881_v24 = vld [vmem:[#allocation8 + $0xf8] sm:$0xff]  ;;  %v1880_v15 = vld [vmem:[#allocation8 + $0xf0] sm:$0xff]  ;;  %v14294_v13 = vpack.c.bf16 %v1889_v18, %v1885_v5  ;;  %v1890_v55 = vld [vmem:[#allocation8 + $0x140] sm:$0xff] }
 0x23a   :  { %v14282_v16 = vpack.c.bf16 %v1881_v24, %v1877_v3  ;;  %v14287_v39 = vpack.c.bf16 %v1880_v15, %v1876_v62  ;;  %v14296_v49 = vpack.c.bf16 %v1886_v29, %v1882_v28  ;;  %v1894_v45 = vld [vmem:[#allocation8 + $0x160] sm:$0xff]  ;;  %v14306_v3 = vpack.c.bf16 %v1897_v11, %v1893_v22  ;;  %v1899_v15 = vld [vmem:[#allocation8 + $0x188] sm:$0xff]  ;;  %v1901_v59 = vld [vmem:[#allocation8 + $0x198] sm:$0xff] }
 0x23b   :  { %16812 = vst [vmem:[#allocation45_spill] sm:$0xff] %v14236_v35  ;;  %1739 = vmatmul.mubr.f32.vlgmr.msra.gmra.mrb[22].mxu0 %v14236_v35  ;;  %1810 = vmatmul.mubr.f32.vlgmr.msra.gmra.mrb[34].mxu1 %v14236_v35  ;;  %v14308_v24 = vpack.c.bf16 %v1894_v45, %v1890_v55  ;;  %v14311_v62 = vpack.c.bf16 %v1896_v61, %v1892_v46  ;;  %v1903_v34 = vld [vmem:[#allocation8 + $0x1a8] sm:$0xff]  ;;  %v1905_v18 = vld [vmem:[#allocation8 + $0x1b8] sm:$0xff]  ;;  %v1898_v28 = vld [vmem:[#allocation8 + $0x180] sm:$0xff] }
 0x23c   :  { %1978 = vmatprep.mubr.f32.mxu0 %v16811_v41  ;;  %2049 = vmatprep.mubr.f32.mxu1 %v16811_v41  ;;  %v14316_v5 = vpack.c.bf16 %v1903_v34, %v1899_v15  ;;  %v1902_v29 = vld [vmem:[#allocation8 + $0x1a0] sm:$0xff]  ;;  %v14318_v25 = vpack.c.bf16 %v1905_v18, %v1901_v59  ;;  %v14323_v22 = vpack.c.bf16 %v1904_v12, %v1900_v42  ;;  %v1907_v11 = vld [vmem:[#allocation8 + $0x1c8] sm:$0xff]  ;;  %v1909_v45 = vld [vmem:[#allocation8 + $0x1d8] sm:$0xff] }
 0x23d   :  { %10293 = vmatpush1.bf16.msra.mxu0 %v14248_v20  ;;  %10325 = vmatpush1.bf16.msra.mxu1 %v14251_v58  ;;  %v14320_v52 = vpack.c.bf16 %v1902_v29, %v1898_v28  ;;  %v1911_v55 = vld [vmem:[#allocation8 + $0x1e8] sm:$0xff]  ;;  %v1913_v61 = vld [vmem:[#allocation8 + $0x1f8] sm:$0xff]  ;;  %v1906_v15 = vld [vmem:[#allocation8 + $0x1c0] sm:$0xff] }
 0x23e   :  { %10295 = vmatprep.subr.bf16.mxu0 %v14256_v17  ;;  %10327 = vmatprep.subr.bf16.mxu1 %v14258_v37  ;;  %v14328_v46 = vpack.c.bf16 %v1911_v55, %v1907_v11  ;;  %v1910_v34 = vld [vmem:[#allocation8 + $0x1e0] sm:$0xff]  ;;  %v14330_v59 = vpack.c.bf16 %v1913_v61, %v1909_v45  ;;  %v1908_v28 = vld [vmem:[#allocation8 + $0x1d0] sm:$0xff]  ;;  %v2089_v12 = vld [vmem:[#allocation11 + $0x8] sm:$0xff] }
 0x23f   :  { %v14332_v18 = vpack.c.bf16 %v1910_v34, %v1906_v15  ;;  %v1912_v29 = vld [vmem:[#allocation8 + $0x1f0] sm:$0xff]  ;;  %v2093_v11 = vld [vmem:[#allocation11 + $0x28] sm:$0xff]  ;;  %v2091_v55 = vld [vmem:[#allocation11 + $0x18] sm:$0xff] }
 0x240   :  { %v14335_v42 = vpack.c.bf16 %v1912_v29, %v1908_v28  ;;  %v14340_v21 = vpack.c.bf16 %v2093_v11, %v2089_v12  ;;  %v2095_v45 = vld [vmem:[#allocation11 + $0x38] sm:$0xff] }
 0x241   :  { %10297 = vmatpush1.bf16.msra.mxu0 %v14260_v27  ;;  %10329 = vmatpush1.bf16.msra.mxu1 %v14263_v19  ;;  %v14342_v61 = vpack.c.bf16 %v2095_v45, %v2091_v55 }
 0x242   :  { %10299 = vmatprep.subr.bf16.mxu0 %v14268_v60  ;;  %10331 = vmatprep.subr.bf16.mxu1 %v14270_v10 }
 0x245   :  { %10301 = vmatpush1.bf16.msra.mxu0 %v14272_v30  ;;  %10333 = vmatpush1.bf16.msra.mxu1 %v14275_v40 }
 0x246   :  { %10303 = vmatprep.subr.bf16.mxu0 %v14280_v14  ;;  %10335 = vmatprep.subr.bf16.mxu1 %v14282_v16 }
 0x249   :  { %10305 = vmatpush1.bf16.msra.mxu0 %v14284_v43  ;;  %10337 = vmatpush1.bf16.msra.mxu1 %v14287_v39 }
 0x24a   :  { %10307 = vmatprep.subr.bf16.mxu0 %v14292_v9  ;;  %10339 = vmatprep.subr.bf16.mxu1 %v14294_v13 }
 0x24d   :  { %10309 = vmatpush1.bf16.msra.mxu0 %v14296_v49  ;;  %10341 = vmatpush1.bf16.msra.mxu1 %v14299_v31 }
 0x24e   :  { %10311 = vmatprep.subr.bf16.mxu0 %v14304_v36  ;;  %10343 = vmatprep.subr.bf16.mxu1 %v14306_v3 }
 0x251   :  { %10313 = vmatpush1.bf16.msra.mxu0 %v14308_v24  ;;  %10345 = vmatpush1.bf16.msra.mxu1 %v14311_v62 }
 0x252   :  { %10315 = vmatprep.subr.bf16.mxu0 %v14316_v5  ;;  %10347 = vmatprep.subr.bf16.mxu1 %v14318_v25 }
 0x255   :  { %10317 = vmatpush1.bf16.msra.mxu0 %v14320_v52  ;;  %10349 = vmatpush1.bf16.msra.mxu1 %v14323_v22 }
 0x256   :  { %10319 = vmatprep.subr.bf16.mxu0 %v14328_v46  ;;  %10351 = vmatprep.subr.bf16.mxu1 %v14330_v59 }
 0x259   :  { %10321 = vmatpush1.bf16.msra.mxu0 %v14332_v18  ;;  %10353 = vmatpush1.bf16.msra.mxu1 %v14335_v42 }
 0x25a   :  { %10355 = vmatprep.subr.bf16.mxu0 %v14340_v21  ;;  %10387 = vmatprep.subr.bf16.mxu1 %v14342_v61 }
 0x2ee   :  { %v1502_v15 = vpop.f32.mrb[2].mxu0  ;;  %v1573_v34 = vpop.f32.mrb[8].mxu1 }
 0x2ef   :  { %v12446_v28 = vadd.f32 %v1502_v15, %v14161_v23  ;;  %v1504_v29 = vpop.f32.mrb[3].mxu0  ;;  %v1575_v57 = vpop.f32.mrb[9].mxu1  ;;  %v12468_v55 = vadd.f32 %v1573_v34, %v14170_v1  ;;  %v2105_v1 = vld [vmem:[#allocation11 + $0x88] sm:$0xff] }
 0x2f0   :  { %v12447_v44 = vadd.f32 %v1504_v29, %v14158_v6  ;;  %v12469_v12 = vadd.f32 %v1575_v57, %v14173_v53  ;;  %v2109_v53 = vld [vmem:[#allocation11 + $0xa8] sm:$0xff]  ;;  %v2107_v6 = vld [vmem:[#allocation11 + $0x98] sm:$0xff] }
 0x2f1   :  { %v9799_v63 = vmul.f32 -1.442695, %v12446_v28 }
 0x2f2   :  { %v9800_v35 = vmul.f32 -1.442695, %v12447_v44  ;;  %v9801_v11 = vmul.f32 -1.442695, %v12469_v12 }
 0x2f3   :  { %12750 = vpow2.f32 %v9799_v63 }
 0x2f4   :  { %12752 = vpow2.f32 %v9800_v35 }
 0x2f5   :  { %12754 = vpow2.f32 %v9801_v11 }
 0x2f6   :  { %12756 = vtanh.f32 %v12468_v55 }
 0x2fd   :  { %v12751_v45 = vpop.eup %12750 }
 0x2fe   :  { %v12753_v54 = vpop.eup %12752  ;;  %v1585_v8 = vadd.f32 1.0, %v12751_v45 }
 0x2ff   :  { %v1591_v7 = vadd.f32 1.0, %v12753_v54  ;;  %v12755_v15 = vpop.eup %12754 }
 0x300   :  { %12758 = vrcp.f32 %v1585_v8  ;;  %v12757_v2 = vpop.eup %12756  ;;  %v1598_v63 = vadd.f32 1.0, %v12755_v15  ;;  %v2092_v15 = vld [vmem:[#allocation11 + $0x20] sm:$0xff] }
 0x301   :  { %12760 = vrcp.f32 %v1591_v7 }
 0x302   :  { %12762 = vrcp.f32 %v1598_v63  ;;  %v2101_v63 = vld [vmem:[#allocation11 + $0x68] sm:$0xff] }
 0x30a   :  { %v12759_v29 = vpop.eup %12758 }
 0x30b   :  { %v12761_v28 = vpop.eup %12760  ;;  %v1602_v44 = vmul.f32 %v12759_v29, %v12757_v2  ;;  %v2090_v29 = vld [vmem:[#allocation11 + $0x10] sm:$0xff] }
 0x30c   :  { %v1601_v35 = vmul.f32 %v12761_v28, %v14188_v4  ;;  %v2088_v4 = vld [vmem:[#allocation11] sm:$0xff]  ;;  %v2094_v28 = vld [vmem:[#allocation11 + $0x30] sm:$0xff]  ;;  %v12763_v51 = vpop.eup %12762 }
 0x30e   :  { %v14351_v57 = vadd.f32 %v1602_v44, %v1601_v35  ;;  %v1740_v12 = vpop.f32.mrb[22].mxu0  ;;  %v1811_v34 = vpop.f32.mrb[34].mxu1  ;;  %v2097_v44 = vld [vmem:[#allocation11 + $0x48] sm:$0xff]  ;;  %v2099_v35 = vld [vmem:[#allocation11 + $0x58] sm:$0xff] }
 0x30f   :  { %v12494_v45 = vadd.f32 %v1740_v12, %v14184_v32  ;;  %v1742_v11 = vpop.f32.mrb[23].mxu0  ;;  %v1813_v55 = vpop.f32.mrb[35].mxu1  ;;  %v2103_v12 = vld [vmem:[#allocation11 + $0x78] sm:$0xff]  ;;  %v14357_v32 = vpack.c.bf16 %v2092_v15, %v2088_v4 }
 0x310   :  { %16813 = vst [vmem:[#allocation46_spill] sm:$0xff] %v14351_v57  ;;  %12764 = vtanh.f32 %v14351_v57  ;;  %v12495_v7 = vadd.f32 %v1742_v11, %v14181_v26  ;;  %v12511_v2 = vadd.f32 %v1813_v55, %v14195_v48  ;;  %v14359_v11 = vpack.c.bf16 %v2094_v28, %v2090_v29  ;;  %v2098_v26 = vld [vmem:[#allocation11 + $0x50] sm:$0xff]  ;;  %v2104_v29 = vld [vmem:[#allocation11 + $0x80] sm:$0xff] }
 0x311   :  { %v9802_v8 = vmul.f32 -1.442695, %v12494_v45  ;;  %16814 = vst [vmem:[#allocation47_spill] sm:$0xff] %v14357_v32  ;;  %v2096_v45 = vld [vmem:[#allocation11 + $0x40] sm:$0xff]  ;;  %v12510_v55 = vadd.f32 %v1811_v34, %v14192_v0  ;;  %v14366_v48 = vpack.c.bf16 %v2103_v12, %v2099_v35  ;;  %v2102_v57 = vld [vmem:[#allocation11 + $0x70] sm:$0xff] }
 0x312   :  { %v9803_v54 = vmul.f32 -1.442695, %v12495_v7  ;;  %v9804_v38 = vmul.f32 -1.442695, %v12511_v2  ;;  %16815 = vst [vmem:[#allocation48_spill] sm:$0xff] %v14359_v11  ;;  %v2100_v7 = vld [vmem:[#allocation11 + $0x60] sm:$0xff]  ;;  %v14374_v34 = vpack.c.bf16 %v2102_v57, %v2098_v26 }
 0x313   :  { %12766 = vpow2.f32 %v9802_v8  ;;  %16818 = vst [vmem:[#allocation51_spill] sm:$0xff] %v14366_v48  ;;  %v2111_v2 = vld [vmem:[#allocation11 + $0xb8] sm:$0xff]  ;;  %v2108_v28 = vld [vmem:[#allocation11 + $0xa0] sm:$0xff]  ;;  %v2110_v12 = vld [vmem:[#allocation11 + $0xb0] sm:$0xff] }
 0x314   :  { %12768 = vpow2.f32 %v9803_v54  ;;  %v14364_v54 = vpack.c.bf16 %v2101_v63, %v2097_v44  ;;  %16820 = vst [vmem:[#allocation53_spill] sm:$0xff] %v14374_v34  ;;  %v14378_v63 = vpack.c.bf16 %v2109_v53, %v2105_v1  ;;  %v14380_v35 = vpack.c.bf16 %v2111_v2, %v2107_v6  ;;  %v2119_v26 = vld [vmem:[#allocation11 + $0xf8] sm:$0xff]  ;;  %v2112_v53 = vld [vmem:[#allocation11 + $0xc0] sm:$0xff] }
 0x315   :  { %12770 = vpow2.f32 %v9804_v38  ;;  %v2106_v38 = vld [vmem:[#allocation11 + $0x90] sm:$0xff]  ;;  %v14386_v1 = vpack.c.bf16 %v2108_v28, %v2104_v29  ;;  %v2116_v57 = vld [vmem:[#allocation11 + $0xe0] sm:$0xff] }
 0x316   :  { %16817 = vst [vmem:[#allocation50_spill] sm:$0xff] %v14364_v54  ;;  %12772 = vtanh.f32 %v12510_v55  ;;  %16821 = vst [vmem:[#allocation54_spill] sm:$0xff] %v14378_v63  ;;  %v14388_v6 = vpack.c.bf16 %v2110_v12, %v2106_v38  ;;  %v14398_v29 = vpack.c.bf16 %v2116_v57, %v2112_v53  ;;  %v2120_v38 = vld [vmem:[#allocation11 + $0x100] sm:$0xff]  ;;  %v2135_v53 = vld [vmem:[#allocation11 + $0x178] sm:$0xff] }
 0x317   :  { %16822 = vst [vmem:[#allocation55_spill] sm:$0xff] %v14380_v35  ;;  %16823 = vst [vmem:[#allocation56_spill] sm:$0xff] %v14386_v1  ;;  %v2124_v12 = vld [vmem:[#allocation11 + $0x120] sm:$0xff] }
 0x318   :  { %16824 = vst [vmem:[#allocation57_spill] sm:$0xff] %v14388_v6  ;;  %16827 = vst [vmem:[#allocation60_spill] sm:$0xff] %v14398_v29 }
 0x31a   :  { %v12765_v50 = vpop.eup %12764 }
 0x31b   :  { %v14361_v8 = vmul.f32 %v12765_v50, %v12763_v51  ;;  %v14372_v51 = vpack.c.bf16 %v2100_v7, %v2096_v45  ;;  %v2117_v45 = vld [vmem:[#allocation11 + $0xe8] sm:$0xff]  ;;  %v2115_v7 = vld [vmem:[#allocation11 + $0xd8] sm:$0xff] }
 0x31c   :  { %v14394_v2 = vpack.c.bf16 %v2119_v26, %v2115_v7  ;;  %v2122_v7 = vld [vmem:[#allocation11 + $0x110] sm:$0xff] }
 0x31d   :  { %16816 = vst [vmem:[#allocation49_spill] sm:$0xff] %v14361_v8  ;;  %v12767_v4 = vpop.eup %12766  ;;  %1979 = vmatmul.mubr.f32.vlgmr.msra.gmra.mrb[4].mxu0 %v14361_v8  ;;  %2050 = vmatmul.mubr.f32.vlgmr.msra.gmra.mrb[10].mxu1 %v14361_v8  ;;  %16819 = vst [vmem:[#allocation52_spill] sm:$0xff] %v14372_v51  ;;  %v2125_v8 = vld [vmem:[#allocation11 + $0x128] sm:$0xff]  ;;  %v2126_v26 = vld [vmem:[#allocation11 + $0x130] sm:$0xff] }
 0x31e   :  { %v12769_v15 = vpop.eup %12768  ;;  %v1823_v50 = vadd.f32 1.0, %v12767_v4  ;;  %10357 = vmatpush1.bf16.msra.mxu0 %v14357_v32  ;;  %10389 = vmatpush1.bf16.msra.mxu1 %v14359_v11  ;;  %v2113_v4 = vld [vmem:[#allocation11 + $0xc8] sm:$0xff]  ;;  %16826 = vst [vmem:[#allocation59_spill] sm:$0xff] %v14394_v2  ;;  %v2134_v11 = vld [vmem:[#allocation11 + $0x170] sm:$0xff] }
 0x31f   :  { %v1829_v44 = vadd.f32 1.0, %v12769_v15  ;;  %10359 = vmatprep.subr.bf16.mxu0 %v14364_v54  ;;  %10391 = vmatprep.subr.bf16.mxu1 %v14366_v48  ;;  %v14392_v55 = vpack.c.bf16 %v2117_v45, %v2113_v4  ;;  %v2114_v15 = vld [vmem:[#allocation11 + $0xd0] sm:$0xff] }
 0x320   :  { %12774 = vrcp.f32 %v1823_v50  ;;  %2216 = vmatprep.mubr.f32.mxu0 %v16811_v41  ;;  %2287 = vmatprep.mubr.f32.mxu1 %v16811_v41  ;;  %v2118_v50 = vld [vmem:[#allocation11 + $0xf0] sm:$0xff] }
 0x321   :  { %12776 = vrcp.f32 %v1829_v44  ;;  %16825 = vst [vmem:[#allocation58_spill] sm:$0xff] %v14392_v55  ;;  %v2121_v44 = vld [vmem:[#allocation11 + $0x108] sm:$0xff]  ;;  %v14400_v28 = vpack.c.bf16 %v2118_v50, %v2114_v15  ;;  %v14410_v50 = vpack.c.bf16 %v2124_v12, %v2120_v38 }
 0x322   :  { %10361 = vmatpush1.bf16.msra.mxu0 %v14372_v51  ;;  %10393 = vmatpush1.bf16.msra.mxu1 %v14374_v34  ;;  %v2123_v51 = vld [vmem:[#allocation11 + $0x118] sm:$0xff]  ;;  %v14404_v4 = vpack.c.bf16 %v2125_v8, %v2121_v44  ;;  %v2128_v8 = vld [vmem:[#allocation11 + $0x140] sm:$0xff]  ;;  %v2141_v12 = vld [vmem:[#allocation11 + $0x1a8] sm:$0xff] }
 0x323   :  { %10363 = vmatprep.subr.bf16.mxu0 %v14378_v63  ;;  %10395 = vmatprep.subr.bf16.mxu1 %v14380_v35  ;;  %v2127_v34 = vld [vmem:[#allocation11 + $0x138] sm:$0xff]  ;;  %16828 = vst [vmem:[#allocation61_spill] sm:$0xff] %v14400_v28  ;;  %v2129_v35 = vld [vmem:[#allocation11 + $0x148] sm:$0xff] }
 0x324   :  { %v14406_v45 = vpack.c.bf16 %v2127_v34, %v2123_v51  ;;  %v2133_v63 = vld [vmem:[#allocation11 + $0x168] sm:$0xff]  ;;  %v2132_v51 = vld [vmem:[#allocation11 + $0x160] sm:$0xff] }
 0x325   :  { %v14416_v48 = vpack.c.bf16 %v2133_v63, %v2129_v35  ;;  %v2136_v35 = vld [vmem:[#allocation11 + $0x180] sm:$0xff] }
 0x326   :  { %10365 = vmatpush1.bf16.msra.mxu0 %v14386_v1  ;;  %10397 = vmatpush1.bf16.msra.mxu1 %v14388_v6  ;;  %v12771_v1 = vpop.eup %12770  ;;  %v2131_v6 = vld [vmem:[#allocation11 + $0x158] sm:$0xff] }
 0x327   :  { %10367 = vmatprep.subr.bf16.mxu0 %v14392_v55  ;;  %10399 = vmatprep.subr.bf16.mxu1 %v14394_v2  ;;  %v12773_v57 = vpop.eup %12772  ;;  %v14412_v2 = vpack.c.bf16 %v2126_v26, %v2122_v7  ;;  %v1836_v55 = vadd.f32 1.0, %v12771_v1  ;;  %v14418_v54 = vpack.c.bf16 %v2135_v53, %v2131_v6  ;;  %v2139_v7 = vld [vmem:[#allocation11 + $0x198] sm:$0xff]  ;;  %v14425_v1 = vpack.c.bf16 %v2132_v51, %v2128_v8  ;;  %v2140_v6 = vld [vmem:[#allocation11 + $0x1a0] sm:$0xff]  ;;  %v2149_v8 = vld [vmem:[#allocation11 + $0x1e8] sm:$0xff] }
 0x328   :  { %v2143_v26 = vld [vmem:[#allocation11 + $0x1b8] sm:$0xff] }
 0x329   :  { %12778 = vrcp.f32 %v1836_v55  ;;  %v14433_v53 = vpack.c.bf16 %v2143_v26, %v2139_v7  ;;  %v2147_v51 = vld [vmem:[#allocation11 + $0x1d8] sm:$0xff]  ;;  %v14438_v55 = vpack.c.bf16 %v2140_v6, %v2136_v35  ;;  %v2146_v7 = vld [vmem:[#allocation11 + $0x1d0] sm:$0xff] }
 0x32a   :  { %v12775_v15 = vpop.eup %12774  ;;  %10369 = vmatpush1.bf16.msra.mxu0 %v14398_v29  ;;  %10401 = vmatpush1.bf16.msra.mxu1 %v14400_v28  ;;  %v2130_v29 = vld [vmem:[#allocation11 + $0x150] sm:$0xff]  ;;  %v2137_v28 = vld [vmem:[#allocation11 + $0x188] sm:$0xff] }
 0x32b   :  { %v12777_v34 = vpop.eup %12776  ;;  %v1840_v44 = vmul.f32 %v12775_v15, %v12773_v57  ;;  %10371 = vmatprep.subr.bf16.mxu0 %v14404_v4  ;;  %10403 = vmatprep.subr.bf16.mxu1 %v14406_v45  ;;  %v14427_v63 = vpack.c.bf16 %v2134_v11, %v2130_v29  ;;  %v2138_v57 = vld [vmem:[#allocation11 + $0x190] sm:$0xff]  ;;  %v2151_v11 = vld [vmem:[#allocation11 + $0x1f8] sm:$0xff] }
 0x32c   :  { %v1839_v38 = vmul.f32 %v12777_v34, %v14221_v56  ;;  %v14431_v56 = vpack.c.bf16 %v2141_v12, %v2137_v28  ;;  %v2142_v15 = vld [vmem:[#allocation11 + $0x1b0] sm:$0xff]  ;;  %v2145_v34 = vld [vmem:[#allocation11 + $0x1c8] sm:$0xff]  ;;  %v2144_v28 = vld [vmem:[#allocation11 + $0x1c0] sm:$0xff] }
 0x32d   :  { %v14440_v29 = vpack.c.bf16 %v2142_v15, %v2138_v57  ;;  %v2148_v12 = vld [vmem:[#allocation11 + $0x1e0] sm:$0xff]  ;;  %v2150_v26 = vld [vmem:[#allocation11 + $0x1f0] sm:$0xff] }
 0x32e   :  { %v14421_v32 = vadd.f32 %v1840_v44, %v1839_v38  ;;  %10373 = vmatpush1.bf16.msra.mxu0 %v14410_v50  ;;  %10405 = vmatpush1.bf16.msra.mxu1 %v14412_v2  ;;  %v14444_v44 = vpack.c.bf16 %v2149_v8, %v2145_v34  ;;  %v14446_v38 = vpack.c.bf16 %v2151_v11, %v2147_v51 }
 0x32f   :  { %10375 = vmatprep.subr.bf16.mxu0 %v14416_v48  ;;  %10407 = vmatprep.subr.bf16.mxu1 %v14418_v54  ;;  %v14450_v35 = vpack.c.bf16 %v2148_v12, %v2144_v28  ;;  %v14452_v6 = vpack.c.bf16 %v2150_v26, %v2146_v7  ;;  %v16836_v28 = vld [vmem:[#allocation43_spill] sm:$0xff] }
 0x330   :  { %12780 = vtanh.f32 %v14421_v32 }
 0x332   :  { %10377 = vmatpush1.bf16.msra.mxu0 %v14425_v1  ;;  %10409 = vmatpush1.bf16.msra.mxu1 %v14427_v63 }
 0x333   :  { %10379 = vmatprep.subr.bf16.mxu0 %v14431_v56  ;;  %10411 = vmatprep.subr.bf16.mxu1 %v14433_v53  ;;  %v12779_v57 = vpop.eup %12778 }
 0x336   :  { %10381 = vmatpush1.bf16.msra.mxu0 %v14438_v55  ;;  %10413 = vmatpush1.bf16.msra.mxu1 %v14440_v29 }
 0x337   :  { %10383 = vmatprep.subr.bf16.mxu0 %v14444_v44  ;;  %10415 = vmatprep.subr.bf16.mxu1 %v14446_v38 }
 0x33a   :  { %v12781_v15 = vpop.eup %12780  ;;  %10385 = vmatpush1.bf16.msra.mxu0 %v14450_v35  ;;  %10417 = vmatpush1.bf16.msra.mxu1 %v14452_v6 }
 0x33b   :  { %v14458_v34 = vmul.f32 %v12781_v15, %v12779_v57  ;;  %10419 = vmatprep.subr.bf16.mxu0 %v14244_v33  ;;  %10451 = vmatprep.subr.bf16.mxu1 %v14246_v47 }
 0x33d   :  { %16829 = vst [vmem:[#allocation62_spill] sm:$0xff] %v14458_v34  ;;  %2217 = vmatmul.mubr.f32.vlgmr.msra.gmra.mrb[20].mxu0 %v14458_v34  ;;  %2288 = vmatmul.mubr.f32.vlgmr.msra.gmra.mrb[32].mxu1 %v14458_v34 }
 0x33e   :  { %10421 = vmatpush1.bf16.msra.mxu0 %v14248_v20  ;;  %10453 = vmatpush1.bf16.msra.mxu1 %v14251_v58 }
 0x33f   :  { %10423 = vmatprep.subr.bf16.mxu0 %v14256_v17  ;;  %10455 = vmatprep.subr.bf16.mxu1 %v14258_v37  ;;  %v16830_v37 = vld [vmem:[#allocation36_spill] sm:$0xff] }
 0x340   :  { %2456 = vmatprep.mubr.f32.mxu0 %v16811_v41  ;;  %2527 = vmatprep.mubr.f32.mxu1 %v16811_v41 }
 0x342   :  { %10425 = vmatpush1.bf16.msra.mxu0 %v14260_v27  ;;  %10457 = vmatpush1.bf16.msra.mxu1 %v14263_v19 }
 0x343   :  { %10427 = vmatprep.subr.bf16.mxu0 %v14268_v60  ;;  %10459 = vmatprep.subr.bf16.mxu1 %v14270_v10  ;;  %v16831_v10 = vld [vmem:[#allocation40_spill] sm:$0xff] }
 0x346   :  { %10429 = vmatpush1.bf16.msra.mxu0 %v14272_v30  ;;  %10461 = vmatpush1.bf16.msra.mxu1 %v14275_v40 }
 0x347   :  { %10431 = vmatprep.subr.bf16.mxu0 %v14280_v14  ;;  %10463 = vmatprep.subr.bf16.mxu1 %v14282_v16  ;;  %v16832_v14 = vld [vmem:[#allocation39_spill] sm:$0xff] }
 0x34a   :  { %10433 = vmatpush1.bf16.msra.mxu0 %v14284_v43  ;;  %10465 = vmatpush1.bf16.msra.mxu1 %v14287_v39 }
 0x34b   :  { %10435 = vmatprep.subr.bf16.mxu0 %v14292_v9  ;;  %10467 = vmatprep.subr.bf16.mxu1 %v14294_v13 }
 0x34e   :  { %10437 = vmatpush1.bf16.msra.mxu0 %v14296_v49  ;;  %10469 = vmatpush1.bf16.msra.mxu1 %v14299_v31 }
 0x34f   :  { %10439 = vmatprep.subr.bf16.mxu0 %v14304_v36  ;;  %10471 = vmatprep.subr.bf16.mxu1 %v14306_v3 }
 0x352   :  { %10441 = vmatpush1.bf16.msra.mxu0 %v14308_v24  ;;  %10473 = vmatpush1.bf16.msra.mxu1 %v14311_v62  ;;  %v16833_v62 = vld [vmem:[#allocation46_spill] sm:$0xff] }
 0x353   :  { %10443 = vmatprep.subr.bf16.mxu0 %v14316_v5  ;;  %10475 = vmatprep.subr.bf16.mxu1 %v14318_v25 }
 0x356   :  { %10445 = vmatpush1.bf16.msra.mxu0 %v14320_v52  ;;  %10477 = vmatpush1.bf16.msra.mxu1 %v14323_v22 }
 0x357   :  { %10447 = vmatprep.subr.bf16.mxu0 %v14328_v46  ;;  %10479 = vmatprep.subr.bf16.mxu1 %v14330_v59  ;;  %v16834_v46 = vld [vmem:[#allocation42_spill] sm:$0xff] }
 0x35a   :  { %10449 = vmatpush1.bf16.msra.mxu0 %v14332_v18  ;;  %10481 = vmatpush1.bf16.msra.mxu1 %v14335_v42 }
 0x35b   :  { %10483 = vmatprep.subr.bf16.mxu0 %v14340_v21  ;;  %10515 = vmatprep.subr.bf16.mxu1 %v14342_v61  ;;  %v16835_v61 = vld [vmem:[#allocation41_spill] sm:$0xff] }
 0x3f0   :  { %v1980_v33 = vpop.f32.mrb[4].mxu0  ;;  %v2051_v47 = vpop.f32.mrb[10].mxu1 }
 0x3f1   :  { %v12448_v20 = vadd.f32 %v1980_v33, %v14161_v23  ;;  %v1982_v58 = vpop.f32.mrb[5].mxu0  ;;  %v2053_v17 = vpop.f32.mrb[11].mxu1  ;;  %v12470_v16 = vadd.f32 %v2051_v47, %v16832_v14 }
 0x3f2   :  { %v12449_v27 = vadd.f32 %v1982_v58, %v16830_v37  ;;  %v12471_v30 = vadd.f32 %v2053_v17, %v16831_v10  ;;  %v16838_v17 = vld [vmem:[#allocation47_spill] sm:$0xff] }
 0x3f3   :  { %v9805_v19 = vmul.f32 -1.442695, %v12448_v20 }
 0x3f4   :  { %v9806_v60 = vmul.f32 -1.442695, %v12449_v27  ;;  %v9807_v40 = vmul.f32 -1.442695, %v12471_v30  ;;  %v16839_v27 = vld [vmem:[#allocation48_spill] sm:$0xff]  ;;  %v16841_v30 = vld [vmem:[#allocation51_spill] sm:$0xff] }
 0x3f5   :  { %12782 = vpow2.f32 %v9805_v19 }
 0x3f6   :  { %12784 = vpow2.f32 %v9806_v60  ;;  %v16840_v60 = vld [vmem:[#allocation50_spill] sm:$0xff] }
 0x3f7   :  { %12786 = vpow2.f32 %v9807_v40  ;;  %v16842_v40 = vld [vmem:[#allocation52_spill] sm:$0xff] }
 0x3f8   :  { %12788 = vtanh.f32 %v12470_v16  ;;  %v16843_v16 = vld [vmem:[#allocation53_spill] sm:$0xff] }
 0x3ff   :  { %v12783_v21 = vpop.eup %12782 }
 0x400   :  { %v12785_v43 = vpop.eup %12784  ;;  %v2063_v39 = vadd.f32 1.0, %v12783_v21  ;;  %v16844_v21 = vld [vmem:[#allocation54_spill] sm:$0xff] }
 0x401   :  { %v2069_v9 = vadd.f32 1.0, %v12785_v43  ;;  %v12787_v13 = vpop.eup %12786  ;;  %v16845_v43 = vld [vmem:[#allocation55_spill] sm:$0xff] }
 0x402   :  { %12790 = vrcp.f32 %v2063_v39  ;;  %v12789_v49 = vpop.eup %12788  ;;  %v2076_v24 = vadd.f32 1.0, %v12787_v13  ;;  %v16846_v39 = vld [vmem:[#allocation56_spill] sm:$0xff]  ;;  %v16848_v13 = vld [vmem:[#allocation58_spill] sm:$0xff] }
 0x403   :  { %12792 = vrcp.f32 %v2069_v9  ;;  %v16847_v9 = vld [vmem:[#allocation57_spill] sm:$0xff] }
 0x404   :  { %12794 = vrcp.f32 %v2076_v24  ;;  %v16850_v24 = vld [vmem:[#allocation60_spill] sm:$0xff] }
 0x40c   :  { %v12791_v31 = vpop.eup %12790 }
 0x40d   :  { %v12793_v36 = vpop.eup %12792  ;;  %v2080_v3 = vmul.f32 %v12791_v31, %v12789_v49  ;;  %v16849_v49 = vld [vmem:[#allocation59_spill] sm:$0xff] }
 0x40e   :  { %v2079_v5 = vmul.f32 %v12793_v36, %v16833_v62  ;;  %v12795_v7 = vpop.eup %12794  ;;  %v16851_v62 = vld [vmem:[#allocation61_spill] sm:$0xff] }
 0x410   :  { %v14503_v25 = vadd.f32 %v2080_v3, %v2079_v5  ;;  %v2218_v52 = vpop.f32.mrb[20].mxu0  ;;  %v2289_v22 = vpop.f32.mrb[32].mxu1 }
 0x411   :  { %v12492_v59 = vadd.f32 %v2218_v52, %v16834_v46  ;;  %v2220_v18 = vpop.f32.mrb[21].mxu0  ;;  %v2291_v42 = vpop.f32.mrb[33].mxu1  ;;  %v12508_v33 = vadd.f32 %v2289_v22, %v14192_v0 }
 0x412   :  { %12796 = vtanh.f32 %v14503_v25  ;;  %v12493_v8 = vadd.f32 %v2220_v18, %v16835_v61  ;;  %v12509_v12 = vadd.f32 %v2291_v42, %v16836_v28  ;;  %v2817_v42 = vld [vmem:[#allocation8 + $0x58] sm:$0xff] }
 0x413   :  { %v9808_v51 = vmul.f32 -1.442695, %v12492_v59 }
 0x414   :  { %v9809_v11 = vmul.f32 -1.442695, %v12493_v8  ;;  %v9810_v57 = vmul.f32 -1.442695, %v12509_v12  ;;  %v2818_v12 = vld [vmem:[#allocation8 + $0x60] sm:$0xff] }
 0x415   :  { %12798 = vpow2.f32 %v9808_v51  ;;  %v2821_v51 = vld [vmem:[#allocation8 + $0x78] sm:$0xff] }
 0x416   :  { %12800 = vpow2.f32 %v9809_v11  ;;  %v2814_v11 = vld [vmem:[#allocation8 + $0x40] sm:$0xff] }
 0x417   :  { %12802 = vpow2.f32 %v9810_v57  ;;  %v2816_v57 = vld [vmem:[#allocation8 + $0x50] sm:$0xff] }
 0x418   :  { %12804 = vtanh.f32 %v12508_v33  ;;  %v2820_v33 = vld [vmem:[#allocation8 + $0x70] sm:$0xff] }
 0x41c   :  { %v12797_v26 = vpop.eup %12796 }
 0x41d   :  { %v14509_v15 = vmul.f32 %v12797_v26, %v12795_v7  ;;  %v14570_v7 = vpack.c.bf16 %v2821_v51, %v2817_v42  ;;  %v14572_v26 = vpack.c.bf16 %v2818_v12, %v2814_v11  ;;  %v2847_v42 = vld [vmem:[#allocation8 + $0x148] sm:$0xff]  ;;  %v2849_v11 = vld [vmem:[#allocation8 + $0x158] sm:$0xff] }
 0x41e   :  { %v2851_v51 = vld [vmem:[#allocation8 + $0x168] sm:$0xff] }
 0x41f   :  { %16837 = vst [vmem:[#allocation46_spill] sm:$0xff] %v14509_v15  ;;  %v12799_v47 = vpop.eup %12798  ;;  %2457 = vmatmul.mubr.f32.vlgmr.msra.gmra.mrb[6].mxu0 %v14509_v15  ;;  %2528 = vmatmul.mubr.f32.vlgmr.msra.gmra.mrb[12].mxu1 %v14509_v15  ;;  %v14616_v12 = vpack.c.bf16 %v2851_v51, %v2847_v42  ;;  %v2866_v42 = vld [vmem:[#allocation8 + $0x1e0] sm:$0xff] }
 0x420   :  { %v12801_v20 = vpop.eup %12800  ;;  %v2301_v58 = vadd.f32 1.0, %v12799_v47  ;;  %10485 = vmatpush1.bf16.msra.mxu0 %v16838_v17  ;;  %10517 = vmatpush1.bf16.msra.mxu1 %v16839_v27  ;;  %v14575_v47 = vpack.c.bf16 %v2820_v33, %v2816_v57  ;;  %v2825_v17 = vld [vmem:[#allocation8 + $0x98] sm:$0xff]  ;;  %v2846_v33 = vld [vmem:[#allocation8 + $0x140] sm:$0xff] }
 0x421   :  { %v2307_v19 = vadd.f32 1.0, %v12801_v20  ;;  %10487 = vmatprep.subr.bf16.mxu0 %v16840_v60  ;;  %10519 = vmatprep.subr.bf16.mxu1 %v16841_v30  ;;  %v12803_v31 = vpop.eup %12802  ;;  %v2823_v20 = vld [vmem:[#allocation8 + $0x88] sm:$0xff]  ;;  %v2822_v60 = vld [vmem:[#allocation8 + $0x80] sm:$0xff]  ;;  %v2853_v57 = vld [vmem:[#allocation8 + $0x178] sm:$0xff] }
 0x422   :  { %12806 = vrcp.f32 %v2301_v58  ;;  %2694 = vmatprep.mubr.f32.mxu0 %v16811_v41  ;;  %2765 = vmatprep.mubr.f32.mxu1 %v16811_v41  ;;  %v12805_v36 = vpop.eup %12804  ;;  %v2314_v22 = vadd.f32 1.0, %v12803_v31  ;;  %v2827_v58 = vld [vmem:[#allocation8 + $0xa8] sm:$0xff]  ;;  %v2826_v30 = vld [vmem:[#allocation8 + $0xa0] sm:$0xff] }
 0x423   :  { %12808 = vrcp.f32 %v2307_v19  ;;  %v14580_v27 = vpack.c.bf16 %v2827_v58, %v2823_v20  ;;  %v2829_v19 = vld [vmem:[#allocation8 + $0xb8] sm:$0xff]  ;;  %v2850_v20 = vld [vmem:[#allocation8 + $0x160] sm:$0xff]  ;;  %v14618_v58 = vpack.c.bf16 %v2853_v57, %v2849_v11  ;;  %v2864_v57 = vld [vmem:[#allocation8 + $0x1d0] sm:$0xff] }
 0x424   :  { %10489 = vmatpush1.bf16.msra.mxu0 %v16842_v40  ;;  %10521 = vmatpush1.bf16.msra.mxu1 %v16843_v16  ;;  %12810 = vrcp.f32 %v2314_v22  ;;  %v14582_v40 = vpack.c.bf16 %v2829_v19, %v2825_v17  ;;  %v14584_v16 = vpack.c.bf16 %v2826_v30, %v2822_v60  ;;  %v2836_v22 = vld [vmem:[#allocation8 + $0xf0] sm:$0xff]  ;;  %v14620_v17 = vpack.c.bf16 %v2850_v20, %v2846_v33 }
 0x425   :  { %10491 = vmatprep.subr.bf16.mxu0 %v16844_v21  ;;  %10523 = vmatprep.subr.bf16.mxu1 %v16845_v43  ;;  %v2824_v21 = vld [vmem:[#allocation8 + $0x90] sm:$0xff] }
 0x426   :  { %v2828_v43 = vld [vmem:[#allocation8 + $0xb0] sm:$0xff] }
 0x427   :  { %v2848_v19 = vld [vmem:[#allocation8 + $0x150] sm:$0xff] }
 0x428   :  { %10493 = vmatpush1.bf16.msra.mxu0 %v16846_v39  ;;  %10525 = vmatpush1.bf16.msra.mxu1 %v16847_v9  ;;  %v14587_v39 = vpack.c.bf16 %v2828_v43, %v2824_v21  ;;  %v2831_v9 = vld [vmem:[#allocation8 + $0xc8] sm:$0xff]  ;;  %v2852_v60 = vld [vmem:[#allocation8 + $0x170] sm:$0xff] }
 0x429   :  { %10495 = vmatprep.subr.bf16.mxu0 %v16848_v13  ;;  %10527 = vmatprep.subr.bf16.mxu1 %v16849_v49  ;;  %v2835_v13 = vld [vmem:[#allocation8 + $0xe8] sm:$0xff]  ;;  %v2833_v49 = vld [vmem:[#allocation8 + $0xd8] sm:$0xff]  ;;  %v14623_v30 = vpack.c.bf16 %v2852_v60, %v2848_v19  ;;  %v2868_v33 = vld [vmem:[#allocation8 + $0x1f0] sm:$0xff] }
 0x42a   :  { %v14592_v31 = vpack.c.bf16 %v2835_v13, %v2831_v9  ;;  %v2855_v21 = vld [vmem:[#allocation8 + $0x188] sm:$0xff]  ;;  %v2857_v9 = vld [vmem:[#allocation8 + $0x198] sm:$0xff]  ;;  %v14647_v20 = vpack.c.bf16 %v2868_v33, %v2864_v57 }
 0x42b   :  { %v2859_v43 = vld [vmem:[#allocation8 + $0x1a8] sm:$0xff] }
 0x42c   :  { %v12807_v3 = vpop.eup %12806  ;;  %10497 = vmatpush1.bf16.msra.mxu0 %v16850_v24  ;;  %10529 = vmatpush1.bf16.msra.mxu1 %v16851_v62  ;;  %v2834_v24 = vld [vmem:[#allocation8 + $0xe0] sm:$0xff]  ;;  %v14628_v13 = vpack.c.bf16 %v2859_v43, %v2855_v21  ;;  %v3045_v19 = vld [vmem:[#allocation11 + $0x8] sm:$0xff]  ;;  %v3047_v21 = vld [vmem:[#allocation11 + $0x18] sm:$0xff] }
 0x42d   :  { %v12809_v5 = vpop.eup %12808  ;;  %v2318_v52 = vmul.f32 %v12807_v3, %v12805_v36  ;;  %10499 = vmatprep.subr.bf16.mxu0 %v14404_v4  ;;  %10531 = vmatprep.subr.bf16.mxu1 %v14406_v45  ;;  %v2811_v4 = vld [vmem:[#allocation8 + $0x28] sm:$0xff]  ;;  %v2809_v45 = vld [vmem:[#allocation8 + $0x18] sm:$0xff]  ;;  %v2830_v3 = vld [vmem:[#allocation8 + $0xc0] sm:$0xff] }
 0x42e   :  { %v2317_v59 = vmul.f32 %v12809_v5, %v14421_v32  ;;  %v12811_v32 = vpop.eup %12810  ;;  %v2837_v36 = vld [vmem:[#allocation8 + $0xf8] sm:$0xff]  ;;  %v14596_v5 = vpack.c.bf16 %v2834_v24, %v2830_v3  ;;  %v2858_v3 = vld [vmem:[#allocation8 + $0x1a0] sm:$0xff]  ;;  %v3049_v60 = vld [vmem:[#allocation11 + $0x28] sm:$0xff] }
 0x42f   :  { %v14594_v62 = vpack.c.bf16 %v2837_v36, %v2833_v49  ;;  %v2861_v49 = vld [vmem:[#allocation8 + $0x1b8] sm:$0xff]  ;;  %v2854_v36 = vld [vmem:[#allocation8 + $0x180] sm:$0xff]  ;;  %v14652_v43 = vpack.c.bf16 %v3049_v60, %v3045_v19 }
 0x430   :  { %v14533_v18 = vadd.f32 %v2318_v52, %v2317_v59  ;;  %10501 = vmatpush1.bf16.msra.mxu0 %v14410_v50  ;;  %10533 = vmatpush1.bf16.msra.mxu1 %v14412_v2  ;;  %v2807_v2 = vld [vmem:[#allocation8 + $0x8] sm:$0xff]  ;;  %v2832_v52 = vld [vmem:[#allocation8 + $0xd0] sm:$0xff]  ;;  %v14630_v24 = vpack.c.bf16 %v2861_v49, %v2857_v9  ;;  %v3051_v9 = vld [vmem:[#allocation11 + $0x38] sm:$0xff] }
 0x431   :  { %10503 = vmatprep.subr.bf16.mxu0 %v14416_v48  ;;  %10535 = vmatprep.subr.bf16.mxu1 %v14418_v54  ;;  %v14556_v50 = vpack.c.bf16 %v2811_v4, %v2807_v2  ;;  %v14599_v59 = vpack.c.bf16 %v2836_v22, %v2832_v52  ;;  %v2841_v2 = vld [vmem:[#allocation8 + $0x118] sm:$0xff]  ;;  %v14632_v52 = vpack.c.bf16 %v2858_v3, %v2854_v36  ;;  %v2856_v22 = vld [vmem:[#allocation8 + $0x190] sm:$0xff] }
 0x432   :  { %12812 = vtanh.f32 %v14533_v18  ;;  %v14654_v49 = vpack.c.bf16 %v3051_v9, %v3047_v21 }
 0x434   :  { %10505 = vmatpush1.bf16.msra.mxu0 %v14425_v1  ;;  %10537 = vmatpush1.bf16.msra.mxu1 %v14427_v63  ;;  %v2813_v1 = vld [vmem:[#allocation8 + $0x38] sm:$0xff]  ;;  %v2806_v63 = vld [vmem:[#allocation8] sm:$0xff] }
 0x435   :  { %10507 = vmatprep.subr.bf16.mxu0 %v14431_v56  ;;  %10539 = vmatprep.subr.bf16.mxu1 %v14433_v53  ;;  %v2810_v56 = vld [vmem:[#allocation8 + $0x20] sm:$0xff]  ;;  %v14558_v53 = vpack.c.bf16 %v2813_v1, %v2809_v45  ;;  %v2845_v45 = vld [vmem:[#allocation8 + $0x138] sm:$0xff] }
 0x436   :  { %v2838_v1 = vld [vmem:[#allocation8 + $0x100] sm:$0xff] }
 0x438   :  { %10509 = vmatpush1.bf16.msra.mxu0 %v14438_v55  ;;  %10541 = vmatpush1.bf16.msra.mxu1 %v14440_v29  ;;  %v14560_v55 = vpack.c.bf16 %v2810_v56, %v2806_v63  ;;  %v2808_v29 = vld [vmem:[#allocation8 + $0x10] sm:$0xff]  ;;  %v2842_v63 = vld [vmem:[#allocation8 + $0x120] sm:$0xff]  ;;  %v14606_v56 = vpack.c.bf16 %v2845_v45, %v2841_v2  ;;  %v2863_v2 = vld [vmem:[#allocation8 + $0x1c8] sm:$0xff] }
 0x439   :  { %10511 = vmatprep.subr.bf16.mxu0 %v14444_v44  ;;  %10543 = vmatprep.subr.bf16.mxu1 %v14446_v38  ;;  %v2812_v44 = vld [vmem:[#allocation8 + $0x30] sm:$0xff]  ;;  %v2867_v45 = vld [vmem:[#allocation8 + $0x1e8] sm:$0xff] }
 0x43a   :  { %v14563_v38 = vpack.c.bf16 %v2812_v44, %v2808_v29  ;;  %v14608_v29 = vpack.c.bf16 %v2842_v63, %v2838_v1  ;;  %v2840_v44 = vld [vmem:[#allocation8 + $0x110] sm:$0xff]  ;;  %v2865_v1 = vld [vmem:[#allocation8 + $0x1d8] sm:$0xff]  ;;  %v14640_v63 = vpack.c.bf16 %v2867_v45, %v2863_v2 }
 0x43c   :  { %v12813_v48 = vpop.eup %12812  ;;  %10513 = vmatpush1.bf16.msra.mxu0 %v14450_v35  ;;  %10545 = vmatpush1.bf16.msra.mxu1 %v14452_v6  ;;  %v2815_v35 = vld [vmem:[#allocation8 + $0x48] sm:$0xff] }
 0x43d   :  { %v14550_v54 = vmul.f32 %v12813_v48, %v12811_v32  ;;  %10547 = vmatprep.subr.bf16.mxu0 %v14556_v50  ;;  %10579 = vmatprep.subr.bf16.mxu1 %v14558_v53  ;;  %v2819_v6 = vld [vmem:[#allocation8 + $0x68] sm:$0xff] }
 0x43e   :  { %v14568_v8 = vpack.c.bf16 %v2819_v6, %v2815_v35  ;;  %v2839_v32 = vld [vmem:[#allocation8 + $0x108] sm:$0xff]  ;;  %v2844_v35 = vld [vmem:[#allocation8 + $0x130] sm:$0xff] }
 0x43f   :  { %16852 = vst [vmem:[#allocation47_spill] sm:$0xff] %v14550_v54  ;;  %2695 = vmatmul.mubr.f32.vlgmr.msra.gmra.mrb[18].mxu0 %v14550_v54  ;;  %2766 = vmatmul.mubr.f32.vlgmr.msra.gmra.mrb[30].mxu1 %v14550_v54  ;;  %v2843_v48 = vld [vmem:[#allocation8 + $0x128] sm:$0xff]  ;;  %v14611_v6 = vpack.c.bf16 %v2844_v35, %v2840_v44  ;;  %v2869_v44 = vld [vmem:[#allocation8 + $0x1f8] sm:$0xff]  ;;  %v2862_v35 = vld [vmem:[#allocation8 + $0x1c0] sm:$0xff] }
 0x440   :  { %2934 = vmatprep.mubr.f32.mxu0 %v16811_v41  ;;  %3005 = vmatprep.mubr.f32.mxu1 %v16811_v41  ;;  %v14604_v4 = vpack.c.bf16 %v2843_v48, %v2839_v32  ;;  %v2860_v32 = vld [vmem:[#allocation8 + $0x1b0] sm:$0xff]  ;;  %v14642_v51 = vpack.c.bf16 %v2869_v44, %v2865_v1  ;;  %v14644_v11 = vpack.c.bf16 %v2866_v42, %v2862_v35 }
 0x441   :  { %10549 = vmatpush1.bf16.msra.mxu0 %v14560_v55  ;;  %10581 = vmatpush1.bf16.msra.mxu1 %v14563_v38  ;;  %v14635_v48 = vpack.c.bf16 %v2860_v32, %v2856_v22 }
 0x442   :  { %10551 = vmatprep.subr.bf16.mxu0 %v14568_v8  ;;  %10583 = vmatprep.subr.bf16.mxu1 %v14570_v7 }
 0x445   :  { %10553 = vmatpush1.bf16.msra.mxu0 %v14572_v26  ;;  %10585 = vmatpush1.bf16.msra.mxu1 %v14575_v47 }
 0x446   :  { %10555 = vmatprep.subr.bf16.mxu0 %v14580_v27  ;;  %10587 = vmatprep.subr.bf16.mxu1 %v14582_v40 }
 0x449   :  { %10557 = vmatpush1.bf16.msra.mxu0 %v14584_v16  ;;  %10589 = vmatpush1.bf16.msra.mxu1 %v14587_v39 }
 0x44a   :  { %10559 = vmatprep.subr.bf16.mxu0 %v14592_v31  ;;  %10591 = vmatprep.subr.bf16.mxu1 %v14594_v62 }
 0x44d   :  { %10561 = vmatpush1.bf16.msra.mxu0 %v14596_v5  ;;  %10593 = vmatpush1.bf16.msra.mxu1 %v14599_v59 }
 0x44e   :  { %10563 = vmatprep.subr.bf16.mxu0 %v14604_v4  ;;  %10595 = vmatprep.subr.bf16.mxu1 %v14606_v56 }
 0x451   :  { %10565 = vmatpush1.bf16.msra.mxu0 %v14608_v29  ;;  %10597 = vmatpush1.bf16.msra.mxu1 %v14611_v6 }
 0x452   :  { %10567 = vmatprep.subr.bf16.mxu0 %v14616_v12  ;;  %10599 = vmatprep.subr.bf16.mxu1 %v14618_v58 }
 0x455   :  { %10569 = vmatpush1.bf16.msra.mxu0 %v14620_v17  ;;  %10601 = vmatpush1.bf16.msra.mxu1 %v14623_v30 }
 0x456   :  { %10571 = vmatprep.subr.bf16.mxu0 %v14628_v13  ;;  %10603 = vmatprep.subr.bf16.mxu1 %v14630_v24 }
 0x459   :  { %10573 = vmatpush1.bf16.msra.mxu0 %v14632_v52  ;;  %10605 = vmatpush1.bf16.msra.mxu1 %v14635_v48 }
 0x45a   :  { %10575 = vmatprep.subr.bf16.mxu0 %v14640_v63  ;;  %10607 = vmatprep.subr.bf16.mxu1 %v14642_v51 }
 0x45d   :  { %10577 = vmatpush1.bf16.msra.mxu0 %v14644_v11  ;;  %10609 = vmatpush1.bf16.msra.mxu1 %v14647_v20 }
 0x45e   :  { %10611 = vmatprep.subr.bf16.mxu0 %v14652_v43  ;;  %10643 = vmatprep.subr.bf16.mxu1 %v14654_v49 }
 0x4f2   :  { %v2458_v36 = vpop.f32.mrb[6].mxu0  ;;  %v2529_v3 = vpop.f32.mrb[12].mxu1 }
 0x4f3   :  { %v12450_v22 = vadd.f32 %v2458_v36, %v14161_v23  ;;  %v2460_v32 = vpop.f32.mrb[7].mxu0  ;;  %v2531_v2 = vpop.f32.mrb[13].mxu1  ;;  %v12472_v57 = vadd.f32 %v2529_v3, %v16832_v14  ;;  %v3061_v14 = vld [vmem:[#allocation11 + $0x88] sm:$0xff] }
 0x4f4   :  { %v12451_v45 = vadd.f32 %v2460_v32, %v16830_v37  ;;  %v12473_v35 = vadd.f32 %v2531_v2, %v16831_v10  ;;  %v3065_v10 = vld [vmem:[#allocation11 + $0xa8] sm:$0xff]  ;;  %v3063_v37 = vld [vmem:[#allocation11 + $0x98] sm:$0xff] }
 0x4f5   :  { %v9811_v1 = vmul.f32 -1.442695, %v12450_v22 }
 0x4f6   :  { %v9812_v44 = vmul.f32 -1.442695, %v12451_v45  ;;  %v9813_v42 = vmul.f32 -1.442695, %v12473_v35 }
 0x4f7   :  { %12814 = vpow2.f32 %v9811_v1 }
 0x4f8   :  { %12816 = vpow2.f32 %v9812_v44 }
 0x4f9   :  { %12818 = vpow2.f32 %v9813_v42 }
 0x4fa   :  { %12820 = vtanh.f32 %v12472_v57 }
 0x501   :  { %v12815_v33 = vpop.eup %12814 }
 0x502   :  { %v12817_v19 = vpop.eup %12816  ;;  %v2541_v60 = vadd.f32 1.0, %v12815_v33 }
 0x503   :  { %v2547_v21 = vadd.f32 1.0, %v12817_v19  ;;  %v12819_v9 = vpop.eup %12818 }
 0x504   :  { %12822 = vrcp.f32 %v2541_v60  ;;  %v12821_v36 = vpop.eup %12820  ;;  %v2554_v1 = vadd.f32 1.0, %v12819_v9 }
 0x505   :  { %12824 = vrcp.f32 %v2547_v21 }
 0x506   :  { %12826 = vrcp.f32 %v2554_v1  ;;  %v3057_v1 = vld [vmem:[#allocation11 + $0x68] sm:$0xff] }
 0x50e   :  { %v12823_v32 = vpop.eup %12822 }
 0x50f   :  { %v12825_v22 = vpop.eup %12824  ;;  %v2558_v45 = vmul.f32 %v12823_v32, %v12821_v36  ;;  %v3048_v36 = vld [vmem:[#allocation11 + $0x20] sm:$0xff]  ;;  %v3046_v32 = vld [vmem:[#allocation11 + $0x10] sm:$0xff] }
 0x510   :  { %v2557_v44 = vmul.f32 %v12825_v22, %v14503_v25  ;;  %v3044_v25 = vld [vmem:[#allocation11] sm:$0xff]  ;;  %v3050_v22 = vld [vmem:[#allocation11 + $0x30] sm:$0xff]  ;;  %v12827_v34 = vpop.eup %12826 }
 0x512   :  { %v14663_v2 = vadd.f32 %v2558_v45, %v2557_v44  ;;  %v2696_v35 = vpop.f32.mrb[18].mxu0  ;;  %v2767_v3 = vpop.f32.mrb[30].mxu1  ;;  %v3053_v45 = vld [vmem:[#allocation11 + $0x48] sm:$0xff]  ;;  %v3055_v44 = vld [vmem:[#allocation11 + $0x58] sm:$0xff] }
 0x513   :  { %v12490_v33 = vadd.f32 %v2696_v35, %v16834_v46  ;;  %v2698_v42 = vpop.f32.mrb[19].mxu0  ;;  %v2769_v57 = vpop.f32.mrb[31].mxu1  ;;  %v3059_v35 = vld [vmem:[#allocation11 + $0x78] sm:$0xff]  ;;  %v14669_v46 = vpack.c.bf16 %v3048_v36, %v3044_v25 }
 0x514   :  { %16853 = vst [vmem:[#allocation48_spill] sm:$0xff] %v14663_v2  ;;  %12828 = vtanh.f32 %v14663_v2  ;;  %v12491_v19 = vadd.f32 %v2698_v42, %v16835_v61  ;;  %v12507_v9 = vadd.f32 %v2769_v57, %v16836_v28  ;;  %v14671_v42 = vpack.c.bf16 %v3050_v22, %v3046_v32  ;;  %v3054_v61 = vld [vmem:[#allocation11 + $0x50] sm:$0xff]  ;;  %v3060_v32 = vld [vmem:[#allocation11 + $0x80] sm:$0xff] }
 0x515   :  { %v9814_v60 = vmul.f32 -1.442695, %v12490_v33  ;;  %16854 = vst [vmem:[#allocation50_spill] sm:$0xff] %v14669_v46  ;;  %v3052_v33 = vld [vmem:[#allocation11 + $0x40] sm:$0xff]  ;;  %v12506_v57 = vadd.f32 %v2767_v3, %v14192_v0  ;;  %v14678_v28 = vpack.c.bf16 %v3059_v35, %v3055_v44  ;;  %v3058_v2 = vld [vmem:[#allocation11 + $0x70] sm:$0xff] }
 0x516   :  { %v9815_v21 = vmul.f32 -1.442695, %v12491_v19  ;;  %v9816_v15 = vmul.f32 -1.442695, %v12507_v9  ;;  %16855 = vst [vmem:[#allocation51_spill] sm:$0xff] %v14671_v42  ;;  %v3056_v19 = vld [vmem:[#allocation11 + $0x60] sm:$0xff]  ;;  %v14686_v3 = vpack.c.bf16 %v3058_v2, %v3054_v61 }
 0x517   :  { %12830 = vpow2.f32 %v9814_v60  ;;  %16858 = vst [vmem:[#allocation54_spill] sm:$0xff] %v14678_v28  ;;  %v3067_v9 = vld [vmem:[#allocation11 + $0xb8] sm:$0xff]  ;;  %v3064_v22 = vld [vmem:[#allocation11 + $0xa0] sm:$0xff]  ;;  %v3066_v35 = vld [vmem:[#allocation11 + $0xb0] sm:$0xff] }
 0x518   :  { %12832 = vpow2.f32 %v9815_v21  ;;  %v14676_v21 = vpack.c.bf16 %v3057_v1, %v3053_v45  ;;  %16860 = vst [vmem:[#allocation56_spill] sm:$0xff] %v14686_v3  ;;  %v14690_v1 = vpack.c.bf16 %v3065_v10, %v3061_v14  ;;  %v14692_v44 = vpack.c.bf16 %v3067_v9, %v3063_v37  ;;  %v3075_v61 = vld [vmem:[#allocation11 + $0xf8] sm:$0xff]  ;;  %v3068_v14 = vld [vmem:[#allocation11 + $0xc0] sm:$0xff] }
 0x519   :  { %12834 = vpow2.f32 %v9816_v15  ;;  %v3062_v15 = vld [vmem:[#allocation11 + $0x90] sm:$0xff]  ;;  %v14698_v10 = vpack.c.bf16 %v3064_v22, %v3060_v32  ;;  %v3072_v2 = vld [vmem:[#allocation11 + $0xe0] sm:$0xff] }
 0x51a   :  { %16857 = vst [vmem:[#allocation53_spill] sm:$0xff] %v14676_v21  ;;  %12836 = vtanh.f32 %v12506_v57  ;;  %16861 = vst [vmem:[#allocation57_spill] sm:$0xff] %v14690_v1  ;;  %v14700_v37 = vpack.c.bf16 %v3066_v35, %v3062_v15  ;;  %v14710_v32 = vpack.c.bf16 %v3072_v2, %v3068_v14  ;;  %v3076_v15 = vld [vmem:[#allocation11 + $0x100] sm:$0xff]  ;;  %v3091_v14 = vld [vmem:[#allocation11 + $0x178] sm:$0xff] }
 0x51b   :  { %16862 = vst [vmem:[#allocation58_spill] sm:$0xff] %v14692_v44  ;;  %16863 = vst [vmem:[#allocation59_spill] sm:$0xff] %v14698_v10  ;;  %v3080_v35 = vld [vmem:[#allocation11 + $0x120] sm:$0xff] }
 0x51c   :  { %16864 = vst [vmem:[#allocation60_spill] sm:$0xff] %v14700_v37  ;;  %16867 = vst [vmem:[#allocation64_spill] sm:$0xff] %v14710_v32 }
 0x51e   :  { %v12829_v54 = vpop.eup %12828 }
 0x51f   :  { %v14673_v60 = vmul.f32 %v12829_v54, %v12827_v34  ;;  %v14684_v54 = vpack.c.bf16 %v3056_v19, %v3052_v33  ;;  %v3073_v33 = vld [vmem:[#allocation11 + $0xe8] sm:$0xff]  ;;  %v3071_v19 = vld [vmem:[#allocation11 + $0xd8] sm:$0xff] }
 0x520   :  { %v14706_v9 = vpack.c.bf16 %v3075_v61, %v3071_v19  ;;  %v3078_v19 = vld [vmem:[#allocation11 + $0x110] sm:$0xff] }
 0x521   :  { %16856 = vst [vmem:[#allocation52_spill] sm:$0xff] %v14673_v60  ;;  %v12831_v25 = vpop.eup %12830  ;;  %2935 = vmatmul.mubr.f32.vlgmr.msra.gmra.mrb[8].mxu0 %v14673_v60  ;;  %3006 = vmatmul.mubr.f32.vlgmr.msra.gmra.mrb[14].mxu1 %v14673_v60  ;;  %16859 = vst [vmem:[#allocation55_spill] sm:$0xff] %v14684_v54  ;;  %v3081_v60 = vld [vmem:[#allocation11 + $0x128] sm:$0xff]  ;;  %v3082_v61 = vld [vmem:[#allocation11 + $0x130] sm:$0xff] }
 0x522   :  { %v12833_v36 = vpop.eup %12832  ;;  %v2779_v34 = vadd.f32 1.0, %v12831_v25  ;;  %10613 = vmatpush1.bf16.msra.mxu0 %v14669_v46  ;;  %10645 = vmatpush1.bf16.msra.mxu1 %v14671_v42  ;;  %v3069_v25 = vld [vmem:[#allocation11 + $0xc8] sm:$0xff]  ;;  %16866 = vst [vmem:[#allocation63_spill] sm:$0xff] %v14706_v9  ;;  %v3090_v42 = vld [vmem:[#allocation11 + $0x170] sm:$0xff] }
 0x523   :  { %v2785_v45 = vadd.f32 1.0, %v12833_v36  ;;  %10615 = vmatprep.subr.bf16.mxu0 %v14676_v21  ;;  %10647 = vmatprep.subr.bf16.mxu1 %v14678_v28  ;;  %v14704_v57 = vpack.c.bf16 %v3073_v33, %v3069_v25  ;;  %v3070_v36 = vld [vmem:[#allocation11 + $0xd0] sm:$0xff] }
 0x524   :  { %12838 = vrcp.f32 %v2779_v34  ;;  %3172 = vmatprep.mubr.f32.mxu0 %v16811_v41  ;;  %3243 = vmatprep.mubr.f32.mxu1 %v16811_v41  ;;  %v3074_v34 = vld [vmem:[#allocation11 + $0xf0] sm:$0xff] }
 0x525   :  { %12840 = vrcp.f32 %v2785_v45  ;;  %16865 = vst [vmem:[#allocation61_spill] sm:$0xff] %v14704_v57  ;;  %v3077_v45 = vld [vmem:[#allocation11 + $0x108] sm:$0xff]  ;;  %v14712_v22 = vpack.c.bf16 %v3074_v34, %v3070_v36  ;;  %v14722_v34 = vpack.c.bf16 %v3080_v35, %v3076_v15 }
 0x526   :  { %10617 = vmatpush1.bf16.msra.mxu0 %v14684_v54  ;;  %10649 = vmatpush1.bf16.msra.mxu1 %v14686_v3  ;;  %v3079_v54 = vld [vmem:[#allocation11 + $0x118] sm:$0xff]  ;;  %v14716_v25 = vpack.c.bf16 %v3081_v60, %v3077_v45  ;;  %v3084_v60 = vld [vmem:[#allocation11 + $0x140] sm:$0xff]  ;;  %v3097_v35 = vld [vmem:[#allocation11 + $0x1a8] sm:$0xff] }
 0x527   :  { %10619 = vmatprep.subr.bf16.mxu0 %v14690_v1  ;;  %10651 = vmatprep.subr.bf16.mxu1 %v14692_v44  ;;  %v3083_v3 = vld [vmem:[#allocation11 + $0x138] sm:$0xff]  ;;  %16868 = vst [vmem:[#allocation65_spill] sm:$0xff] %v14712_v22  ;;  %v3085_v44 = vld [vmem:[#allocation11 + $0x148] sm:$0xff] }
 0x528   :  { %v14718_v33 = vpack.c.bf16 %v3083_v3, %v3079_v54  ;;  %v3089_v1 = vld [vmem:[#allocation11 + $0x168] sm:$0xff]  ;;  %v3088_v54 = vld [vmem:[#allocation11 + $0x160] sm:$0xff] }
 0x529   :  { %v14728_v28 = vpack.c.bf16 %v3089_v1, %v3085_v44  ;;  %v3092_v44 = vld [vmem:[#allocation11 + $0x180] sm:$0xff] }
 0x52a   :  { %10621 = vmatpush1.bf16.msra.mxu0 %v14698_v10  ;;  %10653 = vmatpush1.bf16.msra.mxu1 %v14700_v37  ;;  %v12835_v10 = vpop.eup %12834  ;;  %v3087_v37 = vld [vmem:[#allocation11 + $0x158] sm:$0xff] }
 0x52b   :  { %10623 = vmatprep.subr.bf16.mxu0 %v14704_v57  ;;  %10655 = vmatprep.subr.bf16.mxu1 %v14706_v9  ;;  %v12837_v2 = vpop.eup %12836  ;;  %v14724_v9 = vpack.c.bf16 %v3082_v61, %v3078_v19  ;;  %v2792_v57 = vadd.f32 1.0, %v12835_v10  ;;  %v14730_v21 = vpack.c.bf16 %v3091_v14, %v3087_v37  ;;  %v3095_v19 = vld [vmem:[#allocation11 + $0x198] sm:$0xff]  ;;  %v14737_v10 = vpack.c.bf16 %v3088_v54, %v3084_v60  ;;  %v3096_v37 = vld [vmem:[#allocation11 + $0x1a0] sm:$0xff]  ;;  %v3105_v60 = vld [vmem:[#allocation11 + $0x1e8] sm:$0xff] }
 0x52c   :  { %v3099_v61 = vld [vmem:[#allocation11 + $0x1b8] sm:$0xff] }
 0x52d   :  { %12842 = vrcp.f32 %v2792_v57  ;;  %v14745_v14 = vpack.c.bf16 %v3099_v61, %v3095_v19  ;;  %v3103_v54 = vld [vmem:[#allocation11 + $0x1d8] sm:$0xff]  ;;  %v14750_v57 = vpack.c.bf16 %v3096_v37, %v3092_v44  ;;  %v3102_v19 = vld [vmem:[#allocation11 + $0x1d0] sm:$0xff] }
 0x52e   :  { %v12839_v36 = vpop.eup %12838  ;;  %10625 = vmatpush1.bf16.msra.mxu0 %v14710_v32  ;;  %10657 = vmatpush1.bf16.msra.mxu1 %v14712_v22  ;;  %v3086_v32 = vld [vmem:[#allocation11 + $0x150] sm:$0xff]  ;;  %v3093_v22 = vld [vmem:[#allocation11 + $0x188] sm:$0xff] }
 0x52f   :  { %v12841_v3 = vpop.eup %12840  ;;  %v2796_v45 = vmul.f32 %v12839_v36, %v12837_v2  ;;  %10627 = vmatprep.subr.bf16.mxu0 %v14716_v25  ;;  %10659 = vmatprep.subr.bf16.mxu1 %v14718_v33  ;;  %v14739_v1 = vpack.c.bf16 %v3090_v42, %v3086_v32  ;;  %v3094_v2 = vld [vmem:[#allocation11 + $0x190] sm:$0xff]  ;;  %v3107_v42 = vld [vmem:[#allocation11 + $0x1f8] sm:$0xff] }
 0x530   :  { %v2795_v15 = vmul.f32 %v12841_v3, %v14533_v18  ;;  %v14743_v18 = vpack.c.bf16 %v3097_v35, %v3093_v22  ;;  %v3098_v36 = vld [vmem:[#allocation11 + $0x1b0] sm:$0xff]  ;;  %v3101_v3 = vld [vmem:[#allocation11 + $0x1c8] sm:$0xff]  ;;  %v3100_v22 = vld [vmem:[#allocation11 + $0x1c0] sm:$0xff] }
 0x531   :  { %v14752_v32 = vpack.c.bf16 %v3098_v36, %v3094_v2  ;;  %v3104_v35 = vld [vmem:[#allocation11 + $0x1e0] sm:$0xff]  ;;  %v3106_v61 = vld [vmem:[#allocation11 + $0x1f0] sm:$0xff] }
 0x532   :  { %v14733_v46 = vadd.f32 %v2796_v45, %v2795_v15  ;;  %10629 = vmatpush1.bf16.msra.mxu0 %v14722_v34  ;;  %10661 = vmatpush1.bf16.msra.mxu1 %v14724_v9  ;;  %v14756_v45 = vpack.c.bf16 %v3105_v60, %v3101_v3  ;;  %v14758_v15 = vpack.c.bf16 %v3107_v42, %v3103_v54 }
 0x533   :  { %10631 = vmatprep.subr.bf16.mxu0 %v14728_v28  ;;  %10663 = vmatprep.subr.bf16.mxu1 %v14730_v21  ;;  %v14762_v44 = vpack.c.bf16 %v3104_v35, %v3100_v22  ;;  %v14764_v37 = vpack.c.bf16 %v3106_v61, %v3102_v19  ;;  %v16876_v22 = vld [vmem:[#allocation43_spill] sm:$0xff] }
 0x534   :  { %12844 = vtanh.f32 %v14733_v46 }
 0x536   :  { %10633 = vmatpush1.bf16.msra.mxu0 %v14737_v10  ;;  %10665 = vmatpush1.bf16.msra.mxu1 %v14739_v1 }
 0x537   :  { %10635 = vmatprep.subr.bf16.mxu0 %v14743_v18  ;;  %10667 = vmatprep.subr.bf16.mxu1 %v14745_v14  ;;  %v12843_v2 = vpop.eup %12842 }
 0x53a   :  { %10637 = vmatpush1.bf16.msra.mxu0 %v14750_v57  ;;  %10669 = vmatpush1.bf16.msra.mxu1 %v14752_v32 }
 0x53b   :  { %10639 = vmatprep.subr.bf16.mxu0 %v14756_v45  ;;  %10671 = vmatprep.subr.bf16.mxu1 %v14758_v15 }
 0x53e   :  { %v12845_v36 = vpop.eup %12844  ;;  %10641 = vmatpush1.bf16.msra.mxu0 %v14762_v44  ;;  %10673 = vmatpush1.bf16.msra.mxu1 %v14764_v37 }
 0x53f   :  { %v14770_v3 = vmul.f32 %v12845_v36, %v12843_v2  ;;  %10675 = vmatprep.subr.bf16.mxu0 %v14556_v50  ;;  %10707 = vmatprep.subr.bf16.mxu1 %v14558_v53 }
 0x541   :  { %16869 = vst [vmem:[#allocation66_spill] sm:$0xff] %v14770_v3  ;;  %3173 = vmatmul.mubr.f32.vlgmr.msra.gmra.mrb[16].mxu0 %v14770_v3  ;;  %3244 = vmatmul.mubr.f32.vlgmr.msra.gmra.mrb[28].mxu1 %v14770_v3 }
 0x542   :  { %10677 = vmatpush1.bf16.msra.mxu0 %v14560_v55  ;;  %10709 = vmatpush1.bf16.msra.mxu1 %v14563_v38 }
 0x543   :  { %10679 = vmatprep.subr.bf16.mxu0 %v14568_v8  ;;  %10711 = vmatprep.subr.bf16.mxu1 %v14570_v7  ;;  %v16870_v7 = vld [vmem:[#allocation36_spill] sm:$0xff] }
 0x544   :  { %3412 = vmatprep.mubr.f32.mxu0 %v16811_v41  ;;  %3483 = vmatprep.mubr.f32.mxu1 %v16811_v41 }
 0x546   :  { %10681 = vmatpush1.bf16.msra.mxu0 %v14572_v26  ;;  %10713 = vmatpush1.bf16.msra.mxu1 %v14575_v47 }
 0x547   :  { %10683 = vmatprep.subr.bf16.mxu0 %v14580_v27  ;;  %10715 = vmatprep.subr.bf16.mxu1 %v14582_v40  ;;  %v16871_v40 = vld [vmem:[#allocation40_spill] sm:$0xff] }
 0x54a   :  { %10685 = vmatpush1.bf16.msra.mxu0 %v14584_v16  ;;  %10717 = vmatpush1.bf16.msra.mxu1 %v14587_v39 }
 0x54b   :  { %10687 = vmatprep.subr.bf16.mxu0 %v14592_v31  ;;  %10719 = vmatprep.subr.bf16.mxu1 %v14594_v62  ;;  %v16872_v31 = vld [vmem:[#allocation39_spill] sm:$0xff] }
 0x54e   :  { %10689 = vmatpush1.bf16.msra.mxu0 %v14596_v5  ;;  %10721 = vmatpush1.bf16.msra.mxu1 %v14599_v59 }
 0x54f   :  { %10691 = vmatprep.subr.bf16.mxu0 %v14604_v4  ;;  %10723 = vmatprep.subr.bf16.mxu1 %v14606_v56 }
 0x552   :  { %10693 = vmatpush1.bf16.msra.mxu0 %v14608_v29  ;;  %10725 = vmatpush1.bf16.msra.mxu1 %v14611_v6 }
 0x553   :  { %10695 = vmatprep.subr.bf16.mxu0 %v14616_v12  ;;  %10727 = vmatprep.subr.bf16.mxu1 %v14618_v58 }
 0x556   :  { %10697 = vmatpush1.bf16.msra.mxu0 %v14620_v17  ;;  %10729 = vmatpush1.bf16.msra.mxu1 %v14623_v30 }
 0x557   :  { %10699 = vmatprep.subr.bf16.mxu0 %v14628_v13  ;;  %10731 = vmatprep.subr.bf16.mxu1 %v14630_v24  ;;  %v16873_v13 = vld [vmem:[#allocation48_spill] sm:$0xff] }
 0x55a   :  { %10701 = vmatpush1.bf16.msra.mxu0 %v14632_v52  ;;  %10733 = vmatpush1.bf16.msra.mxu1 %v14635_v48 }
 0x55b   :  { %10703 = vmatprep.subr.bf16.mxu0 %v14640_v63  ;;  %10735 = vmatprep.subr.bf16.mxu1 %v14642_v51  ;;  %v16874_v51 = vld [vmem:[#allocation42_spill] sm:$0xff] }
 0x55e   :  { %10705 = vmatpush1.bf16.msra.mxu0 %v14644_v11  ;;  %10737 = vmatpush1.bf16.msra.mxu1 %v14647_v20 }
 0x55f   :  { %10739 = vmatprep.subr.bf16.mxu0 %v14652_v43  ;;  %10771 = vmatprep.subr.bf16.mxu1 %v14654_v49  ;;  %v16875_v49 = vld [vmem:[#allocation41_spill] sm:$0xff] }
 0x5f4   :  { %v2936_v50 = vpop.f32.mrb[8].mxu0  ;;  %v3007_v53 = vpop.f32.mrb[14].mxu1 }
 0x5f5   :  { %v12452_v55 = vadd.f32 %v2936_v50, %v14161_v23  ;;  %v2938_v38 = vpop.f32.mrb[9].mxu0  ;;  %v3009_v8 = vpop.f32.mrb[15].mxu1  ;;  %v12474_v62 = vadd.f32 %v3007_v53, %v16872_v31 }
 0x5f6   :  { %v12453_v26 = vadd.f32 %v2938_v38, %v16870_v7  ;;  %v12475_v16 = vadd.f32 %v3009_v8, %v16871_v40  ;;  %v16878_v8 = vld [vmem:[#allocation50_spill] sm:$0xff] }
 0x5f7   :  { %v9817_v47 = vmul.f32 -1.442695, %v12452_v55 }
 0x5f8   :  { %v9818_v27 = vmul.f32 -1.442695, %v12453_v26  ;;  %v9819_v39 = vmul.f32 -1.442695, %v12475_v16  ;;  %v16879_v26 = vld [vmem:[#allocation51_spill] sm:$0xff]  ;;  %v16881_v16 = vld [vmem:[#allocation54_spill] sm:$0xff] }
 0x5f9   :  { %12846 = vpow2.f32 %v9817_v47 }
 0x5fa   :  { %12848 = vpow2.f32 %v9818_v27  ;;  %v16880_v27 = vld [vmem:[#allocation53_spill] sm:$0xff] }
 0x5fb   :  { %12850 = vpow2.f32 %v9819_v39  ;;  %v16882_v39 = vld [vmem:[#allocation55_spill] sm:$0xff] }
 0x5fc   :  { %12852 = vtanh.f32 %v12474_v62  ;;  %v16883_v62 = vld [vmem:[#allocation56_spill] sm:$0xff] }
 0x603   :  { %v12847_v5 = vpop.eup %12846 }
 0x604   :  { %v12849_v59 = vpop.eup %12848  ;;  %v3019_v4 = vadd.f32 1.0, %v12847_v5  ;;  %v16884_v5 = vld [vmem:[#allocation57_spill] sm:$0xff] }
 0x605   :  { %v3025_v56 = vadd.f32 1.0, %v12849_v59  ;;  %v12851_v29 = vpop.eup %12850  ;;  %v16885_v59 = vld [vmem:[#allocation58_spill] sm:$0xff] }
 0x606   :  { %12854 = vrcp.f32 %v3019_v4  ;;  %v12853_v6 = vpop.eup %12852  ;;  %v3032_v30 = vadd.f32 1.0, %v12851_v29  ;;  %v16886_v4 = vld [vmem:[#allocation59_spill] sm:$0xff]  ;;  %v16888_v29 = vld [vmem:[#allocation61_spill] sm:$0xff] }
 0x607   :  { %12856 = vrcp.f32 %v3025_v56  ;;  %v16887_v56 = vld [vmem:[#allocation60_spill] sm:$0xff] }
 0x608   :  { %12858 = vrcp.f32 %v3032_v30  ;;  %v16890_v30 = vld [vmem:[#allocation64_spill] sm:$0xff] }
 0x610   :  { %v12855_v12 = vpop.eup %12854 }
 0x611   :  { %v12857_v58 = vpop.eup %12856  ;;  %v3036_v17 = vmul.f32 %v12855_v12, %v12853_v6  ;;  %v16889_v6 = vld [vmem:[#allocation63_spill] sm:$0xff] }
 0x612   :  { %v3035_v24 = vmul.f32 %v12857_v58, %v16873_v13  ;;  %v12859_v19 = vpop.eup %12858  ;;  %v16891_v13 = vld [vmem:[#allocation65_spill] sm:$0xff] }
 0x614   :  { %v14815_v52 = vadd.f32 %v3036_v17, %v3035_v24  ;;  %v3174_v48 = vpop.f32.mrb[16].mxu0  ;;  %v3245_v63 = vpop.f32.mrb[28].mxu1 }
 0x615   :  { %v12488_v11 = vadd.f32 %v3174_v48, %v16874_v51  ;;  %v3176_v20 = vpop.f32.mrb[17].mxu0  ;;  %v3247_v43 = vpop.f32.mrb[29].mxu1  ;;  %v12504_v50 = vadd.f32 %v3245_v63, %v14192_v0 }
 0x616   :  { %12860 = vtanh.f32 %v14815_v52  ;;  %v12489_v60 = vadd.f32 %v3176_v20, %v16875_v49  ;;  %v12505_v35 = vadd.f32 %v3247_v43, %v16876_v22  ;;  %v3773_v43 = vld [vmem:[#allocation8 + $0x58] sm:$0xff] }
 0x617   :  { %v9820_v54 = vmul.f32 -1.442695, %v12488_v11 }
 0x618   :  { %v9821_v42 = vmul.f32 -1.442695, %v12489_v60  ;;  %v9822_v2 = vmul.f32 -1.442695, %v12505_v35  ;;  %v3774_v35 = vld [vmem:[#allocation8 + $0x60] sm:$0xff] }
 0x619   :  { %12862 = vpow2.f32 %v9820_v54  ;;  %v3777_v54 = vld [vmem:[#allocation8 + $0x78] sm:$0xff] }
 0x61a   :  { %12864 = vpow2.f32 %v9821_v42  ;;  %v3770_v42 = vld [vmem:[#allocation8 + $0x40] sm:$0xff] }
 0x61b   :  { %12866 = vpow2.f32 %v9822_v2  ;;  %v3772_v2 = vld [vmem:[#allocation8 + $0x50] sm:$0xff] }
 0x61c   :  { %12868 = vtanh.f32 %v12504_v50  ;;  %v3776_v50 = vld [vmem:[#allocation8 + $0x70] sm:$0xff] }
 0x620   :  { %v12861_v61 = vpop.eup %12860 }
 0x621   :  { %v14821_v36 = vmul.f32 %v12861_v61, %v12859_v19  ;;  %v14882_v19 = vpack.c.bf16 %v3777_v54, %v3773_v43  ;;  %v14884_v61 = vpack.c.bf16 %v3774_v35, %v3770_v42  ;;  %v3803_v43 = vld [vmem:[#allocation8 + $0x148] sm:$0xff]  ;;  %v3805_v42 = vld [vmem:[#allocation8 + $0x158] sm:$0xff] }
 0x622   :  { %v3807_v54 = vld [vmem:[#allocation8 + $0x168] sm:$0xff] }
 0x623   :  { %16877 = vst [vmem:[#allocation48_spill] sm:$0xff] %v14821_v36  ;;  %v12863_v53 = vpop.eup %12862  ;;  %3413 = vmatmul.mubr.f32.vlgmr.msra.gmra.mrb[26].mxu0 %v14821_v36  ;;  %3484 = vmatmul.mubr.f32.vlgmr.msra.gmra.mrb[16].mxu1 %v14821_v36  ;;  %v14928_v35 = vpack.c.bf16 %v3807_v54, %v3803_v43  ;;  %v3822_v43 = vld [vmem:[#allocation8 + $0x1e0] sm:$0xff] }
 0x624   :  { %v12865_v55 = vpop.eup %12864  ;;  %v3257_v38 = vadd.f32 1.0, %v12863_v53  ;;  %10741 = vmatpush1.bf16.msra.mxu0 %v16878_v8  ;;  %10773 = vmatpush1.bf16.msra.mxu1 %v16879_v26  ;;  %v14887_v53 = vpack.c.bf16 %v3776_v50, %v3772_v2  ;;  %v3781_v8 = vld [vmem:[#allocation8 + $0x98] sm:$0xff]  ;;  %v3802_v50 = vld [vmem:[#allocation8 + $0x140] sm:$0xff] }
 0x625   :  { %v3263_v47 = vadd.f32 1.0, %v12865_v55  ;;  %10743 = vmatprep.subr.bf16.mxu0 %v16880_v27  ;;  %10775 = vmatprep.subr.bf16.mxu1 %v16881_v16  ;;  %v12867_v12 = vpop.eup %12866  ;;  %v3779_v55 = vld [vmem:[#allocation8 + $0x88] sm:$0xff]  ;;  %v3778_v27 = vld [vmem:[#allocation8 + $0x80] sm:$0xff]  ;;  %v3809_v2 = vld [vmem:[#allocation8 + $0x178] sm:$0xff] }
 0x626   :  { %12870 = vrcp.f32 %v3257_v38  ;;  %3650 = vmatprep.mubr.f32.mxu0 %v16811_v41  ;;  %3721 = vmatprep.mubr.f32.mxu1 %v16811_v41  ;;  %v12869_v58 = vpop.eup %12868  ;;  %v3270_v63 = vadd.f32 1.0, %v12867_v12  ;;  %v3783_v38 = vld [vmem:[#allocation8 + $0xa8] sm:$0xff]  ;;  %v3782_v16 = vld [vmem:[#allocation8 + $0xa0] sm:$0xff] }
 0x627   :  { %12872 = vrcp.f32 %v3263_v47  ;;  %v14892_v26 = vpack.c.bf16 %v3783_v38, %v3779_v55  ;;  %v3785_v47 = vld [vmem:[#allocation8 + $0xb8] sm:$0xff]  ;;  %v3806_v55 = vld [vmem:[#allocation8 + $0x160] sm:$0xff]  ;;  %v14930_v38 = vpack.c.bf16 %v3809_v2, %v3805_v42  ;;  %v3820_v2 = vld [vmem:[#allocation8 + $0x1d0] sm:$0xff] }
 0x628   :  { %10745 = vmatpush1.bf16.msra.mxu0 %v16882_v39  ;;  %10777 = vmatpush1.bf16.msra.mxu1 %v16883_v62  ;;  %12874 = vrcp.f32 %v3270_v63  ;;  %v14894_v39 = vpack.c.bf16 %v3785_v47, %v3781_v8  ;;  %v14896_v62 = vpack.c.bf16 %v3782_v16, %v3778_v27  ;;  %v3792_v63 = vld [vmem:[#allocation8 + $0xf0] sm:$0xff]  ;;  %v14932_v8 = vpack.c.bf16 %v3806_v55, %v3802_v50 }
 0x629   :  { %10747 = vmatprep.subr.bf16.mxu0 %v16884_v5  ;;  %10779 = vmatprep.subr.bf16.mxu1 %v16885_v59  ;;  %v3780_v5 = vld [vmem:[#allocation8 + $0x90] sm:$0xff] }
 0x62a   :  { %v3784_v59 = vld [vmem:[#allocation8 + $0xb0] sm:$0xff] }
 0x62b   :  { %v3804_v47 = vld [vmem:[#allocation8 + $0x150] sm:$0xff] }
 0x62c   :  { %10749 = vmatpush1.bf16.msra.mxu0 %v16886_v4  ;;  %10781 = vmatpush1.bf16.msra.mxu1 %v16887_v56  ;;  %v14899_v4 = vpack.c.bf16 %v3784_v59, %v3780_v5  ;;  %v3787_v56 = vld [vmem:[#allocation8 + $0xc8] sm:$0xff]  ;;  %v3808_v27 = vld [vmem:[#allocation8 + $0x170] sm:$0xff] }
 0x62d   :  { %10751 = vmatprep.subr.bf16.mxu0 %v16888_v29  ;;  %10783 = vmatprep.subr.bf16.mxu1 %v16889_v6  ;;  %v3791_v29 = vld [vmem:[#allocation8 + $0xe8] sm:$0xff]  ;;  %v3789_v6 = vld [vmem:[#allocation8 + $0xd8] sm:$0xff]  ;;  %v14935_v16 = vpack.c.bf16 %v3808_v27, %v3804_v47  ;;  %v3824_v50 = vld [vmem:[#allocation8 + $0x1f0] sm:$0xff] }
 0x62e   :  { %v14904_v12 = vpack.c.bf16 %v3791_v29, %v3787_v56  ;;  %v3811_v5 = vld [vmem:[#allocation8 + $0x188] sm:$0xff]  ;;  %v3813_v56 = vld [vmem:[#allocation8 + $0x198] sm:$0xff]  ;;  %v14959_v55 = vpack.c.bf16 %v3824_v50, %v3820_v2 }
 0x62f   :  { %v3815_v59 = vld [vmem:[#allocation8 + $0x1a8] sm:$0xff] }
 0x630   :  { %v12871_v17 = vpop.eup %12870  ;;  %10753 = vmatpush1.bf16.msra.mxu0 %v16890_v30  ;;  %10785 = vmatpush1.bf16.msra.mxu1 %v16891_v13  ;;  %v3790_v30 = vld [vmem:[#allocation8 + $0xe0] sm:$0xff]  ;;  %v14940_v29 = vpack.c.bf16 %v3815_v59, %v3811_v5  ;;  %v4001_v47 = vld [vmem:[#allocation11 + $0x8] sm:$0xff]  ;;  %v4003_v5 = vld [vmem:[#allocation11 + $0x18] sm:$0xff] }
 0x631   :  { %v12873_v24 = vpop.eup %12872  ;;  %v3274_v48 = vmul.f32 %v12871_v17, %v12869_v58  ;;  %10755 = vmatprep.subr.bf16.mxu0 %v14716_v25  ;;  %10787 = vmatprep.subr.bf16.mxu1 %v14718_v33  ;;  %v3767_v25 = vld [vmem:[#allocation8 + $0x28] sm:$0xff]  ;;  %v3765_v33 = vld [vmem:[#allocation8 + $0x18] sm:$0xff]  ;;  %v3786_v17 = vld [vmem:[#allocation8 + $0xc0] sm:$0xff] }
 0x632   :  { %v3273_v11 = vmul.f32 %v12873_v24, %v14733_v46  ;;  %v12875_v46 = vpop.eup %12874  ;;  %v3793_v58 = vld [vmem:[#allocation8 + $0xf8] sm:$0xff]  ;;  %v14908_v24 = vpack.c.bf16 %v3790_v30, %v3786_v17  ;;  %v3814_v17 = vld [vmem:[#allocation8 + $0x1a0] sm:$0xff]  ;;  %v4005_v27 = vld [vmem:[#allocation11 + $0x28] sm:$0xff] }
 0x633   :  { %v14906_v13 = vpack.c.bf16 %v3793_v58, %v3789_v6  ;;  %v3817_v6 = vld [vmem:[#allocation8 + $0x1b8] sm:$0xff]  ;;  %v3810_v58 = vld [vmem:[#allocation8 + $0x180] sm:$0xff]  ;;  %v14964_v59 = vpack.c.bf16 %v4005_v27, %v4001_v47 }
 0x634   :  { %v14845_v20 = vadd.f32 %v3274_v48, %v3273_v11  ;;  %10757 = vmatpush1.bf16.msra.mxu0 %v14722_v34  ;;  %10789 = vmatpush1.bf16.msra.mxu1 %v14724_v9  ;;  %v3763_v9 = vld [vmem:[#allocation8 + $0x8] sm:$0xff]  ;;  %v3788_v48 = vld [vmem:[#allocation8 + $0xd0] sm:$0xff]  ;;  %v14942_v30 = vpack.c.bf16 %v3817_v6, %v3813_v56  ;;  %v4007_v56 = vld [vmem:[#allocation11 + $0x38] sm:$0xff] }
 0x635   :  { %10759 = vmatprep.subr.bf16.mxu0 %v14728_v28  ;;  %10791 = vmatprep.subr.bf16.mxu1 %v14730_v21  ;;  %v14868_v34 = vpack.c.bf16 %v3767_v25, %v3763_v9  ;;  %v14911_v11 = vpack.c.bf16 %v3792_v63, %v3788_v48  ;;  %v3797_v9 = vld [vmem:[#allocation8 + $0x118] sm:$0xff]  ;;  %v14944_v48 = vpack.c.bf16 %v3814_v17, %v3810_v58  ;;  %v3812_v63 = vld [vmem:[#allocation8 + $0x190] sm:$0xff]  ;;  %v16893_v58 = vld [vmem:[#allocation28_spill] sm:$0xff] }
 0x636   :  { %12876 = vtanh.f32 %v14845_v20  ;;  %v14966_v6 = vpack.c.bf16 %v4007_v56, %v4003_v5  ;;  %v397_v17 = vadd.f32 %v16893_v58, %v14161_v23 }
 0x638   :  { %10761 = vmatpush1.bf16.msra.mxu0 %v14737_v10  ;;  %10793 = vmatpush1.bf16.msra.mxu1 %v14739_v1  ;;  %v3769_v10 = vld [vmem:[#allocation8 + $0x38] sm:$0xff]  ;;  %v3762_v1 = vld [vmem:[#allocation8] sm:$0xff] }
 0x639   :  { %10763 = vmatprep.subr.bf16.mxu0 %v14743_v18  ;;  %10795 = vmatprep.subr.bf16.mxu1 %v14745_v14  ;;  %v3766_v18 = vld [vmem:[#allocation8 + $0x20] sm:$0xff]  ;;  %v14870_v14 = vpack.c.bf16 %v3769_v10, %v3765_v33  ;;  %v3801_v33 = vld [vmem:[#allocation8 + $0x138] sm:$0xff] }
 0x63a   :  { %v3794_v10 = vld [vmem:[#allocation8 + $0x100] sm:$0xff] }
 0x63c   :  { %10765 = vmatpush1.bf16.msra.mxu0 %v14750_v57  ;;  %10797 = vmatpush1.bf16.msra.mxu1 %v14752_v32  ;;  %v14872_v57 = vpack.c.bf16 %v3766_v18, %v3762_v1  ;;  %v3764_v32 = vld [vmem:[#allocation8 + $0x10] sm:$0xff]  ;;  %v3798_v1 = vld [vmem:[#allocation8 + $0x120] sm:$0xff]  ;;  %v14918_v18 = vpack.c.bf16 %v3801_v33, %v3797_v9  ;;  %v3819_v9 = vld [vmem:[#allocation8 + $0x1c8] sm:$0xff] }
 0x63d   :  { %10767 = vmatprep.subr.bf16.mxu0 %v14756_v45  ;;  %10799 = vmatprep.subr.bf16.mxu1 %v14758_v15  ;;  %v3768_v45 = vld [vmem:[#allocation8 + $0x30] sm:$0xff]  ;;  %v3823_v33 = vld [vmem:[#allocation8 + $0x1e8] sm:$0xff] }
 0x63e   :  { %v14875_v15 = vpack.c.bf16 %v3768_v45, %v3764_v32  ;;  %v14920_v32 = vpack.c.bf16 %v3798_v1, %v3794_v10  ;;  %v3796_v45 = vld [vmem:[#allocation8 + $0x110] sm:$0xff]  ;;  %v3821_v10 = vld [vmem:[#allocation8 + $0x1d8] sm:$0xff]  ;;  %v14952_v1 = vpack.c.bf16 %v3823_v33, %v3819_v9 }
 0x640   :  { %v12877_v28 = vpop.eup %12876  ;;  %10769 = vmatpush1.bf16.msra.mxu0 %v14762_v44  ;;  %10801 = vmatpush1.bf16.msra.mxu1 %v14764_v37  ;;  %v3771_v44 = vld [vmem:[#allocation8 + $0x48] sm:$0xff] }
 0x641   :  { %v14862_v21 = vmul.f32 %v12877_v28, %v12875_v46  ;;  %10803 = vmatprep.subr.bf16.mxu0 %v14868_v34  ;;  %10835 = vmatprep.subr.bf16.mxu1 %v14870_v14  ;;  %v3775_v37 = vld [vmem:[#allocation8 + $0x68] sm:$0xff] }
 0x642   :  { %v14880_v60 = vpack.c.bf16 %v3775_v37, %v3771_v44  ;;  %v3795_v46 = vld [vmem:[#allocation8 + $0x108] sm:$0xff]  ;;  %v3800_v44 = vld [vmem:[#allocation8 + $0x130] sm:$0xff] }
 0x643   :  { %16892 = vst [vmem:[#allocation50_spill] sm:$0xff] %v14862_v21  ;;  %3651 = vmatmul.mubr.f32.vlgmr.msra.gmra.mrb[14].mxu0 %v14862_v21  ;;  %3722 = vmatmul.mubr.f32.vlgmr.msra.gmra.mrb[26].mxu1 %v14862_v21  ;;  %v3799_v28 = vld [vmem:[#allocation8 + $0x128] sm:$0xff]  ;;  %v14923_v37 = vpack.c.bf16 %v3800_v44, %v3796_v45  ;;  %v3825_v45 = vld [vmem:[#allocation8 + $0x1f8] sm:$0xff]  ;;  %v3818_v44 = vld [vmem:[#allocation8 + $0x1c0] sm:$0xff] }
 0x644   :  { %3890 = vmatprep.mubr.f32.mxu0 %v16811_v41  ;;  %3961 = vmatprep.mubr.f32.mxu1 %v16811_v41  ;;  %v14916_v25 = vpack.c.bf16 %v3799_v28, %v3795_v46  ;;  %v3816_v46 = vld [vmem:[#allocation8 + $0x1b0] sm:$0xff]  ;;  %v14954_v54 = vpack.c.bf16 %v3825_v45, %v3821_v10  ;;  %v14956_v42 = vpack.c.bf16 %v3822_v43, %v3818_v44 }
 0x645   :  { %10805 = vmatpush1.bf16.msra.mxu0 %v14872_v57  ;;  %10837 = vmatpush1.bf16.msra.mxu1 %v14875_v15  ;;  %v14947_v28 = vpack.c.bf16 %v3816_v46, %v3812_v63  ;;  %v16894_v63 = vld [vmem:[#allocation29_spill] sm:$0xff] }
 0x646   :  { %10807 = vmatprep.subr.bf16.mxu0 %v14880_v60  ;;  %10839 = vmatprep.subr.bf16.mxu1 %v14882_v19  ;;  %v399_v46 = vadd.f32 %v16894_v63, %v16870_v7  ;;  %v4019_v7 = vld [vmem:[#allocation11 + $0x98] sm:$0xff] }
 0x649   :  { %10809 = vmatpush1.bf16.msra.mxu0 %v14884_v61  ;;  %10841 = vmatpush1.bf16.msra.mxu1 %v14887_v53 }
 0x64a   :  { %10811 = vmatprep.subr.bf16.mxu0 %v14892_v26  ;;  %10843 = vmatprep.subr.bf16.mxu1 %v14894_v39 }
 0x64d   :  { %10813 = vmatpush1.bf16.msra.mxu0 %v14896_v62  ;;  %10845 = vmatpush1.bf16.msra.mxu1 %v14899_v4 }
 0x64e   :  { %10815 = vmatprep.subr.bf16.mxu0 %v14904_v12  ;;  %10847 = vmatprep.subr.bf16.mxu1 %v14906_v13 }
 0x651   :  { %10817 = vmatpush1.bf16.msra.mxu0 %v14908_v24  ;;  %10849 = vmatpush1.bf16.msra.mxu1 %v14911_v11 }
 0x652   :  { %10819 = vmatprep.subr.bf16.mxu0 %v14916_v25  ;;  %10851 = vmatprep.subr.bf16.mxu1 %v14918_v18 }
 0x655   :  { %10821 = vmatpush1.bf16.msra.mxu0 %v14920_v32  ;;  %10853 = vmatpush1.bf16.msra.mxu1 %v14923_v37 }
 0x656   :  { %10823 = vmatprep.subr.bf16.mxu0 %v14928_v35  ;;  %10855 = vmatprep.subr.bf16.mxu1 %v14930_v38 }
 0x659   :  { %10825 = vmatpush1.bf16.msra.mxu0 %v14932_v8  ;;  %10857 = vmatpush1.bf16.msra.mxu1 %v14935_v16 }
 0x65a   :  { %10827 = vmatprep.subr.bf16.mxu0 %v14940_v29  ;;  %10859 = vmatprep.subr.bf16.mxu1 %v14942_v30 }
 0x65d   :  { %10829 = vmatpush1.bf16.msra.mxu0 %v14944_v48  ;;  %10861 = vmatpush1.bf16.msra.mxu1 %v14947_v28 }
 0x65e   :  { %10831 = vmatprep.subr.bf16.mxu0 %v14952_v1  ;;  %10863 = vmatprep.subr.bf16.mxu1 %v14954_v54 }
 0x661   :  { %10833 = vmatpush1.bf16.msra.mxu0 %v14956_v42  ;;  %10865 = vmatpush1.bf16.msra.mxu1 %v14959_v55 }
 0x662   :  { %10867 = vmatprep.subr.bf16.mxu0 %v14964_v59  ;;  %10899 = vmatprep.subr.bf16.mxu1 %v14966_v6 }
 0x6f6   :  { %v3414_v9 = vpop.f32.mrb[26].mxu0  ;;  %v3485_v33 = vpop.f32.mrb[16].mxu1 }
 0x6f7   :  { %v3490_v10 = vadd.f32 %v3414_v9, %v397_v17  ;;  %v3416_v45 = vpop.f32.mrb[27].mxu0  ;;  %v3487_v44 = vpop.f32.mrb[17].mxu1  ;;  %v12476_v5 = vadd.f32 %v3485_v33, %v16872_v31  ;;  %v4017_v31 = vld [vmem:[#allocation11 + $0x88] sm:$0xff] }
 0x6f8   :  { %v3491_v43 = vadd.f32 %v3416_v45, %v399_v46  ;;  %v12477_v47 = vadd.f32 %v3487_v44, %v16871_v40  ;;  %v4021_v40 = vld [vmem:[#allocation11 + $0xa8] sm:$0xff] }
 0x6f9   :  { %v9823_v2 = vmul.f32 -1.442695, %v3490_v10 }
 0x6fa   :  { %v9824_v50 = vmul.f32 -1.442695, %v3491_v43  ;;  %v9825_v27 = vmul.f32 -1.442695, %v12477_v47 }
 0x6fb   :  { %12878 = vpow2.f32 %v9823_v2 }
 0x6fc   :  { %12880 = vpow2.f32 %v9824_v50 }
 0x6fd   :  { %12882 = vpow2.f32 %v9825_v27 }
 0x6fe   :  { %12884 = vtanh.f32 %v12476_v5 }
 0x705   :  { %v12879_v56 = vpop.eup %12878 }
 0x706   :  { %v12881_v58 = vpop.eup %12880  ;;  %v3497_v36 = vadd.f32 1.0, %v12879_v56 }
 0x707   :  { %v3503_v63 = vadd.f32 1.0, %v12881_v58  ;;  %v12883_v17 = vpop.eup %12882 }
 0x708   :  { %12886 = vrcp.f32 %v3497_v36  ;;  %v12885_v9 = vpop.eup %12884  ;;  %v3510_v43 = vadd.f32 1.0, %v12883_v17  ;;  %v4004_v17 = vld [vmem:[#allocation11 + $0x20] sm:$0xff] }
 0x709   :  { %12888 = vrcp.f32 %v3503_v63 }
 0x70a   :  { %12890 = vrcp.f32 %v3510_v43  ;;  %v4011_v43 = vld [vmem:[#allocation11 + $0x58] sm:$0xff] }
 0x712   :  { %v12887_v46 = vpop.eup %12886 }
 0x713   :  { %v12889_v10 = vpop.eup %12888  ;;  %v3514_v45 = vmul.f32 %v12887_v46, %v12885_v9  ;;  %v4002_v9 = vld [vmem:[#allocation11 + $0x10] sm:$0xff] }
 0x714   :  { %v3513_v2 = vmul.f32 %v12889_v10, %v14815_v52  ;;  %v4000_v52 = vld [vmem:[#allocation11] sm:$0xff]  ;;  %v4006_v46 = vld [vmem:[#allocation11 + $0x30] sm:$0xff]  ;;  %v4009_v10 = vld [vmem:[#allocation11 + $0x48] sm:$0xff] }
 0x716   :  { %v14977_v44 = vadd.f32 %v3514_v45, %v3513_v2  ;;  %v3652_v50 = vpop.f32.mrb[14].mxu0  ;;  %v3723_v33 = vpop.f32.mrb[26].mxu1  ;;  %v4013_v45 = vld [vmem:[#allocation11 + $0x68] sm:$0xff]  ;;  %v4015_v2 = vld [vmem:[#allocation11 + $0x78] sm:$0xff] }
 0x717   :  { %v12486_v47 = vadd.f32 %v3652_v50, %v16874_v51  ;;  %v3654_v27 = vpop.f32.mrb[15].mxu0  ;;  %v3725_v5 = vpop.f32.mrb[27].mxu1  ;;  %v14983_v51 = vpack.c.bf16 %v4004_v17, %v4000_v52 }
 0x718   :  { %16895 = vst [vmem:[#allocation51_spill] sm:$0xff] %v14977_v44  ;;  %12892 = vtanh.f32 %v14977_v44  ;;  %v12487_v36 = vadd.f32 %v3654_v27, %v16875_v49  ;;  %v12503_v63 = vadd.f32 %v3725_v5, %v16876_v22  ;;  %v12891_v50 = vpop.eup %12890  ;;  %v14985_v27 = vpack.c.bf16 %v4006_v46, %v4002_v9  ;;  %v4010_v49 = vld [vmem:[#allocation11 + $0x50] sm:$0xff]  ;;  %v4016_v46 = vld [vmem:[#allocation11 + $0x80] sm:$0xff] }
 0x719   :  { %v9826_v56 = vmul.f32 -1.442695, %v12486_v47  ;;  %16896 = vst [vmem:[#allocation53_spill] sm:$0xff] %v14983_v51  ;;  %v4008_v47 = vld [vmem:[#allocation11 + $0x40] sm:$0xff]  ;;  %v12502_v5 = vadd.f32 %v3723_v33, %v14192_v0  ;;  %v14992_v22 = vpack.c.bf16 %v4015_v2, %v4011_v43  ;;  %v4014_v44 = vld [vmem:[#allocation11 + $0x70] sm:$0xff]  ;;  %v15004_v43 = vpack.c.bf16 %v4021_v40, %v4017_v31 }
 0x71a   :  { %v9827_v58 = vmul.f32 -1.442695, %v12487_v36  ;;  %v9828_v21 = vmul.f32 -1.442695, %v12503_v63  ;;  %16897 = vst [vmem:[#allocation54_spill] sm:$0xff] %v14985_v27  ;;  %v4012_v36 = vld [vmem:[#allocation11 + $0x60] sm:$0xff]  ;;  %v15000_v9 = vpack.c.bf16 %v4014_v44, %v4010_v49 }
 0x71b   :  { %12894 = vpow2.f32 %v9826_v56  ;;  %16900 = vst [vmem:[#allocation57_spill] sm:$0xff] %v14992_v22  ;;  %v4023_v63 = vld [vmem:[#allocation11 + $0xb8] sm:$0xff]  ;;  %v14998_v33 = vpack.c.bf16 %v4012_v36, %v4008_v47  ;;  %16903 = vst [vmem:[#allocation60_spill] sm:$0xff] %v15004_v43  ;;  %v4029_v47 = vld [vmem:[#allocation11 + $0xe8] sm:$0xff] }
 0x71c   :  { %12896 = vpow2.f32 %v9827_v58  ;;  %v14990_v58 = vpack.c.bf16 %v4013_v45, %v4009_v10  ;;  %16902 = vst [vmem:[#allocation59_spill] sm:$0xff] %v15000_v9  ;;  %v4020_v10 = vld [vmem:[#allocation11 + $0xa0] sm:$0xff]  ;;  %v15006_v2 = vpack.c.bf16 %v4023_v63, %v4019_v7  ;;  %v4027_v36 = vld [vmem:[#allocation11 + $0xd8] sm:$0xff] }
 0x71d   :  { %12898 = vpow2.f32 %v9828_v21  ;;  %16901 = vst [vmem:[#allocation58_spill] sm:$0xff] %v14998_v33  ;;  %v4018_v21 = vld [vmem:[#allocation11 + $0x90] sm:$0xff]  ;;  %v4031_v49 = vld [vmem:[#allocation11 + $0xf8] sm:$0xff]  ;;  %v15012_v40 = vpack.c.bf16 %v4020_v10, %v4016_v46  ;;  %v4024_v31 = vld [vmem:[#allocation11 + $0xc0] sm:$0xff] }
 0x71e   :  { %16899 = vst [vmem:[#allocation56_spill] sm:$0xff] %v14990_v58  ;;  %12900 = vtanh.f32 %v12502_v5  ;;  %16904 = vst [vmem:[#allocation61_spill] sm:$0xff] %v15006_v2  ;;  %v4028_v44 = vld [vmem:[#allocation11 + $0xe0] sm:$0xff]  ;;  %v15020_v63 = vpack.c.bf16 %v4031_v49, %v4027_v36  ;;  %v4034_v36 = vld [vmem:[#allocation11 + $0x110] sm:$0xff] }
 0x71f   :  { %16905 = vst [vmem:[#allocation63_spill] sm:$0xff] %v15012_v40  ;;  %v15024_v46 = vpack.c.bf16 %v4028_v44, %v4024_v31  ;;  %v4038_v49 = vld [vmem:[#allocation11 + $0x130] sm:$0xff]  ;;  %v4047_v31 = vld [vmem:[#allocation11 + $0x178] sm:$0xff] }
 0x720   :  { %16908 = vst [vmem:[#allocation28_spill] sm:$0xff] %v15020_v63 }
 0x721   :  { %16909 = vst [vmem:[#allocation29_spill] sm:$0xff] %v15024_v46 }
 0x722   :  { %v12893_v3 = vpop.eup %12892 }
 0x723   :  { %v14987_v56 = vmul.f32 %v12893_v3, %v12891_v50  ;;  %v4022_v50 = vld [vmem:[#allocation11 + $0xb0] sm:$0xff] }
 0x724   :  { %v15014_v7 = vpack.c.bf16 %v4022_v50, %v4018_v21  ;;  %v4032_v21 = vld [vmem:[#allocation11 + $0x100] sm:$0xff] }
 0x725   :  { %16898 = vst [vmem:[#allocation55_spill] sm:$0xff] %v14987_v56  ;;  %v12895_v52 = vpop.eup %12894  ;;  %3891 = vmatmul.mubr.f32.vlgmr.msra.gmra.mrb[28].mxu0 %v14987_v56  ;;  %3962 = vmatmul.mubr.f32.vlgmr.msra.gmra.mrb[18].mxu1 %v14987_v56  ;;  %v4037_v56 = vld [vmem:[#allocation11 + $0x128] sm:$0xff]  ;;  %v4036_v50 = vld [vmem:[#allocation11 + $0x120] sm:$0xff] }
 0x726   :  { %v12897_v17 = vpop.eup %12896  ;;  %v3735_v3 = vadd.f32 1.0, %v12895_v52  ;;  %10869 = vmatpush1.bf16.msra.mxu0 %v14983_v51  ;;  %10901 = vmatpush1.bf16.msra.mxu1 %v14985_v27  ;;  %v4025_v52 = vld [vmem:[#allocation11 + $0xc8] sm:$0xff]  ;;  %16906 = vst [vmem:[#allocation64_spill] sm:$0xff] %v15014_v7  ;;  %v4046_v27 = vld [vmem:[#allocation11 + $0x170] sm:$0xff] }
 0x727   :  { %v3741_v45 = vadd.f32 1.0, %v12897_v17  ;;  %10871 = vmatprep.subr.bf16.mxu0 %v14990_v58  ;;  %10903 = vmatprep.subr.bf16.mxu1 %v14992_v22  ;;  %v15018_v5 = vpack.c.bf16 %v4029_v47, %v4025_v52  ;;  %v4026_v17 = vld [vmem:[#allocation11 + $0xd0] sm:$0xff] }
 0x728   :  { %12902 = vrcp.f32 %v3735_v3  ;;  %4128 = vmatprep.mubr.f32.mxu0 %v16811_v41  ;;  %4199 = vmatprep.mubr.f32.mxu1 %v16811_v41  ;;  %v4030_v3 = vld [vmem:[#allocation11 + $0xf0] sm:$0xff] }
 0x729   :  { %12904 = vrcp.f32 %v3741_v45  ;;  %16907 = vst [vmem:[#allocation65_spill] sm:$0xff] %v15018_v5  ;;  %v4033_v45 = vld [vmem:[#allocation11 + $0x108] sm:$0xff]  ;;  %v15026_v10 = vpack.c.bf16 %v4030_v3, %v4026_v17  ;;  %v15036_v3 = vpack.c.bf16 %v4036_v50, %v4032_v21 }
 0x72a   :  { %10873 = vmatpush1.bf16.msra.mxu0 %v14998_v33  ;;  %10905 = vmatpush1.bf16.msra.mxu1 %v15000_v9  ;;  %v4035_v33 = vld [vmem:[#allocation11 + $0x118] sm:$0xff]  ;;  %v15030_v52 = vpack.c.bf16 %v4037_v56, %v4033_v45  ;;  %v4040_v56 = vld [vmem:[#allocation11 + $0x140] sm:$0xff]  ;;  %v4053_v50 = vld [vmem:[#allocation11 + $0x1a8] sm:$0xff] }
 0x72b   :  { %10875 = vmatprep.subr.bf16.mxu0 %v15004_v43  ;;  %10907 = vmatprep.subr.bf16.mxu1 %v15006_v2  ;;  %v4039_v9 = vld [vmem:[#allocation11 + $0x138] sm:$0xff]  ;;  %16910 = vst [vmem:[#allocation67_spill] sm:$0xff] %v15026_v10  ;;  %v4041_v2 = vld [vmem:[#allocation11 + $0x148] sm:$0xff] }
 0x72c   :  { %v15032_v47 = vpack.c.bf16 %v4039_v9, %v4035_v33  ;;  %v4045_v43 = vld [vmem:[#allocation11 + $0x168] sm:$0xff]  ;;  %v4044_v33 = vld [vmem:[#allocation11 + $0x160] sm:$0xff] }
 0x72d   :  { %v15042_v22 = vpack.c.bf16 %v4045_v43, %v4041_v2  ;;  %v4048_v2 = vld [vmem:[#allocation11 + $0x180] sm:$0xff] }
 0x72e   :  { %10877 = vmatpush1.bf16.msra.mxu0 %v15012_v40  ;;  %10909 = vmatpush1.bf16.msra.mxu1 %v15014_v7  ;;  %v12899_v40 = vpop.eup %12898  ;;  %v4043_v7 = vld [vmem:[#allocation11 + $0x158] sm:$0xff] }
 0x72f   :  { %10879 = vmatprep.subr.bf16.mxu0 %v15018_v5  ;;  %10911 = vmatprep.subr.bf16.mxu1 %v15020_v63  ;;  %v12901_v44 = vpop.eup %12900  ;;  %v15038_v63 = vpack.c.bf16 %v4038_v49, %v4034_v36  ;;  %v3748_v5 = vadd.f32 1.0, %v12899_v40  ;;  %v15044_v58 = vpack.c.bf16 %v4047_v31, %v4043_v7  ;;  %v4051_v36 = vld [vmem:[#allocation11 + $0x198] sm:$0xff]  ;;  %v15051_v40 = vpack.c.bf16 %v4044_v33, %v4040_v56  ;;  %v4052_v7 = vld [vmem:[#allocation11 + $0x1a0] sm:$0xff]  ;;  %v4061_v56 = vld [vmem:[#allocation11 + $0x1e8] sm:$0xff] }
 0x730   :  { %v4055_v49 = vld [vmem:[#allocation11 + $0x1b8] sm:$0xff] }
 0x731   :  { %12906 = vrcp.f32 %v3748_v5  ;;  %v15059_v31 = vpack.c.bf16 %v4055_v49, %v4051_v36  ;;  %v4059_v33 = vld [vmem:[#allocation11 + $0x1d8] sm:$0xff]  ;;  %v15064_v5 = vpack.c.bf16 %v4052_v7, %v4048_v2  ;;  %v4058_v36 = vld [vmem:[#allocation11 + $0x1d0] sm:$0xff] }
 0x732   :  { %v12903_v17 = vpop.eup %12902  ;;  %10881 = vmatpush1.bf16.msra.mxu0 %v15024_v46  ;;  %10913 = vmatpush1.bf16.msra.mxu1 %v15026_v10  ;;  %v4042_v46 = vld [vmem:[#allocation11 + $0x150] sm:$0xff]  ;;  %v4049_v10 = vld [vmem:[#allocation11 + $0x188] sm:$0xff] }
 0x733   :  { %v12905_v9 = vpop.eup %12904  ;;  %v3752_v45 = vmul.f32 %v12903_v17, %v12901_v44  ;;  %10883 = vmatprep.subr.bf16.mxu0 %v15030_v52  ;;  %10915 = vmatprep.subr.bf16.mxu1 %v15032_v47  ;;  %v15053_v43 = vpack.c.bf16 %v4046_v27, %v4042_v46  ;;  %v4050_v44 = vld [vmem:[#allocation11 + $0x190] sm:$0xff]  ;;  %v4063_v27 = vld [vmem:[#allocation11 + $0x1f8] sm:$0xff] }
 0x734   :  { %v3751_v21 = vmul.f32 %v12905_v9, %v14845_v20  ;;  %v15057_v20 = vpack.c.bf16 %v4053_v50, %v4049_v10  ;;  %v4054_v17 = vld [vmem:[#allocation11 + $0x1b0] sm:$0xff]  ;;  %v4057_v9 = vld [vmem:[#allocation11 + $0x1c8] sm:$0xff]  ;;  %v4056_v10 = vld [vmem:[#allocation11 + $0x1c0] sm:$0xff] }
 0x735   :  { %v15066_v46 = vpack.c.bf16 %v4054_v17, %v4050_v44  ;;  %v4060_v50 = vld [vmem:[#allocation11 + $0x1e0] sm:$0xff]  ;;  %v4062_v49 = vld [vmem:[#allocation11 + $0x1f0] sm:$0xff] }
 0x736   :  { %v15047_v51 = vadd.f32 %v3752_v45, %v3751_v21  ;;  %10885 = vmatpush1.bf16.msra.mxu0 %v15036_v3  ;;  %10917 = vmatpush1.bf16.msra.mxu1 %v15038_v63  ;;  %v15070_v45 = vpack.c.bf16 %v4061_v56, %v4057_v9  ;;  %v15072_v21 = vpack.c.bf16 %v4063_v27, %v4059_v33 }
 0x737   :  { %10887 = vmatprep.subr.bf16.mxu0 %v15042_v22  ;;  %10919 = vmatprep.subr.bf16.mxu1 %v15044_v58  ;;  %v15076_v2 = vpack.c.bf16 %v4060_v50, %v4056_v10  ;;  %v15078_v7 = vpack.c.bf16 %v4062_v49, %v4058_v36  ;;  %v16918_v10 = vld [vmem:[#allocation41_spill] sm:$0xff] }
 0x738   :  { %12908 = vtanh.f32 %v15047_v51 }
 0x73a   :  { %10889 = vmatpush1.bf16.msra.mxu0 %v15051_v40  ;;  %10921 = vmatpush1.bf16.msra.mxu1 %v15053_v43 }
 0x73b   :  { %10891 = vmatprep.subr.bf16.mxu0 %v15057_v20  ;;  %10923 = vmatprep.subr.bf16.mxu1 %v15059_v31  ;;  %v12907_v44 = vpop.eup %12906 }
 0x73e   :  { %10893 = vmatpush1.bf16.msra.mxu0 %v15064_v5  ;;  %10925 = vmatpush1.bf16.msra.mxu1 %v15066_v46 }
 0x73f   :  { %10895 = vmatprep.subr.bf16.mxu0 %v15070_v45  ;;  %10927 = vmatprep.subr.bf16.mxu1 %v15072_v21 }
 0x742   :  { %v12909_v17 = vpop.eup %12908  ;;  %10897 = vmatpush1.bf16.msra.mxu0 %v15076_v2  ;;  %10929 = vmatpush1.bf16.msra.mxu1 %v15078_v7 }
 0x743   :  { %v15084_v9 = vmul.f32 %v12909_v17, %v12907_v44  ;;  %10931 = vmatprep.subr.bf16.mxu0 %v14868_v34  ;;  %10963 = vmatprep.subr.bf16.mxu1 %v14870_v14  ;;  %v16911_v34 = vld [vmem:[#allocation30_spill] sm:$0xff]  ;;  %v16919_v44 = vld [vmem:[#allocation43_spill] sm:$0xff] }
 0x744   :  { %v403_v14 = vadd.f32 %v16911_v34, %v14161_v23 }
 0x745   :  { %4129 = vmatmul.mubr.f32.vlgmr.msra.gmra.mrb[12].mxu0 %v15084_v9  ;;  %4200 = vmatmul.mubr.f32.vlgmr.msra.gmra.mrb[24].mxu1 %v15084_v9 }
 0x746   :  { %10933 = vmatpush1.bf16.msra.mxu0 %v14872_v57  ;;  %10965 = vmatpush1.bf16.msra.mxu1 %v14875_v15  ;;  %v16912_v57 = vld [vmem:[#allocation36_spill] sm:$0xff]  ;;  %v16913_v15 = vld [vmem:[#allocation31_spill] sm:$0xff] }
 0x747   :  { %10935 = vmatprep.subr.bf16.mxu0 %v14880_v60  ;;  %10967 = vmatprep.subr.bf16.mxu1 %v14882_v19  ;;  %v405_v60 = vadd.f32 %v16913_v15, %v16912_v57 }
 0x748   :  { %4368 = vmatprep.mubr.f32.mxu0 %v16811_v41  ;;  %4439 = vmatprep.mubr.f32.mxu1 %v16811_v41 }
 0x74a   :  { %10937 = vmatpush1.bf16.msra.mxu0 %v14884_v61  ;;  %10969 = vmatpush1.bf16.msra.mxu1 %v14887_v53 }
 0x74b   :  { %10939 = vmatprep.subr.bf16.mxu0 %v14892_v26  ;;  %10971 = vmatprep.subr.bf16.mxu1 %v14894_v39 }
 0x74e   :  { %10941 = vmatpush1.bf16.msra.mxu0 %v14896_v62  ;;  %10973 = vmatpush1.bf16.msra.mxu1 %v14899_v4 }
 0x74f   :  { %10943 = vmatprep.subr.bf16.mxu0 %v14904_v12  ;;  %10975 = vmatprep.subr.bf16.mxu1 %v14906_v13  ;;  %v16914_v13 = vld [vmem:[#allocation40_spill] sm:$0xff] }
 0x752   :  { %10945 = vmatpush1.bf16.msra.mxu0 %v14908_v24  ;;  %10977 = vmatpush1.bf16.msra.mxu1 %v14911_v11 }
 0x753   :  { %10947 = vmatprep.subr.bf16.mxu0 %v14916_v25  ;;  %10979 = vmatprep.subr.bf16.mxu1 %v14918_v18  ;;  %v16915_v25 = vld [vmem:[#allocation39_spill] sm:$0xff] }
 0x756   :  { %10949 = vmatpush1.bf16.msra.mxu0 %v14920_v32  ;;  %10981 = vmatpush1.bf16.msra.mxu1 %v14923_v37 }
 0x757   :  { %10951 = vmatprep.subr.bf16.mxu0 %v14928_v35  ;;  %10983 = vmatprep.subr.bf16.mxu1 %v14930_v38 }
 0x75a   :  { %10953 = vmatpush1.bf16.msra.mxu0 %v14932_v8  ;;  %10985 = vmatpush1.bf16.msra.mxu1 %v14935_v16 }
 0x75b   :  { %10955 = vmatprep.subr.bf16.mxu0 %v14940_v29  ;;  %10987 = vmatprep.subr.bf16.mxu1 %v14942_v30 }
 0x75e   :  { %10957 = vmatpush1.bf16.msra.mxu0 %v14944_v48  ;;  %10989 = vmatpush1.bf16.msra.mxu1 %v14947_v28 }
 0x75f   :  { %10959 = vmatprep.subr.bf16.mxu0 %v14952_v1  ;;  %10991 = vmatprep.subr.bf16.mxu1 %v14954_v54  ;;  %v16916_v1 = vld [vmem:[#allocation51_spill] sm:$0xff] }
 0x762   :  { %10961 = vmatpush1.bf16.msra.mxu0 %v14956_v42  ;;  %10993 = vmatpush1.bf16.msra.mxu1 %v14959_v55 }
 0x763   :  { %10995 = vmatprep.subr.bf16.mxu0 %v14964_v59  ;;  %11027 = vmatprep.subr.bf16.mxu1 %v14966_v6  ;;  %v16917_v6 = vld [vmem:[#allocation42_spill] sm:$0xff] }
 0x7f8   :  { %v3892_v19 = vpop.f32.mrb[28].mxu0  ;;  %v3963_v61 = vpop.f32.mrb[18].mxu1 }
 0x7f9   :  { %v3968_v53 = vadd.f32 %v3892_v19, %v403_v14  ;;  %v3894_v26 = vpop.f32.mrb[29].mxu0  ;;  %v3965_v39 = vpop.f32.mrb[19].mxu1  ;;  %v12478_v18 = vadd.f32 %v3963_v61, %v16915_v25 }
 0x7fa   :  { %v3969_v62 = vadd.f32 %v3894_v26, %v405_v60  ;;  %v12479_v24 = vadd.f32 %v3965_v39, %v16914_v13  ;;  %v16920_v39 = vld [vmem:[#allocation53_spill] sm:$0xff] }
 0x7fb   :  { %v9829_v4 = vmul.f32 -1.442695, %v3968_v53 }
 0x7fc   :  { %v9830_v12 = vmul.f32 -1.442695, %v3969_v62  ;;  %v9831_v11 = vmul.f32 -1.442695, %v12479_v24  ;;  %v16921_v62 = vld [vmem:[#allocation54_spill] sm:$0xff]  ;;  %v16923_v24 = vld [vmem:[#allocation57_spill] sm:$0xff] }
 0x7fd   :  { %12910 = vpow2.f32 %v9829_v4 }
 0x7fe   :  { %12912 = vpow2.f32 %v9830_v12  ;;  %v16922_v12 = vld [vmem:[#allocation56_spill] sm:$0xff] }
 0x7ff   :  { %12914 = vpow2.f32 %v9831_v11  ;;  %v16924_v11 = vld [vmem:[#allocation58_spill] sm:$0xff] }
 0x800   :  { %12916 = vtanh.f32 %v12478_v18  ;;  %v16925_v18 = vld [vmem:[#allocation59_spill] sm:$0xff] }
 0x807   :  { %v12911_v32 = vpop.eup %12910 }
 0x808   :  { %v12913_v37 = vpop.eup %12912  ;;  %v3975_v35 = vadd.f32 1.0, %v12911_v32  ;;  %v16926_v32 = vld [vmem:[#allocation60_spill] sm:$0xff] }
 0x809   :  { %v3981_v38 = vadd.f32 1.0, %v12913_v37  ;;  %v12915_v8 = vpop.eup %12914  ;;  %v16927_v37 = vld [vmem:[#allocation61_spill] sm:$0xff] }
 0x80a   :  { %12918 = vrcp.f32 %v3975_v35  ;;  %v12917_v16 = vpop.eup %12916  ;;  %v3988_v28 = vadd.f32 1.0, %v12915_v8  ;;  %v16928_v35 = vld [vmem:[#allocation63_spill] sm:$0xff]  ;;  %v16930_v8 = vld [vmem:[#allocation65_spill] sm:$0xff] }
 0x80b   :  { %12920 = vrcp.f32 %v3981_v38  ;;  %v16929_v38 = vld [vmem:[#allocation64_spill] sm:$0xff] }
 0x80c   :  { %12922 = vrcp.f32 %v3988_v28  ;;  %v16932_v28 = vld [vmem:[#allocation29_spill] sm:$0xff] }
 0x814   :  { %v12919_v29 = vpop.eup %12918 }
 0x815   :  { %v12921_v30 = vpop.eup %12920  ;;  %v3992_v48 = vmul.f32 %v12919_v29, %v12917_v16  ;;  %v16931_v16 = vld [vmem:[#allocation28_spill] sm:$0xff] }
 0x816   :  { %v3991_v54 = vmul.f32 %v12921_v30, %v16916_v1  ;;  %v12923_v34 = vpop.eup %12922  ;;  %v16933_v1 = vld [vmem:[#allocation67_spill] sm:$0xff] }
 0x818   :  { %v15131_v42 = vadd.f32 %v3992_v48, %v3991_v54  ;;  %v4130_v55 = vpop.f32.mrb[12].mxu0  ;;  %v4201_v59 = vpop.f32.mrb[24].mxu1 }
 0x819   :  { %v12484_v56 = vadd.f32 %v4130_v55, %v16917_v6  ;;  %v4132_v33 = vpop.f32.mrb[13].mxu0  ;;  %v4203_v27 = vpop.f32.mrb[25].mxu1  ;;  %v12500_v19 = vadd.f32 %v4201_v59, %v14192_v0 }
 0x81a   :  { %12924 = vtanh.f32 %v15131_v42  ;;  %v12485_v50 = vadd.f32 %v4132_v33, %v16918_v10  ;;  %v12501_v17 = vadd.f32 %v4203_v27, %v16919_v44  ;;  %v4741_v27 = vld [vmem:[#allocation13 + $0x58] sm:$0xff] }
 0x81b   :  { %v9832_v36 = vmul.f32 -1.442695, %v12484_v56 }
 0x81c   :  { %v9833_v49 = vmul.f32 -1.442695, %v12485_v50  ;;  %v9834_v15 = vmul.f32 -1.442695, %v12501_v17  ;;  %v4742_v17 = vld [vmem:[#allocation13 + $0x60] sm:$0xff] }
 0x81d   :  { %12926 = vpow2.f32 %v9832_v36  ;;  %v4745_v36 = vld [vmem:[#allocation13 + $0x78] sm:$0xff] }
 0x81e   :  { %12928 = vpow2.f32 %v9833_v49  ;;  %v4738_v49 = vld [vmem:[#allocation13 + $0x40] sm:$0xff] }
 0x81f   :  { %12930 = vpow2.f32 %v9834_v15  ;;  %v4740_v15 = vld [vmem:[#allocation13 + $0x50] sm:$0xff] }
 0x820   :  { %12932 = vtanh.f32 %v12500_v19  ;;  %v4744_v19 = vld [vmem:[#allocation13 + $0x70] sm:$0xff] }
 0x824   :  { %v12925_v14 = vpop.eup %12924 }
 0x825   :  { %v15137_v60 = vmul.f32 %v12925_v14, %v12923_v34  ;;  %v11126_v34 = vpack.c.bf16 %v4745_v36, %v4741_v27  ;;  %v11064_v14 = vpack.c.bf16 %v4742_v17, %v4738_v49  ;;  %v4777_v27 = vld [vmem:[#allocation13 + $0x178] sm:$0xff]  ;;  %v4774_v36 = vld [vmem:[#allocation13 + $0x160] sm:$0xff] }
 0x827   :  { %v12927_v61 = vpop.eup %12926  ;;  %4369 = vmatmul.mubr.f32.vlgmr.msra.gmra.mrb[30].mxu0 %v15137_v60  ;;  %4440 = vmatmul.mubr.f32.vlgmr.msra.gmra.mrb[20].mxu1 %v15137_v60 }
 0x828   :  { %v12929_v53 = vpop.eup %12928  ;;  %v4213_v26 = vadd.f32 1.0, %v12927_v61  ;;  %10997 = vmatpush1.bf16.msra.mxu0 %v16920_v39  ;;  %11029 = vmatpush1.bf16.msra.mxu1 %v16921_v62  ;;  %v11128_v61 = vpack.c.bf16 %v4744_v19, %v4740_v15  ;;  %v4749_v39 = vld [vmem:[#allocation13 + $0x98] sm:$0xff]  ;;  %v4779_v19 = vld [vmem:[#allocation13 + $0x188] sm:$0xff] }
 0x829   :  { %v4219_v4 = vadd.f32 1.0, %v12929_v53  ;;  %10999 = vmatprep.subr.bf16.mxu0 %v16922_v12  ;;  %11031 = vmatprep.subr.bf16.mxu1 %v16923_v24  ;;  %v12931_v29 = vpop.eup %12930  ;;  %v4747_v53 = vld [vmem:[#allocation13 + $0x88] sm:$0xff]  ;;  %v4746_v12 = vld [vmem:[#allocation13 + $0x80] sm:$0xff] }
 0x82a   :  { %12934 = vrcp.f32 %v4213_v26  ;;  %4606 = vmatprep.mubr.f32.mxu0 %v16811_v41  ;;  %4677 = vmatprep.mubr.f32.mxu1 %v16811_v41  ;;  %v12933_v30 = vpop.eup %12932  ;;  %v4226_v59 = vadd.f32 1.0, %v12931_v29  ;;  %v4751_v26 = vld [vmem:[#allocation13 + $0xa8] sm:$0xff]  ;;  %v4750_v24 = vld [vmem:[#allocation13 + $0xa0] sm:$0xff] }
 0x82b   :  { %12936 = vrcp.f32 %v4219_v4  ;;  %v11066_v62 = vpack.c.bf16 %v4751_v26, %v4747_v53  ;;  %v4753_v4 = vld [vmem:[#allocation13 + $0xb8] sm:$0xff] }
 0x82c   :  { %11001 = vmatpush1.bf16.msra.mxu0 %v16924_v11  ;;  %11033 = vmatpush1.bf16.msra.mxu1 %v16925_v18  ;;  %12938 = vrcp.f32 %v4226_v59  ;;  %v11130_v11 = vpack.c.bf16 %v4753_v4, %v4749_v39  ;;  %v11068_v18 = vpack.c.bf16 %v4750_v24, %v4746_v12  ;;  %v4760_v59 = vld [vmem:[#allocation13 + $0xf0] sm:$0xff]  ;;  %v4781_v53 = vld [vmem:[#allocation13 + $0x198] sm:$0xff]  ;;  %v4782_v4 = vld [vmem:[#allocation13 + $0x1a0] sm:$0xff] }
 0x82d   :  { %11003 = vmatprep.subr.bf16.mxu0 %v16926_v32  ;;  %11035 = vmatprep.subr.bf16.mxu1 %v16927_v37  ;;  %v4748_v32 = vld [vmem:[#allocation13 + $0x90] sm:$0xff]  ;;  %v4785_v39 = vld [vmem:[#allocation13 + $0x1b8] sm:$0xff] }
 0x82e   :  { %v4752_v37 = vld [vmem:[#allocation13 + $0xb0] sm:$0xff]  ;;  %v11146_v12 = vpack.c.bf16 %v4785_v39, %v4781_v53  ;;  %v4817_v53 = vld [vmem:[#allocation13 + $0x2b8] sm:$0xff]  ;;  %v4814_v39 = vld [vmem:[#allocation13 + $0x2a0] sm:$0xff] }
 0x830   :  { %11005 = vmatpush1.bf16.msra.mxu0 %v16928_v35  ;;  %11037 = vmatpush1.bf16.msra.mxu1 %v16929_v38  ;;  %v11132_v35 = vpack.c.bf16 %v4752_v37, %v4748_v32  ;;  %v4755_v38 = vld [vmem:[#allocation13 + $0xc8] sm:$0xff] }
 0x831   :  { %11007 = vmatprep.subr.bf16.mxu0 %v16930_v8  ;;  %11039 = vmatprep.subr.bf16.mxu1 %v16931_v16  ;;  %v4759_v8 = vld [vmem:[#allocation13 + $0xe8] sm:$0xff]  ;;  %v4757_v16 = vld [vmem:[#allocation13 + $0xd8] sm:$0xff] }
 0x832   :  { %v11070_v29 = vpack.c.bf16 %v4759_v8, %v4755_v38  ;;  %v4787_v37 = vld [vmem:[#allocation13 + $0x1c8] sm:$0xff]  ;;  %v4789_v38 = vld [vmem:[#allocation13 + $0x1d8] sm:$0xff] }
 0x834   :  { %v12935_v48 = vpop.eup %12934  ;;  %11009 = vmatpush1.bf16.msra.mxu0 %v16932_v28  ;;  %11041 = vmatpush1.bf16.msra.mxu1 %v16933_v1  ;;  %v4758_v28 = vld [vmem:[#allocation13 + $0xe0] sm:$0xff] }
 0x835   :  { %v12937_v54 = vpop.eup %12936  ;;  %v4230_v55 = vmul.f32 %v12935_v48, %v12933_v30  ;;  %11011 = vmatprep.subr.bf16.mxu0 %v15030_v52  ;;  %11043 = vmatprep.subr.bf16.mxu1 %v15032_v47  ;;  %v4735_v52 = vld [vmem:[#allocation13 + $0x28] sm:$0xff]  ;;  %v4733_v47 = vld [vmem:[#allocation13 + $0x18] sm:$0xff]  ;;  %v4754_v48 = vld [vmem:[#allocation13 + $0xc0] sm:$0xff] }
 0x836   :  { %v4229_v56 = vmul.f32 %v12937_v54, %v15047_v51  ;;  %v12939_v51 = vpop.eup %12938  ;;  %v4761_v30 = vld [vmem:[#allocation13 + $0xf8] sm:$0xff]  ;;  %v11072_v54 = vpack.c.bf16 %v4758_v28, %v4754_v48 }
 0x837   :  { %v11134_v1 = vpack.c.bf16 %v4761_v30, %v4757_v16  ;;  %v4793_v16 = vld [vmem:[#allocation13 + $0x1f8] sm:$0xff]  ;;  %v4790_v30 = vld [vmem:[#allocation13 + $0x1e0] sm:$0xff] }
 0x838   :  { %v15161_v33 = vadd.f32 %v4230_v55, %v4229_v56  ;;  %11013 = vmatpush1.bf16.msra.mxu0 %v15036_v3  ;;  %11045 = vmatpush1.bf16.msra.mxu1 %v15038_v63  ;;  %v4731_v63 = vld [vmem:[#allocation13 + $0x8] sm:$0xff]  ;;  %v4756_v55 = vld [vmem:[#allocation13 + $0xd0] sm:$0xff]  ;;  %v11150_v48 = vpack.c.bf16 %v4793_v16, %v4789_v38  ;;  %v4825_v38 = vld [vmem:[#allocation13 + $0x2f8] sm:$0xff] }
 0x839   :  { %11015 = vmatprep.subr.bf16.mxu0 %v15042_v22  ;;  %11047 = vmatprep.subr.bf16.mxu1 %v15044_v58  ;;  %v11058_v3 = vpack.c.bf16 %v4735_v52, %v4731_v63  ;;  %v11136_v56 = vpack.c.bf16 %v4760_v59, %v4756_v55  ;;  %v4765_v63 = vld [vmem:[#allocation13 + $0x118] sm:$0xff]  ;;  %v4795_v59 = vld [vmem:[#allocation13 + $0x208] sm:$0xff]  ;;  %v4822_v16 = vld [vmem:[#allocation13 + $0x2e0] sm:$0xff] }
 0x83a   :  { %12940 = vtanh.f32 %v15161_v33 }
 0x83c   :  { %11017 = vmatpush1.bf16.msra.mxu0 %v15051_v40  ;;  %11049 = vmatpush1.bf16.msra.mxu1 %v15053_v43  ;;  %v4737_v40 = vld [vmem:[#allocation13 + $0x38] sm:$0xff]  ;;  %v4730_v43 = vld [vmem:[#allocation13] sm:$0xff] }
 0x83d   :  { %11019 = vmatprep.subr.bf16.mxu0 %v15057_v20  ;;  %11051 = vmatprep.subr.bf16.mxu1 %v15059_v31  ;;  %v4734_v20 = vld [vmem:[#allocation13 + $0x20] sm:$0xff]  ;;  %v11122_v31 = vpack.c.bf16 %v4737_v40, %v4733_v47  ;;  %v4769_v47 = vld [vmem:[#allocation13 + $0x138] sm:$0xff] }
 0x83e   :  { %v4766_v40 = vld [vmem:[#allocation13 + $0x120] sm:$0xff] }
 0x840   :  { %11021 = vmatpush1.bf16.msra.mxu0 %v15064_v5  ;;  %11053 = vmatpush1.bf16.msra.mxu1 %v15066_v46  ;;  %v11060_v5 = vpack.c.bf16 %v4734_v20, %v4730_v43  ;;  %v4732_v46 = vld [vmem:[#allocation13 + $0x10] sm:$0xff]  ;;  %v11138_v43 = vpack.c.bf16 %v4769_v47, %v4765_v63  ;;  %v4801_v63 = vld [vmem:[#allocation13 + $0x238] sm:$0xff]  ;;  %v4798_v47 = vld [vmem:[#allocation13 + $0x220] sm:$0xff] }
 0x841   :  { %11023 = vmatprep.subr.bf16.mxu0 %v15070_v45  ;;  %11055 = vmatprep.subr.bf16.mxu1 %v15072_v21  ;;  %v4736_v45 = vld [vmem:[#allocation13 + $0x30] sm:$0xff] }
 0x842   :  { %v11124_v21 = vpack.c.bf16 %v4736_v45, %v4732_v46  ;;  %v4771_v45 = vld [vmem:[#allocation13 + $0x148] sm:$0xff] }
 0x844   :  { %v12941_v22 = vpop.eup %12940  ;;  %11025 = vmatpush1.bf16.msra.mxu0 %v15076_v2  ;;  %11057 = vmatpush1.bf16.msra.mxu1 %v15078_v7  ;;  %v4739_v2 = vld [vmem:[#allocation13 + $0x48] sm:$0xff] }
 0x845   :  { %v15178_v58 = vmul.f32 %v12941_v22, %v12939_v51  ;;  %11059 = vmatprep.subr.bf16.mxu0 %v11058_v3  ;;  %11123 = vmatprep.subr.bf16.mxu1 %v11122_v31  ;;  %v4743_v7 = vld [vmem:[#allocation13 + $0x68] sm:$0xff]  ;;  %v4762_v3 = vld [vmem:[#allocation13 + $0x100] sm:$0xff]  ;;  %v4764_v31 = vld [vmem:[#allocation13 + $0x110] sm:$0xff] }
 0x846   :  { %v11062_v50 = vpack.c.bf16 %v4743_v7, %v4739_v2  ;;  %v4763_v51 = vld [vmem:[#allocation13 + $0x108] sm:$0xff]  ;;  %v11076_v20 = vpack.c.bf16 %v4766_v40, %v4762_v3  ;;  %v4773_v2 = vld [vmem:[#allocation13 + $0x158] sm:$0xff] }
 0x847   :  { %4607 = vmatmul.mubr.f32.vlgmr.msra.gmra.mrb[10].mxu0 %v15178_v58  ;;  %4678 = vmatmul.mubr.f32.vlgmr.msra.gmra.mrb[22].mxu1 %v15178_v58  ;;  %v4767_v22 = vld [vmem:[#allocation13 + $0x128] sm:$0xff]  ;;  %v11142_v49 = vpack.c.bf16 %v4777_v27, %v4773_v2  ;;  %v4809_v2 = vld [vmem:[#allocation13 + $0x278] sm:$0xff]  ;;  %v4806_v27 = vld [vmem:[#allocation13 + $0x260] sm:$0xff] }
 0x848   :  { %11061 = vmatpush1.bf16.msra.mxu0 %v11060_v5  ;;  %11125 = vmatpush1.bf16.msra.mxu1 %v11124_v21  ;;  %v11074_v52 = vpack.c.bf16 %v4767_v22, %v4763_v51  ;;  %v4768_v5 = vld [vmem:[#allocation13 + $0x130] sm:$0xff]  ;;  %v4775_v21 = vld [vmem:[#allocation13 + $0x168] sm:$0xff]  ;;  %v4797_v51 = vld [vmem:[#allocation13 + $0x218] sm:$0xff] }
 0x849   :  { %11063 = vmatprep.subr.bf16.mxu0 %v11062_v50  ;;  %11127 = vmatprep.subr.bf16.mxu1 %v11126_v34  ;;  %v11140_v46 = vpack.c.bf16 %v4768_v5, %v4764_v31  ;;  %v11078_v7 = vpack.c.bf16 %v4775_v21, %v4771_v45  ;;  %v4770_v50 = vld [vmem:[#allocation13 + $0x140] sm:$0xff]  ;;  %v4772_v34 = vld [vmem:[#allocation13 + $0x150] sm:$0xff]  ;;  %v11154_v3 = vpack.c.bf16 %v4801_v63, %v4797_v51  ;;  %v4803_v5 = vld [vmem:[#allocation13 + $0x248] sm:$0xff] }
 0x84a   :  { %v11080_v17 = vpack.c.bf16 %v4774_v36, %v4770_v50  ;;  %v4805_v45 = vld [vmem:[#allocation13 + $0x258] sm:$0xff]  ;;  %v4830_v63 = vld [vmem:[#allocation13 + $0x320] sm:$0xff] }
 0x84b   :  { %v11158_v50 = vpack.c.bf16 %v4809_v2, %v4805_v45  ;;  %v4833_v51 = vld [vmem:[#allocation13 + $0x338] sm:$0xff]  ;;  %v4838_v2 = vld [vmem:[#allocation13 + $0x360] sm:$0xff] }
 0x84c   :  { %11065 = vmatpush1.bf16.msra.mxu0 %v11064_v14  ;;  %11129 = vmatpush1.bf16.msra.mxu1 %v11128_v61  ;;  %v4776_v14 = vld [vmem:[#allocation13 + $0x170] sm:$0xff]  ;;  %v4783_v61 = vld [vmem:[#allocation13 + $0x1a8] sm:$0xff]  ;;  %v4841_v45 = vld [vmem:[#allocation13 + $0x378] sm:$0xff] }
 0x84d   :  { %11067 = vmatprep.subr.bf16.mxu0 %v11066_v62  ;;  %11131 = vmatprep.subr.bf16.mxu1 %v11130_v11  ;;  %v11144_v15 = vpack.c.bf16 %v4776_v14, %v4772_v34  ;;  %v11082_v26 = vpack.c.bf16 %v4783_v61, %v4779_v19  ;;  %v4778_v62 = vld [vmem:[#allocation13 + $0x180] sm:$0xff]  ;;  %v4780_v11 = vld [vmem:[#allocation13 + $0x190] sm:$0xff]  ;;  %v4811_v14 = vld [vmem:[#allocation13 + $0x288] sm:$0xff] }
 0x84e   :  { %v11084_v24 = vpack.c.bf16 %v4782_v4, %v4778_v62  ;;  %v4813_v19 = vld [vmem:[#allocation13 + $0x298] sm:$0xff] }
 0x84f   :  { %v11162_v62 = vpack.c.bf16 %v4817_v53, %v4813_v19  ;;  %v4842_v53 = vld [vmem:[#allocation13 + $0x380] sm:$0xff] }
 0x850   :  { %11069 = vmatpush1.bf16.msra.mxu0 %v11068_v18  ;;  %11133 = vmatpush1.bf16.msra.mxu1 %v11132_v35  ;;  %v4784_v18 = vld [vmem:[#allocation13 + $0x1b0] sm:$0xff]  ;;  %v4791_v35 = vld [vmem:[#allocation13 + $0x1e8] sm:$0xff] }
 0x851   :  { %11071 = vmatprep.subr.bf16.mxu0 %v11070_v29  ;;  %11135 = vmatprep.subr.bf16.mxu1 %v11134_v1  ;;  %v11148_v32 = vpack.c.bf16 %v4784_v18, %v4780_v11  ;;  %v11086_v8 = vpack.c.bf16 %v4791_v35, %v4787_v37  ;;  %v4786_v29 = vld [vmem:[#allocation13 + $0x1c0] sm:$0xff]  ;;  %v4788_v1 = vld [vmem:[#allocation13 + $0x1d0] sm:$0xff]  ;;  %v4819_v18 = vld [vmem:[#allocation13 + $0x2c8] sm:$0xff] }
 0x852   :  { %v11088_v28 = vpack.c.bf16 %v4790_v30, %v4786_v29  ;;  %v4821_v37 = vld [vmem:[#allocation13 + $0x2d8] sm:$0xff] }
 0x853   :  { %v11166_v29 = vpack.c.bf16 %v4825_v38, %v4821_v37  ;;  %v4857_v37 = vld [vmem:[#allocation13 + $0x3f8] sm:$0xff] }
 0x854   :  { %11073 = vmatpush1.bf16.msra.mxu0 %v11072_v54  ;;  %11137 = vmatpush1.bf16.msra.mxu1 %v11136_v56  ;;  %v4792_v54 = vld [vmem:[#allocation13 + $0x1f0] sm:$0xff]  ;;  %v4799_v56 = vld [vmem:[#allocation13 + $0x228] sm:$0xff] }
 0x855   :  { %11075 = vmatprep.subr.bf16.mxu0 %v11074_v52  ;;  %11139 = vmatprep.subr.bf16.mxu1 %v11138_v43  ;;  %v11152_v55 = vpack.c.bf16 %v4792_v54, %v4788_v1  ;;  %v11090_v22 = vpack.c.bf16 %v4799_v56, %v4795_v59  ;;  %v4794_v52 = vld [vmem:[#allocation13 + $0x200] sm:$0xff]  ;;  %v4796_v43 = vld [vmem:[#allocation13 + $0x210] sm:$0xff]  ;;  %v4827_v54 = vld [vmem:[#allocation13 + $0x308] sm:$0xff] }
 0x856   :  { %v11092_v40 = vpack.c.bf16 %v4798_v47, %v4794_v52  ;;  %v4829_v59 = vld [vmem:[#allocation13 + $0x318] sm:$0xff] }
 0x857   :  { %v11170_v52 = vpack.c.bf16 %v4833_v51, %v4829_v59  ;;  %v5145_v59 = vld [vmem:[#allocation16 + $0x38] sm:$0xff]  ;;  %v16934_v51 = vld [vmem:[#allocation32_spill] sm:$0xff] }
 0x858   :  { %11077 = vmatpush1.bf16.msra.mxu0 %v11076_v20  ;;  %11141 = vmatpush1.bf16.msra.mxu1 %v11140_v46  ;;  %v4800_v20 = vld [vmem:[#allocation13 + $0x230] sm:$0xff]  ;;  %v4807_v46 = vld [vmem:[#allocation13 + $0x268] sm:$0xff] }
 0x859   :  { %11079 = vmatprep.subr.bf16.mxu0 %v11078_v7  ;;  %11143 = vmatprep.subr.bf16.mxu1 %v11142_v49  ;;  %v11156_v31 = vpack.c.bf16 %v4800_v20, %v4796_v43  ;;  %v11094_v21 = vpack.c.bf16 %v4807_v46, %v4803_v5  ;;  %v4802_v7 = vld [vmem:[#allocation13 + $0x240] sm:$0xff]  ;;  %v4804_v49 = vld [vmem:[#allocation13 + $0x250] sm:$0xff]  ;;  %v4835_v20 = vld [vmem:[#allocation13 + $0x348] sm:$0xff] }
 0x85a   :  { %v11096_v36 = vpack.c.bf16 %v4806_v27, %v4802_v7  ;;  %v4837_v5 = vld [vmem:[#allocation13 + $0x358] sm:$0xff] }
 0x85b   :  { %v11174_v7 = vpack.c.bf16 %v4841_v45, %v4837_v5 }
 0x85c   :  { %11081 = vmatpush1.bf16.msra.mxu0 %v11080_v17  ;;  %11145 = vmatpush1.bf16.msra.mxu1 %v11144_v15  ;;  %v4808_v17 = vld [vmem:[#allocation13 + $0x270] sm:$0xff]  ;;  %v4815_v15 = vld [vmem:[#allocation13 + $0x2a8] sm:$0xff] }
 0x85d   :  { %11083 = vmatprep.subr.bf16.mxu0 %v11082_v26  ;;  %11147 = vmatprep.subr.bf16.mxu1 %v11146_v12  ;;  %v11160_v34 = vpack.c.bf16 %v4808_v17, %v4804_v49  ;;  %v11098_v61 = vpack.c.bf16 %v4815_v15, %v4811_v14  ;;  %v4810_v26 = vld [vmem:[#allocation13 + $0x280] sm:$0xff]  ;;  %v4812_v12 = vld [vmem:[#allocation13 + $0x290] sm:$0xff]  ;;  %v4843_v49 = vld [vmem:[#allocation13 + $0x388] sm:$0xff] }
 0x85e   :  { %v11100_v4 = vpack.c.bf16 %v4814_v39, %v4810_v26  ;;  %v4845_v14 = vld [vmem:[#allocation13 + $0x398] sm:$0xff]  ;;  %v4846_v26 = vld [vmem:[#allocation13 + $0x3a0] sm:$0xff]  ;;  %v4844_v39 = vld [vmem:[#allocation13 + $0x390] sm:$0xff] }
 0x85f   :  { %v4849_v15 = vld [vmem:[#allocation13 + $0x3b8] sm:$0xff] }
 0x860   :  { %11085 = vmatpush1.bf16.msra.mxu0 %v11084_v24  ;;  %11149 = vmatpush1.bf16.msra.mxu1 %v11148_v32  ;;  %v4816_v24 = vld [vmem:[#allocation13 + $0x2b0] sm:$0xff]  ;;  %v4823_v32 = vld [vmem:[#allocation13 + $0x2e8] sm:$0xff] }
 0x861   :  { %11087 = vmatprep.subr.bf16.mxu0 %v11086_v8  ;;  %11151 = vmatprep.subr.bf16.mxu1 %v11150_v48  ;;  %v11164_v11 = vpack.c.bf16 %v4816_v24, %v4812_v12  ;;  %v11102_v35 = vpack.c.bf16 %v4823_v32, %v4819_v18  ;;  %v4818_v8 = vld [vmem:[#allocation13 + $0x2c0] sm:$0xff]  ;;  %v4820_v48 = vld [vmem:[#allocation13 + $0x2d0] sm:$0xff]  ;;  %v4851_v12 = vld [vmem:[#allocation13 + $0x3c8] sm:$0xff] }
 0x862   :  { %v11104_v30 = vpack.c.bf16 %v4822_v16, %v4818_v8  ;;  %v4855_v24 = vld [vmem:[#allocation13 + $0x3e8] sm:$0xff]  ;;  %v4853_v32 = vld [vmem:[#allocation13 + $0x3d8] sm:$0xff]  ;;  %v4854_v8 = vld [vmem:[#allocation13 + $0x3e0] sm:$0xff] }
 0x863   :  { %v11118_v18 = vpack.c.bf16 %v4855_v24, %v4851_v12  ;;  %v11182_v38 = vpack.c.bf16 %v4857_v37, %v4853_v32  ;;  %v4852_v16 = vld [vmem:[#allocation13 + $0x3d0] sm:$0xff] }
 0x864   :  { %11089 = vmatpush1.bf16.msra.mxu0 %v11088_v28  ;;  %11153 = vmatpush1.bf16.msra.mxu1 %v11152_v55  ;;  %v4824_v28 = vld [vmem:[#allocation13 + $0x2f0] sm:$0xff]  ;;  %v4831_v55 = vld [vmem:[#allocation13 + $0x328] sm:$0xff] }
 0x865   :  { %11091 = vmatprep.subr.bf16.mxu0 %v11090_v22  ;;  %11155 = vmatprep.subr.bf16.mxu1 %v11154_v3  ;;  %v11168_v1 = vpack.c.bf16 %v4824_v28, %v4820_v48  ;;  %v11106_v56 = vpack.c.bf16 %v4831_v55, %v4827_v54  ;;  %v4826_v22 = vld [vmem:[#allocation13 + $0x300] sm:$0xff]  ;;  %v4828_v3 = vld [vmem:[#allocation13 + $0x310] sm:$0xff]  ;;  %v5139_v28 = vld [vmem:[#allocation16 + $0x8] sm:$0xff] }
 0x866   :  { %v11108_v47 = vpack.c.bf16 %v4830_v63, %v4826_v22  ;;  %v5141_v54 = vld [vmem:[#allocation16 + $0x18] sm:$0xff]  ;;  %v409_v22 = vadd.f32 %v16934_v51, %v14161_v23  ;;  %v16935_v63 = vld [vmem:[#allocation33_spill] sm:$0xff] }
 0x868   :  { %11093 = vmatpush1.bf16.msra.mxu0 %v11092_v40  ;;  %11157 = vmatpush1.bf16.msra.mxu1 %v11156_v31  ;;  %v4832_v40 = vld [vmem:[#allocation13 + $0x330] sm:$0xff]  ;;  %v4839_v31 = vld [vmem:[#allocation13 + $0x368] sm:$0xff] }
 0x869   :  { %11095 = vmatprep.subr.bf16.mxu0 %v11094_v21  ;;  %11159 = vmatprep.subr.bf16.mxu1 %v11158_v50  ;;  %v11172_v43 = vpack.c.bf16 %v4832_v40, %v4828_v3  ;;  %v11110_v46 = vpack.c.bf16 %v4839_v31, %v4835_v20  ;;  %v4834_v21 = vld [vmem:[#allocation13 + $0x340] sm:$0xff]  ;;  %v4836_v50 = vld [vmem:[#allocation13 + $0x350] sm:$0xff] }
 0x86a   :  { %v11112_v27 = vpack.c.bf16 %v4838_v2, %v4834_v21 }
 0x86c   :  { %11097 = vmatpush1.bf16.msra.mxu0 %v11096_v36  ;;  %11161 = vmatpush1.bf16.msra.mxu1 %v11160_v34  ;;  %v4840_v36 = vld [vmem:[#allocation13 + $0x370] sm:$0xff]  ;;  %v4847_v34 = vld [vmem:[#allocation13 + $0x3a8] sm:$0xff] }
 0x86d   :  { %11099 = vmatprep.subr.bf16.mxu0 %v11098_v61  ;;  %11163 = vmatprep.subr.bf16.mxu1 %v11162_v62  ;;  %v11176_v17 = vpack.c.bf16 %v4840_v36, %v4836_v50  ;;  %v11114_v19 = vpack.c.bf16 %v4847_v34, %v4843_v49  ;;  %v11178_v61 = vpack.c.bf16 %v4849_v15, %v4845_v14 }
 0x86e   :  { %v11116_v62 = vpack.c.bf16 %v4846_v26, %v4842_v53 }
 0x870   :  { %11101 = vmatpush1.bf16.msra.mxu0 %v11100_v4  ;;  %11165 = vmatpush1.bf16.msra.mxu1 %v11164_v11  ;;  %v4848_v4 = vld [vmem:[#allocation13 + $0x3b0] sm:$0xff] }
 0x871   :  { %11103 = vmatprep.subr.bf16.mxu0 %v11102_v35  ;;  %11167 = vmatprep.subr.bf16.mxu1 %v11166_v29  ;;  %v11180_v11 = vpack.c.bf16 %v4848_v4, %v4844_v39  ;;  %v4850_v35 = vld [vmem:[#allocation13 + $0x3c0] sm:$0xff]  ;;  %v4856_v29 = vld [vmem:[#allocation13 + $0x3f0] sm:$0xff] }
 0x872   :  { %v11184_v48 = vpack.c.bf16 %v4856_v29, %v4852_v16 }
 0x874   :  { %11105 = vmatpush1.bf16.msra.mxu0 %v11104_v30  ;;  %11169 = vmatpush1.bf16.msra.mxu1 %v11168_v1  ;;  %v11120_v30 = vpack.c.bf16 %v4854_v8, %v4850_v35  ;;  %v5143_v1 = vld [vmem:[#allocation16 + $0x28] sm:$0xff] }
 0x875   :  { %11107 = vmatprep.subr.bf16.mxu0 %v11106_v56  ;;  %11171 = vmatprep.subr.bf16.mxu1 %v11170_v52  ;;  %v11186_v55 = vpack.c.bf16 %v5143_v1, %v5139_v28  ;;  %v11250_v56 = vpack.c.bf16 %v5145_v59, %v5141_v54  ;;  %v411_v52 = vadd.f32 %v16935_v63, %v16912_v57  ;;  %v5142_v1 = vld [vmem:[#allocation16 + $0x20] sm:$0xff]  ;;  %v5140_v54 = vld [vmem:[#allocation16 + $0x10] sm:$0xff]  ;;  %v5149_v63 = vld [vmem:[#allocation16 + $0x58] sm:$0xff] }
 0x878   :  { %11109 = vmatpush1.bf16.msra.mxu0 %v11108_v47  ;;  %11173 = vmatpush1.bf16.msra.mxu1 %v11172_v43 }
 0x879   :  { %11111 = vmatprep.subr.bf16.mxu0 %v11110_v46  ;;  %11175 = vmatprep.subr.bf16.mxu1 %v11174_v7 }
 0x87c   :  { %11113 = vmatpush1.bf16.msra.mxu0 %v11112_v27  ;;  %11177 = vmatpush1.bf16.msra.mxu1 %v11176_v17 }
 0x87d   :  { %11115 = vmatprep.subr.bf16.mxu0 %v11114_v19  ;;  %11179 = vmatprep.subr.bf16.mxu1 %v11178_v61 }
 0x880   :  { %11117 = vmatpush1.bf16.msra.mxu0 %v11116_v62  ;;  %11181 = vmatpush1.bf16.msra.mxu1 %v11180_v11 }
 0x881   :  { %11119 = vmatprep.subr.bf16.mxu0 %v11118_v18  ;;  %11183 = vmatprep.subr.bf16.mxu1 %v11182_v38 }
 0x884   :  { %11121 = vmatpush1.bf16.msra.mxu0 %v11120_v30  ;;  %11185 = vmatpush1.bf16.msra.mxu1 %v11184_v48 }
 0x885   :  { %11187 = vmatprep.subr.bf16.mxu0 %v11186_v55  ;;  %11251 = vmatprep.subr.bf16.mxu1 %v11250_v56  ;;  %v5144_v55 = vld [vmem:[#allocation16 + $0x30] sm:$0xff]  ;;  %v5147_v56 = vld [vmem:[#allocation16 + $0x48] sm:$0xff] }
 0x8fa   :  { %v4370_v47 = vpop.f32.mrb[30].mxu0  ;;  %v4441_v3 = vpop.f32.mrb[20].mxu1 }
 0x8fb   :  { %v4446_v40 = vadd.f32 %v4370_v47, %v409_v22  ;;  %v4372_v43 = vpop.f32.mrb[31].mxu0  ;;  %v4443_v20 = vpop.f32.mrb[21].mxu1  ;;  %v12480_v2 = vadd.f32 %v4441_v3, %v16915_v25  ;;  %v5151_v22 = vld [vmem:[#allocation16 + $0x68] sm:$0xff] }
 0x8fc   :  { %v4447_v31 = vadd.f32 %v4372_v43, %v411_v52  ;;  %v12481_v45 = vadd.f32 %v4443_v20, %v16914_v13  ;;  %v5153_v52 = vld [vmem:[#allocation16 + $0x78] sm:$0xff]  ;;  %v5146_v43 = vld [vmem:[#allocation16 + $0x40] sm:$0xff] }
 0x8fd   :  { %v9835_v5 = vmul.f32 -1.442695, %v4446_v40  ;;  %v11252_v40 = vpack.c.bf16 %v5144_v55, %v5140_v54  ;;  %v5150_v20 = vld [vmem:[#allocation16 + $0x60] sm:$0xff]  ;;  %v5183_v54 = vld [vmem:[#allocation16 + $0x168] sm:$0xff]  ;;  %v5181_v55 = vld [vmem:[#allocation16 + $0x158] sm:$0xff] }
 0x8fe   :  { %v9836_v46 = vmul.f32 -1.442695, %v4447_v31  ;;  %v9837_v21 = vmul.f32 -1.442695, %v12481_v45  ;;  %v5152_v31 = vld [vmem:[#allocation16 + $0x70] sm:$0xff]  ;;  %v5155_v45 = vld [vmem:[#allocation16 + $0x88] sm:$0xff] }
 0x8ff   :  { %12942 = vpow2.f32 %v9835_v5  ;;  %v11190_v5 = vpack.c.bf16 %v5151_v22, %v5147_v56  ;;  %v5178_v22 = vld [vmem:[#allocation16 + $0x140] sm:$0xff] }
 0x900   :  { %12944 = vpow2.f32 %v9836_v46  ;;  %v11254_v46 = vpack.c.bf16 %v5153_v52, %v5149_v63  ;;  %v16941_v63 = vld [vmem:[#allocation66_spill] sm:$0xff]  ;;  %v5182_v52 = vld [vmem:[#allocation16 + $0x160] sm:$0xff] }
 0x901   :  { %12946 = vpow2.f32 %v9837_v21  ;;  %v16936_v21 = vld [vmem:[#allocation44_spill] sm:$0xff] }
 0x902   :  { %12948 = vtanh.f32 %v12480_v2  ;;  %v5159_v2 = vld [vmem:[#allocation16 + $0xa8] sm:$0xff] }
 0x909   :  { %v12943_v7 = vpop.eup %12942 }
 0x90a   :  { %v12945_v23 = vpop.eup %12944  ;;  %v4453_v27 = vadd.f32 1.0, %v12943_v7  ;;  %v5157_v7 = vld [vmem:[#allocation16 + $0x98] sm:$0xff] }
 0x90b   :  { %v4459_v57 = vadd.f32 1.0, %v12945_v23  ;;  %v12947_v50 = vpop.eup %12946  ;;  %v5161_v23 = vld [vmem:[#allocation16 + $0xb8] sm:$0xff] }
 0x90c   :  { %12950 = vrcp.f32 %v4453_v27  ;;  %v12949_v36 = vpop.eup %12948  ;;  %v4466_v14 = vadd.f32 1.0, %v12947_v50  ;;  %v11192_v27 = vpack.c.bf16 %v5150_v20, %v5146_v43  ;;  %v5154_v50 = vld [vmem:[#allocation16 + $0x80] sm:$0xff] }
 0x90d   :  { %12952 = vrcp.f32 %v4459_v57 }
 0x90e   :  { %12954 = vrcp.f32 %v4466_v14  ;;  %v11258_v14 = vpack.c.bf16 %v5161_v23, %v5157_v7  ;;  %v5186_v23 = vld [vmem:[#allocation16 + $0x180] sm:$0xff] }
 0x916   :  { %v12951_v49 = vpop.eup %12950 }
 0x917   :  { %v12953_v17 = vpop.eup %12952  ;;  %v4470_v34 = vmul.f32 %v12951_v49, %v12949_v36  ;;  %v5158_v36 = vld [vmem:[#allocation16 + $0xa0] sm:$0xff]  ;;  %v5156_v49 = vld [vmem:[#allocation16 + $0x90] sm:$0xff] }
 0x918   :  { %v4469_v15 = vmul.f32 %v12953_v17, %v15131_v42  ;;  %v12955_v24 = vpop.eup %12954  ;;  %v5160_v17 = vld [vmem:[#allocation16 + $0xb0] sm:$0xff] }
 0x91a   :  { %v4471_v13 = vadd.f32 %v4470_v34, %v4469_v15  ;;  %v4608_v19 = vpop.f32.mrb[10].mxu0  ;;  %v4679_v61 = vpop.f32.mrb[22].mxu1  ;;  %v11194_v34 = vpack.c.bf16 %v5159_v2, %v5155_v45  ;;  %v5163_v15 = vld [vmem:[#allocation16 + $0xc8] sm:$0xff]  ;;  %v5193_v45 = vld [vmem:[#allocation16 + $0x1b8] sm:$0xff]  ;;  %v11208_v2 = vpack.c.bf16 %v5182_v52, %v5178_v22  ;;  %v5210_v52 = vld [vmem:[#allocation16 + $0x240] sm:$0xff] }
 0x91b   :  { %v12482_v25 = vadd.f32 %v4608_v19, %v16917_v6  ;;  %v4610_v53 = vpop.f32.mrb[11].mxu0  ;;  %v4681_v26 = vpop.f32.mrb[23].mxu1  ;;  %v12498_v18 = vadd.f32 %v4679_v61, %v14192_v0  ;;  %v5138_v0 = vld [vmem:[#allocation16] sm:$0xff]  ;;  %v5167_v19 = vld [vmem:[#allocation16 + $0xe8] sm:$0xff]  ;;  %v5165_v61 = vld [vmem:[#allocation16 + $0xd8] sm:$0xff] }
 0x91c   :  { %12956 = vtanh.f32 %v4471_v13  ;;  %v12483_v39 = vadd.f32 %v4610_v53, %v16918_v10  ;;  %v12499_v12 = vadd.f32 %v4681_v26, %v16919_v44  ;;  %v11188_v3 = vpack.c.bf16 %v5142_v1, %v5138_v0  ;;  %v16937_v13 = vld [vmem:[#allocation49_spill] sm:$0xff]  ;;  %v16940_v1 = vld [vmem:[#allocation52_spill] sm:$0xff] }
 0x91d   :  { %v9838_v62 = vmul.f32 -1.442695, %v12482_v25  ;;  %v5169_v25 = vld [vmem:[#allocation16 + $0xf8] sm:$0xff]  ;;  %v11196_v53 = vpack.c.bf16 %v5158_v36, %v5154_v50  ;;  %v11260_v26 = vpack.c.bf16 %v5160_v17, %v5156_v49  ;;  %v5179_v0 = vld [vmem:[#allocation16 + $0x148] sm:$0xff]  ;;  %v5188_v50 = vld [vmem:[#allocation16 + $0x190] sm:$0xff] }
 0x91e   :  { %v9839_v4 = vmul.f32 -1.442695, %v12483_v39  ;;  %v9840_v42 = vmul.f32 -1.442695, %v12499_v12  ;;  %v5162_v39 = vld [vmem:[#allocation16 + $0xc0] sm:$0xff]  ;;  %v5168_v12 = vld [vmem:[#allocation16 + $0xf0] sm:$0xff]  ;;  %v11206_v43 = vpack.c.bf16 %v5183_v54, %v5179_v0 }
 0x91f   :  { %12958 = vpow2.f32 %v9838_v62  ;;  %v5166_v62 = vld [vmem:[#allocation16 + $0xe0] sm:$0xff]  ;;  %v5192_v36 = vld [vmem:[#allocation16 + $0x1b0] sm:$0xff] }
 0x920   :  { %12960 = vpow2.f32 %v9839_v4  ;;  %v5164_v4 = vld [vmem:[#allocation16 + $0xd0] sm:$0xff] }
 0x921   :  { %12962 = vpow2.f32 %v9840_v42  ;;  %v5171_v42 = vld [vmem:[#allocation16 + $0x108] sm:$0xff] }
 0x922   :  { %12964 = vtanh.f32 %v12498_v18  ;;  %v16938_v18 = vld [vmem:[#allocation46_spill] sm:$0xff] }
 0x926   :  { %v12957_v11 = vpop.eup %12956 }
 0x927   :  { %v15193_v32 = vmul.f32 %v12957_v11, %v12955_v24  ;;  %v11198_v24 = vpack.c.bf16 %v5167_v19, %v5163_v15  ;;  %v11262_v11 = vpack.c.bf16 %v5169_v25, %v5165_v61  ;;  %v5199_v15 = vld [vmem:[#allocation16 + $0x1e8] sm:$0xff]  ;;  %v5197_v19 = vld [vmem:[#allocation16 + $0x1d8] sm:$0xff] }
 0x928   :  { %v5201_v61 = vld [vmem:[#allocation16 + $0x1f8] sm:$0xff] }
 0x929   :  { %v12959_v37 = vpop.eup %12958 }
 0x92a   :  { %v12961_v6 = vpop.eup %12960  ;;  %v4691_v35 = vadd.f32 1.0, %v12959_v37  ;;  %v5175_v37 = vld [vmem:[#allocation16 + $0x128] sm:$0xff] }
 0x92b   :  { %v4697_v38 = vadd.f32 1.0, %v12961_v6  ;;  %v12963_v10 = vpop.eup %12962  ;;  %v5173_v6 = vld [vmem:[#allocation16 + $0x118] sm:$0xff] }
 0x92c   :  { %12966 = vrcp.f32 %v4691_v35  ;;  %v12965_v8 = vpop.eup %12964  ;;  %v4704_v30 = vadd.f32 1.0, %v12963_v10  ;;  %v5177_v35 = vld [vmem:[#allocation16 + $0x138] sm:$0xff]  ;;  %v11264_v10 = vpack.c.bf16 %v5168_v12, %v5164_v4  ;;  %v5196_v4 = vld [vmem:[#allocation16 + $0x1d0] sm:$0xff] }
 0x92d   :  { %12968 = vrcp.f32 %v4697_v38  ;;  %v11200_v38 = vpack.c.bf16 %v5166_v62, %v5162_v39  ;;  %v16945_v39 = vld [vmem:[#allocation62_spill] sm:$0xff]  ;;  %v5198_v62 = vld [vmem:[#allocation16 + $0x1e0] sm:$0xff] }
 0x92e   :  { %12970 = vrcp.f32 %v4704_v30  ;;  %v5176_v30 = vld [vmem:[#allocation16 + $0x130] sm:$0xff] }
 0x92f   :  { %v5200_v12 = vld [vmem:[#allocation16 + $0x1f0] sm:$0xff] }
 0x936   :  { %v12967_v16 = vpop.eup %12966 }
 0x937   :  { %v12969_v29 = vpop.eup %12968  ;;  %v4708_v44 = vmul.f32 %v12967_v16, %v12965_v8  ;;  %v5170_v8 = vld [vmem:[#allocation16 + $0x100] sm:$0xff]  ;;  %v16939_v16 = vld [vmem:[#allocation50_spill] sm:$0xff] }
 0x938   :  { %v4707_v48 = vmul.f32 %v12969_v29, %v15161_v33  ;;  %v12971_v59 = vpop.eup %12970  ;;  %v5148_v33 = vld [vmem:[#allocation16 + $0x50] sm:$0xff]  ;;  %v5174_v29 = vld [vmem:[#allocation16 + $0x120] sm:$0xff] }
 0x939   :  { %v11256_v57 = vpack.c.bf16 %v5152_v31, %v5148_v33  ;;  %v11204_v56 = vpack.c.bf16 %v5174_v29, %v5170_v8  ;;  %v5187_v33 = vld [vmem:[#allocation16 + $0x188] sm:$0xff]  ;;  %v16942_v31 = vld [vmem:[#allocation48_spill] sm:$0xff] }
 0x93a   :  { %v4709_v28 = vadd.f32 %v4708_v44, %v4707_v48  ;;  %v5172_v44 = vld [vmem:[#allocation16 + $0x110] sm:$0xff]  ;;  %v11202_v48 = vpack.c.bf16 %v5175_v37, %v5171_v42  ;;  %v5203_v42 = vld [vmem:[#allocation16 + $0x208] sm:$0xff]  ;;  %v5202_v8 = vld [vmem:[#allocation16 + $0x200] sm:$0xff] }
 0x93b   :  { %v5207_v37 = vld [vmem:[#allocation16 + $0x228] sm:$0xff]  ;;  %v5206_v29 = vld [vmem:[#allocation16 + $0x220] sm:$0xff] }
 0x93c   :  { %12972 = vtanh.f32 %v4709_v28  ;;  %v11266_v28 = vpack.c.bf16 %v5177_v35, %v5173_v6  ;;  %v5205_v6 = vld [vmem:[#allocation16 + $0x218] sm:$0xff]  ;;  %v11218_v0 = vpack.c.bf16 %v5207_v37, %v5203_v42  ;;  %v5235_v42 = vld [vmem:[#allocation16 + $0x308] sm:$0xff] }
 0x93d   :  { %v5209_v35 = vld [vmem:[#allocation16 + $0x238] sm:$0xff]  ;;  %v5239_v37 = vld [vmem:[#allocation16 + $0x328] sm:$0xff] }
 0x93e   :  { %v11282_v54 = vpack.c.bf16 %v5209_v35, %v5205_v6  ;;  %v5237_v6 = vld [vmem:[#allocation16 + $0x318] sm:$0xff] }
 0x93f   :  { %v5241_v35 = vld [vmem:[#allocation16 + $0x338] sm:$0xff] }
 0x946   :  { %v12973_v51 = vpop.eup %12972 }
 0x947   :  { %v15196_v47 = vmul.f32 %v12973_v51, %v12971_v59  ;;  %v5185_v59 = vld [vmem:[#allocation16 + $0x178] sm:$0xff]  ;;  %v11268_v51 = vpack.c.bf16 %v5176_v30, %v5172_v44  ;;  %v16946_v44 = vld [vmem:[#allocation45_spill] sm:$0xff]  ;;  %v5204_v30 = vld [vmem:[#allocation16 + $0x210] sm:$0xff] }
 0x948   :  { %v11270_v20 = vpack.c.bf16 %v5185_v59, %v5181_v55  ;;  %v5215_v55 = vld [vmem:[#allocation16 + $0x268] sm:$0xff]  ;;  %v5213_v59 = vld [vmem:[#allocation16 + $0x258] sm:$0xff] }
 0x949   :  { %4944 = vmatprep.mubr.f32.mxu0 %v15196_v47  ;;  %5057 = vmatprep.mubr.f32.mxu1 %v15196_v47 }
 0x94a   :  { %4945 = vmatmul.mubr.f32.vlgmr.msra.gmra.mrb[32].mxu0 %v16936_v21  ;;  %5058 = vmatmul.mubr.f32.vlgmr.msra.gmra.mrb[38].mxu1 %v16936_v21 }
 0x94b   :  { %11189 = vmatpush1.bf16.msra.mxu0 %v11188_v3  ;;  %11253 = vmatpush1.bf16.msra.mxu1 %v11252_v40  ;;  %v5180_v3 = vld [vmem:[#allocation16 + $0x150] sm:$0xff] }
 0x94c   :  { %4950 = vmatprep.mubr.f32.mxu0 %v15178_v58  ;;  %5063 = vmatprep.mubr.f32.mxu1 %v15178_v58  ;;  %v5184_v40 = vld [vmem:[#allocation16 + $0x170] sm:$0xff] }
 0x94d   :  { %11191 = vmatprep.subr.bf16.mxu0 %v11190_v5  ;;  %11255 = vmatprep.subr.bf16.mxu1 %v11254_v46  ;;  %v5191_v5 = vld [vmem:[#allocation16 + $0x1a8] sm:$0xff]  ;;  %v5189_v46 = vld [vmem:[#allocation16 + $0x198] sm:$0xff]  ;;  %v11272_v7 = vpack.c.bf16 %v5184_v40, %v5180_v3  ;;  %v5214_v3 = vld [vmem:[#allocation16 + $0x260] sm:$0xff] }
 0x94e   :  { %4951 = vmatmul.mubr.f32.gmra.mrb[34].mxu0 %v16937_v13  ;;  %5064 = vmatmul.mubr.f32.gmra.mrb[40].mxu1 %v16937_v13  ;;  %v11210_v49 = vpack.c.bf16 %v5191_v5, %v5187_v33  ;;  %v11274_v17 = vpack.c.bf16 %v5193_v45, %v5189_v46  ;;  %v5216_v33 = vld [vmem:[#allocation16 + $0x270] sm:$0xff]  ;;  %v5219_v5 = vld [vmem:[#allocation16 + $0x288] sm:$0xff]  ;;  %v5221_v45 = vld [vmem:[#allocation16 + $0x298] sm:$0xff] }
 0x94f   :  { %11193 = vmatpush1.bf16.msra.mxu0 %v11192_v27  ;;  %11257 = vmatpush1.bf16.msra.mxu1 %v11256_v57  ;;  %v16943_v27 = vld [vmem:[#allocation47_spill] sm:$0xff]  ;;  %v5190_v57 = vld [vmem:[#allocation16 + $0x1a0] sm:$0xff]  ;;  %v5223_v46 = vld [vmem:[#allocation16 + $0x2a8] sm:$0xff] }
 0x950   :  { %4956 = vmatprep.mubr.f32.mxu0 %v15084_v9  ;;  %5069 = vmatprep.mubr.f32.mxu1 %v15084_v9  ;;  %v11212_v25 = vpack.c.bf16 %v5190_v57, %v5186_v23  ;;  %v5218_v57 = vld [vmem:[#allocation16 + $0x280] sm:$0xff] }
 0x951   :  { %11195 = vmatprep.subr.bf16.mxu0 %v11194_v34  ;;  %11259 = vmatprep.subr.bf16.mxu1 %v11258_v14  ;;  %v5195_v34 = vld [vmem:[#allocation16 + $0x1c8] sm:$0xff]  ;;  %v16944_v14 = vld [vmem:[#allocation55_spill] sm:$0xff] }
 0x952   :  { %4957 = vmatmul.mubr.f32.gmra.mrb[36].mxu0 %v16938_v18  ;;  %5070 = vmatmul.mubr.f32.gmra.mrb[42].mxu1 %v16938_v18 }
 0x953   :  { %11197 = vmatpush1.bf16.msra.mxu0 %v11196_v53  ;;  %11261 = vmatpush1.bf16.msra.mxu1 %v11260_v26  ;;  %v11276_v53 = vpack.c.bf16 %v5192_v36, %v5188_v50  ;;  %v5194_v26 = vld [vmem:[#allocation16 + $0x1c0] sm:$0xff]  ;;  %v11226_v36 = vpack.c.bf16 %v5223_v46, %v5219_v5  ;;  %v5251_v5 = vld [vmem:[#allocation16 + $0x388] sm:$0xff] }
 0x954   :  { %4962 = vmatprep.mubr.f32.mxu0 %v16939_v16  ;;  %5075 = vmatprep.mubr.f32.mxu1 %v16939_v16  ;;  %v5222_v50 = vld [vmem:[#allocation16 + $0x2a0] sm:$0xff]  ;;  %v5255_v46 = vld [vmem:[#allocation16 + $0x3a8] sm:$0xff] }
 0x955   :  { %11199 = vmatprep.subr.bf16.mxu0 %v11198_v24  ;;  %11263 = vmatprep.subr.bf16.mxu1 %v11262_v11  ;;  %v11214_v24 = vpack.c.bf16 %v5199_v15, %v5195_v34  ;;  %v11278_v11 = vpack.c.bf16 %v5201_v61, %v5197_v19  ;;  %v5227_v34 = vld [vmem:[#allocation16 + $0x2c8] sm:$0xff]  ;;  %v5229_v19 = vld [vmem:[#allocation16 + $0x2d8] sm:$0xff] }
 0x956   :  { %4963 = vmatmul.mubr.f32.gmra.mrb[38].mxu0 %v16940_v1  ;;  %5076 = vmatmul.mubr.f32.gmra.mrb[44].mxu1 %v16940_v1  ;;  %v5231_v15 = vld [vmem:[#allocation16 + $0x2e8] sm:$0xff]  ;;  %v5233_v61 = vld [vmem:[#allocation16 + $0x2f8] sm:$0xff] }
 0x957   :  { %11201 = vmatpush1.bf16.msra.mxu0 %v11200_v38  ;;  %11265 = vmatpush1.bf16.msra.mxu1 %v11264_v10  ;;  %v11216_v38 = vpack.c.bf16 %v5198_v62, %v5194_v26  ;;  %v11280_v10 = vpack.c.bf16 %v5200_v12, %v5196_v4  ;;  %v5226_v26 = vld [vmem:[#allocation16 + $0x2c0] sm:$0xff]  ;;  %v11230_v4 = vpack.c.bf16 %v5231_v15, %v5227_v34  ;;  %v5259_v34 = vld [vmem:[#allocation16 + $0x3c8] sm:$0xff] }
 0x958   :  { %4968 = vmatprep.mubr.f32.mxu0 %v16941_v63  ;;  %5081 = vmatprep.mubr.f32.mxu1 %v16941_v63  ;;  %v5230_v62 = vld [vmem:[#allocation16 + $0x2e0] sm:$0xff]  ;;  %v11294_v12 = vpack.c.bf16 %v5233_v61, %v5229_v19  ;;  %v5263_v15 = vld [vmem:[#allocation16 + $0x3e8] sm:$0xff]  ;;  %v5261_v19 = vld [vmem:[#allocation16 + $0x3d8] sm:$0xff] }
 0x959   :  { %11203 = vmatprep.subr.bf16.mxu0 %v11202_v48  ;;  %11267 = vmatprep.subr.bf16.mxu1 %v11266_v28  ;;  %v5208_v48 = vld [vmem:[#allocation16 + $0x230] sm:$0xff]  ;;  %v5211_v28 = vld [vmem:[#allocation16 + $0x248] sm:$0xff]  ;;  %v5265_v61 = vld [vmem:[#allocation16 + $0x3f8] sm:$0xff] }
 0x95a   :  { %4969 = vmatmul.mubr.f32.gmra.mrb[40].mxu0 %v16942_v31  ;;  %5082 = vmatmul.mubr.f32.gmra.mrb[46].mxu1 %v16942_v31  ;;  %v11284_v22 = vpack.c.bf16 %v5208_v48, %v5204_v30  ;;  %v11222_v40 = vpack.c.bf16 %v5215_v55, %v5211_v28  ;;  %v11234_v30 = vpack.c.bf16 %v5239_v37, %v5235_v42  ;;  %v5236_v28 = vld [vmem:[#allocation16 + $0x310] sm:$0xff]  ;;  %v5247_v55 = vld [vmem:[#allocation16 + $0x368] sm:$0xff] }
 0x95b   :  { %11205 = vmatpush1.bf16.msra.mxu0 %v11204_v56  ;;  %11269 = vmatpush1.bf16.msra.mxu1 %v11268_v51  ;;  %v5217_v56 = vld [vmem:[#allocation16 + $0x278] sm:$0xff]  ;;  %v11220_v51 = vpack.c.bf16 %v5206_v29, %v5202_v8  ;;  %v5234_v8 = vld [vmem:[#allocation16 + $0x300] sm:$0xff]  ;;  %v11298_v48 = vpack.c.bf16 %v5241_v35, %v5237_v6  ;;  %v5551_v42 = vld [vmem:[#allocation14 + $0x8] sm:$0xff] }
 0x95c   :  { %4974 = vmatprep.mubr.f32.mxu0 %v16943_v27  ;;  %5087 = vmatprep.mubr.f32.mxu1 %v16943_v27  ;;  %v5238_v29 = vld [vmem:[#allocation16 + $0x320] sm:$0xff]  ;;  %v5555_v37 = vld [vmem:[#allocation14 + $0x28] sm:$0xff]  ;;  %v5553_v6 = vld [vmem:[#allocation14 + $0x18] sm:$0xff] }
 0x95d   :  { %11207 = vmatprep.subr.bf16.mxu0 %v11206_v43  ;;  %11271 = vmatprep.subr.bf16.mxu1 %v11270_v20  ;;  %v11286_v43 = vpack.c.bf16 %v5217_v56, %v5213_v59  ;;  %v5212_v20 = vld [vmem:[#allocation16 + $0x250] sm:$0xff]  ;;  %v5245_v59 = vld [vmem:[#allocation16 + $0x358] sm:$0xff] }
 0x95e   :  { %4975 = vmatmul.mubr.f32.gmra.mrb[42].mxu0 %v16944_v14  ;;  %5088 = vmatmul.mubr.f32.gmra.mrb[48].mxu1 %v16944_v14  ;;  %v11288_v23 = vpack.c.bf16 %v5216_v33, %v5212_v20  ;;  %v5249_v56 = vld [vmem:[#allocation16 + $0x378] sm:$0xff]  ;;  %v5244_v20 = vld [vmem:[#allocation16 + $0x350] sm:$0xff] }
 0x95f   :  { %11209 = vmatpush1.bf16.msra.mxu0 %v11208_v2  ;;  %11273 = vmatpush1.bf16.msra.mxu1 %v11272_v7  ;;  %v5225_v2 = vld [vmem:[#allocation16 + $0x2b8] sm:$0xff]  ;;  %v11224_v7 = vpack.c.bf16 %v5214_v3, %v5210_v52  ;;  %v5242_v52 = vld [vmem:[#allocation16 + $0x340] sm:$0xff]  ;;  %v5248_v33 = vld [vmem:[#allocation16 + $0x370] sm:$0xff] }
 0x960   :  { %4980 = vmatprep.mubr.f32.mxu0 %v16945_v39  ;;  %5093 = vmatprep.mubr.f32.mxu1 %v16945_v39  ;;  %v5246_v3 = vld [vmem:[#allocation16 + $0x360] sm:$0xff]  ;;  %v5557_v35 = vld [vmem:[#allocation14 + $0x38] sm:$0xff] }
 0x961   :  { %11211 = vmatprep.subr.bf16.mxu0 %v11210_v49  ;;  %11275 = vmatprep.subr.bf16.mxu1 %v11274_v17  ;;  %v5220_v49 = vld [vmem:[#allocation16 + $0x290] sm:$0xff] }
 0x962   :  { %4981 = vmatmul.mubr.f32.gmra.mrb[44].mxu0 %v15137_v60  ;;  %5094 = vmatmul.mubr.f32.gmra.mrb[50].mxu1 %v15137_v60  ;;  %v5224_v17 = vld [vmem:[#allocation16 + $0x2b0] sm:$0xff] }
 0x963   :  { %11213 = vmatpush1.bf16.msra.mxu0 %v11212_v25  ;;  %11277 = vmatpush1.bf16.msra.mxu1 %v11276_v53  ;;  %v11228_v25 = vpack.c.bf16 %v5222_v50, %v5218_v57  ;;  %v11292_v53 = vpack.c.bf16 %v5224_v17, %v5220_v49  ;;  %v5250_v57 = vld [vmem:[#allocation16 + $0x380] sm:$0xff]  ;;  %v5252_v49 = vld [vmem:[#allocation16 + $0x390] sm:$0xff] }
 0x964   :  { %4986 = vmatprep.mubr.f32.mxu0 %v16946_v44  ;;  %5099 = vmatprep.mubr.f32.mxu1 %v16946_v44  ;;  %v5254_v50 = vld [vmem:[#allocation16 + $0x3a0] sm:$0xff]  ;;  %v5256_v17 = vld [vmem:[#allocation16 + $0x3b0] sm:$0xff] }
 0x965   :  { %11215 = vmatprep.subr.bf16.mxu0 %v11214_v24  ;;  %11279 = vmatprep.subr.bf16.mxu1 %v11278_v11  ;;  %v5228_v24 = vld [vmem:[#allocation16 + $0x2d0] sm:$0xff] }
 0x966   :  { %4987 = vmatmul.mubr.f32.gmra.mrb[46].mxu0 %v15193_v32  ;;  %5100 = vmatmul.mubr.f32.gmra.mrb[52].mxu1 %v15193_v32  ;;  %v5232_v11 = vld [vmem:[#allocation16 + $0x2f0] sm:$0xff] }
 0x967   :  { %11217 = vmatpush1.bf16.msra.mxu0 %v11216_v38  ;;  %11281 = vmatpush1.bf16.msra.mxu1 %v11280_v10  ;;  %v11232_v38 = vpack.c.bf16 %v5230_v62, %v5226_v26  ;;  %v11296_v10 = vpack.c.bf16 %v5232_v11, %v5228_v24  ;;  %v5258_v26 = vld [vmem:[#allocation16 + $0x3c0] sm:$0xff]  ;;  %v5260_v24 = vld [vmem:[#allocation16 + $0x3d0] sm:$0xff] }
 0x968   :  { %5352 = vmatprep.mubr.f32.mxu0 %v15196_v47  ;;  %5465 = vmatprep.mubr.f32.mxu1 %v15196_v47  ;;  %v11290_v47 = vpack.c.bf16 %v5225_v2, %v5221_v45  ;;  %v5253_v45 = vld [vmem:[#allocation16 + $0x398] sm:$0xff]  ;;  %v5262_v62 = vld [vmem:[#allocation16 + $0x3e0] sm:$0xff]  ;;  %v5264_v11 = vld [vmem:[#allocation16 + $0x3f0] sm:$0xff] }
 0x969   :  { %11219 = vmatprep.subr.bf16.mxu0 %v11218_v0  ;;  %11283 = vmatprep.subr.bf16.mxu1 %v11282_v54  ;;  %v5240_v0 = vld [vmem:[#allocation16 + $0x330] sm:$0xff]  ;;  %v5243_v54 = vld [vmem:[#allocation16 + $0x348] sm:$0xff]  ;;  %v5257_v2 = vld [vmem:[#allocation16 + $0x3b8] sm:$0xff] }
 0x96b   :  { %11221 = vmatpush1.bf16.msra.mxu0 %v11220_v51  ;;  %11285 = vmatpush1.bf16.msra.mxu1 %v11284_v22  ;;  %v11236_v51 = vpack.c.bf16 %v5238_v29, %v5234_v8  ;;  %v11300_v22 = vpack.c.bf16 %v5240_v0, %v5236_v28  ;;  %v15232_v8 = vpack.c.bf16 %v5555_v37, %v5551_v42  ;;  %v5552_v28 = vld [vmem:[#allocation14 + $0x10] sm:$0xff] }
 0x96c   :  { %11223 = vmatprep.subr.bf16.mxu0 %v11222_v40  ;;  %11287 = vmatprep.subr.bf16.mxu1 %v11286_v43  ;;  %v11238_v40 = vpack.c.bf16 %v5247_v55, %v5243_v54  ;;  %v11302_v43 = vpack.c.bf16 %v5249_v56, %v5245_v59  ;;  %v15234_v29 = vpack.c.bf16 %v5557_v35, %v5553_v6  ;;  %v5556_v0 = vld [vmem:[#allocation14 + $0x30] sm:$0xff]  ;;  %v5559_v54 = vld [vmem:[#allocation14 + $0x48] sm:$0xff]  ;;  %v5561_v59 = vld [vmem:[#allocation14 + $0x58] sm:$0xff] }
 0x96d   :  { %v5563_v55 = vld [vmem:[#allocation14 + $0x68] sm:$0xff]  ;;  %v5565_v56 = vld [vmem:[#allocation14 + $0x78] sm:$0xff]  ;;  %v5582_v6 = vld [vmem:[#allocation14 + $0x100] sm:$0xff] }
 0x96e   :  { %v5586_v35 = vld [vmem:[#allocation14 + $0x120] sm:$0xff] }
 0x96f   :  { %11225 = vmatpush1.bf16.msra.mxu0 %v11224_v7  ;;  %11289 = vmatpush1.bf16.msra.mxu1 %v11288_v23  ;;  %v11240_v7 = vpack.c.bf16 %v5246_v3, %v5242_v52  ;;  %v11304_v23 = vpack.c.bf16 %v5248_v33, %v5244_v20  ;;  %v5558_v52 = vld [vmem:[#allocation14 + $0x40] sm:$0xff]  ;;  %v5560_v20 = vld [vmem:[#allocation14 + $0x50] sm:$0xff] }
 0x970   :  { %11227 = vmatprep.subr.bf16.mxu0 %v11226_v36  ;;  %11291 = vmatprep.subr.bf16.mxu1 %v11290_v47  ;;  %v11242_v36 = vpack.c.bf16 %v5255_v46, %v5251_v5  ;;  %v11306_v47 = vpack.c.bf16 %v5257_v2, %v5253_v45  ;;  %v5562_v3 = vld [vmem:[#allocation14 + $0x60] sm:$0xff]  ;;  %v5564_v33 = vld [vmem:[#allocation14 + $0x70] sm:$0xff]  ;;  %v5567_v5 = vld [vmem:[#allocation14 + $0x88] sm:$0xff] }
 0x971   :  { %v5571_v46 = vld [vmem:[#allocation14 + $0xa8] sm:$0xff]  ;;  %v5569_v45 = vld [vmem:[#allocation14 + $0x98] sm:$0xff] }
 0x972   :  { %v5573_v2 = vld [vmem:[#allocation14 + $0xb8] sm:$0xff] }
 0x973   :  { %11229 = vmatpush1.bf16.msra.mxu0 %v11228_v25  ;;  %11293 = vmatpush1.bf16.msra.mxu1 %v11292_v53  ;;  %v11244_v25 = vpack.c.bf16 %v5254_v50, %v5250_v57  ;;  %v11308_v53 = vpack.c.bf16 %v5256_v17, %v5252_v49  ;;  %v5566_v57 = vld [vmem:[#allocation14 + $0x80] sm:$0xff]  ;;  %v5575_v49 = vld [vmem:[#allocation14 + $0xc8] sm:$0xff] }
 0x974   :  { %11231 = vmatprep.subr.bf16.mxu0 %v11230_v4  ;;  %11295 = vmatprep.subr.bf16.mxu1 %v11294_v12  ;;  %v11246_v4 = vpack.c.bf16 %v5263_v15, %v5259_v34  ;;  %v11310_v12 = vpack.c.bf16 %v5265_v61, %v5261_v19  ;;  %v5570_v50 = vld [vmem:[#allocation14 + $0xa0] sm:$0xff]  ;;  %v5579_v17 = vld [vmem:[#allocation14 + $0xe8] sm:$0xff]  ;;  %v5577_v34 = vld [vmem:[#allocation14 + $0xd8] sm:$0xff] }
 0x975   :  { %v5581_v15 = vld [vmem:[#allocation14 + $0xf8] sm:$0xff]  ;;  %v15268_v19 = vpack.c.bf16 %v5570_v50, %v5566_v57  ;;  %v5598_v57 = vld [vmem:[#allocation14 + $0x180] sm:$0xff] }
 0x976   :  { %v5602_v50 = vld [vmem:[#allocation14 + $0x1a0] sm:$0xff] }
 0x977   :  { %11233 = vmatpush1.bf16.msra.mxu0 %v11232_v38  ;;  %11297 = vmatpush1.bf16.msra.mxu1 %v11296_v10  ;;  %v11248_v38 = vpack.c.bf16 %v5262_v62, %v5258_v26  ;;  %v11312_v10 = vpack.c.bf16 %v5264_v11, %v5260_v24  ;;  %v15276_v26 = vpack.c.bf16 %v5581_v15, %v5577_v34  ;;  %v5576_v62 = vld [vmem:[#allocation14 + $0xd0] sm:$0xff]  ;;  %v5585_v24 = vld [vmem:[#allocation14 + $0x118] sm:$0xff] }
 0x978   :  { %11235 = vmatprep.subr.bf16.mxu0 %v11234_v30  ;;  %11299 = vmatprep.subr.bf16.mxu1 %v11298_v48  ;;  %v5550_v30 = vld [vmem:[#allocation14] sm:$0xff]  ;;  %v5589_v11 = vld [vmem:[#allocation14 + $0x138] sm:$0xff] }
 0x979   :  { %v5554_v48 = vld [vmem:[#allocation14 + $0x20] sm:$0xff]  ;;  %v5609_v34 = vld [vmem:[#allocation14 + $0x1d8] sm:$0xff] }
 0x97a   :  { %v5613_v15 = vld [vmem:[#allocation14 + $0x1f8] sm:$0xff] }
 0x97b   :  { %11237 = vmatpush1.bf16.msra.mxu0 %v11236_v51  ;;  %11301 = vmatpush1.bf16.msra.mxu1 %v11300_v22  ;;  %v15238_v51 = vpack.c.bf16 %v5554_v48, %v5550_v30  ;;  %v15240_v22 = vpack.c.bf16 %v5556_v0, %v5552_v28  ;;  %v5591_v30 = vld [vmem:[#allocation14 + $0x148] sm:$0xff]  ;;  %v5593_v28 = vld [vmem:[#allocation14 + $0x158] sm:$0xff] }
 0x97c   :  { %11239 = vmatprep.subr.bf16.mxu0 %v11238_v40  ;;  %11303 = vmatprep.subr.bf16.mxu1 %v11302_v43  ;;  %v15242_v40 = vpack.c.bf16 %v5563_v55, %v5559_v54  ;;  %v15244_v43 = vpack.c.bf16 %v5565_v56, %v5561_v59  ;;  %v5595_v48 = vld [vmem:[#allocation14 + $0x168] sm:$0xff]  ;;  %v5597_v0 = vld [vmem:[#allocation14 + $0x178] sm:$0xff]  ;;  %v15300_v54 = vpack.c.bf16 %v5586_v35, %v5582_v6  ;;  %v5590_v59 = vld [vmem:[#allocation14 + $0x140] sm:$0xff] }
 0x97d   :  { %v5594_v56 = vld [vmem:[#allocation14 + $0x160] sm:$0xff]  ;;  %v5791_v6 = vld [vmem:[#allocation17 + $0x18] sm:$0xff] }
 0x97e   :  { %v5795_v35 = vld [vmem:[#allocation17 + $0x38] sm:$0xff] }
 0x97f   :  { %11241 = vmatpush1.bf16.msra.mxu0 %v11240_v7  ;;  %11305 = vmatpush1.bf16.msra.mxu1 %v11304_v23  ;;  %v15252_v7 = vpack.c.bf16 %v5562_v3, %v5558_v52  ;;  %v15254_v23 = vpack.c.bf16 %v5564_v33, %v5560_v20  ;;  %v15308_v52 = vpack.c.bf16 %v5597_v0, %v5593_v28  ;;  %v5592_v3 = vld [vmem:[#allocation14 + $0x150] sm:$0xff]  ;;  %v5599_v20 = vld [vmem:[#allocation14 + $0x188] sm:$0xff] }
 0x980   :  { %11243 = vmatprep.subr.bf16.mxu0 %v11242_v36  ;;  %11307 = vmatprep.subr.bf16.mxu1 %v11306_v47  ;;  %v15260_v36 = vpack.c.bf16 %v5573_v2, %v5569_v45  ;;  %v5568_v47 = vld [vmem:[#allocation14 + $0x90] sm:$0xff]  ;;  %v5603_v33 = vld [vmem:[#allocation14 + $0x1a8] sm:$0xff]  ;;  %v15316_v45 = vpack.c.bf16 %v5594_v56, %v5590_v59  ;;  %v15356_v28 = vpack.c.bf16 %v5795_v35, %v5791_v6 }
 0x981   :  { %v5790_v0 = vld [vmem:[#allocation17 + $0x10] sm:$0xff]  ;;  %v5797_v59 = vld [vmem:[#allocation17 + $0x48] sm:$0xff] }
 0x982   :  { %v5801_v56 = vld [vmem:[#allocation17 + $0x68] sm:$0xff]  ;;  %v5810_v6 = vld [vmem:[#allocation17 + $0xb0] sm:$0xff] }
 0x983   :  { %11245 = vmatpush1.bf16.msra.mxu0 %v11244_v25  ;;  %11309 = vmatpush1.bf16.msra.mxu1 %v11308_v53  ;;  %v5574_v25 = vld [vmem:[#allocation14 + $0xc0] sm:$0xff]  ;;  %v5813_v35 = vld [vmem:[#allocation17 + $0xc8] sm:$0xff] }
 0x984   :  { %11247 = vmatprep.subr.bf16.mxu0 %v11246_v4  ;;  %11311 = vmatprep.subr.bf16.mxu1 %v11310_v12  ;;  %v5578_v53 = vld [vmem:[#allocation14 + $0xe0] sm:$0xff]  ;;  %v5583_v4 = vld [vmem:[#allocation14 + $0x108] sm:$0xff] }
 0x985   :  { %v5587_v12 = vld [vmem:[#allocation14 + $0x128] sm:$0xff]  ;;  %v15284_v42 = vpack.c.bf16 %v5578_v53, %v5574_v25  ;;  %v15332_v25 = vpack.c.bf16 %v5602_v50, %v5598_v57  ;;  %v5798_v50 = vld [vmem:[#allocation17 + $0x50] sm:$0xff] }
 0x987   :  { %11249 = vmatpush1.bf16.msra.mxu0 %v11248_v38  ;;  %11313 = vmatpush1.bf16.msra.mxu1 %v11312_v10  ;;  %v15292_v38 = vpack.c.bf16 %v5589_v11, %v5585_v24  ;;  %v5584_v10 = vld [vmem:[#allocation14 + $0x110] sm:$0xff]  ;;  %v5789_v24 = vld [vmem:[#allocation17 + $0x8] sm:$0xff] }
 0x988   :  { %11315 = vmatprep.subr.bf16.mxu0 %v15232_v8  ;;  %11347 = vmatprep.subr.bf16.mxu1 %v15234_v29  ;;  %v5793_v11 = vld [vmem:[#allocation17 + $0x28] sm:$0xff] }
 0x98a   :  { %5353 = vmatmul.mubr.f32.vlgmr.msra.gmra.mrb[48].mxu0 %v16936_v21  ;;  %5466 = vmatmul.mubr.f32.vlgmr.msra.gmra.mrb[54].mxu1 %v16936_v21  ;;  %v15258_v21 = vpack.c.bf16 %v5571_v46, %v5567_v5  ;;  %v5601_v5 = vld [vmem:[#allocation14 + $0x198] sm:$0xff] }
 0x98b   :  { %5358 = vmatprep.mubr.f32.mxu0 %v15178_v58  ;;  %5471 = vmatprep.mubr.f32.mxu1 %v15178_v58  ;;  %v5572_v58 = vld [vmem:[#allocation14 + $0xb0] sm:$0xff]  ;;  %v5605_v46 = vld [vmem:[#allocation14 + $0x1b8] sm:$0xff] }
 0x98c   :  { %11317 = vmatpush1.bf16.msra.mxu0 %v15238_v51  ;;  %11349 = vmatpush1.bf16.msra.mxu1 %v15240_v22  ;;  %v15270_v61 = vpack.c.bf16 %v5572_v58, %v5568_v47  ;;  %v15324_v47 = vpack.c.bf16 %v5605_v46, %v5601_v5  ;;  %v5600_v58 = vld [vmem:[#allocation14 + $0x190] sm:$0xff]  ;;  %v5796_v5 = vld [vmem:[#allocation17 + $0x40] sm:$0xff] }
 0x98d   :  { %11319 = vmatprep.subr.bf16.mxu0 %v15242_v40  ;;  %11351 = vmatprep.subr.bf16.mxu1 %v15244_v43  ;;  %v5800_v46 = vld [vmem:[#allocation17 + $0x60] sm:$0xff] }
 0x98e   :  { %5359 = vmatmul.mubr.f32.gmra.mrb[50].mxu0 %v16937_v13  ;;  %5472 = vmatmul.mubr.f32.gmra.mrb[56].mxu1 %v16937_v13  ;;  %v15274_v13 = vpack.c.bf16 %v5579_v17, %v5575_v49  ;;  %v5607_v49 = vld [vmem:[#allocation14 + $0x1c8] sm:$0xff] }
 0x98f   :  { %5364 = vmatprep.mubr.f32.mxu0 %v15084_v9  ;;  %5477 = vmatprep.mubr.f32.mxu1 %v15084_v9  ;;  %v5580_v9 = vld [vmem:[#allocation14 + $0xf0] sm:$0xff]  ;;  %v5611_v17 = vld [vmem:[#allocation14 + $0x1e8] sm:$0xff] }
 0x990   :  { %11321 = vmatpush1.bf16.msra.mxu0 %v15252_v7  ;;  %11353 = vmatpush1.bf16.msra.mxu1 %v15254_v23  ;;  %v15286_v37 = vpack.c.bf16 %v5580_v9, %v5576_v62  ;;  %v5606_v62 = vld [vmem:[#allocation14 + $0x1c0] sm:$0xff] }
 0x991   :  { %11323 = vmatprep.subr.bf16.mxu0 %v15258_v21  ;;  %11355 = vmatprep.subr.bf16.mxu1 %v15260_v36  ;;  %v5610_v9 = vld [vmem:[#allocation14 + $0x1e0] sm:$0xff] }
 0x992   :  { %5365 = vmatmul.mubr.f32.gmra.mrb[52].mxu0 %v16938_v18  ;;  %5478 = vmatmul.mubr.f32.gmra.mrb[58].mxu1 %v16938_v18  ;;  %v15290_v18 = vpack.c.bf16 %v5587_v12, %v5583_v4  ;;  %v15340_v4 = vpack.c.bf16 %v5613_v15, %v5609_v34  ;;  %v5608_v12 = vld [vmem:[#allocation14 + $0x1d0] sm:$0xff]  ;;  %v5811_v34 = vld [vmem:[#allocation17 + $0xb8] sm:$0xff]  ;;  %v15378_v15 = vpack.c.bf16 %v5800_v46, %v5796_v5 }
 0x993   :  { %5370 = vmatprep.mubr.f32.mxu0 %v16939_v16  ;;  %5483 = vmatprep.mubr.f32.mxu1 %v16939_v16  ;;  %v5588_v16 = vld [vmem:[#allocation14 + $0x130] sm:$0xff] }
 0x994   :  { %11325 = vmatpush1.bf16.msra.mxu0 %v15268_v19  ;;  %11357 = vmatpush1.bf16.msra.mxu1 %v15270_v61  ;;  %v15302_v55 = vpack.c.bf16 %v5588_v16, %v5584_v10  ;;  %v15348_v10 = vpack.c.bf16 %v5610_v9, %v5606_v62  ;;  %v5804_v9 = vld [vmem:[#allocation17 + $0x80] sm:$0xff]  ;;  %v5814_v46 = vld [vmem:[#allocation17 + $0xd0] sm:$0xff] }
 0x995   :  { %11327 = vmatprep.subr.bf16.mxu0 %v15274_v13  ;;  %11359 = vmatprep.subr.bf16.mxu1 %v15276_v26 }
 0x996   :  { %5371 = vmatmul.mubr.f32.gmra.mrb[54].mxu0 %v16940_v1  ;;  %5484 = vmatmul.mubr.f32.gmra.mrb[60].mxu1 %v16940_v1  ;;  %v15306_v1 = vpack.c.bf16 %v5595_v48, %v5591_v30  ;;  %v5788_v30 = vld [vmem:[#allocation17] sm:$0xff] }
 0x997   :  { %5376 = vmatprep.mubr.f32.mxu0 %v16941_v63  ;;  %5489 = vmatprep.mubr.f32.mxu1 %v16941_v63  ;;  %v5596_v63 = vld [vmem:[#allocation14 + $0x170] sm:$0xff]  ;;  %v5792_v48 = vld [vmem:[#allocation17 + $0x20] sm:$0xff] }
 0x998   :  { %11329 = vmatpush1.bf16.msra.mxu0 %v15284_v42  ;;  %11361 = vmatpush1.bf16.msra.mxu1 %v15286_v37  ;;  %v15318_v2 = vpack.c.bf16 %v5596_v63, %v5592_v3  ;;  %v5799_v3 = vld [vmem:[#allocation17 + $0x58] sm:$0xff] }
 0x999   :  { %11331 = vmatprep.subr.bf16.mxu0 %v15290_v18  ;;  %11363 = vmatprep.subr.bf16.mxu1 %v15292_v38  ;;  %v5803_v63 = vld [vmem:[#allocation17 + $0x78] sm:$0xff] }
 0x99a   :  { %5377 = vmatmul.mubr.f32.gmra.mrb[56].mxu0 %v16942_v31  ;;  %5490 = vmatmul.mubr.f32.gmra.mrb[62].mxu1 %v16942_v31  ;;  %v15322_v31 = vpack.c.bf16 %v5603_v33, %v5599_v20  ;;  %v15364_v20 = vpack.c.bf16 %v5792_v48, %v5788_v30  ;;  %v15372_v57 = vpack.c.bf16 %v5803_v63, %v5799_v3  ;;  %v5817_v30 = vld [vmem:[#allocation17 + $0xe8] sm:$0xff]  ;;  %v5815_v48 = vld [vmem:[#allocation17 + $0xd8] sm:$0xff]  ;;  %v5816_v3 = vld [vmem:[#allocation17 + $0xe0] sm:$0xff] }
 0x99b   :  { %5382 = vmatprep.mubr.f32.mxu0 %v16943_v27  ;;  %5495 = vmatprep.mubr.f32.mxu1 %v16943_v27  ;;  %v5604_v27 = vld [vmem:[#allocation14 + $0x1b0] sm:$0xff]  ;;  %v15398_v63 = vpack.c.bf16 %v5817_v30, %v5813_v35 }
 0x99c   :  { %11333 = vmatpush1.bf16.msra.mxu0 %v15300_v54  ;;  %11365 = vmatpush1.bf16.msra.mxu1 %v15302_v55  ;;  %v15334_v53 = vpack.c.bf16 %v5604_v27, %v5600_v58  ;;  %v5802_v58 = vld [vmem:[#allocation17 + $0x70] sm:$0xff]  ;;  %v5805_v27 = vld [vmem:[#allocation17 + $0x88] sm:$0xff] }
 0x99d   :  { %11335 = vmatprep.subr.bf16.mxu0 %v15306_v1  ;;  %11367 = vmatprep.subr.bf16.mxu1 %v15308_v52  ;;  %v15380_v62 = vpack.c.bf16 %v5802_v58, %v5798_v50  ;;  %16950 = vst [vmem:[#allocation40_spill] sm:$0xff] %v15398_v63  ;;  %v5818_v50 = vld [vmem:[#allocation17 + $0xf0] sm:$0xff]  ;;  %v5821_v58 = vld [vmem:[#allocation17 + $0x108] sm:$0xff] }
 0x99e   :  { %5383 = vmatmul.mubr.f32.gmra.mrb[58].mxu0 %v16944_v14  ;;  %5496 = vmatmul.mubr.f32.gmra.mrb[64].mxu1 %v16944_v14  ;;  %v15338_v14 = vpack.c.bf16 %v5611_v17, %v5607_v49  ;;  %v5809_v49 = vld [vmem:[#allocation17 + $0xa8] sm:$0xff]  ;;  %v5807_v17 = vld [vmem:[#allocation17 + $0x98] sm:$0xff]  ;;  %v5822_v30 = vld [vmem:[#allocation17 + $0x110] sm:$0xff] }
 0x99f   :  { %5388 = vmatprep.mubr.f32.mxu0 %v16945_v39  ;;  %5501 = vmatprep.mubr.f32.mxu1 %v16945_v39  ;;  %v5612_v39 = vld [vmem:[#allocation14 + $0x1f0] sm:$0xff] }
 0x9a0   :  { %11337 = vmatpush1.bf16.msra.mxu0 %v15316_v45  ;;  %11369 = vmatpush1.bf16.msra.mxu1 %v15318_v2  ;;  %v15350_v16 = vpack.c.bf16 %v5612_v39, %v5608_v12  ;;  %v5808_v12 = vld [vmem:[#allocation17 + $0xa0] sm:$0xff]  ;;  %v15384_v39 = vpack.c.bf16 %v5809_v49, %v5805_v27  ;;  %v5825_v27 = vld [vmem:[#allocation17 + $0x128] sm:$0xff]  ;;  %v5823_v49 = vld [vmem:[#allocation17 + $0x118] sm:$0xff] }
 0x9a1   :  { %11339 = vmatprep.subr.bf16.mxu0 %v15322_v31  ;;  %11371 = vmatprep.subr.bf16.mxu1 %v15324_v47 }
 0x9a2   :  { %5389 = vmatmul.mubr.f32.gmra.mrb[60].mxu0 %v15137_v60  ;;  %5502 = vmatmul.mubr.f32.gmra.mrb[66].mxu1 %v15137_v60  ;;  %v15354_v60 = vpack.c.bf16 %v5793_v11, %v5789_v24  ;;  %v15386_v24 = vpack.c.bf16 %v5811_v34, %v5807_v17  ;;  %v5806_v11 = vld [vmem:[#allocation17 + $0x90] sm:$0xff]  ;;  %v5827_v17 = vld [vmem:[#allocation17 + $0x138] sm:$0xff] }
 0x9a3   :  { %5394 = vmatprep.mubr.f32.mxu0 %v16946_v44  ;;  %5507 = vmatprep.mubr.f32.mxu1 %v16946_v44  ;;  %v5794_v44 = vld [vmem:[#allocation17 + $0x30] sm:$0xff]  ;;  %v15412_v35 = vpack.c.bf16 %v5827_v17, %v5823_v49 }
 0x9a4   :  { %11341 = vmatpush1.bf16.msra.mxu0 %v15332_v25  ;;  %11373 = vmatpush1.bf16.msra.mxu1 %v15334_v53  ;;  %v15366_v33 = vpack.c.bf16 %v5794_v44, %v5790_v0  ;;  %16947 = vst [vmem:[#allocation30_spill] sm:$0xff] %v15386_v24  ;;  %v5819_v0 = vld [vmem:[#allocation17 + $0xf8] sm:$0xff]  ;;  %v15392_v44 = vpack.c.bf16 %v5808_v12, %v5804_v9  ;;  %v5820_v12 = vld [vmem:[#allocation17 + $0x100] sm:$0xff]  ;;  %v5830_v49 = vld [vmem:[#allocation17 + $0x150] sm:$0xff] }
 0x9a5   :  { %11343 = vmatprep.subr.bf16.mxu0 %v15338_v14  ;;  %11375 = vmatprep.subr.bf16.mxu1 %v15340_v4  ;;  %v15400_v5 = vpack.c.bf16 %v5819_v0, %v5815_v48  ;;  %v15406_v9 = vpack.c.bf16 %v5818_v50, %v5814_v46  ;;  %16955 = vst [vmem:[#allocation43_spill] sm:$0xff] %v15412_v35  ;;  %v5826_v48 = vld [vmem:[#allocation17 + $0x130] sm:$0xff]  ;;  %v5829_v0 = vld [vmem:[#allocation17 + $0x148] sm:$0xff]  ;;  %v5828_v46 = vld [vmem:[#allocation17 + $0x140] sm:$0xff] }
 0x9a6   :  { %5395 = vmatmul.mubr.f32.gmra.mrb[62].mxu0 %v15193_v32  ;;  %5508 = vmatmul.mubr.f32.gmra.mrb[68].mxu1 %v15193_v32  ;;  %v15370_v32 = vpack.c.bf16 %v5801_v56, %v5797_v59  ;;  %16948 = vst [vmem:[#allocation36_spill] sm:$0xff] %v15392_v44  ;;  %v15394_v59 = vpack.c.bf16 %v5810_v6, %v5806_v11  ;;  %v5812_v56 = vld [vmem:[#allocation17 + $0xc0] sm:$0xff]  ;;  %v5834_v17 = vld [vmem:[#allocation17 + $0x170] sm:$0xff] }
 0x9a7   :  { %5678 = vmatprep.mubr.f32.mxu0 %v16811_v41  ;;  %5749 = vmatprep.mubr.f32.mxu1 %v16811_v41  ;;  %16951 = vst [vmem:[#allocation39_spill] sm:$0xff] %v15400_v5  ;;  %v15404_v34 = vpack.c.bf16 %v5816_v3, %v5812_v56  ;;  %16953 = vst [vmem:[#allocation42_spill] sm:$0xff] %v15406_v9  ;;  %v5824_v11 = vld [vmem:[#allocation17 + $0x120] sm:$0xff]  ;;  %v15410_v6 = vpack.c.bf16 %v5825_v27, %v5821_v58 }
 0x9a8   :  { %11345 = vmatpush1.bf16.msra.mxu0 %v15348_v10  ;;  %11377 = vmatpush1.bf16.msra.mxu1 %v15350_v16  ;;  %16949 = vst [vmem:[#allocation31_spill] sm:$0xff] %v15394_v59  ;;  %v15416_v56 = vpack.c.bf16 %v5824_v11, %v5820_v12  ;;  %v15418_v3 = vpack.c.bf16 %v5826_v48, %v5822_v30  ;;  %v5832_v50 = vld [vmem:[#allocation17 + $0x160] sm:$0xff] }
 0x9a9   :  { %11379 = vmatprep.subr.bf16.mxu0 %v15354_v60  ;;  %11411 = vmatprep.subr.bf16.mxu1 %v15356_v28  ;;  %16952 = vst [vmem:[#allocation51_spill] sm:$0xff] %v15404_v34  ;;  %16954 = vst [vmem:[#allocation41_spill] sm:$0xff] %v15410_v6  ;;  %v15428_v12 = vpack.c.bf16 %v5832_v50, %v5828_v46  ;;  %v15430_v11 = vpack.c.bf16 %v5834_v17, %v5830_v49  ;;  %v5836_v30 = vld [vmem:[#allocation17 + $0x180] sm:$0xff]  ;;  %v5850_v17 = vld [vmem:[#allocation17 + $0x1f0] sm:$0xff] }
 0x9aa   :  { %16956 = vst [vmem:[#allocation53_spill] sm:$0xff] %v15416_v56  ;;  %16957 = vst [vmem:[#allocation54_spill] sm:$0xff] %v15418_v3  ;;  %v5840_v48 = vld [vmem:[#allocation17 + $0x1a0] sm:$0xff] }
 0x9ab   :  { %5679 = vmatmul.mubr.f32.vlgmr.msra.gmra.mrb[32].mxu0 %v16811_v41  ;;  %5750 = vmatmul.mubr.f32.vlgmr.msra.gmra.mrb[38].mxu1 %v16811_v41  ;;  %v15440_v46 = vpack.c.bf16 %v5840_v48, %v5836_v30  ;;  %v5844_v49 = vld [vmem:[#allocation17 + $0x1c0] sm:$0xff] }
 0x9ac   :  { %11381 = vmatpush1.bf16.msra.mxu0 %v15364_v20  ;;  %11413 = vmatpush1.bf16.msra.mxu1 %v15366_v33 }
 0x9ad   :  { %11383 = vmatprep.subr.bf16.mxu0 %v15370_v32  ;;  %11415 = vmatprep.subr.bf16.mxu1 %v15372_v57 }
 0x9ae   :  { %5916 = vmatprep.mubr.f32.mxu0 %v16811_v41  ;;  %5987 = vmatprep.mubr.f32.mxu1 %v16811_v41 }
 0x9b0   :  { %11385 = vmatpush1.bf16.msra.mxu0 %v15378_v15  ;;  %11417 = vmatpush1.bf16.msra.mxu1 %v15380_v62 }
 0x9b1   :  { %11387 = vmatprep.subr.bf16.mxu0 %v15384_v39  ;;  %11419 = vmatprep.subr.bf16.mxu1 %v15386_v24  ;;  %v5831_v24 = vld [vmem:[#allocation17 + $0x158] sm:$0xff] }
 0x9b4   :  { %11389 = vmatpush1.bf16.msra.mxu0 %v15392_v44  ;;  %11421 = vmatpush1.bf16.msra.mxu1 %v15394_v59  ;;  %v5833_v44 = vld [vmem:[#allocation17 + $0x168] sm:$0xff]  ;;  %v5835_v59 = vld [vmem:[#allocation17 + $0x178] sm:$0xff] }
 0x9b5   :  { %11391 = vmatprep.subr.bf16.mxu0 %v15398_v63  ;;  %11423 = vmatprep.subr.bf16.mxu1 %v15400_v5  ;;  %v15422_v58 = vpack.c.bf16 %v5833_v44, %v5829_v0  ;;  %v15424_v27 = vpack.c.bf16 %v5835_v59, %v5831_v24  ;;  %v5837_v5 = vld [vmem:[#allocation17 + $0x188] sm:$0xff]  ;;  %v5839_v63 = vld [vmem:[#allocation17 + $0x198] sm:$0xff]  ;;  %v5838_v59 = vld [vmem:[#allocation17 + $0x190] sm:$0xff] }
 0x9b6   :  { %v5842_v0 = vld [vmem:[#allocation17 + $0x1b0] sm:$0xff] }
 0x9b7   :  { %v15442_v50 = vpack.c.bf16 %v5842_v0, %v5838_v59 }
 0x9b8   :  { %11393 = vmatpush1.bf16.msra.mxu0 %v15404_v34  ;;  %11425 = vmatpush1.bf16.msra.mxu1 %v15406_v9  ;;  %v5841_v34 = vld [vmem:[#allocation17 + $0x1a8] sm:$0xff]  ;;  %v5843_v9 = vld [vmem:[#allocation17 + $0x1b8] sm:$0xff] }
 0x9b9   :  { %11395 = vmatprep.subr.bf16.mxu0 %v15410_v6  ;;  %11427 = vmatprep.subr.bf16.mxu1 %v15412_v35  ;;  %v15434_v24 = vpack.c.bf16 %v5841_v34, %v5837_v5  ;;  %v15436_v44 = vpack.c.bf16 %v5843_v9, %v5839_v63  ;;  %v5845_v35 = vld [vmem:[#allocation17 + $0x1c8] sm:$0xff]  ;;  %v5847_v6 = vld [vmem:[#allocation17 + $0x1d8] sm:$0xff]  ;;  %v5848_v34 = vld [vmem:[#allocation17 + $0x1e0] sm:$0xff] }
 0x9ba   :  { %v5846_v9 = vld [vmem:[#allocation17 + $0x1d0] sm:$0xff]  ;;  %v15452_v30 = vpack.c.bf16 %v5848_v34, %v5844_v49 }
 0x9bb   :  { %v15454_v48 = vpack.c.bf16 %v5850_v17, %v5846_v9 }
 0x9bc   :  { %11397 = vmatpush1.bf16.msra.mxu0 %v15416_v56  ;;  %11429 = vmatpush1.bf16.msra.mxu1 %v15418_v3  ;;  %v5849_v56 = vld [vmem:[#allocation17 + $0x1e8] sm:$0xff]  ;;  %v5851_v3 = vld [vmem:[#allocation17 + $0x1f8] sm:$0xff] }
 0x9bd   :  { %11399 = vmatprep.subr.bf16.mxu0 %v15422_v58  ;;  %11431 = vmatprep.subr.bf16.mxu1 %v15424_v27  ;;  %v15446_v63 = vpack.c.bf16 %v5849_v56, %v5845_v35  ;;  %v15448_v5 = vpack.c.bf16 %v5851_v3, %v5847_v6 }
 0x9c0   :  { %11401 = vmatpush1.bf16.msra.mxu0 %v15428_v12  ;;  %11433 = vmatpush1.bf16.msra.mxu1 %v15430_v11 }
 0x9c1   :  { %11403 = vmatprep.subr.bf16.mxu0 %v15434_v24  ;;  %11435 = vmatprep.subr.bf16.mxu1 %v15436_v44 }
 0x9c4   :  { %11405 = vmatpush1.bf16.msra.mxu0 %v15440_v46  ;;  %11437 = vmatpush1.bf16.msra.mxu1 %v15442_v50 }
 0x9c5   :  { %11407 = vmatprep.subr.bf16.mxu0 %v15446_v63  ;;  %11439 = vmatprep.subr.bf16.mxu1 %v15448_v5 }
 0x9c8   :  { %11409 = vmatpush1.bf16.msra.mxu0 %v15452_v30  ;;  %11441 = vmatpush1.bf16.msra.mxu1 %v15454_v48 }
 0x9c9   :  { %11443 = vmatprep.subr.bf16.mxu0 %v15232_v8  ;;  %11475 = vmatprep.subr.bf16.mxu1 %v15234_v29  ;;  %v4858_v8 = vld [vmem:[%s16583_s9] sm:$0xf]  ;;  %v16958_v29 = vld [vmem:[#allocation35_spill] sm:$0xff] }
 0x9cb   :  { %5917 = vmatmul.mubr.f32.vlgmr.msra.gmra.mrb[62].mxu0 %v16811_v41  ;;  %5988 = vmatmul.mubr.f32.vlgmr.msra.gmra.mrb[68].mxu1 %v16811_v41 }
 0x9cc   :  { %11445 = vmatpush1.bf16.msra.mxu0 %v15238_v51  ;;  %11477 = vmatpush1.bf16.msra.mxu1 %v15240_v22  ;;  %v15502_v51 = vrot.slane %v4858_v8, %v16958_v29  ;;  %v16959_v22 = vld [vmem:[#allocation34_spill] sm:$0xff] }
 0x9cd   :  { %11447 = vmatprep.subr.bf16.mxu0 %v15242_v40  ;;  %11479 = vmatprep.subr.bf16.mxu1 %v15244_v43  ;;  %v15505_v40 = vrot.slane %v4858_v8, %v16959_v22 }
 0x9ce   :  { %6156 = vmatprep.mubr.f32.mxu0 %v16811_v41  ;;  %6227 = vmatprep.mubr.f32.mxu1 %v16811_v41 }
 0x9cf   :  { %16960 = vst [vmem:[#allocation56_spill] sm:$0xff] %v15505_v40 }
 0x9d0   :  { %11449 = vmatpush1.bf16.msra.mxu0 %v15252_v7  ;;  %11481 = vmatpush1.bf16.msra.mxu1 %v15254_v23 }
 0x9d1   :  { %11451 = vmatprep.subr.bf16.mxu0 %v15258_v21  ;;  %11483 = vmatprep.subr.bf16.mxu1 %v15260_v36 }
 0x9d4   :  { %11453 = vmatpush1.bf16.msra.mxu0 %v15268_v19  ;;  %11485 = vmatpush1.bf16.msra.mxu1 %v15270_v61 }
 0x9d5   :  { %11455 = vmatprep.subr.bf16.mxu0 %v15274_v13  ;;  %11487 = vmatprep.subr.bf16.mxu1 %v15276_v26  ;;  %v16961_v26 = vld [vmem:[#allocation38_spill] sm:$0xff] }
 0x9d8   :  { %11457 = vmatpush1.bf16.msra.mxu0 %v15284_v42  ;;  %11489 = vmatpush1.bf16.msra.mxu1 %v15286_v37  ;;  %v15510_v42 = vrot.slane %v4858_v8, %v16961_v26 }
 0x9d9   :  { %11459 = vmatprep.subr.bf16.mxu0 %v15290_v18  ;;  %11491 = vmatprep.subr.bf16.mxu1 %v15292_v38  ;;  %v16963_v18 = vld [vmem:[#allocation37_spill] sm:$0xff] }
 0x9da   :  { %16962 = vst [vmem:[#allocation57_spill] sm:$0xff] %v15510_v42  ;;  %v15514_v38 = vrot.slane %v4858_v8, %v16963_v18 }
 0x9dc   :  { %11461 = vmatpush1.bf16.msra.mxu0 %v15300_v54  ;;  %11493 = vmatpush1.bf16.msra.mxu1 %v15302_v55  ;;  %16964 = vst [vmem:[#allocation58_spill] sm:$0xff] %v15514_v38 }
 0x9dd   :  { %11463 = vmatprep.subr.bf16.mxu0 %v15306_v1  ;;  %11495 = vmatprep.subr.bf16.mxu1 %v15308_v52 }
 0x9e0   :  { %11465 = vmatpush1.bf16.msra.mxu0 %v15316_v45  ;;  %11497 = vmatpush1.bf16.msra.mxu1 %v15318_v2 }
 0x9e1   :  { %11467 = vmatprep.subr.bf16.mxu0 %v15322_v31  ;;  %11499 = vmatprep.subr.bf16.mxu1 %v15324_v47  ;;  %v5266_v47 = vld [vmem:[%s16586_s12] sm:$0xf] }
 0x9e2   :  { %v15532_v17 = vrot.slane %v5266_v47, %v16961_v26 }
 0x9e4   :  { %11469 = vmatpush1.bf16.msra.mxu0 %v15332_v25  ;;  %11501 = vmatpush1.bf16.msra.mxu1 %v15334_v53  ;;  %16967 = vst [vmem:[#allocation61_spill] sm:$0xff] %v15532_v17 }
 0x9e5   :  { %11471 = vmatprep.subr.bf16.mxu0 %v15338_v14  ;;  %11503 = vmatprep.subr.bf16.mxu1 %v15340_v4 }
 0x9e8   :  { %11473 = vmatpush1.bf16.msra.mxu0 %v15348_v10  ;;  %11505 = vmatpush1.bf16.msra.mxu1 %v15350_v16  ;;  %v15521_v16 = vrot.slane %v5266_v47, %v16958_v29 }
 0x9e9   :  { %11507 = vmatprep.subr.bf16.mxu0 %v15354_v60  ;;  %11539 = vmatprep.subr.bf16.mxu1 %v15356_v28  ;;  %v15524_v28 = vrot.slane %v5266_v47, %v16959_v22 }
 0x9ea   :  { %16965 = vst [vmem:[#allocation59_spill] sm:$0xff] %v15521_v16 }
 0x9eb   :  { %16966 = vst [vmem:[#allocation60_spill] sm:$0xff] %v15524_v28 }
 0xa7e   :  { %v5680_v43 = vpop.f32.mrb[32].mxu0  ;;  %v5751_v7 = vpop.f32.mrb[38].mxu1 }
 0xa7f   :  { %v12514_v23 = vadd.f32 %v5680_v43, %v15502_v51  ;;  %v5682_v21 = vpop.f32.mrb[33].mxu0  ;;  %v5753_v36 = vpop.f32.mrb[39].mxu1  ;;  %v12530_v55 = vadd.f32 %v5751_v7, %v15514_v38  ;;  %v15536_v43 = vrot.slane %v5266_v47, %v16963_v18  ;;  %v16971_v18 = vld [vmem:[#allocation31_spill] sm:$0xff] }
 0xa80   :  { %v12515_v19 = vadd.f32 %v5682_v21, %v15505_v40  ;;  %v12531_v37 = vadd.f32 %v5753_v36, %v15510_v42 }
 0xa81   :  { %v9841_v61 = vmul.f32 -1.442695, %v12514_v23 }
 0xa82   :  { %v9842_v13 = vmul.f32 -1.442695, %v12515_v19  ;;  %v9843_v54 = vmul.f32 -1.442695, %v12531_v37 }
 0xa83   :  { %12974 = vpow2.f32 %v9841_v61 }
 0xa84   :  { %12976 = vpow2.f32 %v9842_v13 }
 0xa85   :  { %12978 = vpow2.f32 %v9843_v54 }
 0xa86   :  { %12980 = vtanh.f32 %v12530_v55 }
 0xa8d   :  { %v12975_v1 = vpop.eup %12974 }
 0xa8e   :  { %v12977_v52 = vpop.eup %12976  ;;  %v5763_v45 = vadd.f32 1.0, %v12975_v1 }
 0xa8f   :  { %v5769_v2 = vadd.f32 1.0, %v12977_v52  ;;  %v12979_v31 = vpop.eup %12978  ;;  %v16974_v52 = vld [vmem:[#allocation51_spill] sm:$0xff] }
 0xa90   :  { %12982 = vrcp.f32 %v5763_v45  ;;  %v12981_v25 = vpop.eup %12980  ;;  %v5776_v10 = vadd.f32 1.0, %v12979_v31  ;;  %v16977_v31 = vld [vmem:[#allocation43_spill] sm:$0xff] }
 0xa91   :  { %12984 = vrcp.f32 %v5769_v2  ;;  %v16976_v2 = vld [vmem:[#allocation41_spill] sm:$0xff] }
 0xa92   :  { %12986 = vrcp.f32 %v5776_v10  ;;  %v6512_v10 = vld [vmem:[#allocation14 + $0x30] sm:$0xff] }
 0xa9a   :  { %v12983_v53 = vpop.eup %12982 }
 0xa9b   :  { %v12985_v14 = vpop.eup %12984  ;;  %v5780_v4 = vmul.f32 %v12983_v53, %v12981_v25  ;;  %v16978_v53 = vld [vmem:[#allocation53_spill] sm:$0xff] }
 0xa9c   :  { %v5779_v60 = vmul.f32 0.0, %v12985_v14  ;;  %v12987_v7 = vpop.eup %12986  ;;  %v16979_v14 = vld [vmem:[#allocation54_spill] sm:$0xff] }
 0xa9e   :  { %v15526_v6 = vadd.f32 %v5780_v4, %v5779_v60  ;;  %v5918_v35 = vpop.f32.mrb[62].mxu0  ;;  %v5989_v56 = vpop.f32.mrb[68].mxu1  ;;  %v6508_v4 = vld [vmem:[#allocation14 + $0x10] sm:$0xff] }
 0xa9f   :  { %v12560_v3 = vadd.f32 %v5918_v35, %v15521_v16  ;;  %v5920_v59 = vpop.f32.mrb[63].mxu0  ;;  %v5991_v0 = vpop.f32.mrb[69].mxu1  ;;  %v12576_v36 = vadd.f32 %v5989_v56, %v15536_v43  ;;  %v15591_v60 = vpack.c.bf16 %v6512_v10, %v6508_v4  ;;  %v6515_v35 = vld [vmem:[#allocation14 + $0x48] sm:$0xff] }
 0xaa0   :  { %12988 = vtanh.f32 %v15526_v6  ;;  %v12561_v49 = vadd.f32 %v5920_v59, %v15524_v28  ;;  %v12577_v8 = vadd.f32 %v5991_v0, %v15532_v17  ;;  %v6519_v56 = vld [vmem:[#allocation14 + $0x68] sm:$0xff]  ;;  %v6521_v0 = vld [vmem:[#allocation14 + $0x78] sm:$0xff] }
 0xaa1   :  { %v9844_v34 = vmul.f32 -1.442695, %v12560_v3  ;;  %v6517_v3 = vld [vmem:[#allocation14 + $0x58] sm:$0xff]  ;;  %v15596_v59 = vpack.c.bf16 %v6519_v56, %v6515_v35  ;;  %v6540_v35 = vld [vmem:[#allocation14 + $0x110] sm:$0xff] }
 0xaa2   :  { %v9845_v9 = vmul.f32 -1.442695, %v12561_v49  ;;  %v9846_v21 = vmul.f32 -1.442695, %v12577_v8  ;;  %v6514_v49 = vld [vmem:[#allocation14 + $0x40] sm:$0xff]  ;;  %v6544_v56 = vld [vmem:[#allocation14 + $0x130] sm:$0xff] }
 0xaa3   :  { %12990 = vpow2.f32 %v9844_v34  ;;  %v6518_v34 = vld [vmem:[#allocation14 + $0x60] sm:$0xff] }
 0xaa4   :  { %12992 = vpow2.f32 %v9845_v9  ;;  %v15598_v9 = vpack.c.bf16 %v6521_v0, %v6517_v3  ;;  %v15600_v8 = vpack.c.bf16 %v6518_v34, %v6514_v49  ;;  %v15639_v3 = vpack.c.bf16 %v6544_v56, %v6540_v35  ;;  %v6547_v0 = vld [vmem:[#allocation14 + $0x148] sm:$0xff]  ;;  %v6549_v34 = vld [vmem:[#allocation14 + $0x158] sm:$0xff] }
 0xaa5   :  { %12994 = vpow2.f32 %v9846_v21  ;;  %v6551_v49 = vld [vmem:[#allocation14 + $0x168] sm:$0xff]  ;;  %v6569_v56 = vld [vmem:[#allocation14 + $0x1f8] sm:$0xff] }
 0xaa6   :  { %12996 = vtanh.f32 %v12576_v36  ;;  %v6523_v36 = vld [vmem:[#allocation14 + $0x88] sm:$0xff] }
 0xaaa   :  { %v12989_v23 = vpop.eup %12988 }
 0xaab   :  { %v15539_v19 = vmul.f32 %v12989_v23, %v12987_v7  ;;  %v6516_v7 = vld [vmem:[#allocation14 + $0x50] sm:$0xff] }
 0xaac   :  { %v6520_v23 = vld [vmem:[#allocation14 + $0x70] sm:$0xff] }
 0xaad   :  { %16968 = vst [vmem:[#allocation63_spill] sm:$0xff] %v15539_v19  ;;  %v12991_v61 = vpop.eup %12990  ;;  %6157 = vmatmul.mubr.f32.vlgmr.msra.gmra.mrb[34].mxu0 %v15539_v19  ;;  %6228 = vmatmul.mubr.f32.vlgmr.msra.gmra.mrb[40].mxu1 %v15539_v19  ;;  %v15603_v21 = vpack.c.bf16 %v6520_v23, %v6516_v7  ;;  %v15644_v7 = vpack.c.bf16 %v6551_v49, %v6547_v0  ;;  %v6553_v23 = vld [vmem:[#allocation14 + $0x178] sm:$0xff]  ;;  %v6562_v0 = vld [vmem:[#allocation14 + $0x1c0] sm:$0xff] }
 0xaae   :  { %v12993_v13 = vpop.eup %12992  ;;  %v6001_v26 = vadd.f32 1.0, %v12991_v61  ;;  %11509 = vmatpush1.bf16.msra.mxu0 %v15364_v20  ;;  %11541 = vmatpush1.bf16.msra.mxu1 %v15366_v33  ;;  %v16969_v20 = vld [vmem:[#allocation30_spill] sm:$0xff]  ;;  %v16970_v33 = vld [vmem:[#allocation36_spill] sm:$0xff]  ;;  %v6527_v61 = vld [vmem:[#allocation14 + $0xa8] sm:$0xff] }
 0xaaf   :  { %v6007_v37 = vadd.f32 1.0, %v12993_v13  ;;  %11511 = vmatprep.subr.bf16.mxu0 %v15370_v32  ;;  %11543 = vmatprep.subr.bf16.mxu1 %v15372_v57  ;;  %v16972_v32 = vld [vmem:[#allocation40_spill] sm:$0xff]  ;;  %v16973_v57 = vld [vmem:[#allocation39_spill] sm:$0xff]  ;;  %v12995_v54 = vpop.eup %12994 }
 0xab0   :  { %12998 = vrcp.f32 %v6001_v26  ;;  %6394 = vmatprep.mubr.f32.mxu0 %v16811_v41  ;;  %6465 = vmatprep.mubr.f32.mxu1 %v16811_v41  ;;  %v12997_v55 = vpop.eup %12996  ;;  %v6525_v13 = vld [vmem:[#allocation14 + $0x98] sm:$0xff]  ;;  %v15608_v26 = vpack.c.bf16 %v6527_v61, %v6523_v36  ;;  %v6546_v36 = vld [vmem:[#allocation14 + $0x140] sm:$0xff] }
 0xab1   :  { %13000 = vrcp.f32 %v6007_v37  ;;  %v6529_v37 = vld [vmem:[#allocation14 + $0xb8] sm:$0xff]  ;;  %v6550_v61 = vld [vmem:[#allocation14 + $0x160] sm:$0xff] }
 0xab2   :  { %11513 = vmatpush1.bf16.msra.mxu0 %v15378_v15  ;;  %11545 = vmatpush1.bf16.msra.mxu1 %v15380_v62  ;;  %v16975_v15 = vld [vmem:[#allocation42_spill] sm:$0xff]  ;;  %v6566_v49 = vld [vmem:[#allocation14 + $0x1e0] sm:$0xff] }
 0xab3   :  { %11515 = vmatprep.subr.bf16.mxu0 %v15384_v39  ;;  %11547 = vmatprep.subr.bf16.mxu1 %v16969_v20  ;;  %v6014_v39 = vadd.f32 1.0, %v12995_v54  ;;  %v6522_v20 = vld [vmem:[#allocation14 + $0x80] sm:$0xff]  ;;  %v6528_v54 = vld [vmem:[#allocation14 + $0xb0] sm:$0xff] }
 0xab5   :  { %13002 = vrcp.f32 %v6014_v39  ;;  %v6530_v39 = vld [vmem:[#allocation14 + $0xc0] sm:$0xff] }
 0xab6   :  { %11517 = vmatpush1.bf16.msra.mxu0 %v16970_v33  ;;  %11549 = vmatpush1.bf16.msra.mxu1 %v16971_v18  ;;  %v6526_v33 = vld [vmem:[#allocation14 + $0xa0] sm:$0xff]  ;;  %v15610_v18 = vpack.c.bf16 %v6529_v37, %v6525_v13  ;;  %v15646_v13 = vpack.c.bf16 %v6553_v23, %v6549_v34  ;;  %v15648_v37 = vpack.c.bf16 %v6550_v61, %v6546_v36  ;;  %v6564_v36 = vld [vmem:[#allocation14 + $0x1d0] sm:$0xff] }
 0xab7   :  { %11519 = vmatprep.subr.bf16.mxu0 %v16972_v32  ;;  %11551 = vmatprep.subr.bf16.mxu1 %v16973_v57  ;;  %v15612_v32 = vpack.c.bf16 %v6526_v33, %v6522_v20  ;;  %v6524_v57 = vld [vmem:[#allocation14 + $0x90] sm:$0xff]  ;;  %v15672_v23 = vpack.c.bf16 %v6566_v49, %v6562_v0 }
 0xab8   :  { %v6548_v20 = vld [vmem:[#allocation14 + $0x150] sm:$0xff] }
 0xab9   :  { %v6552_v33 = vld [vmem:[#allocation14 + $0x170] sm:$0xff] }
 0xaba   :  { %v12999_v1 = vpop.eup %12998  ;;  %11521 = vmatpush1.bf16.msra.mxu0 %v16974_v52  ;;  %11553 = vmatpush1.bf16.msra.mxu1 %v16975_v15  ;;  %v6535_v52 = vld [vmem:[#allocation14 + $0xe8] sm:$0xff]  ;;  %v6533_v15 = vld [vmem:[#allocation14 + $0xd8] sm:$0xff]  ;;  %v6568_v61 = vld [vmem:[#allocation14 + $0x1f0] sm:$0xff] }
 0xabb   :  { %v13001_v62 = vpop.eup %13000  ;;  %v6018_v45 = vmul.f32 %v12999_v1, %v12997_v55  ;;  %11523 = vmatprep.subr.bf16.mxu0 %v16976_v2  ;;  %11555 = vmatprep.subr.bf16.mxu1 %v16977_v31  ;;  %v15615_v55 = vpack.c.bf16 %v6528_v54, %v6524_v57  ;;  %v6531_v1 = vld [vmem:[#allocation14 + $0xc8] sm:$0xff]  ;;  %v6534_v2 = vld [vmem:[#allocation14 + $0xe0] sm:$0xff]  ;;  %v15651_v57 = vpack.c.bf16 %v6552_v33, %v6548_v20 }
 0xabc   :  { %v6017_v47 = vmul.f32 0.0, %v13001_v62  ;;  %v15620_v62 = vpack.c.bf16 %v6535_v52, %v6531_v1  ;;  %v6555_v54 = vld [vmem:[#allocation14 + $0x188] sm:$0xff]  ;;  %v6557_v52 = vld [vmem:[#allocation14 + $0x198] sm:$0xff]  ;;  %v15675_v20 = vpack.c.bf16 %v6568_v61, %v6564_v36 }
 0xabd   :  { %v6559_v1 = vld [vmem:[#allocation14 + $0x1a8] sm:$0xff] }
 0xabe   :  { %v15561_v25 = vadd.f32 %v6018_v45, %v6017_v47  ;;  %11525 = vmatpush1.bf16.msra.mxu0 %v16978_v53  ;;  %11557 = vmatpush1.bf16.msra.mxu1 %v16979_v14  ;;  %v6537_v45 = vld [vmem:[#allocation14 + $0xf8] sm:$0xff]  ;;  %v15624_v47 = vpack.c.bf16 %v6534_v2, %v6530_v39  ;;  %v6532_v53 = vld [vmem:[#allocation14 + $0xd0] sm:$0xff]  ;;  %v6554_v39 = vld [vmem:[#allocation14 + $0x180] sm:$0xff] }
 0xabf   :  { %11527 = vmatprep.subr.bf16.mxu0 %v15422_v58  ;;  %11559 = vmatprep.subr.bf16.mxu1 %v15424_v27  ;;  %v13003_v58 = vpop.eup %13002  ;;  %v15622_v31 = vpack.c.bf16 %v6537_v45, %v6533_v15  ;;  %v6536_v14 = vld [vmem:[#allocation14 + $0xf0] sm:$0xff]  ;;  %v15656_v15 = vpack.c.bf16 %v6559_v1, %v6555_v54  ;;  %v6561_v45 = vld [vmem:[#allocation14 + $0x1b8] sm:$0xff]  ;;  %v6558_v2 = vld [vmem:[#allocation14 + $0x1a0] sm:$0xff] }
 0xac0   :  { %13004 = vtanh.f32 %v15561_v25  ;;  %v6745_v33 = vld [vmem:[#allocation17 + $0x8] sm:$0xff]  ;;  %v6747_v1 = vld [vmem:[#allocation17 + $0x18] sm:$0xff] }
 0xac1   :  { %v6749_v54 = vld [vmem:[#allocation17 + $0x28] sm:$0xff] }
 0xac2   :  { %11529 = vmatpush1.bf16.msra.mxu0 %v15428_v12  ;;  %11561 = vmatpush1.bf16.msra.mxu1 %v15430_v11  ;;  %v6507_v11 = vld [vmem:[#allocation14 + $0x8] sm:$0xff] }
 0xac3   :  { %11531 = vmatprep.subr.bf16.mxu0 %v15434_v24  ;;  %11563 = vmatprep.subr.bf16.mxu1 %v15436_v44  ;;  %v6511_v24 = vld [vmem:[#allocation14 + $0x28] sm:$0xff]  ;;  %v6509_v44 = vld [vmem:[#allocation14 + $0x18] sm:$0xff] }
 0xac6   :  { %11533 = vmatpush1.bf16.msra.mxu0 %v15440_v46  ;;  %11565 = vmatpush1.bf16.msra.mxu1 %v15442_v50  ;;  %v15584_v46 = vpack.c.bf16 %v6511_v24, %v6507_v11  ;;  %v6513_v50 = vld [vmem:[#allocation14 + $0x38] sm:$0xff]  ;;  %v6543_v11 = vld [vmem:[#allocation14 + $0x128] sm:$0xff] }
 0xac7   :  { %11535 = vmatprep.subr.bf16.mxu0 %v15446_v63  ;;  %11567 = vmatprep.subr.bf16.mxu1 %v15448_v5  ;;  %v6506_v63 = vld [vmem:[#allocation14] sm:$0xff]  ;;  %v6541_v24 = vld [vmem:[#allocation14 + $0x118] sm:$0xff] }
 0xac8   :  { %v6510_v5 = vld [vmem:[#allocation14 + $0x20] sm:$0xff] }
 0xaca   :  { %v13005_v27 = vpop.eup %13004  ;;  %11537 = vmatpush1.bf16.msra.mxu0 %v15452_v30  ;;  %11569 = vmatpush1.bf16.msra.mxu1 %v15454_v48  ;;  %v15586_v30 = vpack.c.bf16 %v6513_v50, %v6509_v44  ;;  %v15588_v48 = vpack.c.bf16 %v6510_v5, %v6506_v63  ;;  %v6545_v50 = vld [vmem:[#allocation14 + $0x138] sm:$0xff]  ;;  %v6538_v63 = vld [vmem:[#allocation14 + $0x100] sm:$0xff] }
 0xacb   :  { %v15578_v12 = vmul.f32 %v13005_v27, %v13003_v58  ;;  %11571 = vmatprep.subr.bf16.mxu0 %v15584_v46  ;;  %v15627_v58 = vpack.c.bf16 %v6536_v14, %v6532_v53  ;;  %v6539_v27 = vld [vmem:[#allocation14 + $0x108] sm:$0xff]  ;;  %v6542_v5 = vld [vmem:[#allocation14 + $0x120] sm:$0xff]  ;;  %v15634_v4 = vpack.c.bf16 %v6545_v50, %v6541_v24  ;;  %v15658_v53 = vpack.c.bf16 %v6561_v45, %v6557_v52  ;;  %v6751_v45 = vld [vmem:[#allocation17 + $0x38] sm:$0xff] }
 0xacc   :  { %11603 = vmatprep.subr.bf16.mxu1 %v15586_v30  ;;  %v15632_v44 = vpack.c.bf16 %v6543_v11, %v6539_v27  ;;  %v15636_v10 = vpack.c.bf16 %v6542_v5, %v6538_v63  ;;  %v15660_v14 = vpack.c.bf16 %v6558_v2, %v6554_v39  ;;  %v6556_v27 = vld [vmem:[#allocation14 + $0x190] sm:$0xff]  ;;  %v6563_v50 = vld [vmem:[#allocation14 + $0x1c8] sm:$0xff]  ;;  %v6565_v5 = vld [vmem:[#allocation14 + $0x1d8] sm:$0xff]  ;;  %v15680_v52 = vpack.c.bf16 %v6749_v54, %v6745_v33 }
 0xacd   :  { %16980 = vst [vmem:[#allocation64_spill] sm:$0xff] %v15578_v12  ;;  %6395 = vmatmul.mubr.f32.vlgmr.msra.gmra.mrb[60].mxu0 %v15578_v12  ;;  %6466 = vmatmul.mubr.f32.vlgmr.msra.gmra.mrb[66].mxu1 %v15578_v12  ;;  %v6560_v11 = vld [vmem:[#allocation14 + $0x1b0] sm:$0xff]  ;;  %v6567_v63 = vld [vmem:[#allocation14 + $0x1e8] sm:$0xff]  ;;  %v15670_v34 = vpack.c.bf16 %v6569_v56, %v6565_v5  ;;  %v15682_v39 = vpack.c.bf16 %v6751_v45, %v6747_v1 }
 0xace   :  { %6634 = vmatprep.mubr.f32.mxu0 %v16811_v41  ;;  %6705 = vmatprep.mubr.f32.mxu1 %v16811_v41  ;;  %v15663_v24 = vpack.c.bf16 %v6560_v11, %v6556_v27  ;;  %v15668_v35 = vpack.c.bf16 %v6567_v63, %v6563_v50 }
 0xacf   :  { %11573 = vmatpush1.bf16.msra.mxu0 %v15588_v48  ;;  %11605 = vmatpush1.bf16.msra.mxu1 %v15591_v60 }
 0xad0   :  { %11575 = vmatprep.subr.bf16.mxu0 %v15596_v59  ;;  %11607 = vmatprep.subr.bf16.mxu1 %v15598_v9 }
 0xad3   :  { %11577 = vmatpush1.bf16.msra.mxu0 %v15600_v8  ;;  %11609 = vmatpush1.bf16.msra.mxu1 %v15603_v21 }
 0xad4   :  { %11579 = vmatprep.subr.bf16.mxu0 %v15608_v26  ;;  %11611 = vmatprep.subr.bf16.mxu1 %v15610_v18 }
 0xad7   :  { %11581 = vmatpush1.bf16.msra.mxu0 %v15612_v32  ;;  %11613 = vmatpush1.bf16.msra.mxu1 %v15615_v55 }
 0xad8   :  { %11583 = vmatprep.subr.bf16.mxu0 %v15620_v62  ;;  %11615 = vmatprep.subr.bf16.mxu1 %v15622_v31 }
 0xadb   :  { %11585 = vmatpush1.bf16.msra.mxu0 %v15624_v47  ;;  %11617 = vmatpush1.bf16.msra.mxu1 %v15627_v58 }
 0xadc   :  { %11587 = vmatprep.subr.bf16.mxu0 %v15632_v44  ;;  %11619 = vmatprep.subr.bf16.mxu1 %v15634_v4 }
 0xadf   :  { %11589 = vmatpush1.bf16.msra.mxu0 %v15636_v10  ;;  %11621 = vmatpush1.bf16.msra.mxu1 %v15639_v3 }
 0xae0   :  { %11591 = vmatprep.subr.bf16.mxu0 %v15644_v7  ;;  %11623 = vmatprep.subr.bf16.mxu1 %v15646_v13 }
 0xae3   :  { %11593 = vmatpush1.bf16.msra.mxu0 %v15648_v37  ;;  %11625 = vmatpush1.bf16.msra.mxu1 %v15651_v57 }
 0xae4   :  { %11595 = vmatprep.subr.bf16.mxu0 %v15656_v15  ;;  %11627 = vmatprep.subr.bf16.mxu1 %v15658_v53 }
 0xae7   :  { %11597 = vmatpush1.bf16.msra.mxu0 %v15660_v14  ;;  %11629 = vmatpush1.bf16.msra.mxu1 %v15663_v24 }
 0xae8   :  { %11599 = vmatprep.subr.bf16.mxu0 %v15668_v35  ;;  %11631 = vmatprep.subr.bf16.mxu1 %v15670_v34 }
 0xaeb   :  { %11601 = vmatpush1.bf16.msra.mxu0 %v15672_v23  ;;  %11633 = vmatpush1.bf16.msra.mxu1 %v15675_v20 }
 0xaec   :  { %11635 = vmatprep.subr.bf16.mxu0 %v15680_v52  ;;  %11667 = vmatprep.subr.bf16.mxu1 %v15682_v39 }
 0xb80   :  { %v6158_v2 = vpop.f32.mrb[34].mxu0  ;;  %v6229_v27 = vpop.f32.mrb[40].mxu1 }
 0xb81   :  { %v12516_v11 = vadd.f32 %v6158_v2, %v15502_v51  ;;  %v6160_v50 = vpop.f32.mrb[35].mxu0  ;;  %v6231_v63 = vpop.f32.mrb[41].mxu1  ;;  %v12532_v61 = vadd.f32 %v6229_v27, %v15514_v38  ;;  %v6761_v38 = vld [vmem:[#allocation17 + $0x88] sm:$0xff] }
 0xb82   :  { %v12517_v5 = vadd.f32 %v6160_v50, %v15505_v40  ;;  %v12533_v49 = vadd.f32 %v6231_v63, %v15510_v42  ;;  %v6765_v42 = vld [vmem:[#allocation17 + $0xa8] sm:$0xff]  ;;  %v6763_v40 = vld [vmem:[#allocation17 + $0x98] sm:$0xff] }
 0xb83   :  { %v9847_v56 = vmul.f32 -1.442695, %v12516_v11 }
 0xb84   :  { %v9848_v0 = vmul.f32 -1.442695, %v12517_v5  ;;  %v9849_v36 = vmul.f32 -1.442695, %v12533_v49 }
 0xb85   :  { %13006 = vpow2.f32 %v9847_v56 }
 0xb86   :  { %13008 = vpow2.f32 %v9848_v0 }
 0xb87   :  { %13010 = vpow2.f32 %v9849_v36 }
 0xb88   :  { %13012 = vtanh.f32 %v12532_v61 }
 0xb8f   :  { %v13007_v33 = vpop.eup %13006 }
 0xb90   :  { %v13009_v54 = vpop.eup %13008  ;;  %v6241_v1 = vadd.f32 1.0, %v13007_v33 }
 0xb91   :  { %v6247_v45 = vadd.f32 1.0, %v13009_v54  ;;  %v13011_v2 = vpop.eup %13010 }
 0xb92   :  { %13014 = vrcp.f32 %v6241_v1  ;;  %v13013_v22 = vpop.eup %13012  ;;  %v6254_v56 = vadd.f32 1.0, %v13011_v2  ;;  %v6748_v2 = vld [vmem:[#allocation17 + $0x20] sm:$0xff] }
 0xb93   :  { %13016 = vrcp.f32 %v6247_v45 }
 0xb94   :  { %13018 = vrcp.f32 %v6254_v56  ;;  %v6757_v56 = vld [vmem:[#allocation17 + $0x68] sm:$0xff] }
 0xb9c   :  { %v13015_v50 = vpop.eup %13014 }
 0xb9d   :  { %v13017_v11 = vpop.eup %13016  ;;  %v6258_v5 = vmul.f32 %v13015_v50, %v13013_v22  ;;  %v6746_v50 = vld [vmem:[#allocation17 + $0x10] sm:$0xff] }
 0xb9e   :  { %v6257_v0 = vmul.f32 %v13017_v11, %v15526_v6  ;;  %v6744_v6 = vld [vmem:[#allocation17] sm:$0xff]  ;;  %v6750_v11 = vld [vmem:[#allocation17 + $0x30] sm:$0xff]  ;;  %v13019_v29 = vpop.eup %13018 }
 0xba0   :  { %v15691_v63 = vadd.f32 %v6258_v5, %v6257_v0  ;;  %v6396_v49 = vpop.f32.mrb[60].mxu0  ;;  %v6467_v27 = vpop.f32.mrb[66].mxu1  ;;  %v6753_v5 = vld [vmem:[#allocation17 + $0x48] sm:$0xff]  ;;  %v6755_v0 = vld [vmem:[#allocation17 + $0x58] sm:$0xff] }
 0xba1   :  { %v12558_v33 = vadd.f32 %v6396_v49, %v15521_v16  ;;  %v6398_v36 = vpop.f32.mrb[61].mxu0  ;;  %v6469_v61 = vpop.f32.mrb[67].mxu1  ;;  %v6759_v49 = vld [vmem:[#allocation17 + $0x78] sm:$0xff]  ;;  %v6754_v16 = vld [vmem:[#allocation17 + $0x50] sm:$0xff] }
 0xba2   :  { %16981 = vst [vmem:[#allocation65_spill] sm:$0xff] %v15691_v63  ;;  %v12559_v54 = vadd.f32 %v6398_v36, %v15524_v28  ;;  %13020 = vtanh.f32 %v15691_v63  ;;  %v12575_v22 = vadd.f32 %v6469_v61, %v15532_v17  ;;  %v15697_v36 = vpack.c.bf16 %v6748_v2, %v6744_v6  ;;  %v6758_v63 = vld [vmem:[#allocation17 + $0x70] sm:$0xff] }
 0xba3   :  { %v9850_v1 = vmul.f32 -1.442695, %v12558_v33  ;;  %v15699_v28 = vpack.c.bf16 %v6750_v11, %v6746_v50  ;;  %v6752_v33 = vld [vmem:[#allocation17 + $0x40] sm:$0xff]  ;;  %v15706_v17 = vpack.c.bf16 %v6759_v49, %v6755_v0  ;;  %v6766_v49 = vld [vmem:[#allocation17 + $0xb0] sm:$0xff] }
 0xba4   :  { %v9851_v45 = vmul.f32 -1.442695, %v12559_v54  ;;  %v9852_v19 = vmul.f32 -1.442695, %v12575_v22  ;;  %16982 = vst [vmem:[#allocation28_spill] sm:$0xff] %v15697_v36  ;;  %v6756_v54 = vld [vmem:[#allocation17 + $0x60] sm:$0xff] }
 0xba5   :  { %13022 = vpow2.f32 %v9850_v1  ;;  %16983 = vst [vmem:[#allocation29_spill] sm:$0xff] %v15699_v28  ;;  %v12574_v1 = vadd.f32 %v6467_v27, %v15536_v43  ;;  %16986 = vst [vmem:[#allocation33_spill] sm:$0xff] %v15706_v17  ;;  %v6767_v22 = vld [vmem:[#allocation17 + $0xb8] sm:$0xff]  ;;  %v6760_v27 = vld [vmem:[#allocation17 + $0x80] sm:$0xff] }
 0xba6   :  { %13024 = vpow2.f32 %v9851_v45  ;;  %v15704_v45 = vpack.c.bf16 %v6757_v56, %v6753_v5  ;;  %v6764_v11 = vld [vmem:[#allocation17 + $0xa0] sm:$0xff]  ;;  %v15718_v56 = vpack.c.bf16 %v6765_v42, %v6761_v38  ;;  %v15720_v0 = vpack.c.bf16 %v6767_v22, %v6763_v40 }
 0xba7   :  { %13026 = vpow2.f32 %v9852_v19  ;;  %v6762_v19 = vld [vmem:[#allocation17 + $0x90] sm:$0xff]  ;;  %v15726_v42 = vpack.c.bf16 %v6764_v11, %v6760_v27  ;;  %v6768_v38 = vld [vmem:[#allocation17 + $0xc0] sm:$0xff] }
 0xba8   :  { %16985 = vst [vmem:[#allocation32_spill] sm:$0xff] %v15704_v45  ;;  %13028 = vtanh.f32 %v12574_v1  ;;  %16989 = vst [vmem:[#allocation46_spill] sm:$0xff] %v15718_v56  ;;  %v15728_v40 = vpack.c.bf16 %v6766_v49, %v6762_v19  ;;  %v6776_v19 = vld [vmem:[#allocation17 + $0x100] sm:$0xff] }
 0xba9   :  { %16990 = vst [vmem:[#allocation50_spill] sm:$0xff] %v15720_v0  ;;  %16991 = vst [vmem:[#allocation52_spill] sm:$0xff] %v15726_v42  ;;  %v6780_v49 = vld [vmem:[#allocation17 + $0x120] sm:$0xff] }
 0xbaa   :  { %16992 = vst [vmem:[#allocation66_spill] sm:$0xff] %v15728_v40 }
 0xbac   :  { %v13021_v12 = vpop.eup %13020 }
 0xbad   :  { %v15702_v61 = vmul.f32 %v13021_v12, %v13019_v29  ;;  %v15712_v29 = vpack.c.bf16 %v6756_v54, %v6752_v33  ;;  %v15714_v12 = vpack.c.bf16 %v6758_v63, %v6754_v16  ;;  %v6773_v33 = vld [vmem:[#allocation17 + $0xe8] sm:$0xff]  ;;  %v6771_v54 = vld [vmem:[#allocation17 + $0xd8] sm:$0xff]  ;;  %v6772_v63 = vld [vmem:[#allocation17 + $0xe0] sm:$0xff] }
 0xbae   :  { %v6775_v16 = vld [vmem:[#allocation17 + $0xf8] sm:$0xff]  ;;  %v15738_v27 = vpack.c.bf16 %v6772_v63, %v6768_v38 }
 0xbaf   :  { %16984 = vst [vmem:[#allocation67_spill] sm:$0xff] %v15702_v61  ;;  %v13023_v6 = vpop.eup %13022  ;;  %6635 = vmatmul.mubr.f32.vlgmr.msra.gmra.mrb[36].mxu0 %v15702_v61  ;;  %6706 = vmatmul.mubr.f32.vlgmr.msra.gmra.mrb[42].mxu1 %v15702_v61  ;;  %16987 = vst [vmem:[#allocation44_spill] sm:$0xff] %v15712_v29  ;;  %v15734_v22 = vpack.c.bf16 %v6775_v16, %v6771_v54  ;;  %v6781_v61 = vld [vmem:[#allocation17 + $0x128] sm:$0xff]  ;;  %v6778_v54 = vld [vmem:[#allocation17 + $0x110] sm:$0xff] }
 0xbb0   :  { %v13025_v2 = vpop.eup %13024  ;;  %v6479_v50 = vadd.f32 1.0, %v13023_v6  ;;  %11637 = vmatpush1.bf16.msra.mxu0 %v15697_v36  ;;  %11669 = vmatpush1.bf16.msra.mxu1 %v15699_v28  ;;  %16988 = vst [vmem:[#allocation49_spill] sm:$0xff] %v15714_v12  ;;  %v6769_v6 = vld [vmem:[#allocation17 + $0xc8] sm:$0xff]  ;;  %16995 = vst [vmem:[#allocation55_spill] sm:$0xff] %v15738_v27  ;;  %v6782_v16 = vld [vmem:[#allocation17 + $0x130] sm:$0xff] }
 0xbb1   :  { %v6485_v5 = vadd.f32 1.0, %v13025_v2  ;;  %11639 = vmatprep.subr.bf16.mxu0 %v15704_v45  ;;  %11671 = vmatprep.subr.bf16.mxu1 %v15706_v17  ;;  %v15732_v1 = vpack.c.bf16 %v6773_v33, %v6769_v6  ;;  %16994 = vst [vmem:[#allocation47_spill] sm:$0xff] %v15734_v22  ;;  %v6770_v2 = vld [vmem:[#allocation17 + $0xd0] sm:$0xff]  ;;  %v6791_v38 = vld [vmem:[#allocation17 + $0x178] sm:$0xff] }
 0xbb2   :  { %13030 = vrcp.f32 %v6479_v50  ;;  %6872 = vmatprep.mubr.f32.mxu0 %v16811_v41  ;;  %6943 = vmatprep.mubr.f32.mxu1 %v16811_v41  ;;  %v6774_v50 = vld [vmem:[#allocation17 + $0xf0] sm:$0xff] }
 0xbb3   :  { %13032 = vrcp.f32 %v6485_v5  ;;  %16993 = vst [vmem:[#allocation48_spill] sm:$0xff] %v15732_v1  ;;  %v6777_v5 = vld [vmem:[#allocation17 + $0x108] sm:$0xff]  ;;  %v15740_v11 = vpack.c.bf16 %v6774_v50, %v6770_v2  ;;  %v15750_v50 = vpack.c.bf16 %v6780_v49, %v6776_v19  ;;  %v6790_v28 = vld [vmem:[#allocation17 + $0x170] sm:$0xff] }
 0xbb4   :  { %11641 = vmatpush1.bf16.msra.mxu0 %v15712_v29  ;;  %11673 = vmatpush1.bf16.msra.mxu1 %v15714_v12  ;;  %v6779_v29 = vld [vmem:[#allocation17 + $0x118] sm:$0xff]  ;;  %v15744_v6 = vpack.c.bf16 %v6781_v61, %v6777_v5  ;;  %v6784_v61 = vld [vmem:[#allocation17 + $0x140] sm:$0xff]  ;;  %v6797_v49 = vld [vmem:[#allocation17 + $0x1a8] sm:$0xff] }
 0xbb5   :  { %11643 = vmatprep.subr.bf16.mxu0 %v15718_v56  ;;  %11675 = vmatprep.subr.bf16.mxu1 %v15720_v0  ;;  %v6783_v12 = vld [vmem:[#allocation17 + $0x138] sm:$0xff]  ;;  %16996 = vst [vmem:[#allocation62_spill] sm:$0xff] %v15740_v11  ;;  %v6785_v0 = vld [vmem:[#allocation17 + $0x148] sm:$0xff] }
 0xbb6   :  { %v15746_v33 = vpack.c.bf16 %v6783_v12, %v6779_v29  ;;  %v6789_v56 = vld [vmem:[#allocation17 + $0x168] sm:$0xff]  ;;  %v6788_v29 = vld [vmem:[#allocation17 + $0x160] sm:$0xff] }
 0xbb7   :  { %v15756_v17 = vpack.c.bf16 %v6789_v56, %v6785_v0  ;;  %v6792_v0 = vld [vmem:[#allocation17 + $0x180] sm:$0xff] }
 0xbb8   :  { %11645 = vmatpush1.bf16.msra.mxu0 %v15726_v42  ;;  %11677 = vmatpush1.bf16.msra.mxu1 %v15728_v40  ;;  %v13027_v42 = vpop.eup %13026  ;;  %v6787_v40 = vld [vmem:[#allocation17 + $0x158] sm:$0xff] }
 0xbb9   :  { %11647 = vmatprep.subr.bf16.mxu0 %v15732_v1  ;;  %11679 = vmatprep.subr.bf16.mxu1 %v15734_v22  ;;  %v13029_v63 = vpop.eup %13028  ;;  %v15752_v22 = vpack.c.bf16 %v6782_v16, %v6778_v54  ;;  %v6492_v1 = vadd.f32 1.0, %v13027_v42  ;;  %v15758_v45 = vpack.c.bf16 %v6791_v38, %v6787_v40  ;;  %v6795_v54 = vld [vmem:[#allocation17 + $0x198] sm:$0xff]  ;;  %v15765_v42 = vpack.c.bf16 %v6788_v29, %v6784_v61  ;;  %v6796_v40 = vld [vmem:[#allocation17 + $0x1a0] sm:$0xff] }
 0xbba   :  { %v6799_v16 = vld [vmem:[#allocation17 + $0x1b8] sm:$0xff] }
 0xbbb   :  { %13034 = vrcp.f32 %v6492_v1  ;;  %v15773_v38 = vpack.c.bf16 %v6799_v16, %v6795_v54  ;;  %v6807_v61 = vld [vmem:[#allocation17 + $0x1f8] sm:$0xff]  ;;  %v6802_v54 = vld [vmem:[#allocation17 + $0x1d0] sm:$0xff] }
 0xbbc   :  { %v13031_v2 = vpop.eup %13030  ;;  %11649 = vmatpush1.bf16.msra.mxu0 %v15738_v27  ;;  %11681 = vmatpush1.bf16.msra.mxu1 %v15740_v11  ;;  %v6786_v27 = vld [vmem:[#allocation17 + $0x150] sm:$0xff]  ;;  %v6793_v11 = vld [vmem:[#allocation17 + $0x188] sm:$0xff] }
 0xbbd   :  { %v13033_v12 = vpop.eup %13032  ;;  %v6496_v5 = vmul.f32 %v13031_v2, %v13029_v63  ;;  %11651 = vmatprep.subr.bf16.mxu0 %v15744_v6  ;;  %11683 = vmatprep.subr.bf16.mxu1 %v15746_v33  ;;  %v15767_v56 = vpack.c.bf16 %v6790_v28, %v6786_v27  ;;  %v6794_v63 = vld [vmem:[#allocation17 + $0x190] sm:$0xff]  ;;  %v15778_v28 = vpack.c.bf16 %v6796_v40, %v6792_v0  ;;  %v6800_v27 = vld [vmem:[#allocation17 + $0x1c0] sm:$0xff] }
 0xbbe   :  { %v6495_v19 = vmul.f32 %v13033_v12, %v15561_v25  ;;  %v15771_v25 = vpack.c.bf16 %v6797_v49, %v6793_v11  ;;  %v6798_v2 = vld [vmem:[#allocation17 + $0x1b0] sm:$0xff]  ;;  %v6801_v12 = vld [vmem:[#allocation17 + $0x1c8] sm:$0xff]  ;;  %v6804_v49 = vld [vmem:[#allocation17 + $0x1e0] sm:$0xff] }
 0xbbf   :  { %v15780_v1 = vpack.c.bf16 %v6798_v2, %v6794_v63  ;;  %v6806_v16 = vld [vmem:[#allocation17 + $0x1f0] sm:$0xff]  ;;  %v15790_v0 = vpack.c.bf16 %v6804_v49, %v6800_v27  ;;  %v17004_v27 = vld [vmem:[#allocation61_spill] sm:$0xff] }
 0xbc0   :  { %v15761_v36 = vadd.f32 %v6496_v5, %v6495_v19  ;;  %11653 = vmatpush1.bf16.msra.mxu0 %v15750_v50  ;;  %11685 = vmatpush1.bf16.msra.mxu1 %v15752_v22  ;;  %v6805_v5 = vld [vmem:[#allocation17 + $0x1e8] sm:$0xff]  ;;  %v6803_v19 = vld [vmem:[#allocation17 + $0x1d8] sm:$0xff]  ;;  %v15792_v40 = vpack.c.bf16 %v6806_v16, %v6802_v54 }
 0xbc1   :  { %11655 = vmatprep.subr.bf16.mxu0 %v15756_v17  ;;  %11687 = vmatprep.subr.bf16.mxu1 %v15758_v45  ;;  %v15784_v11 = vpack.c.bf16 %v6805_v5, %v6801_v12  ;;  %v15786_v29 = vpack.c.bf16 %v6807_v61, %v6803_v19 }
 0xbc2   :  { %13036 = vtanh.f32 %v15761_v36 }
 0xbc4   :  { %11657 = vmatpush1.bf16.msra.mxu0 %v15765_v42  ;;  %11689 = vmatpush1.bf16.msra.mxu1 %v15767_v56 }
 0xbc5   :  { %11659 = vmatprep.subr.bf16.mxu0 %v15771_v25  ;;  %11691 = vmatprep.subr.bf16.mxu1 %v15773_v38  ;;  %v13035_v63 = vpop.eup %13034 }
 0xbc8   :  { %11661 = vmatpush1.bf16.msra.mxu0 %v15778_v28  ;;  %11693 = vmatpush1.bf16.msra.mxu1 %v15780_v1 }
 0xbc9   :  { %11663 = vmatprep.subr.bf16.mxu0 %v15784_v11  ;;  %11695 = vmatprep.subr.bf16.mxu1 %v15786_v29 }
 0xbcc   :  { %v13037_v2 = vpop.eup %13036  ;;  %11665 = vmatpush1.bf16.msra.mxu0 %v15790_v0  ;;  %11697 = vmatpush1.bf16.msra.mxu1 %v15792_v40 }
 0xbcd   :  { %v15798_v12 = vmul.f32 %v13037_v2, %v13035_v63  ;;  %11699 = vmatprep.subr.bf16.mxu0 %v15584_v46  ;;  %11731 = vmatprep.subr.bf16.mxu1 %v15586_v30 }
 0xbcf   :  { %16997 = vst [vmem:[#allocation45_spill] sm:$0xff] %v15798_v12  ;;  %6873 = vmatmul.mubr.f32.vlgmr.msra.gmra.mrb[58].mxu0 %v15798_v12  ;;  %6944 = vmatmul.mubr.f32.vlgmr.msra.gmra.mrb[64].mxu1 %v15798_v12 }
 0xbd0   :  { %11701 = vmatpush1.bf16.msra.mxu0 %v15588_v48  ;;  %11733 = vmatpush1.bf16.msra.mxu1 %v15591_v60 }
 0xbd1   :  { %11703 = vmatprep.subr.bf16.mxu0 %v15596_v59  ;;  %11735 = vmatprep.subr.bf16.mxu1 %v15598_v9  ;;  %v16998_v9 = vld [vmem:[#allocation56_spill] sm:$0xff] }
 0xbd2   :  { %7112 = vmatprep.mubr.f32.mxu0 %v16811_v41  ;;  %7183 = vmatprep.mubr.f32.mxu1 %v16811_v41 }
 0xbd4   :  { %11705 = vmatpush1.bf16.msra.mxu0 %v15600_v8  ;;  %11737 = vmatpush1.bf16.msra.mxu1 %v15603_v21 }
 0xbd5   :  { %11707 = vmatprep.subr.bf16.mxu0 %v15608_v26  ;;  %11739 = vmatprep.subr.bf16.mxu1 %v15610_v18  ;;  %v16999_v18 = vld [vmem:[#allocation57_spill] sm:$0xff] }
 0xbd8   :  { %11709 = vmatpush1.bf16.msra.mxu0 %v15612_v32  ;;  %11741 = vmatpush1.bf16.msra.mxu1 %v15615_v55 }
 0xbd9   :  { %11711 = vmatprep.subr.bf16.mxu0 %v15620_v62  ;;  %11743 = vmatprep.subr.bf16.mxu1 %v15622_v31  ;;  %v17000_v62 = vld [vmem:[#allocation58_spill] sm:$0xff] }
 0xbdc   :  { %11713 = vmatpush1.bf16.msra.mxu0 %v15624_v47  ;;  %11745 = vmatpush1.bf16.msra.mxu1 %v15627_v58 }
 0xbdd   :  { %11715 = vmatprep.subr.bf16.mxu0 %v15632_v44  ;;  %11747 = vmatprep.subr.bf16.mxu1 %v15634_v4 }
 0xbe0   :  { %11717 = vmatpush1.bf16.msra.mxu0 %v15636_v10  ;;  %11749 = vmatpush1.bf16.msra.mxu1 %v15639_v3 }
 0xbe1   :  { %11719 = vmatprep.subr.bf16.mxu0 %v15644_v7  ;;  %11751 = vmatprep.subr.bf16.mxu1 %v15646_v13 }
 0xbe4   :  { %11721 = vmatpush1.bf16.msra.mxu0 %v15648_v37  ;;  %11753 = vmatpush1.bf16.msra.mxu1 %v15651_v57 }
 0xbe5   :  { %11723 = vmatprep.subr.bf16.mxu0 %v15656_v15  ;;  %11755 = vmatprep.subr.bf16.mxu1 %v15658_v53  ;;  %v17001_v15 = vld [vmem:[#allocation65_spill] sm:$0xff] }
 0xbe8   :  { %11725 = vmatpush1.bf16.msra.mxu0 %v15660_v14  ;;  %11757 = vmatpush1.bf16.msra.mxu1 %v15663_v24 }
 0xbe9   :  { %11727 = vmatprep.subr.bf16.mxu0 %v15668_v35  ;;  %11759 = vmatprep.subr.bf16.mxu1 %v15670_v34  ;;  %v17002_v34 = vld [vmem:[#allocation59_spill] sm:$0xff] }
 0xbec   :  { %11729 = vmatpush1.bf16.msra.mxu0 %v15672_v23  ;;  %11761 = vmatpush1.bf16.msra.mxu1 %v15675_v20 }
 0xbed   :  { %11763 = vmatprep.subr.bf16.mxu0 %v15680_v52  ;;  %11795 = vmatprep.subr.bf16.mxu1 %v15682_v39  ;;  %v17003_v39 = vld [vmem:[#allocation60_spill] sm:$0xff] }
 0xc82   :  { %v6636_v46 = vpop.f32.mrb[36].mxu0  ;;  %v6707_v30 = vpop.f32.mrb[42].mxu1 }
 0xc83   :  { %v12518_v48 = vadd.f32 %v6636_v46, %v15502_v51  ;;  %v6638_v60 = vpop.f32.mrb[37].mxu0  ;;  %v6709_v59 = vpop.f32.mrb[43].mxu1  ;;  %v12534_v31 = vadd.f32 %v6707_v30, %v17000_v62 }
 0xc84   :  { %v12519_v8 = vadd.f32 %v6638_v60, %v16998_v9  ;;  %v12535_v32 = vadd.f32 %v6709_v59, %v16999_v18  ;;  %v17006_v59 = vld [vmem:[#allocation28_spill] sm:$0xff] }
 0xc85   :  { %v9853_v21 = vmul.f32 -1.442695, %v12518_v48 }
 0xc86   :  { %v9854_v26 = vmul.f32 -1.442695, %v12519_v8  ;;  %v9855_v55 = vmul.f32 -1.442695, %v12535_v32  ;;  %v17007_v8 = vld [vmem:[#allocation29_spill] sm:$0xff] }
 0xc87   :  { %13038 = vpow2.f32 %v9853_v21  ;;  %v17009_v32 = vld [vmem:[#allocation33_spill] sm:$0xff] }
 0xc88   :  { %13040 = vpow2.f32 %v9854_v26  ;;  %v17008_v26 = vld [vmem:[#allocation32_spill] sm:$0xff] }
 0xc89   :  { %13042 = vpow2.f32 %v9855_v55  ;;  %v17010_v55 = vld [vmem:[#allocation44_spill] sm:$0xff] }
 0xc8a   :  { %13044 = vtanh.f32 %v12534_v31  ;;  %v17011_v31 = vld [vmem:[#allocation49_spill] sm:$0xff] }
 0xc91   :  { %v13039_v47 = vpop.eup %13038 }
 0xc92   :  { %v13041_v58 = vpop.eup %13040  ;;  %v6719_v44 = vadd.f32 1.0, %v13039_v47  ;;  %v17012_v47 = vld [vmem:[#allocation46_spill] sm:$0xff] }
 0xc93   :  { %v6725_v4 = vadd.f32 1.0, %v13041_v58  ;;  %v13043_v10 = vpop.eup %13042  ;;  %v17013_v58 = vld [vmem:[#allocation50_spill] sm:$0xff] }
 0xc94   :  { %13046 = vrcp.f32 %v6719_v44  ;;  %v13045_v3 = vpop.eup %13044  ;;  %v6732_v57 = vadd.f32 1.0, %v13043_v10  ;;  %v17014_v44 = vld [vmem:[#allocation52_spill] sm:$0xff] }
 0xc95   :  { %13048 = vrcp.f32 %v6725_v4  ;;  %v17015_v4 = vld [vmem:[#allocation66_spill] sm:$0xff]  ;;  %v17016_v10 = vld [vmem:[#allocation48_spill] sm:$0xff] }
 0xc96   :  { %13050 = vrcp.f32 %v6732_v57  ;;  %v17018_v57 = vld [vmem:[#allocation55_spill] sm:$0xff] }
 0xc9e   :  { %v13047_v7 = vpop.eup %13046 }
 0xc9f   :  { %v13049_v13 = vpop.eup %13048  ;;  %v6736_v37 = vmul.f32 %v13047_v7, %v13045_v3  ;;  %v17017_v3 = vld [vmem:[#allocation47_spill] sm:$0xff] }
 0xca0   :  { %v6735_v53 = vmul.f32 %v13049_v13, %v17001_v15  ;;  %v13051_v54 = vpop.eup %13050  ;;  %v17019_v15 = vld [vmem:[#allocation62_spill] sm:$0xff] }
 0xca2   :  { %v15843_v14 = vadd.f32 %v6736_v37, %v6735_v53  ;;  %v6874_v24 = vpop.f32.mrb[58].mxu0  ;;  %v6945_v35 = vpop.f32.mrb[64].mxu1 }
 0xca3   :  { %v12556_v23 = vadd.f32 %v6874_v24, %v17002_v34  ;;  %v6876_v20 = vpop.f32.mrb[59].mxu0  ;;  %v6947_v52 = vpop.f32.mrb[65].mxu1  ;;  %v12572_v2 = vadd.f32 %v6945_v35, %v15536_v43 }
 0xca4   :  { %v12557_v5 = vadd.f32 %v6876_v20, %v17003_v39  ;;  %13052 = vtanh.f32 %v15843_v14  ;;  %v12573_v49 = vadd.f32 %v6947_v52, %v17004_v27  ;;  %v7473_v52 = vld [vmem:[#allocation14 + $0x58] sm:$0xff] }
 0xca5   :  { %v9856_v19 = vmul.f32 -1.442695, %v12556_v23 }
 0xca6   :  { %v9857_v61 = vmul.f32 -1.442695, %v12557_v5  ;;  %v9858_v63 = vmul.f32 -1.442695, %v12573_v49  ;;  %v7474_v49 = vld [vmem:[#allocation14 + $0x60] sm:$0xff] }
 0xca7   :  { %13054 = vpow2.f32 %v9856_v19  ;;  %v7477_v19 = vld [vmem:[#allocation14 + $0x78] sm:$0xff] }
 0xca8   :  { %13056 = vpow2.f32 %v9857_v61  ;;  %v7470_v61 = vld [vmem:[#allocation14 + $0x40] sm:$0xff] }
 0xca9   :  { %13058 = vpow2.f32 %v9858_v63  ;;  %v7472_v63 = vld [vmem:[#allocation14 + $0x50] sm:$0xff] }
 0xcaa   :  { %13060 = vtanh.f32 %v12572_v2  ;;  %v7476_v2 = vld [vmem:[#allocation14 + $0x70] sm:$0xff] }
 0xcae   :  { %v13053_v16 = vpop.eup %13052 }
 0xcaf   :  { %v15850_v46 = vmul.f32 %v13053_v16, %v13051_v54  ;;  %v15910_v54 = vpack.c.bf16 %v7477_v19, %v7473_v52  ;;  %v15912_v16 = vpack.c.bf16 %v7474_v49, %v7470_v61  ;;  %v7503_v52 = vld [vmem:[#allocation14 + $0x148] sm:$0xff]  ;;  %v7505_v61 = vld [vmem:[#allocation14 + $0x158] sm:$0xff] }
 0xcb0   :  { %v7507_v19 = vld [vmem:[#allocation14 + $0x168] sm:$0xff] }
 0xcb1   :  { %17005 = vst [vmem:[#allocation38_spill] sm:$0xff] %v15850_v46  ;;  %v13055_v30 = vpop.eup %13054  ;;  %7113 = vmatmul.mubr.f32.vlgmr.msra.gmra.mrb[38].mxu0 %v15850_v46  ;;  %7184 = vmatmul.mubr.f32.vlgmr.msra.gmra.mrb[44].mxu1 %v15850_v46  ;;  %v15956_v49 = vpack.c.bf16 %v7507_v19, %v7503_v52  ;;  %v7522_v52 = vld [vmem:[#allocation14 + $0x1e0] sm:$0xff] }
 0xcb2   :  { %v13057_v48 = vpop.eup %13056  ;;  %v6957_v60 = vadd.f32 1.0, %v13055_v30  ;;  %11765 = vmatpush1.bf16.msra.mxu0 %v17006_v59  ;;  %11797 = vmatpush1.bf16.msra.mxu1 %v17007_v8  ;;  %v15915_v30 = vpack.c.bf16 %v7476_v2, %v7472_v63  ;;  %v7481_v59 = vld [vmem:[#allocation14 + $0x98] sm:$0xff]  ;;  %v7502_v2 = vld [vmem:[#allocation14 + $0x140] sm:$0xff] }
 0xcb3   :  { %v6963_v21 = vadd.f32 1.0, %v13057_v48  ;;  %11767 = vmatprep.subr.bf16.mxu0 %v17008_v26  ;;  %11799 = vmatprep.subr.bf16.mxu1 %v17009_v32  ;;  %v13059_v7 = vpop.eup %13058  ;;  %v7479_v48 = vld [vmem:[#allocation14 + $0x88] sm:$0xff]  ;;  %v7478_v26 = vld [vmem:[#allocation14 + $0x80] sm:$0xff]  ;;  %v7509_v63 = vld [vmem:[#allocation14 + $0x178] sm:$0xff] }
 0xcb4   :  { %13062 = vrcp.f32 %v6957_v60  ;;  %7350 = vmatprep.mubr.f32.mxu0 %v16811_v41  ;;  %7421 = vmatprep.mubr.f32.mxu1 %v16811_v41  ;;  %v13061_v13 = vpop.eup %13060  ;;  %v6970_v35 = vadd.f32 1.0, %v13059_v7  ;;  %v7483_v60 = vld [vmem:[#allocation14 + $0xa8] sm:$0xff]  ;;  %v7482_v32 = vld [vmem:[#allocation14 + $0xa0] sm:$0xff] }
 0xcb5   :  { %13064 = vrcp.f32 %v6963_v21  ;;  %v15920_v8 = vpack.c.bf16 %v7483_v60, %v7479_v48  ;;  %v7485_v21 = vld [vmem:[#allocation14 + $0xb8] sm:$0xff]  ;;  %v7506_v48 = vld [vmem:[#allocation14 + $0x160] sm:$0xff]  ;;  %v15958_v60 = vpack.c.bf16 %v7509_v63, %v7505_v61  ;;  %v7520_v63 = vld [vmem:[#allocation14 + $0x1d0] sm:$0xff] }
 0xcb6   :  { %11769 = vmatpush1.bf16.msra.mxu0 %v17010_v55  ;;  %11801 = vmatpush1.bf16.msra.mxu1 %v17011_v31  ;;  %13066 = vrcp.f32 %v6970_v35  ;;  %v15922_v55 = vpack.c.bf16 %v7485_v21, %v7481_v59  ;;  %v15924_v31 = vpack.c.bf16 %v7482_v32, %v7478_v26  ;;  %v7492_v35 = vld [vmem:[#allocation14 + $0xf0] sm:$0xff]  ;;  %v15960_v59 = vpack.c.bf16 %v7506_v48, %v7502_v2 }
 0xcb7   :  { %11771 = vmatprep.subr.bf16.mxu0 %v17012_v47  ;;  %11803 = vmatprep.subr.bf16.mxu1 %v17013_v58  ;;  %v7480_v47 = vld [vmem:[#allocation14 + $0x90] sm:$0xff] }
 0xcb8   :  { %v7484_v58 = vld [vmem:[#allocation14 + $0xb0] sm:$0xff] }
 0xcb9   :  { %v7504_v21 = vld [vmem:[#allocation14 + $0x150] sm:$0xff] }
 0xcba   :  { %11773 = vmatpush1.bf16.msra.mxu0 %v17014_v44  ;;  %11805 = vmatpush1.bf16.msra.mxu1 %v17015_v4  ;;  %v15927_v44 = vpack.c.bf16 %v7484_v58, %v7480_v47  ;;  %v7487_v4 = vld [vmem:[#allocation14 + $0xc8] sm:$0xff]  ;;  %v7508_v26 = vld [vmem:[#allocation14 + $0x170] sm:$0xff] }
 0xcbb   :  { %11775 = vmatprep.subr.bf16.mxu0 %v17016_v10  ;;  %11807 = vmatprep.subr.bf16.mxu1 %v17017_v3  ;;  %v7491_v10 = vld [vmem:[#allocation14 + $0xe8] sm:$0xff]  ;;  %v7489_v3 = vld [vmem:[#allocation14 + $0xd8] sm:$0xff]  ;;  %v15963_v32 = vpack.c.bf16 %v7508_v26, %v7504_v21  ;;  %v7524_v2 = vld [vmem:[#allocation14 + $0x1f0] sm:$0xff] }
 0xcbc   :  { %v15932_v7 = vpack.c.bf16 %v7491_v10, %v7487_v4  ;;  %v7511_v47 = vld [vmem:[#allocation14 + $0x188] sm:$0xff]  ;;  %v7513_v4 = vld [vmem:[#allocation14 + $0x198] sm:$0xff]  ;;  %v15987_v48 = vpack.c.bf16 %v7524_v2, %v7520_v63 }
 0xcbd   :  { %v7515_v58 = vld [vmem:[#allocation14 + $0x1a8] sm:$0xff] }
 0xcbe   :  { %v13063_v37 = vpop.eup %13062  ;;  %11777 = vmatpush1.bf16.msra.mxu0 %v17018_v57  ;;  %11809 = vmatpush1.bf16.msra.mxu1 %v17019_v15  ;;  %v7490_v57 = vld [vmem:[#allocation14 + $0xe0] sm:$0xff]  ;;  %v15968_v10 = vpack.c.bf16 %v7515_v58, %v7511_v47  ;;  %v7701_v21 = vld [vmem:[#allocation17 + $0x8] sm:$0xff]  ;;  %v7703_v47 = vld [vmem:[#allocation17 + $0x18] sm:$0xff] }
 0xcbf   :  { %v13065_v53 = vpop.eup %13064  ;;  %v6974_v24 = vmul.f32 %v13063_v37, %v13061_v13  ;;  %11779 = vmatprep.subr.bf16.mxu0 %v15744_v6  ;;  %11811 = vmatprep.subr.bf16.mxu1 %v15746_v33  ;;  %v7467_v6 = vld [vmem:[#allocation14 + $0x28] sm:$0xff]  ;;  %v7465_v33 = vld [vmem:[#allocation14 + $0x18] sm:$0xff]  ;;  %v7486_v37 = vld [vmem:[#allocation14 + $0xc0] sm:$0xff] }
 0xcc0   :  { %v6973_v23 = vmul.f32 %v13065_v53, %v15761_v36  ;;  %v7493_v13 = vld [vmem:[#allocation14 + $0xf8] sm:$0xff]  ;;  %v15936_v53 = vpack.c.bf16 %v7490_v57, %v7486_v37  ;;  %v7514_v37 = vld [vmem:[#allocation14 + $0x1a0] sm:$0xff]  ;;  %v7705_v26 = vld [vmem:[#allocation17 + $0x28] sm:$0xff] }
 0xcc1   :  { %v15934_v15 = vpack.c.bf16 %v7493_v13, %v7489_v3  ;;  %v7517_v3 = vld [vmem:[#allocation14 + $0x1b8] sm:$0xff]  ;;  %v7510_v13 = vld [vmem:[#allocation14 + $0x180] sm:$0xff]  ;;  %v15992_v58 = vpack.c.bf16 %v7705_v26, %v7701_v21 }
 0xcc2   :  { %v15873_v20 = vadd.f32 %v6974_v24, %v6973_v23  ;;  %11781 = vmatpush1.bf16.msra.mxu0 %v15750_v50  ;;  %11813 = vmatpush1.bf16.msra.mxu1 %v15752_v22  ;;  %v7463_v22 = vld [vmem:[#allocation14 + $0x8] sm:$0xff]  ;;  %v7488_v24 = vld [vmem:[#allocation14 + $0xd0] sm:$0xff]  ;;  %v15970_v57 = vpack.c.bf16 %v7517_v3, %v7513_v4  ;;  %v7707_v4 = vld [vmem:[#allocation17 + $0x38] sm:$0xff] }
 0xcc3   :  { %11783 = vmatprep.subr.bf16.mxu0 %v15756_v17  ;;  %11815 = vmatprep.subr.bf16.mxu1 %v15758_v45  ;;  %v13067_v17 = vpop.eup %13066  ;;  %v15896_v50 = vpack.c.bf16 %v7467_v6, %v7463_v22  ;;  %v15939_v23 = vpack.c.bf16 %v7492_v35, %v7488_v24  ;;  %v7497_v22 = vld [vmem:[#allocation14 + $0x118] sm:$0xff]  ;;  %v15972_v24 = vpack.c.bf16 %v7514_v37, %v7510_v13  ;;  %v7512_v35 = vld [vmem:[#allocation14 + $0x190] sm:$0xff] }
 0xcc4   :  { %13068 = vtanh.f32 %v15873_v20  ;;  %v15994_v3 = vpack.c.bf16 %v7707_v4, %v7703_v47 }
 0xcc6   :  { %11785 = vmatpush1.bf16.msra.mxu0 %v15765_v42  ;;  %11817 = vmatpush1.bf16.msra.mxu1 %v15767_v56  ;;  %v7469_v42 = vld [vmem:[#allocation14 + $0x38] sm:$0xff]  ;;  %v7462_v56 = vld [vmem:[#allocation14] sm:$0xff] }
 0xcc7   :  { %11787 = vmatprep.subr.bf16.mxu0 %v15771_v25  ;;  %11819 = vmatprep.subr.bf16.mxu1 %v15773_v38  ;;  %v7466_v25 = vld [vmem:[#allocation14 + $0x20] sm:$0xff]  ;;  %v15898_v38 = vpack.c.bf16 %v7469_v42, %v7465_v33  ;;  %v7501_v33 = vld [vmem:[#allocation14 + $0x138] sm:$0xff] }
 0xcc8   :  { %v7494_v42 = vld [vmem:[#allocation14 + $0x100] sm:$0xff] }
 0xcca   :  { %11789 = vmatpush1.bf16.msra.mxu0 %v15778_v28  ;;  %11821 = vmatpush1.bf16.msra.mxu1 %v15780_v1  ;;  %v15900_v28 = vpack.c.bf16 %v7466_v25, %v7462_v56  ;;  %v7464_v1 = vld [vmem:[#allocation14 + $0x10] sm:$0xff]  ;;  %v7498_v56 = vld [vmem:[#allocation14 + $0x120] sm:$0xff]  ;;  %v15946_v25 = vpack.c.bf16 %v7501_v33, %v7497_v22  ;;  %v7519_v22 = vld [vmem:[#allocation14 + $0x1c8] sm:$0xff] }
 0xccb   :  { %11791 = vmatprep.subr.bf16.mxu0 %v15784_v11  ;;  %11823 = vmatprep.subr.bf16.mxu1 %v15786_v29  ;;  %v7468_v11 = vld [vmem:[#allocation14 + $0x30] sm:$0xff]  ;;  %v7523_v33 = vld [vmem:[#allocation14 + $0x1e8] sm:$0xff] }
 0xccc   :  { %v15903_v29 = vpack.c.bf16 %v7468_v11, %v7464_v1  ;;  %v15948_v1 = vpack.c.bf16 %v7498_v56, %v7494_v42  ;;  %v7496_v11 = vld [vmem:[#allocation14 + $0x110] sm:$0xff]  ;;  %v7521_v42 = vld [vmem:[#allocation14 + $0x1d8] sm:$0xff]  ;;  %v15980_v56 = vpack.c.bf16 %v7523_v33, %v7519_v22 }
 0xcce   :  { %v13069_v36 = vpop.eup %13068  ;;  %11793 = vmatpush1.bf16.msra.mxu0 %v15790_v0  ;;  %11825 = vmatpush1.bf16.msra.mxu1 %v15792_v40  ;;  %v7471_v0 = vld [vmem:[#allocation14 + $0x48] sm:$0xff] }
 0xccf   :  { %v15890_v45 = vmul.f32 %v13069_v36, %v13067_v17  ;;  %11827 = vmatprep.subr.bf16.mxu0 %v15896_v50  ;;  %11859 = vmatprep.subr.bf16.mxu1 %v15898_v38  ;;  %v7475_v40 = vld [vmem:[#allocation14 + $0x68] sm:$0xff] }
 0xcd0   :  { %v15908_v5 = vpack.c.bf16 %v7475_v40, %v7471_v0  ;;  %v7495_v17 = vld [vmem:[#allocation14 + $0x108] sm:$0xff]  ;;  %v7500_v0 = vld [vmem:[#allocation14 + $0x130] sm:$0xff] }
 0xcd1   :  { %17020 = vst [vmem:[#allocation37_spill] sm:$0xff] %v15890_v45  ;;  %7351 = vmatmul.mubr.f32.vlgmr.msra.gmra.mrb[56].mxu0 %v15890_v45  ;;  %7422 = vmatmul.mubr.f32.vlgmr.msra.gmra.mrb[62].mxu1 %v15890_v45  ;;  %v7499_v36 = vld [vmem:[#allocation14 + $0x128] sm:$0xff]  ;;  %v15951_v40 = vpack.c.bf16 %v7500_v0, %v7496_v11  ;;  %v7525_v11 = vld [vmem:[#allocation14 + $0x1f8] sm:$0xff]  ;;  %v7518_v0 = vld [vmem:[#allocation14 + $0x1c0] sm:$0xff] }
 0xcd2   :  { %7590 = vmatprep.mubr.f32.mxu0 %v16811_v41  ;;  %7661 = vmatprep.mubr.f32.mxu1 %v16811_v41  ;;  %v15944_v6 = vpack.c.bf16 %v7499_v36, %v7495_v17  ;;  %v7516_v17 = vld [vmem:[#allocation14 + $0x1b0] sm:$0xff]  ;;  %v15982_v19 = vpack.c.bf16 %v7525_v11, %v7521_v42  ;;  %v15984_v61 = vpack.c.bf16 %v7522_v52, %v7518_v0 }
 0xcd3   :  { %11829 = vmatpush1.bf16.msra.mxu0 %v15900_v28  ;;  %11861 = vmatpush1.bf16.msra.mxu1 %v15903_v29  ;;  %v15975_v36 = vpack.c.bf16 %v7516_v17, %v7512_v35 }
 0xcd4   :  { %11831 = vmatprep.subr.bf16.mxu0 %v15908_v5  ;;  %11863 = vmatprep.subr.bf16.mxu1 %v15910_v54 }
 0xcd7   :  { %11833 = vmatpush1.bf16.msra.mxu0 %v15912_v16  ;;  %11865 = vmatpush1.bf16.msra.mxu1 %v15915_v30 }
 0xcd8   :  { %11835 = vmatprep.subr.bf16.mxu0 %v15920_v8  ;;  %11867 = vmatprep.subr.bf16.mxu1 %v15922_v55 }
 0xcdb   :  { %11837 = vmatpush1.bf16.msra.mxu0 %v15924_v31  ;;  %11869 = vmatpush1.bf16.msra.mxu1 %v15927_v44 }
 0xcdc   :  { %11839 = vmatprep.subr.bf16.mxu0 %v15932_v7  ;;  %11871 = vmatprep.subr.bf16.mxu1 %v15934_v15 }
 0xcdf   :  { %11841 = vmatpush1.bf16.msra.mxu0 %v15936_v53  ;;  %11873 = vmatpush1.bf16.msra.mxu1 %v15939_v23 }
 0xce0   :  { %11843 = vmatprep.subr.bf16.mxu0 %v15944_v6  ;;  %11875 = vmatprep.subr.bf16.mxu1 %v15946_v25 }
 0xce3   :  { %11845 = vmatpush1.bf16.msra.mxu0 %v15948_v1  ;;  %11877 = vmatpush1.bf16.msra.mxu1 %v15951_v40 }
 0xce4   :  { %11847 = vmatprep.subr.bf16.mxu0 %v15956_v49  ;;  %11879 = vmatprep.subr.bf16.mxu1 %v15958_v60 }
 0xce7   :  { %11849 = vmatpush1.bf16.msra.mxu0 %v15960_v59  ;;  %11881 = vmatpush1.bf16.msra.mxu1 %v15963_v32 }
 0xce8   :  { %11851 = vmatprep.subr.bf16.mxu0 %v15968_v10  ;;  %11883 = vmatprep.subr.bf16.mxu1 %v15970_v57 }
 0xceb   :  { %11853 = vmatpush1.bf16.msra.mxu0 %v15972_v24  ;;  %11885 = vmatpush1.bf16.msra.mxu1 %v15975_v36 }
 0xcec   :  { %11855 = vmatprep.subr.bf16.mxu0 %v15980_v56  ;;  %11887 = vmatprep.subr.bf16.mxu1 %v15982_v19 }
 0xcef   :  { %11857 = vmatpush1.bf16.msra.mxu0 %v15984_v61  ;;  %11889 = vmatpush1.bf16.msra.mxu1 %v15987_v48 }
 0xcf0   :  { %11891 = vmatprep.subr.bf16.mxu0 %v15992_v58  ;;  %11923 = vmatprep.subr.bf16.mxu1 %v15994_v3 }
 0xd84   :  { %v7114_v13 = vpop.f32.mrb[38].mxu0  ;;  %v7185_v37 = vpop.f32.mrb[44].mxu1 }
 0xd85   :  { %v12520_v35 = vadd.f32 %v7114_v13, %v15502_v51  ;;  %v7116_v17 = vpop.f32.mrb[39].mxu0  ;;  %v7187_v22 = vpop.f32.mrb[45].mxu1  ;;  %v12536_v63 = vadd.f32 %v7185_v37, %v17000_v62  ;;  %v7717_v62 = vld [vmem:[#allocation17 + $0x88] sm:$0xff] }
 0xd86   :  { %v12521_v33 = vadd.f32 %v7116_v17, %v16998_v9  ;;  %v12537_v0 = vadd.f32 %v7187_v22, %v16999_v18  ;;  %v7721_v18 = vld [vmem:[#allocation17 + $0xa8] sm:$0xff]  ;;  %v7719_v9 = vld [vmem:[#allocation17 + $0x98] sm:$0xff] }
 0xd87   :  { %v9859_v42 = vmul.f32 -1.442695, %v12520_v35 }
 0xd88   :  { %v9860_v11 = vmul.f32 -1.442695, %v12521_v33  ;;  %v9861_v52 = vmul.f32 -1.442695, %v12537_v0 }
 0xd89   :  { %13070 = vpow2.f32 %v9859_v42 }
 0xd8a   :  { %13072 = vpow2.f32 %v9860_v11 }
 0xd8b   :  { %13074 = vpow2.f32 %v9861_v52 }
 0xd8c   :  { %13076 = vtanh.f32 %v12536_v63 }
 0xd93   :  { %v13071_v2 = vpop.eup %13070 }
 0xd94   :  { %v13073_v21 = vpop.eup %13072  ;;  %v7197_v26 = vadd.f32 1.0, %v13071_v2 }
 0xd95   :  { %v7203_v47 = vadd.f32 1.0, %v13073_v21  ;;  %v13075_v4 = vpop.eup %13074 }
 0xd96   :  { %13078 = vrcp.f32 %v7197_v26  ;;  %v13077_v13 = vpop.eup %13076  ;;  %v7210_v42 = vadd.f32 1.0, %v13075_v4 }
 0xd97   :  { %13080 = vrcp.f32 %v7203_v47 }
 0xd98   :  { %13082 = vrcp.f32 %v7210_v42  ;;  %v7713_v42 = vld [vmem:[#allocation17 + $0x68] sm:$0xff] }
 0xda0   :  { %v13079_v17 = vpop.eup %13078 }
 0xda1   :  { %v13081_v35 = vpop.eup %13080  ;;  %v7214_v33 = vmul.f32 %v13079_v17, %v13077_v13  ;;  %v7704_v13 = vld [vmem:[#allocation17 + $0x20] sm:$0xff]  ;;  %v7702_v17 = vld [vmem:[#allocation17 + $0x10] sm:$0xff] }
 0xda2   :  { %v7213_v11 = vmul.f32 %v13081_v35, %v15843_v14  ;;  %v7700_v14 = vld [vmem:[#allocation17] sm:$0xff]  ;;  %v7706_v35 = vld [vmem:[#allocation17 + $0x30] sm:$0xff]  ;;  %v13083_v12 = vpop.eup %13082 }
 0xda4   :  { %v16003_v22 = vadd.f32 %v7214_v33, %v7213_v11  ;;  %v7352_v0 = vpop.f32.mrb[56].mxu0  ;;  %v7423_v37 = vpop.f32.mrb[62].mxu1  ;;  %v7709_v33 = vld [vmem:[#allocation17 + $0x48] sm:$0xff]  ;;  %v7711_v11 = vld [vmem:[#allocation17 + $0x58] sm:$0xff] }
 0xda5   :  { %v12554_v2 = vadd.f32 %v7352_v0, %v17002_v34  ;;  %v7354_v52 = vpop.f32.mrb[57].mxu0  ;;  %v7425_v63 = vpop.f32.mrb[63].mxu1  ;;  %v7715_v0 = vld [vmem:[#allocation17 + $0x78] sm:$0xff]  ;;  %v7710_v34 = vld [vmem:[#allocation17 + $0x50] sm:$0xff] }
 0xda6   :  { %17021 = vst [vmem:[#allocation30_spill] sm:$0xff] %v16003_v22  ;;  %v12555_v21 = vadd.f32 %v7354_v52, %v17003_v39  ;;  %13084 = vtanh.f32 %v16003_v22  ;;  %v12571_v4 = vadd.f32 %v7425_v63, %v17004_v27  ;;  %v16009_v52 = vpack.c.bf16 %v7704_v13, %v7700_v14  ;;  %v7714_v22 = vld [vmem:[#allocation17 + $0x70] sm:$0xff] }
 0xda7   :  { %v9862_v26 = vmul.f32 -1.442695, %v12554_v2  ;;  %v16011_v39 = vpack.c.bf16 %v7706_v35, %v7702_v17  ;;  %v7708_v2 = vld [vmem:[#allocation17 + $0x40] sm:$0xff]  ;;  %v16018_v27 = vpack.c.bf16 %v7715_v0, %v7711_v11  ;;  %v7722_v0 = vld [vmem:[#allocation17 + $0xb0] sm:$0xff] }
 0xda8   :  { %v9863_v47 = vmul.f32 -1.442695, %v12555_v21  ;;  %v9864_v46 = vmul.f32 -1.442695, %v12571_v4  ;;  %17022 = vst [vmem:[#allocation36_spill] sm:$0xff] %v16009_v52  ;;  %v7712_v21 = vld [vmem:[#allocation17 + $0x60] sm:$0xff] }
 0xda9   :  { %13086 = vpow2.f32 %v9862_v26  ;;  %17023 = vst [vmem:[#allocation31_spill] sm:$0xff] %v16011_v39  ;;  %v12570_v26 = vadd.f32 %v7423_v37, %v15536_v43  ;;  %17026 = vst [vmem:[#allocation51_spill] sm:$0xff] %v16018_v27  ;;  %v7723_v4 = vld [vmem:[#allocation17 + $0xb8] sm:$0xff]  ;;  %v7716_v37 = vld [vmem:[#allocation17 + $0x80] sm:$0xff] }
 0xdaa   :  { %13088 = vpow2.f32 %v9863_v47  ;;  %v16016_v47 = vpack.c.bf16 %v7713_v42, %v7709_v33  ;;  %v7720_v35 = vld [vmem:[#allocation17 + $0xa0] sm:$0xff]  ;;  %v16030_v42 = vpack.c.bf16 %v7721_v18, %v7717_v62  ;;  %v16032_v11 = vpack.c.bf16 %v7723_v4, %v7719_v9 }
 0xdab   :  { %13090 = vpow2.f32 %v9864_v46  ;;  %v7718_v46 = vld [vmem:[#allocation17 + $0x90] sm:$0xff]  ;;  %v16038_v18 = vpack.c.bf16 %v7720_v35, %v7716_v37  ;;  %v7724_v62 = vld [vmem:[#allocation17 + $0xc0] sm:$0xff] }
 0xdac   :  { %17025 = vst [vmem:[#allocation39_spill] sm:$0xff] %v16016_v47  ;;  %13092 = vtanh.f32 %v12570_v26  ;;  %17029 = vst [vmem:[#allocation43_spill] sm:$0xff] %v16030_v42  ;;  %v16040_v9 = vpack.c.bf16 %v7722_v0, %v7718_v46  ;;  %v7732_v46 = vld [vmem:[#allocation17 + $0x100] sm:$0xff] }
 0xdad   :  { %17030 = vst [vmem:[#allocation53_spill] sm:$0xff] %v16032_v11  ;;  %17031 = vst [vmem:[#allocation54_spill] sm:$0xff] %v16038_v18  ;;  %v7736_v0 = vld [vmem:[#allocation17 + $0x120] sm:$0xff] }
 0xdae   :  { %17032 = vst [vmem:[#allocation65_spill] sm:$0xff] %v16040_v9 }
 0xdb0   :  { %v13085_v45 = vpop.eup %13084 }
 0xdb1   :  { %v16014_v63 = vmul.f32 %v13085_v45, %v13083_v12  ;;  %v16024_v12 = vpack.c.bf16 %v7712_v21, %v7708_v2  ;;  %v16026_v45 = vpack.c.bf16 %v7714_v22, %v7710_v34  ;;  %v7729_v2 = vld [vmem:[#allocation17 + $0xe8] sm:$0xff]  ;;  %v7727_v21 = vld [vmem:[#allocation17 + $0xd8] sm:$0xff]  ;;  %v7728_v22 = vld [vmem:[#allocation17 + $0xe0] sm:$0xff] }
 0xdb2   :  { %v7731_v34 = vld [vmem:[#allocation17 + $0xf8] sm:$0xff]  ;;  %v16050_v37 = vpack.c.bf16 %v7728_v22, %v7724_v62 }
 0xdb3   :  { %17024 = vst [vmem:[#allocation40_spill] sm:$0xff] %v16014_v63  ;;  %v13087_v14 = vpop.eup %13086  ;;  %7591 = vmatmul.mubr.f32.vlgmr.msra.gmra.mrb[40].mxu0 %v16014_v63  ;;  %7662 = vmatmul.mubr.f32.vlgmr.msra.gmra.mrb[46].mxu1 %v16014_v63  ;;  %17027 = vst [vmem:[#allocation42_spill] sm:$0xff] %v16024_v12  ;;  %v16046_v4 = vpack.c.bf16 %v7731_v34, %v7727_v21  ;;  %v7737_v63 = vld [vmem:[#allocation17 + $0x128] sm:$0xff]  ;;  %v7734_v21 = vld [vmem:[#allocation17 + $0x110] sm:$0xff] }
 0xdb4   :  { %v13089_v13 = vpop.eup %13088  ;;  %v7435_v17 = vadd.f32 1.0, %v13087_v14  ;;  %11893 = vmatpush1.bf16.msra.mxu0 %v16009_v52  ;;  %11925 = vmatpush1.bf16.msra.mxu1 %v16011_v39  ;;  %17028 = vst [vmem:[#allocation41_spill] sm:$0xff] %v16026_v45  ;;  %v7725_v14 = vld [vmem:[#allocation17 + $0xc8] sm:$0xff]  ;;  %17035 = vst [vmem:[#allocation32_spill] sm:$0xff] %v16050_v37  ;;  %v7738_v34 = vld [vmem:[#allocation17 + $0x130] sm:$0xff] }
 0xdb5   :  { %v7441_v33 = vadd.f32 1.0, %v13089_v13  ;;  %11895 = vmatprep.subr.bf16.mxu0 %v16016_v47  ;;  %11927 = vmatprep.subr.bf16.mxu1 %v16018_v27  ;;  %v16044_v26 = vpack.c.bf16 %v7729_v2, %v7725_v14  ;;  %17034 = vst [vmem:[#allocation29_spill] sm:$0xff] %v16046_v4  ;;  %v7726_v13 = vld [vmem:[#allocation17 + $0xd0] sm:$0xff]  ;;  %v7747_v62 = vld [vmem:[#allocation17 + $0x178] sm:$0xff] }
 0xdb6   :  { %13094 = vrcp.f32 %v7435_v17  ;;  %7828 = vmatprep.mubr.f32.mxu0 %v16811_v41  ;;  %7899 = vmatprep.mubr.f32.mxu1 %v16811_v41  ;;  %v7730_v17 = vld [vmem:[#allocation17 + $0xf0] sm:$0xff] }
 0xdb7   :  { %13096 = vrcp.f32 %v7441_v33  ;;  %17033 = vst [vmem:[#allocation28_spill] sm:$0xff] %v16044_v26  ;;  %v7733_v33 = vld [vmem:[#allocation17 + $0x108] sm:$0xff]  ;;  %v16052_v35 = vpack.c.bf16 %v7730_v17, %v7726_v13  ;;  %v16062_v17 = vpack.c.bf16 %v7736_v0, %v7732_v46  ;;  %v7746_v39 = vld [vmem:[#allocation17 + $0x170] sm:$0xff] }
 0xdb8   :  { %11897 = vmatpush1.bf16.msra.mxu0 %v16024_v12  ;;  %11929 = vmatpush1.bf16.msra.mxu1 %v16026_v45  ;;  %v7735_v12 = vld [vmem:[#allocation17 + $0x118] sm:$0xff]  ;;  %v16056_v14 = vpack.c.bf16 %v7737_v63, %v7733_v33  ;;  %v7740_v63 = vld [vmem:[#allocation17 + $0x140] sm:$0xff]  ;;  %v7753_v0 = vld [vmem:[#allocation17 + $0x1a8] sm:$0xff] }
 0xdb9   :  { %11899 = vmatprep.subr.bf16.mxu0 %v16030_v42  ;;  %11931 = vmatprep.subr.bf16.mxu1 %v16032_v11  ;;  %v7739_v45 = vld [vmem:[#allocation17 + $0x138] sm:$0xff]  ;;  %17036 = vst [vmem:[#allocation33_spill] sm:$0xff] %v16052_v35  ;;  %v7741_v11 = vld [vmem:[#allocation17 + $0x148] sm:$0xff] }
 0xdba   :  { %v16058_v2 = vpack.c.bf16 %v7739_v45, %v7735_v12  ;;  %v7745_v42 = vld [vmem:[#allocation17 + $0x168] sm:$0xff]  ;;  %v7744_v12 = vld [vmem:[#allocation17 + $0x160] sm:$0xff] }
 0xdbb   :  { %v16068_v27 = vpack.c.bf16 %v7745_v42, %v7741_v11  ;;  %v7748_v11 = vld [vmem:[#allocation17 + $0x180] sm:$0xff] }
 0xdbc   :  { %11901 = vmatpush1.bf16.msra.mxu0 %v16038_v18  ;;  %11933 = vmatpush1.bf16.msra.mxu1 %v16040_v9  ;;  %v13091_v18 = vpop.eup %13090  ;;  %v7743_v9 = vld [vmem:[#allocation17 + $0x158] sm:$0xff] }
 0xdbd   :  { %11903 = vmatprep.subr.bf16.mxu0 %v16044_v26  ;;  %11935 = vmatprep.subr.bf16.mxu1 %v16046_v4  ;;  %v13093_v22 = vpop.eup %13092  ;;  %v16064_v4 = vpack.c.bf16 %v7738_v34, %v7734_v21  ;;  %v7448_v26 = vadd.f32 1.0, %v13091_v18  ;;  %v16070_v47 = vpack.c.bf16 %v7747_v62, %v7743_v9  ;;  %v7751_v21 = vld [vmem:[#allocation17 + $0x198] sm:$0xff]  ;;  %v16077_v18 = vpack.c.bf16 %v7744_v12, %v7740_v63  ;;  %v7752_v9 = vld [vmem:[#allocation17 + $0x1a0] sm:$0xff] }
 0xdbe   :  { %v7755_v34 = vld [vmem:[#allocation17 + $0x1b8] sm:$0xff] }
 0xdbf   :  { %13098 = vrcp.f32 %v7448_v26  ;;  %v16085_v62 = vpack.c.bf16 %v7755_v34, %v7751_v21  ;;  %v7763_v63 = vld [vmem:[#allocation17 + $0x1f8] sm:$0xff]  ;;  %v7758_v21 = vld [vmem:[#allocation17 + $0x1d0] sm:$0xff] }
 0xdc0   :  { %v13095_v13 = vpop.eup %13094  ;;  %11905 = vmatpush1.bf16.msra.mxu0 %v16050_v37  ;;  %11937 = vmatpush1.bf16.msra.mxu1 %v16052_v35  ;;  %v7742_v37 = vld [vmem:[#allocation17 + $0x150] sm:$0xff]  ;;  %v7749_v35 = vld [vmem:[#allocation17 + $0x188] sm:$0xff] }
 0xdc1   :  { %v13097_v45 = vpop.eup %13096  ;;  %v7452_v33 = vmul.f32 %v13095_v13, %v13093_v22  ;;  %11907 = vmatprep.subr.bf16.mxu0 %v16056_v14  ;;  %11939 = vmatprep.subr.bf16.mxu1 %v16058_v2  ;;  %v16079_v42 = vpack.c.bf16 %v7746_v39, %v7742_v37  ;;  %v7750_v22 = vld [vmem:[#allocation17 + $0x190] sm:$0xff]  ;;  %v16090_v39 = vpack.c.bf16 %v7752_v9, %v7748_v11  ;;  %v7756_v37 = vld [vmem:[#allocation17 + $0x1c0] sm:$0xff] }
 0xdc2   :  { %v7451_v46 = vmul.f32 %v13097_v45, %v15873_v20  ;;  %v16083_v20 = vpack.c.bf16 %v7753_v0, %v7749_v35  ;;  %v7754_v13 = vld [vmem:[#allocation17 + $0x1b0] sm:$0xff]  ;;  %v7757_v45 = vld [vmem:[#allocation17 + $0x1c8] sm:$0xff]  ;;  %v7760_v0 = vld [vmem:[#allocation17 + $0x1e0] sm:$0xff] }
 0xdc3   :  { %v16092_v26 = vpack.c.bf16 %v7754_v13, %v7750_v22  ;;  %v7762_v34 = vld [vmem:[#allocation17 + $0x1f0] sm:$0xff]  ;;  %v16102_v11 = vpack.c.bf16 %v7760_v0, %v7756_v37  ;;  %v17044_v37 = vld [vmem:[#allocation61_spill] sm:$0xff] }
 0xdc4   :  { %v16073_v52 = vadd.f32 %v7452_v33, %v7451_v46  ;;  %11909 = vmatpush1.bf16.msra.mxu0 %v16062_v17  ;;  %11941 = vmatpush1.bf16.msra.mxu1 %v16064_v4  ;;  %v7761_v33 = vld [vmem:[#allocation17 + $0x1e8] sm:$0xff]  ;;  %v7759_v46 = vld [vmem:[#allocation17 + $0x1d8] sm:$0xff]  ;;  %v16104_v9 = vpack.c.bf16 %v7762_v34, %v7758_v21 }
 0xdc5   :  { %11911 = vmatprep.subr.bf16.mxu0 %v16068_v27  ;;  %11943 = vmatprep.subr.bf16.mxu1 %v16070_v47  ;;  %v16096_v35 = vpack.c.bf16 %v7761_v33, %v7757_v45  ;;  %v16098_v12 = vpack.c.bf16 %v7763_v63, %v7759_v46 }
 0xdc6   :  { %13100 = vtanh.f32 %v16073_v52 }
 0xdc8   :  { %11913 = vmatpush1.bf16.msra.mxu0 %v16077_v18  ;;  %11945 = vmatpush1.bf16.msra.mxu1 %v16079_v42 }
 0xdc9   :  { %11915 = vmatprep.subr.bf16.mxu0 %v16083_v20  ;;  %11947 = vmatprep.subr.bf16.mxu1 %v16085_v62  ;;  %v13099_v22 = vpop.eup %13098 }
 0xdcc   :  { %11917 = vmatpush1.bf16.msra.mxu0 %v16090_v39  ;;  %11949 = vmatpush1.bf16.msra.mxu1 %v16092_v26 }
 0xdcd   :  { %11919 = vmatprep.subr.bf16.mxu0 %v16096_v35  ;;  %11951 = vmatprep.subr.bf16.mxu1 %v16098_v12 }
 0xdd0   :  { %v13101_v13 = vpop.eup %13100  ;;  %11921 = vmatpush1.bf16.msra.mxu0 %v16102_v11  ;;  %11953 = vmatpush1.bf16.msra.mxu1 %v16104_v9 }
 0xdd1   :  { %v16110_v45 = vmul.f32 %v13101_v13, %v13099_v22  ;;  %11955 = vmatprep.subr.bf16.mxu0 %v15896_v50  ;;  %11987 = vmatprep.subr.bf16.mxu1 %v15898_v38 }
 0xdd3   :  { %17037 = vst [vmem:[#allocation44_spill] sm:$0xff] %v16110_v45  ;;  %7829 = vmatmul.mubr.f32.vlgmr.msra.gmra.mrb[54].mxu0 %v16110_v45  ;;  %7900 = vmatmul.mubr.f32.vlgmr.msra.gmra.mrb[60].mxu1 %v16110_v45 }
 0xdd4   :  { %11957 = vmatpush1.bf16.msra.mxu0 %v15900_v28  ;;  %11989 = vmatpush1.bf16.msra.mxu1 %v15903_v29 }
 0xdd5   :  { %11959 = vmatprep.subr.bf16.mxu0 %v15908_v5  ;;  %11991 = vmatprep.subr.bf16.mxu1 %v15910_v54  ;;  %v17038_v54 = vld [vmem:[#allocation56_spill] sm:$0xff] }
 0xdd6   :  { %8068 = vmatprep.mubr.f32.mxu0 %v16811_v41  ;;  %8139 = vmatprep.mubr.f32.mxu1 %v16811_v41 }
 0xdd8   :  { %11961 = vmatpush1.bf16.msra.mxu0 %v15912_v16  ;;  %11993 = vmatpush1.bf16.msra.mxu1 %v15915_v30 }
 0xdd9   :  { %11963 = vmatprep.subr.bf16.mxu0 %v15920_v8  ;;  %11995 = vmatprep.subr.bf16.mxu1 %v15922_v55  ;;  %v17039_v55 = vld [vmem:[#allocation57_spill] sm:$0xff] }
 0xddc   :  { %11965 = vmatpush1.bf16.msra.mxu0 %v15924_v31  ;;  %11997 = vmatpush1.bf16.msra.mxu1 %v15927_v44 }
 0xddd   :  { %11967 = vmatprep.subr.bf16.mxu0 %v15932_v7  ;;  %11999 = vmatprep.subr.bf16.mxu1 %v15934_v15  ;;  %v17040_v7 = vld [vmem:[#allocation58_spill] sm:$0xff] }
 0xde0   :  { %11969 = vmatpush1.bf16.msra.mxu0 %v15936_v53  ;;  %12001 = vmatpush1.bf16.msra.mxu1 %v15939_v23 }
 0xde1   :  { %11971 = vmatprep.subr.bf16.mxu0 %v15944_v6  ;;  %12003 = vmatprep.subr.bf16.mxu1 %v15946_v25 }
 0xde4   :  { %11973 = vmatpush1.bf16.msra.mxu0 %v15948_v1  ;;  %12005 = vmatpush1.bf16.msra.mxu1 %v15951_v40 }
 0xde5   :  { %11975 = vmatprep.subr.bf16.mxu0 %v15956_v49  ;;  %12007 = vmatprep.subr.bf16.mxu1 %v15958_v60 }
 0xde8   :  { %11977 = vmatpush1.bf16.msra.mxu0 %v15960_v59  ;;  %12009 = vmatpush1.bf16.msra.mxu1 %v15963_v32 }
 0xde9   :  { %11979 = vmatprep.subr.bf16.mxu0 %v15968_v10  ;;  %12011 = vmatprep.subr.bf16.mxu1 %v15970_v57  ;;  %v17041_v10 = vld [vmem:[#allocation30_spill] sm:$0xff] }
 0xdec   :  { %11981 = vmatpush1.bf16.msra.mxu0 %v15972_v24  ;;  %12013 = vmatpush1.bf16.msra.mxu1 %v15975_v36 }
 0xded   :  { %11983 = vmatprep.subr.bf16.mxu0 %v15980_v56  ;;  %12015 = vmatprep.subr.bf16.mxu1 %v15982_v19  ;;  %v17042_v19 = vld [vmem:[#allocation59_spill] sm:$0xff] }
 0xdf0   :  { %11985 = vmatpush1.bf16.msra.mxu0 %v15984_v61  ;;  %12017 = vmatpush1.bf16.msra.mxu1 %v15987_v48 }
 0xdf1   :  { %12019 = vmatprep.subr.bf16.mxu0 %v15992_v58  ;;  %12051 = vmatprep.subr.bf16.mxu1 %v15994_v3  ;;  %v17043_v3 = vld [vmem:[#allocation60_spill] sm:$0xff] }
 0xe86   :  { %v7592_v50 = vpop.f32.mrb[40].mxu0  ;;  %v7663_v38 = vpop.f32.mrb[46].mxu1 }
 0xe87   :  { %v12522_v28 = vadd.f32 %v7592_v50, %v15502_v51  ;;  %v7594_v29 = vpop.f32.mrb[41].mxu0  ;;  %v7665_v5 = vpop.f32.mrb[47].mxu1  ;;  %v12538_v15 = vadd.f32 %v7663_v38, %v17040_v7 }
 0xe88   :  { %v12523_v16 = vadd.f32 %v7594_v29, %v17038_v54  ;;  %v12539_v31 = vadd.f32 %v7665_v5, %v17039_v55  ;;  %v17046_v5 = vld [vmem:[#allocation36_spill] sm:$0xff] }
 0xe89   :  { %v9865_v30 = vmul.f32 -1.442695, %v12522_v28 }
 0xe8a   :  { %v9866_v8 = vmul.f32 -1.442695, %v12523_v16  ;;  %v9867_v44 = vmul.f32 -1.442695, %v12539_v31  ;;  %v17047_v16 = vld [vmem:[#allocation31_spill] sm:$0xff] }
 0xe8b   :  { %13102 = vpow2.f32 %v9865_v30  ;;  %v17049_v31 = vld [vmem:[#allocation51_spill] sm:$0xff] }
 0xe8c   :  { %13104 = vpow2.f32 %v9866_v8  ;;  %v17048_v8 = vld [vmem:[#allocation39_spill] sm:$0xff] }
 0xe8d   :  { %13106 = vpow2.f32 %v9867_v44  ;;  %v17050_v44 = vld [vmem:[#allocation42_spill] sm:$0xff] }
 0xe8e   :  { %13108 = vtanh.f32 %v12538_v15  ;;  %v17051_v15 = vld [vmem:[#allocation41_spill] sm:$0xff] }
 0xe95   :  { %v13103_v53 = vpop.eup %13102 }
 0xe96   :  { %v13105_v23 = vpop.eup %13104  ;;  %v7675_v6 = vadd.f32 1.0, %v13103_v53  ;;  %v17052_v53 = vld [vmem:[#allocation43_spill] sm:$0xff] }
 0xe97   :  { %v7681_v25 = vadd.f32 1.0, %v13105_v23  ;;  %v13107_v1 = vpop.eup %13106  ;;  %v17053_v23 = vld [vmem:[#allocation53_spill] sm:$0xff] }
 0xe98   :  { %13110 = vrcp.f32 %v7675_v6  ;;  %v13109_v40 = vpop.eup %13108  ;;  %v7688_v32 = vadd.f32 1.0, %v13107_v1  ;;  %v17054_v6 = vld [vmem:[#allocation54_spill] sm:$0xff]  ;;  %v17056_v1 = vld [vmem:[#allocation28_spill] sm:$0xff] }
 0xe99   :  { %13112 = vrcp.f32 %v7681_v25  ;;  %v17055_v25 = vld [vmem:[#allocation65_spill] sm:$0xff] }
 0xe9a   :  { %13114 = vrcp.f32 %v7688_v32  ;;  %v17058_v32 = vld [vmem:[#allocation32_spill] sm:$0xff] }
 0xea2   :  { %v13111_v49 = vpop.eup %13110 }
 0xea3   :  { %v13113_v60 = vpop.eup %13112  ;;  %v7692_v59 = vmul.f32 %v13111_v49, %v13109_v40  ;;  %v17057_v40 = vld [vmem:[#allocation29_spill] sm:$0xff] }
 0xea4   :  { %v7691_v57 = vmul.f32 %v13113_v60, %v17041_v10  ;;  %v13115_v21 = vpop.eup %13114  ;;  %v17059_v10 = vld [vmem:[#allocation33_spill] sm:$0xff] }
 0xea6   :  { %v16155_v24 = vadd.f32 %v7692_v59, %v7691_v57  ;;  %v7830_v36 = vpop.f32.mrb[54].mxu0  ;;  %v7901_v56 = vpop.f32.mrb[60].mxu1 }
 0xea7   :  { %v12552_v61 = vadd.f32 %v7830_v36, %v17042_v19  ;;  %v7832_v48 = vpop.f32.mrb[55].mxu0  ;;  %v7903_v58 = vpop.f32.mrb[61].mxu1  ;;  %v12568_v13 = vadd.f32 %v7901_v56, %v15536_v43 }
 0xea8   :  { %v12553_v33 = vadd.f32 %v7832_v48, %v17043_v3  ;;  %13116 = vtanh.f32 %v16155_v24  ;;  %v12569_v0 = vadd.f32 %v7903_v58, %v17044_v37  ;;  %v8429_v58 = vld [vmem:[#allocation14 + $0x58] sm:$0xff] }
 0xea9   :  { %v9868_v46 = vmul.f32 -1.442695, %v12552_v61 }
 0xeaa   :  { %v9869_v63 = vmul.f32 -1.442695, %v12553_v33  ;;  %v9870_v22 = vmul.f32 -1.442695, %v12569_v0  ;;  %v8430_v0 = vld [vmem:[#allocation14 + $0x60] sm:$0xff] }
 0xeab   :  { %13118 = vpow2.f32 %v9868_v46  ;;  %v8433_v46 = vld [vmem:[#allocation14 + $0x78] sm:$0xff] }
 0xeac   :  { %13120 = vpow2.f32 %v9869_v63  ;;  %v8426_v63 = vld [vmem:[#allocation14 + $0x40] sm:$0xff] }
 0xead   :  { %13122 = vpow2.f32 %v9870_v22  ;;  %v8428_v22 = vld [vmem:[#allocation14 + $0x50] sm:$0xff] }
 0xeae   :  { %13124 = vtanh.f32 %v12568_v13  ;;  %v8432_v13 = vld [vmem:[#allocation14 + $0x70] sm:$0xff] }
 0xeb2   :  { %v13117_v34 = vpop.eup %13116 }
 0xeb3   :  { %v16162_v50 = vmul.f32 %v13117_v34, %v13115_v21  ;;  %v16222_v21 = vpack.c.bf16 %v8433_v46, %v8429_v58  ;;  %v16224_v34 = vpack.c.bf16 %v8430_v0, %v8426_v63  ;;  %v8459_v58 = vld [vmem:[#allocation14 + $0x148] sm:$0xff]  ;;  %v8461_v63 = vld [vmem:[#allocation14 + $0x158] sm:$0xff] }
 0xeb4   :  { %v8463_v46 = vld [vmem:[#allocation14 + $0x168] sm:$0xff] }
 0xeb5   :  { %17045 = vst [vmem:[#allocation49_spill] sm:$0xff] %v16162_v50  ;;  %v13119_v38 = vpop.eup %13118  ;;  %8069 = vmatmul.mubr.f32.vlgmr.msra.gmra.mrb[42].mxu0 %v16162_v50  ;;  %8140 = vmatmul.mubr.f32.vlgmr.msra.gmra.mrb[48].mxu1 %v16162_v50  ;;  %v16268_v0 = vpack.c.bf16 %v8463_v46, %v8459_v58  ;;  %v8478_v58 = vld [vmem:[#allocation14 + $0x1e0] sm:$0xff] }
 0xeb6   :  { %v13121_v28 = vpop.eup %13120  ;;  %v7913_v29 = vadd.f32 1.0, %v13119_v38  ;;  %12021 = vmatpush1.bf16.msra.mxu0 %v17046_v5  ;;  %12053 = vmatpush1.bf16.msra.mxu1 %v17047_v16  ;;  %v16227_v38 = vpack.c.bf16 %v8432_v13, %v8428_v22  ;;  %v8437_v5 = vld [vmem:[#allocation14 + $0x98] sm:$0xff]  ;;  %v8458_v13 = vld [vmem:[#allocation14 + $0x140] sm:$0xff] }
 0xeb7   :  { %v7919_v30 = vadd.f32 1.0, %v13121_v28  ;;  %12023 = vmatprep.subr.bf16.mxu0 %v17048_v8  ;;  %12055 = vmatprep.subr.bf16.mxu1 %v17049_v31  ;;  %v13123_v49 = vpop.eup %13122  ;;  %v8435_v28 = vld [vmem:[#allocation14 + $0x88] sm:$0xff]  ;;  %v8434_v8 = vld [vmem:[#allocation14 + $0x80] sm:$0xff]  ;;  %v8465_v22 = vld [vmem:[#allocation14 + $0x178] sm:$0xff] }
 0xeb8   :  { %13126 = vrcp.f32 %v7913_v29  ;;  %8306 = vmatprep.mubr.f32.mxu0 %v16811_v41  ;;  %8377 = vmatprep.mubr.f32.mxu1 %v16811_v41  ;;  %v13125_v60 = vpop.eup %13124  ;;  %v7926_v56 = vadd.f32 1.0, %v13123_v49  ;;  %v8439_v29 = vld [vmem:[#allocation14 + $0xa8] sm:$0xff]  ;;  %v8438_v31 = vld [vmem:[#allocation14 + $0xa0] sm:$0xff] }
 0xeb9   :  { %13128 = vrcp.f32 %v7919_v30  ;;  %v16232_v16 = vpack.c.bf16 %v8439_v29, %v8435_v28  ;;  %v8441_v30 = vld [vmem:[#allocation14 + $0xb8] sm:$0xff]  ;;  %v8462_v28 = vld [vmem:[#allocation14 + $0x160] sm:$0xff]  ;;  %v16270_v29 = vpack.c.bf16 %v8465_v22, %v8461_v63  ;;  %v8476_v22 = vld [vmem:[#allocation14 + $0x1d0] sm:$0xff] }
 0xeba   :  { %12025 = vmatpush1.bf16.msra.mxu0 %v17050_v44  ;;  %12057 = vmatpush1.bf16.msra.mxu1 %v17051_v15  ;;  %13130 = vrcp.f32 %v7926_v56  ;;  %v16234_v44 = vpack.c.bf16 %v8441_v30, %v8437_v5  ;;  %v16236_v15 = vpack.c.bf16 %v8438_v31, %v8434_v8  ;;  %v8448_v56 = vld [vmem:[#allocation14 + $0xf0] sm:$0xff]  ;;  %v16272_v5 = vpack.c.bf16 %v8462_v28, %v8458_v13 }
 0xebb   :  { %12027 = vmatprep.subr.bf16.mxu0 %v17052_v53  ;;  %12059 = vmatprep.subr.bf16.mxu1 %v17053_v23  ;;  %v8436_v53 = vld [vmem:[#allocation14 + $0x90] sm:$0xff] }
 0xebc   :  { %v8440_v23 = vld [vmem:[#allocation14 + $0xb0] sm:$0xff] }
 0xebd   :  { %v8460_v30 = vld [vmem:[#allocation14 + $0x150] sm:$0xff] }
 0xebe   :  { %12029 = vmatpush1.bf16.msra.mxu0 %v17054_v6  ;;  %12061 = vmatpush1.bf16.msra.mxu1 %v17055_v25  ;;  %v16239_v6 = vpack.c.bf16 %v8440_v23, %v8436_v53  ;;  %v8443_v25 = vld [vmem:[#allocation14 + $0xc8] sm:$0xff]  ;;  %v8464_v8 = vld [vmem:[#allocation14 + $0x170] sm:$0xff] }
 0xebf   :  { %12031 = vmatprep.subr.bf16.mxu0 %v17056_v1  ;;  %12063 = vmatprep.subr.bf16.mxu1 %v17057_v40  ;;  %v8447_v1 = vld [vmem:[#allocation14 + $0xe8] sm:$0xff]  ;;  %v8445_v40 = vld [vmem:[#allocation14 + $0xd8] sm:$0xff]  ;;  %v16275_v31 = vpack.c.bf16 %v8464_v8, %v8460_v30  ;;  %v8480_v13 = vld [vmem:[#allocation14 + $0x1f0] sm:$0xff] }
 0xec0   :  { %v16244_v49 = vpack.c.bf16 %v8447_v1, %v8443_v25  ;;  %v8467_v53 = vld [vmem:[#allocation14 + $0x188] sm:$0xff]  ;;  %v8469_v25 = vld [vmem:[#allocation14 + $0x198] sm:$0xff]  ;;  %v16299_v28 = vpack.c.bf16 %v8480_v13, %v8476_v22 }
 0xec1   :  { %v8471_v23 = vld [vmem:[#allocation14 + $0x1a8] sm:$0xff] }
 0xec2   :  { %v13127_v59 = vpop.eup %13126  ;;  %12033 = vmatpush1.bf16.msra.mxu0 %v17058_v32  ;;  %12065 = vmatpush1.bf16.msra.mxu1 %v17059_v10  ;;  %v8446_v32 = vld [vmem:[#allocation14 + $0xe0] sm:$0xff]  ;;  %v16280_v1 = vpack.c.bf16 %v8471_v23, %v8467_v53  ;;  %v8657_v30 = vld [vmem:[#allocation17 + $0x8] sm:$0xff]  ;;  %v8659_v53 = vld [vmem:[#allocation17 + $0x18] sm:$0xff] }
 0xec3   :  { %v13129_v57 = vpop.eup %13128  ;;  %v7930_v36 = vmul.f32 %v13127_v59, %v13125_v60  ;;  %12035 = vmatprep.subr.bf16.mxu0 %v16056_v14  ;;  %12067 = vmatprep.subr.bf16.mxu1 %v16058_v2  ;;  %v8423_v14 = vld [vmem:[#allocation14 + $0x28] sm:$0xff]  ;;  %v8421_v2 = vld [vmem:[#allocation14 + $0x18] sm:$0xff]  ;;  %v8442_v59 = vld [vmem:[#allocation14 + $0xc0] sm:$0xff] }
 0xec4   :  { %v7929_v61 = vmul.f32 %v13129_v57, %v16073_v52  ;;  %v8449_v60 = vld [vmem:[#allocation14 + $0xf8] sm:$0xff]  ;;  %v16248_v57 = vpack.c.bf16 %v8446_v32, %v8442_v59  ;;  %v8470_v59 = vld [vmem:[#allocation14 + $0x1a0] sm:$0xff]  ;;  %v8661_v8 = vld [vmem:[#allocation17 + $0x28] sm:$0xff] }
 0xec5   :  { %v16246_v10 = vpack.c.bf16 %v8449_v60, %v8445_v40  ;;  %v8473_v40 = vld [vmem:[#allocation14 + $0x1b8] sm:$0xff]  ;;  %v8466_v60 = vld [vmem:[#allocation14 + $0x180] sm:$0xff]  ;;  %v16304_v23 = vpack.c.bf16 %v8661_v8, %v8657_v30 }
 0xec6   :  { %v16185_v48 = vadd.f32 %v7930_v36, %v7929_v61  ;;  %12037 = vmatpush1.bf16.msra.mxu0 %v16062_v17  ;;  %12069 = vmatpush1.bf16.msra.mxu1 %v16064_v4  ;;  %v8419_v4 = vld [vmem:[#allocation14 + $0x8] sm:$0xff]  ;;  %v8444_v36 = vld [vmem:[#allocation14 + $0xd0] sm:$0xff]  ;;  %v16282_v32 = vpack.c.bf16 %v8473_v40, %v8469_v25  ;;  %v8663_v25 = vld [vmem:[#allocation17 + $0x38] sm:$0xff] }
 0xec7   :  { %12039 = vmatprep.subr.bf16.mxu0 %v16068_v27  ;;  %12071 = vmatprep.subr.bf16.mxu1 %v16070_v47  ;;  %v13131_v27 = vpop.eup %13130  ;;  %v16208_v17 = vpack.c.bf16 %v8423_v14, %v8419_v4  ;;  %v16251_v61 = vpack.c.bf16 %v8448_v56, %v8444_v36  ;;  %v8453_v4 = vld [vmem:[#allocation14 + $0x118] sm:$0xff]  ;;  %v16284_v36 = vpack.c.bf16 %v8470_v59, %v8466_v60  ;;  %v8468_v56 = vld [vmem:[#allocation14 + $0x190] sm:$0xff] }
 0xec8   :  { %13132 = vtanh.f32 %v16185_v48  ;;  %v16306_v40 = vpack.c.bf16 %v8663_v25, %v8659_v53 }
 0xeca   :  { %12041 = vmatpush1.bf16.msra.mxu0 %v16077_v18  ;;  %12073 = vmatpush1.bf16.msra.mxu1 %v16079_v42  ;;  %v8425_v18 = vld [vmem:[#allocation14 + $0x38] sm:$0xff]  ;;  %v8418_v42 = vld [vmem:[#allocation14] sm:$0xff] }
 0xecb   :  { %12043 = vmatprep.subr.bf16.mxu0 %v16083_v20  ;;  %12075 = vmatprep.subr.bf16.mxu1 %v16085_v62  ;;  %v8422_v20 = vld [vmem:[#allocation14 + $0x20] sm:$0xff]  ;;  %v16210_v62 = vpack.c.bf16 %v8425_v18, %v8421_v2  ;;  %v8457_v2 = vld [vmem:[#allocation14 + $0x138] sm:$0xff] }
 0xecc   :  { %v8450_v18 = vld [vmem:[#allocation14 + $0x100] sm:$0xff] }
 0xece   :  { %12045 = vmatpush1.bf16.msra.mxu0 %v16090_v39  ;;  %12077 = vmatpush1.bf16.msra.mxu1 %v16092_v26  ;;  %v16212_v39 = vpack.c.bf16 %v8422_v20, %v8418_v42  ;;  %v8420_v26 = vld [vmem:[#allocation14 + $0x10] sm:$0xff]  ;;  %v8454_v42 = vld [vmem:[#allocation14 + $0x120] sm:$0xff]  ;;  %v16258_v20 = vpack.c.bf16 %v8457_v2, %v8453_v4  ;;  %v8475_v4 = vld [vmem:[#allocation14 + $0x1c8] sm:$0xff] }
 0xecf   :  { %12047 = vmatprep.subr.bf16.mxu0 %v16096_v35  ;;  %12079 = vmatprep.subr.bf16.mxu1 %v16098_v12  ;;  %v8424_v35 = vld [vmem:[#allocation14 + $0x30] sm:$0xff]  ;;  %v8479_v2 = vld [vmem:[#allocation14 + $0x1e8] sm:$0xff] }
 0xed0   :  { %v16215_v12 = vpack.c.bf16 %v8424_v35, %v8420_v26  ;;  %v16260_v26 = vpack.c.bf16 %v8454_v42, %v8450_v18  ;;  %v8452_v35 = vld [vmem:[#allocation14 + $0x110] sm:$0xff]  ;;  %v8477_v18 = vld [vmem:[#allocation14 + $0x1d8] sm:$0xff]  ;;  %v16292_v42 = vpack.c.bf16 %v8479_v2, %v8475_v4 }
 0xed2   :  { %v13133_v52 = vpop.eup %13132  ;;  %12049 = vmatpush1.bf16.msra.mxu0 %v16102_v11  ;;  %12081 = vmatpush1.bf16.msra.mxu1 %v16104_v9  ;;  %v8427_v11 = vld [vmem:[#allocation14 + $0x48] sm:$0xff] }
 0xed3   :  { %v16202_v47 = vmul.f32 %v13133_v52, %v13131_v27  ;;  %12083 = vmatprep.subr.bf16.mxu0 %v16208_v17  ;;  %12115 = vmatprep.subr.bf16.mxu1 %v16210_v62  ;;  %v8431_v9 = vld [vmem:[#allocation14 + $0x68] sm:$0xff] }
 0xed4   :  { %v16220_v33 = vpack.c.bf16 %v8431_v9, %v8427_v11  ;;  %v8451_v27 = vld [vmem:[#allocation14 + $0x108] sm:$0xff]  ;;  %v8456_v11 = vld [vmem:[#allocation14 + $0x130] sm:$0xff] }
 0xed5   :  { %17060 = vst [vmem:[#allocation46_spill] sm:$0xff] %v16202_v47  ;;  %8307 = vmatmul.mubr.f32.vlgmr.msra.gmra.mrb[52].mxu0 %v16202_v47  ;;  %8378 = vmatmul.mubr.f32.vlgmr.msra.gmra.mrb[58].mxu1 %v16202_v47  ;;  %v8455_v52 = vld [vmem:[#allocation14 + $0x128] sm:$0xff]  ;;  %v16263_v9 = vpack.c.bf16 %v8456_v11, %v8452_v35  ;;  %v8481_v35 = vld [vmem:[#allocation14 + $0x1f8] sm:$0xff]  ;;  %v8474_v11 = vld [vmem:[#allocation14 + $0x1c0] sm:$0xff] }
 0xed6   :  { %8546 = vmatprep.mubr.f32.mxu0 %v16811_v41  ;;  %8617 = vmatprep.mubr.f32.mxu1 %v16811_v41  ;;  %v16256_v14 = vpack.c.bf16 %v8455_v52, %v8451_v27  ;;  %v8472_v27 = vld [vmem:[#allocation14 + $0x1b0] sm:$0xff]  ;;  %v16294_v46 = vpack.c.bf16 %v8481_v35, %v8477_v18  ;;  %v16296_v63 = vpack.c.bf16 %v8478_v58, %v8474_v11 }
 0xed7   :  { %12085 = vmatpush1.bf16.msra.mxu0 %v16212_v39  ;;  %12117 = vmatpush1.bf16.msra.mxu1 %v16215_v12  ;;  %v16287_v52 = vpack.c.bf16 %v8472_v27, %v8468_v56 }
 0xed8   :  { %12087 = vmatprep.subr.bf16.mxu0 %v16220_v33  ;;  %12119 = vmatprep.subr.bf16.mxu1 %v16222_v21 }
 0xedb   :  { %12089 = vmatpush1.bf16.msra.mxu0 %v16224_v34  ;;  %12121 = vmatpush1.bf16.msra.mxu1 %v16227_v38 }
 0xedc   :  { %12091 = vmatprep.subr.bf16.mxu0 %v16232_v16  ;;  %12123 = vmatprep.subr.bf16.mxu1 %v16234_v44 }
 0xedf   :  { %12093 = vmatpush1.bf16.msra.mxu0 %v16236_v15  ;;  %12125 = vmatpush1.bf16.msra.mxu1 %v16239_v6 }
 0xee0   :  { %12095 = vmatprep.subr.bf16.mxu0 %v16244_v49  ;;  %12127 = vmatprep.subr.bf16.mxu1 %v16246_v10 }
 0xee3   :  { %12097 = vmatpush1.bf16.msra.mxu0 %v16248_v57  ;;  %12129 = vmatpush1.bf16.msra.mxu1 %v16251_v61 }
 0xee4   :  { %12099 = vmatprep.subr.bf16.mxu0 %v16256_v14  ;;  %12131 = vmatprep.subr.bf16.mxu1 %v16258_v20 }
 0xee7   :  { %12101 = vmatpush1.bf16.msra.mxu0 %v16260_v26  ;;  %12133 = vmatpush1.bf16.msra.mxu1 %v16263_v9 }
 0xee8   :  { %12103 = vmatprep.subr.bf16.mxu0 %v16268_v0  ;;  %12135 = vmatprep.subr.bf16.mxu1 %v16270_v29 }
 0xeeb   :  { %12105 = vmatpush1.bf16.msra.mxu0 %v16272_v5  ;;  %12137 = vmatpush1.bf16.msra.mxu1 %v16275_v31 }
 0xeec   :  { %12107 = vmatprep.subr.bf16.mxu0 %v16280_v1  ;;  %12139 = vmatprep.subr.bf16.mxu1 %v16282_v32 }
 0xeef   :  { %12109 = vmatpush1.bf16.msra.mxu0 %v16284_v36  ;;  %12141 = vmatpush1.bf16.msra.mxu1 %v16287_v52 }
 0xef0   :  { %12111 = vmatprep.subr.bf16.mxu0 %v16292_v42  ;;  %12143 = vmatprep.subr.bf16.mxu1 %v16294_v46 }
 0xef3   :  { %12113 = vmatpush1.bf16.msra.mxu0 %v16296_v63  ;;  %12145 = vmatpush1.bf16.msra.mxu1 %v16299_v28 }
 0xef4   :  { %12147 = vmatprep.subr.bf16.mxu0 %v16304_v23  ;;  %12179 = vmatprep.subr.bf16.mxu1 %v16306_v40 }
 0xf88   :  { %v8070_v60 = vpop.f32.mrb[42].mxu0  ;;  %v8141_v59 = vpop.f32.mrb[48].mxu1 }
 0xf89   :  { %v12524_v56 = vadd.f32 %v8070_v60, %v15502_v51  ;;  %v8072_v27 = vpop.f32.mrb[43].mxu0  ;;  %v8143_v4 = vpop.f32.mrb[49].mxu1  ;;  %v12540_v22 = vadd.f32 %v8141_v59, %v17040_v7  ;;  %v8673_v7 = vld [vmem:[#allocation17 + $0x88] sm:$0xff] }
 0xf8a   :  { %v12525_v2 = vadd.f32 %v8072_v27, %v17038_v54  ;;  %v12541_v11 = vadd.f32 %v8143_v4, %v17039_v55  ;;  %v8677_v55 = vld [vmem:[#allocation17 + $0xa8] sm:$0xff]  ;;  %v8675_v54 = vld [vmem:[#allocation17 + $0x98] sm:$0xff] }
 0xf8b   :  { %v9871_v18 = vmul.f32 -1.442695, %v12524_v56 }
 0xf8c   :  { %v9872_v35 = vmul.f32 -1.442695, %v12525_v2  ;;  %v9873_v58 = vmul.f32 -1.442695, %v12541_v11 }
 0xf8d   :  { %13134 = vpow2.f32 %v9871_v18 }
 0xf8e   :  { %13136 = vpow2.f32 %v9872_v35 }
 0xf8f   :  { %13138 = vpow2.f32 %v9873_v58 }
 0xf90   :  { %13140 = vtanh.f32 %v12540_v22 }
 0xf97   :  { %v13135_v13 = vpop.eup %13134 }
 0xf98   :  { %v13137_v30 = vpop.eup %13136  ;;  %v8153_v8 = vadd.f32 1.0, %v13135_v13 }
 0xf99   :  { %v8159_v53 = vadd.f32 1.0, %v13137_v30  ;;  %v13139_v25 = vpop.eup %13138 }
 0xf9a   :  { %13142 = vrcp.f32 %v8153_v8  ;;  %v13141_v60 = vpop.eup %13140  ;;  %v8166_v18 = vadd.f32 1.0, %v13139_v25 }
 0xf9b   :  { %13144 = vrcp.f32 %v8159_v53 }
 0xf9c   :  { %13146 = vrcp.f32 %v8166_v18  ;;  %v8669_v18 = vld [vmem:[#allocation17 + $0x68] sm:$0xff] }
 0xfa4   :  { %v13143_v27 = vpop.eup %13142 }
 0xfa5   :  { %v13145_v56 = vpop.eup %13144  ;;  %v8170_v2 = vmul.f32 %v13143_v27, %v13141_v60  ;;  %v8660_v60 = vld [vmem:[#allocation17 + $0x20] sm:$0xff]  ;;  %v8658_v27 = vld [vmem:[#allocation17 + $0x10] sm:$0xff] }
 0xfa6   :  { %v8169_v35 = vmul.f32 %v13145_v56, %v16155_v24  ;;  %v8656_v24 = vld [vmem:[#allocation17] sm:$0xff]  ;;  %v8662_v56 = vld [vmem:[#allocation17 + $0x30] sm:$0xff]  ;;  %v13147_v50 = vpop.eup %13146 }
 0xfa8   :  { %v16315_v4 = vadd.f32 %v8170_v2, %v8169_v35  ;;  %v8308_v11 = vpop.f32.mrb[52].mxu0  ;;  %v8379_v59 = vpop.f32.mrb[58].mxu1  ;;  %v8665_v2 = vld [vmem:[#allocation17 + $0x48] sm:$0xff]  ;;  %v8667_v35 = vld [vmem:[#allocation17 + $0x58] sm:$0xff] }
 0xfa9   :  { %v12550_v13 = vadd.f32 %v8308_v11, %v17042_v19  ;;  %v8310_v58 = vpop.f32.mrb[53].mxu0  ;;  %v8381_v22 = vpop.f32.mrb[59].mxu1  ;;  %v8671_v11 = vld [vmem:[#allocation17 + $0x78] sm:$0xff]  ;;  %v8666_v19 = vld [vmem:[#allocation17 + $0x50] sm:$0xff] }
 0xfaa   :  { %17061 = vst [vmem:[#allocation50_spill] sm:$0xff] %v16315_v4  ;;  %v12551_v30 = vadd.f32 %v8310_v58, %v17043_v3  ;;  %13148 = vtanh.f32 %v16315_v4  ;;  %v12567_v25 = vadd.f32 %v8381_v22, %v17044_v37  ;;  %v16321_v58 = vpack.c.bf16 %v8660_v60, %v8656_v24  ;;  %v8670_v4 = vld [vmem:[#allocation17 + $0x70] sm:$0xff] }
 0xfab   :  { %v9874_v8 = vmul.f32 -1.442695, %v12550_v13  ;;  %v16323_v3 = vpack.c.bf16 %v8662_v56, %v8658_v27  ;;  %v8664_v13 = vld [vmem:[#allocation17 + $0x40] sm:$0xff]  ;;  %v16330_v37 = vpack.c.bf16 %v8671_v11, %v8667_v35  ;;  %v8678_v11 = vld [vmem:[#allocation17 + $0xb0] sm:$0xff] }
 0xfac   :  { %v9875_v53 = vmul.f32 -1.442695, %v12551_v30  ;;  %v9876_v47 = vmul.f32 -1.442695, %v12567_v25  ;;  %17062 = vst [vmem:[#allocation52_spill] sm:$0xff] %v16321_v58  ;;  %v8668_v30 = vld [vmem:[#allocation17 + $0x60] sm:$0xff] }
 0xfad   :  { %13150 = vpow2.f32 %v9874_v8  ;;  %17063 = vst [vmem:[#allocation66_spill] sm:$0xff] %v16323_v3  ;;  %v12566_v8 = vadd.f32 %v8379_v59, %v15536_v43  ;;  %17066 = vst [vmem:[#allocation55_spill] sm:$0xff] %v16330_v37  ;;  %v8679_v25 = vld [vmem:[#allocation17 + $0xb8] sm:$0xff]  ;;  %v8672_v59 = vld [vmem:[#allocation17 + $0x80] sm:$0xff] }
 0xfae   :  { %13152 = vpow2.f32 %v9875_v53  ;;  %v16328_v53 = vpack.c.bf16 %v8669_v18, %v8665_v2  ;;  %v8676_v56 = vld [vmem:[#allocation17 + $0xa0] sm:$0xff]  ;;  %v16342_v18 = vpack.c.bf16 %v8677_v55, %v8673_v7  ;;  %v16344_v35 = vpack.c.bf16 %v8679_v25, %v8675_v54 }
 0xfaf   :  { %13154 = vpow2.f32 %v9876_v47  ;;  %v8674_v47 = vld [vmem:[#allocation17 + $0x90] sm:$0xff]  ;;  %v16350_v55 = vpack.c.bf16 %v8676_v56, %v8672_v59  ;;  %v8680_v7 = vld [vmem:[#allocation17 + $0xc0] sm:$0xff] }
 0xfb0   :  { %17065 = vst [vmem:[#allocation47_spill] sm:$0xff] %v16328_v53  ;;  %13156 = vtanh.f32 %v12566_v8  ;;  %17069 = vst [vmem:[#allocation36_spill] sm:$0xff] %v16342_v18  ;;  %v16352_v54 = vpack.c.bf16 %v8678_v11, %v8674_v47  ;;  %v8688_v47 = vld [vmem:[#allocation17 + $0x100] sm:$0xff] }
 0xfb1   :  { %17070 = vst [vmem:[#allocation31_spill] sm:$0xff] %v16344_v35  ;;  %17071 = vst [vmem:[#allocation39_spill] sm:$0xff] %v16350_v55  ;;  %v8692_v11 = vld [vmem:[#allocation17 + $0x120] sm:$0xff] }
 0xfb2   :  { %17072 = vst [vmem:[#allocation51_spill] sm:$0xff] %v16352_v54 }
 0xfb4   :  { %v13149_v45 = vpop.eup %13148 }
 0xfb5   :  { %v16326_v22 = vmul.f32 %v13149_v45, %v13147_v50  ;;  %v16336_v45 = vpack.c.bf16 %v8668_v30, %v8664_v13  ;;  %v16338_v50 = vpack.c.bf16 %v8670_v4, %v8666_v19  ;;  %v8685_v13 = vld [vmem:[#allocation17 + $0xe8] sm:$0xff]  ;;  %v8683_v30 = vld [vmem:[#allocation17 + $0xd8] sm:$0xff]  ;;  %v8684_v4 = vld [vmem:[#allocation17 + $0xe0] sm:$0xff] }
 0xfb6   :  { %v8687_v19 = vld [vmem:[#allocation17 + $0xf8] sm:$0xff]  ;;  %v16362_v59 = vpack.c.bf16 %v8684_v4, %v8680_v7 }
 0xfb7   :  { %17064 = vst [vmem:[#allocation48_spill] sm:$0xff] %v16326_v22  ;;  %v13151_v24 = vpop.eup %13150  ;;  %8547 = vmatmul.mubr.f32.vlgmr.msra.gmra.mrb[44].mxu0 %v16326_v22  ;;  %8618 = vmatmul.mubr.f32.vlgmr.msra.gmra.mrb[50].mxu1 %v16326_v22  ;;  %17067 = vst [vmem:[#allocation62_spill] sm:$0xff] %v16336_v45  ;;  %v16358_v25 = vpack.c.bf16 %v8687_v19, %v8683_v30  ;;  %v8693_v22 = vld [vmem:[#allocation17 + $0x128] sm:$0xff]  ;;  %v8690_v30 = vld [vmem:[#allocation17 + $0x110] sm:$0xff] }
 0xfb8   :  { %v13153_v60 = vpop.eup %13152  ;;  %v8391_v27 = vadd.f32 1.0, %v13151_v24  ;;  %12149 = vmatpush1.bf16.msra.mxu0 %v16321_v58  ;;  %12181 = vmatpush1.bf16.msra.mxu1 %v16323_v3  ;;  %17068 = vst [vmem:[#allocation30_spill] sm:$0xff] %v16338_v50  ;;  %v8681_v24 = vld [vmem:[#allocation17 + $0xc8] sm:$0xff]  ;;  %17075 = vst [vmem:[#allocation43_spill] sm:$0xff] %v16362_v59  ;;  %v8694_v19 = vld [vmem:[#allocation17 + $0x130] sm:$0xff] }
 0xfb9   :  { %v8397_v2 = vadd.f32 1.0, %v13153_v60  ;;  %12151 = vmatprep.subr.bf16.mxu0 %v16328_v53  ;;  %12183 = vmatprep.subr.bf16.mxu1 %v16330_v37  ;;  %v16356_v8 = vpack.c.bf16 %v8685_v13, %v8681_v24  ;;  %17074 = vst [vmem:[#allocation41_spill] sm:$0xff] %v16358_v25  ;;  %v8682_v60 = vld [vmem:[#allocation17 + $0xd0] sm:$0xff]  ;;  %v8703_v7 = vld [vmem:[#allocation17 + $0x178] sm:$0xff] }
 0xfba   :  { %13158 = vrcp.f32 %v8391_v27  ;;  %8784 = vmatprep.mubr.f32.mxu0 %v16811_v41  ;;  %8855 = vmatprep.mubr.f32.mxu1 %v16811_v41  ;;  %v8686_v27 = vld [vmem:[#allocation17 + $0xf0] sm:$0xff] }
 0xfbb   :  { %13160 = vrcp.f32 %v8397_v2  ;;  %17073 = vst [vmem:[#allocation42_spill] sm:$0xff] %v16356_v8  ;;  %v8689_v2 = vld [vmem:[#allocation17 + $0x108] sm:$0xff]  ;;  %v16364_v56 = vpack.c.bf16 %v8686_v27, %v8682_v60  ;;  %v16374_v27 = vpack.c.bf16 %v8692_v11, %v8688_v47  ;;  %v8702_v3 = vld [vmem:[#allocation17 + $0x170] sm:$0xff] }
 0xfbc   :  { %12153 = vmatpush1.bf16.msra.mxu0 %v16336_v45  ;;  %12185 = vmatpush1.bf16.msra.mxu1 %v16338_v50  ;;  %v8691_v45 = vld [vmem:[#allocation17 + $0x118] sm:$0xff]  ;;  %v16368_v24 = vpack.c.bf16 %v8693_v22, %v8689_v2  ;;  %v8696_v22 = vld [vmem:[#allocation17 + $0x140] sm:$0xff]  ;;  %v8709_v11 = vld [vmem:[#allocation17 + $0x1a8] sm:$0xff] }
 0xfbd   :  { %12155 = vmatprep.subr.bf16.mxu0 %v16342_v18  ;;  %12187 = vmatprep.subr.bf16.mxu1 %v16344_v35  ;;  %v8695_v50 = vld [vmem:[#allocation17 + $0x138] sm:$0xff]  ;;  %17076 = vst [vmem:[#allocation53_spill] sm:$0xff] %v16364_v56  ;;  %v8697_v35 = vld [vmem:[#allocation17 + $0x148] sm:$0xff] }
 0xfbe   :  { %v16370_v13 = vpack.c.bf16 %v8695_v50, %v8691_v45  ;;  %v8701_v18 = vld [vmem:[#allocation17 + $0x168] sm:$0xff]  ;;  %v8700_v45 = vld [vmem:[#allocation17 + $0x160] sm:$0xff] }
 0xfbf   :  { %v16380_v37 = vpack.c.bf16 %v8701_v18, %v8697_v35  ;;  %v8704_v35 = vld [vmem:[#allocation17 + $0x180] sm:$0xff] }
 0xfc0   :  { %12157 = vmatpush1.bf16.msra.mxu0 %v16350_v55  ;;  %12189 = vmatpush1.bf16.msra.mxu1 %v16352_v54  ;;  %v13155_v55 = vpop.eup %13154  ;;  %v8699_v54 = vld [vmem:[#allocation17 + $0x158] sm:$0xff] }
 0xfc1   :  { %12159 = vmatprep.subr.bf16.mxu0 %v16356_v8  ;;  %12191 = vmatprep.subr.bf16.mxu1 %v16358_v25  ;;  %v13157_v4 = vpop.eup %13156  ;;  %v16376_v25 = vpack.c.bf16 %v8694_v19, %v8690_v30  ;;  %v8404_v8 = vadd.f32 1.0, %v13155_v55  ;;  %v16382_v53 = vpack.c.bf16 %v8703_v7, %v8699_v54  ;;  %v8707_v30 = vld [vmem:[#allocation17 + $0x198] sm:$0xff]  ;;  %v16389_v55 = vpack.c.bf16 %v8700_v45, %v8696_v22  ;;  %v8708_v54 = vld [vmem:[#allocation17 + $0x1a0] sm:$0xff] }
 0xfc2   :  { %v8711_v19 = vld [vmem:[#allocation17 + $0x1b8] sm:$0xff] }
 0xfc3   :  { %13162 = vrcp.f32 %v8404_v8  ;;  %v16397_v7 = vpack.c.bf16 %v8711_v19, %v8707_v30  ;;  %v8719_v22 = vld [vmem:[#allocation17 + $0x1f8] sm:$0xff]  ;;  %v8714_v30 = vld [vmem:[#allocation17 + $0x1d0] sm:$0xff] }
 0xfc4   :  { %v13159_v60 = vpop.eup %13158  ;;  %12161 = vmatpush1.bf16.msra.mxu0 %v16362_v59  ;;  %12193 = vmatpush1.bf16.msra.mxu1 %v16364_v56  ;;  %v8698_v59 = vld [vmem:[#allocation17 + $0x150] sm:$0xff]  ;;  %v8705_v56 = vld [vmem:[#allocation17 + $0x188] sm:$0xff] }
 0xfc5   :  { %v13161_v50 = vpop.eup %13160  ;;  %v8408_v2 = vmul.f32 %v13159_v60, %v13157_v4  ;;  %12163 = vmatprep.subr.bf16.mxu0 %v16368_v24  ;;  %12195 = vmatprep.subr.bf16.mxu1 %v16370_v13  ;;  %v16391_v18 = vpack.c.bf16 %v8702_v3, %v8698_v59  ;;  %v8706_v4 = vld [vmem:[#allocation17 + $0x190] sm:$0xff]  ;;  %v16402_v3 = vpack.c.bf16 %v8708_v54, %v8704_v35  ;;  %v8712_v59 = vld [vmem:[#allocation17 + $0x1c0] sm:$0xff] }
 0xfc6   :  { %v8407_v47 = vmul.f32 %v13161_v50, %v16185_v48  ;;  %v16395_v48 = vpack.c.bf16 %v8709_v11, %v8705_v56  ;;  %v8710_v60 = vld [vmem:[#allocation17 + $0x1b0] sm:$0xff]  ;;  %v8713_v50 = vld [vmem:[#allocation17 + $0x1c8] sm:$0xff]  ;;  %v8716_v11 = vld [vmem:[#allocation17 + $0x1e0] sm:$0xff] }
 0xfc7   :  { %v16404_v8 = vpack.c.bf16 %v8710_v60, %v8706_v4  ;;  %v8718_v19 = vld [vmem:[#allocation17 + $0x1f0] sm:$0xff]  ;;  %v16414_v35 = vpack.c.bf16 %v8716_v11, %v8712_v59  ;;  %v17083_v59 = vld [vmem:[#allocation61_spill] sm:$0xff] }
 0xfc8   :  { %v16385_v58 = vadd.f32 %v8408_v2, %v8407_v47  ;;  %12165 = vmatpush1.bf16.msra.mxu0 %v16374_v27  ;;  %12197 = vmatpush1.bf16.msra.mxu1 %v16376_v25  ;;  %v8717_v2 = vld [vmem:[#allocation17 + $0x1e8] sm:$0xff]  ;;  %v8715_v47 = vld [vmem:[#allocation17 + $0x1d8] sm:$0xff]  ;;  %v16416_v54 = vpack.c.bf16 %v8718_v19, %v8714_v30 }
 0xfc9   :  { %12167 = vmatprep.subr.bf16.mxu0 %v16380_v37  ;;  %12199 = vmatprep.subr.bf16.mxu1 %v16382_v53  ;;  %v16408_v56 = vpack.c.bf16 %v8717_v2, %v8713_v50  ;;  %v16410_v45 = vpack.c.bf16 %v8719_v22, %v8715_v47 }
 0xfca   :  { %13164 = vtanh.f32 %v16385_v58 }
 0xfcc   :  { %12169 = vmatpush1.bf16.msra.mxu0 %v16389_v55  ;;  %12201 = vmatpush1.bf16.msra.mxu1 %v16391_v18 }
 0xfcd   :  { %12171 = vmatprep.subr.bf16.mxu0 %v16395_v48  ;;  %12203 = vmatprep.subr.bf16.mxu1 %v16397_v7  ;;  %v13163_v4 = vpop.eup %13162 }
 0xfd0   :  { %12173 = vmatpush1.bf16.msra.mxu0 %v16402_v3  ;;  %12205 = vmatpush1.bf16.msra.mxu1 %v16404_v8 }
 0xfd1   :  { %12175 = vmatprep.subr.bf16.mxu0 %v16408_v56  ;;  %12207 = vmatprep.subr.bf16.mxu1 %v16410_v45 }
 0xfd4   :  { %v13165_v60 = vpop.eup %13164  ;;  %12177 = vmatpush1.bf16.msra.mxu0 %v16414_v35  ;;  %12209 = vmatpush1.bf16.msra.mxu1 %v16416_v54 }
 0xfd5   :  { %v16422_v50 = vmul.f32 %v13165_v60, %v13163_v4  ;;  %12211 = vmatprep.subr.bf16.mxu0 %v16208_v17  ;;  %12243 = vmatprep.subr.bf16.mxu1 %v16210_v62 }
 0xfd7   :  { %8785 = vmatmul.mubr.f32.vlgmr.msra.gmra.mrb[50].mxu0 %v16422_v50  ;;  %8856 = vmatmul.mubr.f32.vlgmr.msra.gmra.mrb[56].mxu1 %v16422_v50 }
 0xfd8   :  { %12213 = vmatpush1.bf16.msra.mxu0 %v16212_v39  ;;  %12245 = vmatpush1.bf16.msra.mxu1 %v16215_v12 }
 0xfd9   :  { %12215 = vmatprep.subr.bf16.mxu0 %v16220_v33  ;;  %12247 = vmatprep.subr.bf16.mxu1 %v16222_v21  ;;  %v17077_v21 = vld [vmem:[#allocation56_spill] sm:$0xff] }
 0xfda   :  { %9024 = vmatprep.mubr.f32.mxu0 %v16811_v41  ;;  %9095 = vmatprep.mubr.f32.mxu1 %v16811_v41 }
 0xfdc   :  { %12217 = vmatpush1.bf16.msra.mxu0 %v16224_v34  ;;  %12249 = vmatpush1.bf16.msra.mxu1 %v16227_v38 }
 0xfdd   :  { %12219 = vmatprep.subr.bf16.mxu0 %v16232_v16  ;;  %12251 = vmatprep.subr.bf16.mxu1 %v16234_v44  ;;  %v17078_v44 = vld [vmem:[#allocation57_spill] sm:$0xff] }
 0xfe0   :  { %12221 = vmatpush1.bf16.msra.mxu0 %v16236_v15  ;;  %12253 = vmatpush1.bf16.msra.mxu1 %v16239_v6 }
 0xfe1   :  { %12223 = vmatprep.subr.bf16.mxu0 %v16244_v49  ;;  %12255 = vmatprep.subr.bf16.mxu1 %v16246_v10  ;;  %v17079_v49 = vld [vmem:[#allocation58_spill] sm:$0xff] }
 0xfe4   :  { %12225 = vmatpush1.bf16.msra.mxu0 %v16248_v57  ;;  %12257 = vmatpush1.bf16.msra.mxu1 %v16251_v61 }
 0xfe5   :  { %12227 = vmatprep.subr.bf16.mxu0 %v16256_v14  ;;  %12259 = vmatprep.subr.bf16.mxu1 %v16258_v20 }
 0xfe8   :  { %12229 = vmatpush1.bf16.msra.mxu0 %v16260_v26  ;;  %12261 = vmatpush1.bf16.msra.mxu1 %v16263_v9 }
 0xfe9   :  { %12231 = vmatprep.subr.bf16.mxu0 %v16268_v0  ;;  %12263 = vmatprep.subr.bf16.mxu1 %v16270_v29 }
 0xfec   :  { %12233 = vmatpush1.bf16.msra.mxu0 %v16272_v5  ;;  %12265 = vmatpush1.bf16.msra.mxu1 %v16275_v31 }
 0xfed   :  { %12235 = vmatprep.subr.bf16.mxu0 %v16280_v1  ;;  %12267 = vmatprep.subr.bf16.mxu1 %v16282_v32  ;;  %v17080_v1 = vld [vmem:[#allocation50_spill] sm:$0xff] }
 0xff0   :  { %12237 = vmatpush1.bf16.msra.mxu0 %v16284_v36  ;;  %12269 = vmatpush1.bf16.msra.mxu1 %v16287_v52 }
 0xff1   :  { %12239 = vmatprep.subr.bf16.mxu0 %v16292_v42  ;;  %12271 = vmatprep.subr.bf16.mxu1 %v16294_v46  ;;  %v17081_v46 = vld [vmem:[#allocation59_spill] sm:$0xff] }
 0xff4   :  { %12241 = vmatpush1.bf16.msra.mxu0 %v16296_v63  ;;  %12273 = vmatpush1.bf16.msra.mxu1 %v16299_v28 }
 0xff5   :  { %12275 = vmatprep.subr.bf16.mxu0 %v16304_v23  ;;  %12307 = vmatprep.subr.bf16.mxu1 %v16306_v40  ;;  %v17082_v40 = vld [vmem:[#allocation60_spill] sm:$0xff] }
0x108a   :  { %v8548_v17 = vpop.f32.mrb[44].mxu0  ;;  %v8619_v62 = vpop.f32.mrb[50].mxu1 }
0x108b   :  { %v12526_v39 = vadd.f32 %v8548_v17, %v15502_v51  ;;  %v8550_v12 = vpop.f32.mrb[45].mxu0  ;;  %v8621_v33 = vpop.f32.mrb[51].mxu1  ;;  %v12542_v10 = vadd.f32 %v8619_v62, %v17079_v49 }
0x108c   :  { %v12527_v34 = vadd.f32 %v8550_v12, %v17077_v21  ;;  %v12543_v15 = vadd.f32 %v8621_v33, %v17078_v44  ;;  %v17084_v33 = vld [vmem:[#allocation52_spill] sm:$0xff] }
0x108d   :  { %v9877_v38 = vmul.f32 -1.442695, %v12526_v39 }
0x108e   :  { %v9878_v16 = vmul.f32 -1.442695, %v12527_v34  ;;  %v9879_v6 = vmul.f32 -1.442695, %v12543_v15  ;;  %v17085_v34 = vld [vmem:[#allocation66_spill] sm:$0xff]  ;;  %v17087_v15 = vld [vmem:[#allocation55_spill] sm:$0xff] }
0x108f   :  { %13166 = vpow2.f32 %v9877_v38 }
0x1090   :  { %13168 = vpow2.f32 %v9878_v16  ;;  %v17086_v16 = vld [vmem:[#allocation47_spill] sm:$0xff] }
0x1091   :  { %13170 = vpow2.f32 %v9879_v6  ;;  %v17088_v6 = vld [vmem:[#allocation62_spill] sm:$0xff] }
0x1092   :  { %13172 = vtanh.f32 %v12542_v10  ;;  %v17089_v10 = vld [vmem:[#allocation30_spill] sm:$0xff] }
0x1099   :  { %v13167_v57 = vpop.eup %13166 }
0x109a   :  { %v13169_v61 = vpop.eup %13168  ;;  %v8631_v14 = vadd.f32 1.0, %v13167_v57  ;;  %v17090_v57 = vld [vmem:[#allocation36_spill] sm:$0xff] }
0x109b   :  { %v8637_v20 = vadd.f32 1.0, %v13169_v61  ;;  %v13171_v26 = vpop.eup %13170  ;;  %v17091_v61 = vld [vmem:[#allocation31_spill] sm:$0xff] }
0x109c   :  { %13174 = vrcp.f32 %v8631_v14  ;;  %v13173_v9 = vpop.eup %13172  ;;  %v8644_v31 = vadd.f32 1.0, %v13171_v26  ;;  %v17092_v14 = vld [vmem:[#allocation39_spill] sm:$0xff]  ;;  %v17094_v26 = vld [vmem:[#allocation42_spill] sm:$0xff] }
0x109d   :  { %13176 = vrcp.f32 %v8637_v20  ;;  %v17093_v20 = vld [vmem:[#allocation51_spill] sm:$0xff] }
0x109e   :  { %13178 = vrcp.f32 %v8644_v31  ;;  %v17097_v31 = vld [vmem:[#allocation53_spill] sm:$0xff] }
0x10a6   :  { %v13175_v0 = vpop.eup %13174 }
0x10a7   :  { %v13177_v29 = vpop.eup %13176  ;;  %v8648_v5 = vmul.f32 %v13175_v0, %v13173_v9  ;;  %v17095_v9 = vld [vmem:[#allocation41_spill] sm:$0xff] }
0x10a8   :  { %v8647_v32 = vmul.f32 %v13177_v29, %v17080_v1  ;;  %v13179_v30 = vpop.eup %13178 }
0x10aa   :  { %v16467_v36 = vadd.f32 %v8648_v5, %v8647_v32  ;;  %v8786_v52 = vpop.f32.mrb[50].mxu0  ;;  %v8857_v42 = vpop.f32.mrb[56].mxu1  ;;  %v17096_v5 = vld [vmem:[#allocation43_spill] sm:$0xff] }
0x10ab   :  { %v12548_v63 = vadd.f32 %v8786_v52, %v17081_v46  ;;  %v8788_v28 = vpop.f32.mrb[51].mxu0  ;;  %v8859_v23 = vpop.f32.mrb[57].mxu1  ;;  %v12564_v60 = vadd.f32 %v8857_v42, %v15536_v43 }
0x10ac   :  { %v12549_v2 = vadd.f32 %v8788_v28, %v17082_v40  ;;  %13180 = vtanh.f32 %v16467_v36  ;;  %v12565_v11 = vadd.f32 %v8859_v23, %v17083_v59  ;;  %v9394_v23 = vld [vmem:[#allocation19 + $0x40] sm:$0xff] }
0x10ad   :  { %v9880_v47 = vmul.f32 -1.442695, %v12548_v63 }
0x10ae   :  { %v9881_v22 = vmul.f32 -1.442695, %v12549_v2  ;;  %v9882_v4 = vmul.f32 -1.442695, %v12565_v11  ;;  %v9396_v2 = vld [vmem:[#allocation19 + $0x50] sm:$0xff]  ;;  %v9401_v11 = vld [vmem:[#allocation19 + $0x78] sm:$0xff] }
0x10af   :  { %13182 = vpow2.f32 %v9880_v47  ;;  %v12348_v47 = vpack.c.bf16 %v9396_v2, %v9394_v23  ;;  %v9431_v23 = vld [vmem:[#allocation19 + $0x168] sm:$0xff]  ;;  %v9433_v2 = vld [vmem:[#allocation19 + $0x178] sm:$0xff] }
0x10b0   :  { %13184 = vpow2.f32 %v9881_v22  ;;  %v9399_v22 = vld [vmem:[#allocation19 + $0x68] sm:$0xff] }
0x10b1   :  { %13186 = vpow2.f32 %v9882_v4  ;;  %v9400_v4 = vld [vmem:[#allocation19 + $0x70] sm:$0xff] }
0x10b2   :  { %13188 = vtanh.f32 %v12564_v60 }
0x10b6   :  { %v13181_v19 = vpop.eup %13180 }
0x10b7   :  { %v16474_v17 = vmul.f32 %v13181_v19, %v13179_v30  ;;  %v12350_v30 = vpack.c.bf16 %v9401_v11, %v9399_v22  ;;  %v9398_v19 = vld [vmem:[#allocation19 + $0x60] sm:$0xff]  ;;  %v9432_v11 = vld [vmem:[#allocation19 + $0x170] sm:$0xff] }
0x10b8   :  { %v12352_v60 = vpack.c.bf16 %v9400_v4, %v9398_v19  ;;  %v9430_v22 = vld [vmem:[#allocation19 + $0x160] sm:$0xff]  ;;  %v9435_v19 = vld [vmem:[#allocation19 + $0x188] sm:$0xff]  ;;  %v9437_v4 = vld [vmem:[#allocation19 + $0x198] sm:$0xff] }
0x10b9   :  { %v13183_v62 = vpop.eup %13182  ;;  %9025 = vmatmul.mubr.f32.vlgmr.msra.gmra.mrb[46].mxu0 %v16474_v17  ;;  %9096 = vmatmul.mubr.f32.vlgmr.msra.gmra.mrb[52].mxu1 %v16474_v17 }
0x10ba   :  { %v13185_v39 = vpop.eup %13184  ;;  %v8869_v12 = vadd.f32 1.0, %v13183_v62  ;;  %12277 = vmatpush1.bf16.msra.mxu0 %v17084_v33  ;;  %12309 = vmatpush1.bf16.msra.mxu1 %v17085_v34  ;;  %v9403_v62 = vld [vmem:[#allocation19 + $0x88] sm:$0xff]  ;;  %v9402_v33 = vld [vmem:[#allocation19 + $0x80] sm:$0xff]  ;;  %v9404_v34 = vld [vmem:[#allocation19 + $0x90] sm:$0xff] }
0x10bb   :  { %v8875_v38 = vadd.f32 1.0, %v13185_v39  ;;  %12279 = vmatprep.subr.bf16.mxu0 %v17086_v16  ;;  %12311 = vmatprep.subr.bf16.mxu1 %v17087_v15  ;;  %v13187_v0 = vpop.eup %13186  ;;  %v9405_v39 = vld [vmem:[#allocation19 + $0x98] sm:$0xff]  ;;  %v9407_v16 = vld [vmem:[#allocation19 + $0xa8] sm:$0xff] }
0x10bc   :  { %13190 = vrcp.f32 %v8869_v12  ;;  %9262 = vmatprep.mubr.f32.mxu0 %v16811_v41  ;;  %9333 = vmatprep.mubr.f32.mxu1 %v16811_v41  ;;  %v13189_v29 = vpop.eup %13188  ;;  %v8882_v52 = vadd.f32 1.0, %v13187_v0  ;;  %v12354_v12 = vpack.c.bf16 %v9405_v39, %v9403_v62  ;;  %v9409_v15 = vld [vmem:[#allocation19 + $0xb8] sm:$0xff]  ;;  %v9412_v0 = vld [vmem:[#allocation19 + $0xd0] sm:$0xff]  ;;  %v12386_v62 = vpack.c.bf16 %v9437_v4, %v9435_v19  ;;  %v9599_v19 = vld [vmem:[#allocation20 + $0x40] sm:$0xff] }
0x10bd   :  { %13192 = vrcp.f32 %v8875_v38  ;;  %v12356_v38 = vpack.c.bf16 %v9404_v34, %v9402_v33  ;;  %v9436_v39 = vld [vmem:[#allocation19 + $0x190] sm:$0xff]  ;;  %v9441_v33 = vld [vmem:[#allocation19 + $0x1b8] sm:$0xff]  ;;  %v9600_v4 = vld [vmem:[#allocation20 + $0x48] sm:$0xff] }
0x10be   :  { %12281 = vmatpush1.bf16.msra.mxu0 %v17088_v6  ;;  %12313 = vmatpush1.bf16.msra.mxu1 %v17089_v10  ;;  %13194 = vrcp.f32 %v8882_v52  ;;  %v12358_v6 = vpack.c.bf16 %v9409_v15, %v9407_v16  ;;  %v9406_v10 = vld [vmem:[#allocation19 + $0xa0] sm:$0xff]  ;;  %v9440_v15 = vld [vmem:[#allocation19 + $0x1b0] sm:$0xff] }
0x10bf   :  { %12283 = vmatprep.subr.bf16.mxu0 %v17090_v57  ;;  %12315 = vmatprep.subr.bf16.mxu1 %v17091_v61  ;;  %v9408_v57 = vld [vmem:[#allocation19 + $0xb0] sm:$0xff]  ;;  %v9438_v16 = vld [vmem:[#allocation19 + $0x1a0] sm:$0xff] }
0x10c0   :  { %v12360_v61 = vpack.c.bf16 %v9408_v57, %v9406_v10  ;;  %v9445_v10 = vld [vmem:[#allocation19 + $0x1d8] sm:$0xff]  ;;  %v12392_v57 = vpack.c.bf16 %v9440_v15, %v9438_v16  ;;  %v9620_v16 = vld [vmem:[#allocation20 + $0xe8] sm:$0xff] }
0x10c2   :  { %12285 = vmatpush1.bf16.msra.mxu0 %v17092_v14  ;;  %12317 = vmatpush1.bf16.msra.mxu1 %v17093_v20  ;;  %v9411_v14 = vld [vmem:[#allocation19 + $0xc8] sm:$0xff]  ;;  %v9413_v20 = vld [vmem:[#allocation19 + $0xd8] sm:$0xff] }
0x10c3   :  { %12287 = vmatprep.subr.bf16.mxu0 %v17094_v26  ;;  %12319 = vmatprep.subr.bf16.mxu1 %v17095_v9  ;;  %v12362_v26 = vpack.c.bf16 %v9413_v20, %v9411_v14  ;;  %v9410_v9 = vld [vmem:[#allocation19 + $0xc0] sm:$0xff]  ;;  %v9444_v20 = vld [vmem:[#allocation19 + $0x1d0] sm:$0xff] }
0x10c4   :  { %v9442_v14 = vld [vmem:[#allocation19 + $0x1c0] sm:$0xff] }
0x10c6   :  { %v13191_v41 = vpop.eup %13190  ;;  %12289 = vmatpush1.bf16.msra.mxu0 %v17096_v5  ;;  %12321 = vmatpush1.bf16.msra.mxu1 %v17097_v31  ;;  %v9417_v5 = vld [vmem:[#allocation19 + $0xf8] sm:$0xff] }
0x10c7   :  { %v13193_v1 = vpop.eup %13192  ;;  %v8886_v32 = vmul.f32 %v13191_v41, %v13189_v29  ;;  %12291 = vmatprep.subr.bf16.mxu0 %v16368_v24  ;;  %12323 = vmatprep.subr.bf16.mxu1 %v16370_v13  ;;  %v9389_v24 = vld [vmem:[#allocation19 + $0x18] sm:$0xff]  ;;  %v12364_v29 = vpack.c.bf16 %v9412_v0, %v9410_v9  ;;  %v9415_v41 = vld [vmem:[#allocation19 + $0xe8] sm:$0xff]  ;;  %v12396_v0 = vpack.c.bf16 %v9444_v20, %v9442_v14 }
0x10c8   :  { %v8885_v42 = vmul.f32 %v13193_v1, %v16385_v58  ;;  %v12366_v31 = vpack.c.bf16 %v9417_v5, %v9415_v41  ;;  %v9414_v1 = vld [vmem:[#allocation19 + $0xe0] sm:$0xff]  ;;  %v9449_v9 = vld [vmem:[#allocation19 + $0x1f8] sm:$0xff]  ;;  %v9448_v5 = vld [vmem:[#allocation19 + $0x1f0] sm:$0xff] }
0x10c9   :  { %v9446_v41 = vld [vmem:[#allocation19 + $0x1e0] sm:$0xff] }
0x10ca   :  { %v16497_v63 = vadd.f32 %v8886_v32, %v8885_v42  ;;  %12293 = vmatpush1.bf16.msra.mxu0 %v16374_v27  ;;  %12325 = vmatpush1.bf16.msra.mxu1 %v16376_v25  ;;  %v9387_v25 = vld [vmem:[#allocation19 + $0x8] sm:$0xff]  ;;  %v9386_v27 = vld [vmem:[#allocation19] sm:$0xff]  ;;  %v9416_v32 = vld [vmem:[#allocation19 + $0xf0] sm:$0xff] }
0x10cb   :  { %12295 = vmatprep.subr.bf16.mxu0 %v16380_v37  ;;  %12327 = vmatprep.subr.bf16.mxu1 %v16382_v53  ;;  %v13195_v37 = vpop.eup %13194  ;;  %v12338_v13 = vpack.c.bf16 %v9389_v24, %v9387_v25  ;;  %v12368_v52 = vpack.c.bf16 %v9416_v32, %v9414_v1  ;;  %v9419_v42 = vld [vmem:[#allocation19 + $0x108] sm:$0xff]  ;;  %v9418_v25 = vld [vmem:[#allocation19 + $0x100] sm:$0xff]  ;;  %v9420_v24 = vld [vmem:[#allocation19 + $0x110] sm:$0xff] }
0x10cc   :  { %13196 = vtanh.f32 %v16497_v63  ;;  %v9607_v1 = vld [vmem:[#allocation20 + $0x80] sm:$0xff]  ;;  %v9608_v32 = vld [vmem:[#allocation20 + $0x88] sm:$0xff] }
0x10ce   :  { %12297 = vmatpush1.bf16.msra.mxu0 %v16389_v55  ;;  %12329 = vmatpush1.bf16.msra.mxu1 %v16391_v18  ;;  %v9388_v55 = vld [vmem:[#allocation19 + $0x10] sm:$0xff] }
0x10cf   :  { %12299 = vmatprep.subr.bf16.mxu0 %v16395_v48  ;;  %12331 = vmatprep.subr.bf16.mxu1 %v16397_v7  ;;  %v12340_v18 = vpack.c.bf16 %v9388_v55, %v9386_v27  ;;  %v9391_v48 = vld [vmem:[#allocation19 + $0x28] sm:$0xff]  ;;  %v9393_v7 = vld [vmem:[#allocation19 + $0x38] sm:$0xff] }
0x10d0   :  { %v9423_v27 = vld [vmem:[#allocation19 + $0x128] sm:$0xff]  ;;  %v9425_v55 = vld [vmem:[#allocation19 + $0x138] sm:$0xff] }
0x10d2   :  { %12301 = vmatpush1.bf16.msra.mxu0 %v16402_v3  ;;  %12333 = vmatpush1.bf16.msra.mxu1 %v16404_v8  ;;  %v12342_v3 = vpack.c.bf16 %v9393_v7, %v9391_v48  ;;  %v9390_v8 = vld [vmem:[#allocation19 + $0x20] sm:$0xff]  ;;  %v9424_v7 = vld [vmem:[#allocation19 + $0x130] sm:$0xff] }
0x10d3   :  { %12303 = vmatprep.subr.bf16.mxu0 %v16408_v56  ;;  %12335 = vmatprep.subr.bf16.mxu1 %v16410_v45  ;;  %v9392_v56 = vld [vmem:[#allocation19 + $0x30] sm:$0xff]  ;;  %v9422_v48 = vld [vmem:[#allocation19 + $0x120] sm:$0xff] }
0x10d4   :  { %v12344_v45 = vpack.c.bf16 %v9392_v56, %v9390_v8  ;;  %v9427_v8 = vld [vmem:[#allocation19 + $0x148] sm:$0xff]  ;;  %v9429_v56 = vld [vmem:[#allocation19 + $0x158] sm:$0xff] }
0x10d6   :  { %v13197_v58 = vpop.eup %13196  ;;  %12305 = vmatpush1.bf16.msra.mxu0 %v16414_v35  ;;  %12337 = vmatpush1.bf16.msra.mxu1 %v16416_v54  ;;  %v9395_v35 = vld [vmem:[#allocation19 + $0x48] sm:$0xff]  ;;  %v9397_v54 = vld [vmem:[#allocation19 + $0x58] sm:$0xff] }
0x10d7   :  { %v16514_v53 = vmul.f32 %v13197_v58, %v13195_v37  ;;  %12339 = vmatprep.subr.bf16.mxu0 %v12338_v13  ;;  %v12346_v28 = vpack.c.bf16 %v9397_v54, %v9395_v35  ;;  %v9421_v37 = vld [vmem:[#allocation19 + $0x118] sm:$0xff]  ;;  %v12372_v13 = vpack.c.bf16 %v9420_v24, %v9418_v25  ;;  %v9426_v35 = vld [vmem:[#allocation19 + $0x140] sm:$0xff]  ;;  %v9428_v54 = vld [vmem:[#allocation19 + $0x150] sm:$0xff] }
0x10d8   :  { %v12370_v58 = vpack.c.bf16 %v9421_v37, %v9419_v42  ;;  %v12402_v42 = vpack.c.bf16 %v9608_v32, %v9607_v1  ;;  %v9592_v37 = vld [vmem:[#allocation20 + $0x8] sm:$0xff]  ;;  %v9610_v25 = vld [vmem:[#allocation20 + $0x98] sm:$0xff] }
0x10d9   :  { %9263 = vmatmul.mubr.f32.vlgmr.msra.gmra.mrb[48].mxu0 %v16514_v53  ;;  %9334 = vmatmul.mubr.f32.vlgmr.msra.gmra.mrb[54].mxu1 %v16514_v53 }
0x10da   :  { %12341 = vmatpush1.bf16.msra.mxu0 %v12340_v18  ;;  %v12374_v18 = vpack.c.bf16 %v9425_v55, %v9423_v27  ;;  %v9593_v27 = vld [vmem:[#allocation20 + $0x10] sm:$0xff]  ;;  %v9594_v55 = vld [vmem:[#allocation20 + $0x18] sm:$0xff]  ;;  %12403 = vmatprep.subr.bf16.mxu1 %v12402_v42 }
0x10db   :  { %12343 = vmatprep.subr.bf16.mxu0 %v12342_v3  ;;  %v12376_v3 = vpack.c.bf16 %v9424_v7, %v9422_v48  ;;  %v9612_v48 = vld [vmem:[#allocation20 + $0xa8] sm:$0xff]  ;;  %v12408_v7 = vpack.c.bf16 %v9594_v55, %v9593_v27 }
0x10de   :  { %12345 = vmatpush1.bf16.msra.mxu0 %v12344_v45  ;;  %v12378_v45 = vpack.c.bf16 %v9429_v56, %v9427_v8  ;;  %v9595_v8 = vld [vmem:[#allocation20 + $0x20] sm:$0xff]  ;;  %v9596_v56 = vld [vmem:[#allocation20 + $0x28] sm:$0xff] }
0x10df   :  { %12347 = vmatprep.subr.bf16.mxu0 %v12346_v28  ;;  %v12380_v28 = vpack.c.bf16 %v9428_v54, %v9426_v35  ;;  %v9614_v35 = vld [vmem:[#allocation20 + $0xb8] sm:$0xff]  ;;  %v12412_v54 = vpack.c.bf16 %v9596_v56, %v9595_v8 }
0x10e2   :  { %12349 = vmatpush1.bf16.msra.mxu0 %v12348_v47  ;;  %v12382_v47 = vpack.c.bf16 %v9433_v2, %v9431_v23  ;;  %v9597_v23 = vld [vmem:[#allocation20 + $0x30] sm:$0xff]  ;;  %v9598_v2 = vld [vmem:[#allocation20 + $0x38] sm:$0xff] }
0x10e3   :  { %12351 = vmatprep.subr.bf16.mxu0 %v12350_v30  ;;  %v12384_v30 = vpack.c.bf16 %v9432_v11, %v9430_v22  ;;  %v9616_v22 = vld [vmem:[#allocation20 + $0xc8] sm:$0xff]  ;;  %v12416_v11 = vpack.c.bf16 %v9598_v2, %v9597_v23 }
0x10e6   :  { %12353 = vmatpush1.bf16.msra.mxu0 %v12352_v60  ;;  %v9434_v60 = vld [vmem:[#allocation19 + $0x180] sm:$0xff] }
0x10e7   :  { %12355 = vmatprep.subr.bf16.mxu0 %v12354_v12  ;;  %v9439_v12 = vld [vmem:[#allocation19 + $0x1a8] sm:$0xff]  ;;  %v12388_v34 = vpack.c.bf16 %v9436_v39, %v9434_v60  ;;  %v9617_v60 = vld [vmem:[#allocation20 + $0xd0] sm:$0xff]  ;;  %v12420_v39 = vpack.c.bf16 %v9600_v4, %v9599_v19 }
0x10ea   :  { %12357 = vmatpush1.bf16.msra.mxu0 %v12356_v38  ;;  %v12390_v38 = vpack.c.bf16 %v9441_v33, %v9439_v12  ;;  %v9601_v33 = vld [vmem:[#allocation20 + $0x50] sm:$0xff] }
0x10eb   :  { %12359 = vmatprep.subr.bf16.mxu0 %v12358_v6  ;;  %v9443_v6 = vld [vmem:[#allocation19 + $0x1c8] sm:$0xff] }
0x10ee   :  { %12361 = vmatpush1.bf16.msra.mxu0 %v12360_v61  ;;  %v12394_v61 = vpack.c.bf16 %v9445_v10, %v9443_v6 }
0x10ef   :  { %12363 = vmatprep.subr.bf16.mxu0 %v12362_v26  ;;  %v9447_v26 = vld [vmem:[#allocation19 + $0x1e8] sm:$0xff] }
0x10f2   :  { %12365 = vmatpush1.bf16.msra.mxu0 %v12364_v29  ;;  %v12398_v29 = vpack.c.bf16 %v9449_v9, %v9447_v26 }
0x10f3   :  { %12367 = vmatprep.subr.bf16.mxu0 %v12366_v31  ;;  %v12400_v31 = vpack.c.bf16 %v9448_v5, %v9446_v41 }
0x10f6   :  { %12369 = vmatpush1.bf16.msra.mxu0 %v12368_v52  ;;  %v9591_v52 = vld [vmem:[#allocation20] sm:$0xff] }
0x10f7   :  { %12371 = vmatprep.subr.bf16.mxu0 %v12370_v58  ;;  %v9609_v58 = vld [vmem:[#allocation20 + $0x90] sm:$0xff]  ;;  %v12404_v24 = vpack.c.bf16 %v9592_v37, %v9591_v52 }
0x10f9   :  { %12405 = vmatpush3.bf16.msra.mxu1 %v12404_v24 }
0x10fa   :  { %12373 = vmatpush1.bf16.msra.mxu0 %v12372_v13  ;;  %v12406_v13 = vpack.c.bf16 %v9610_v25, %v9609_v58 }
0x10fb   :  { %12375 = vmatprep.subr.bf16.mxu0 %v12374_v18  ;;  %v9611_v18 = vld [vmem:[#allocation20 + $0xa0] sm:$0xff] }
0x10fc   :  { %12407 = vmatprep.subr.bf16.mxu1 %v12406_v13 }
0x10fd   :  { %12409 = vmatpush3.bf16.msra.mxu1 %v12408_v7 }
0x10fe   :  { %12377 = vmatpush1.bf16.msra.mxu0 %v12376_v3  ;;  %v12410_v3 = vpack.c.bf16 %v9612_v48, %v9611_v18 }
0x10ff   :  { %12379 = vmatprep.subr.bf16.mxu0 %v12378_v45  ;;  %v9613_v45 = vld [vmem:[#allocation20 + $0xb0] sm:$0xff] }
0x1100   :  { %12411 = vmatprep.subr.bf16.mxu1 %v12410_v3 }
0x1101   :  { %12413 = vmatpush3.bf16.msra.mxu1 %v12412_v54 }
0x1102   :  { %12381 = vmatpush1.bf16.msra.mxu0 %v12380_v28  ;;  %v12414_v28 = vpack.c.bf16 %v9614_v35, %v9613_v45 }
0x1103   :  { %12383 = vmatprep.subr.bf16.mxu0 %v12382_v47  ;;  %v9615_v47 = vld [vmem:[#allocation20 + $0xc0] sm:$0xff] }
0x1104   :  { %12415 = vmatprep.subr.bf16.mxu1 %v12414_v28 }
0x1105   :  { %12417 = vmatpush3.bf16.msra.mxu1 %v12416_v11 }
0x1106   :  { %12385 = vmatpush1.bf16.msra.mxu0 %v12384_v30  ;;  %v12418_v30 = vpack.c.bf16 %v9616_v22, %v9615_v47 }
0x1107   :  { %12387 = vmatprep.subr.bf16.mxu0 %v12386_v62  ;;  %v9618_v62 = vld [vmem:[#allocation20 + $0xd8] sm:$0xff] }
0x1108   :  { %12419 = vmatprep.subr.bf16.mxu1 %v12418_v30  ;;  %v12422_v12 = vpack.c.bf16 %v9618_v62, %v9617_v60 }
0x1109   :  { %12421 = vmatpush3.bf16.msra.mxu1 %v12420_v39  ;;  %v17098_v39 = vld [vmem:[#allocation63_spill] sm:$0xff] }
0x110a   :  { %12389 = vmatpush1.bf16.msra.mxu0 %v12388_v34  ;;  %v9602_v34 = vld [vmem:[#allocation20 + $0x58] sm:$0xff]  ;;  %12423 = vmatprep.subr.bf16.mxu1 %v12422_v12 }
0x110b   :  { %12391 = vmatprep.subr.bf16.mxu0 %v12390_v38  ;;  %v9619_v38 = vld [vmem:[#allocation20 + $0xe0] sm:$0xff]  ;;  %v12424_v10 = vpack.c.bf16 %v9602_v34, %v9601_v33  ;;  %v17099_v12 = vld [vmem:[#allocation67_spill] sm:$0xff]  ;;  %v17100_v33 = vld [vmem:[#allocation38_spill] sm:$0xff] }
0x110c   :  { %v12426_v20 = vpack.c.bf16 %v9620_v16, %v9619_v38  ;;  %v17101_v34 = vld [vmem:[#allocation46_spill] sm:$0xff]  ;;  %v17103_v38 = vld [vmem:[#allocation44_spill] sm:$0xff]  ;;  %v17104_v16 = vld [vmem:[#allocation49_spill] sm:$0xff] }
0x110d   :  { %12425 = vmatpush3.bf16.msra.mxu1 %v12424_v10  ;;  %v17107_v10 = vld [vmem:[#allocation45_spill] sm:$0xff] }
0x110e   :  { %12393 = vmatpush1.bf16.msra.mxu0 %v12392_v57  ;;  %12427 = vmatprep.subr.bf16.mxu1 %v12426_v20  ;;  %v9622_v20 = vld [vmem:[#allocation20 + $0xf8] sm:$0xff] }
0x110f   :  { %12395 = vmatprep.subr.bf16.mxu0 %v12394_v61 }
0x1112   :  { %12397 = vmatpush1.bf16.msra.mxu0 %v12396_v0 }
0x1113   :  { %12399 = vmatprep.subr.bf16.mxu0 %v12398_v29 }
0x1116   :  { %12401 = vmatpush1.bf16.msra.mxu0 %v12400_v31 }
0x118c   :  { %v9026_v15 = vpop.f32.mrb[46].mxu0  ;;  %v9097_v6 = vpop.f32.mrb[52].mxu1 }
0x118d   :  { %v12528_v57 = vadd.f32 %v9026_v15, %v15502_v51  ;;  %v9028_v61 = vpop.f32.mrb[47].mxu0  ;;  %v9099_v14 = vpop.f32.mrb[53].mxu1  ;;  %v12544_v5 = vadd.f32 %v9097_v6, %v17079_v49  ;;  %v17105_v15 = vld [vmem:[#allocation37_spill] sm:$0xff]  ;;  %v17106_v6 = vld [vmem:[#allocation48_spill] sm:$0xff] }
0x118e   :  { %v12529_v26 = vadd.f32 %v9028_v61, %v17077_v21  ;;  %v12545_v29 = vadd.f32 %v9099_v14, %v17078_v44  ;;  %v9621_v14 = vld [vmem:[#allocation20 + $0xf0] sm:$0xff] }
0x118f   :  { %v9883_v9 = vmul.f32 -1.442695, %v12528_v57  ;;  %v9604_v57 = vld [vmem:[#allocation20 + $0x68] sm:$0xff] }
0x1190   :  { %v9884_v0 = vmul.f32 -1.442695, %v12529_v26  ;;  %v9885_v41 = vmul.f32 -1.442695, %v12545_v29  ;;  %v12430_v26 = vpack.c.bf16 %v9622_v20, %v9621_v14 }
0x1191   :  { %13198 = vpow2.f32 %v9883_v9  ;;  %v9605_v9 = vld [vmem:[#allocation20 + $0x70] sm:$0xff] }
0x1192   :  { %13200 = vpow2.f32 %v9884_v0  ;;  %v9606_v0 = vld [vmem:[#allocation20 + $0x78] sm:$0xff] }
0x1193   :  { %13202 = vpow2.f32 %v9885_v41  ;;  %v12432_v29 = vpack.c.bf16 %v9606_v0, %v9605_v9  ;;  %v9450_v41 = vld [vmem:[%s16588_s14] sm:$0x3] }
0x1194   :  { %13204 = vtanh.f32 %v12544_v5 }
0x119b   :  { %v13199_v31 = vpop.eup %13198 }
0x119c   :  { %v13201_v1 = vpop.eup %13200  ;;  %v9109_v51 = vadd.f32 1.0, %v13199_v31  ;;  %v17110_v31 = vld [vmem:[#allocation34_spill] sm:$0xff] }
0x119d   :  { %v9115_v32 = vadd.f32 1.0, %v13201_v1  ;;  %v13203_v21 = vpop.eup %13202  ;;  %v9459_v1 = vrot.slane %v9450_v41, %v17110_v31 }
0x119e   :  { %13206 = vrcp.f32 %v9109_v51  ;;  %v13205_v52 = vpop.eup %13204  ;;  %v9122_v25 = vadd.f32 1.0, %v13203_v21 }
0x119f   :  { %13208 = vrcp.f32 %v9115_v32 }
0x11a0   :  { %13210 = vrcp.f32 %v9122_v25 }
0x11a8   :  { %v13207_v42 = vpop.eup %13206 }
0x11a9   :  { %v13209_v37 = vpop.eup %13208  ;;  %v9126_v58 = vmul.f32 %v13207_v42, %v13205_v52 }
0x11aa   :  { %v9125_v24 = vmul.f32 %v13209_v37, %v16467_v36  ;;  %v13211_v56 = vpop.eup %13210 }
0x11ac   :  { %v9264_v44 = vpop.f32.mrb[48].mxu0  ;;  %v9335_v13 = vpop.f32.mrb[54].mxu1  ;;  %v9127_v27 = vadd.f32 %v9126_v58, %v9125_v24 }
0x11ad   :  { %v12546_v49 = vadd.f32 %v9264_v44, %v17081_v46  ;;  %v9266_v55 = vpop.f32.mrb[49].mxu0  ;;  %v9337_v18 = vpop.f32.mrb[55].mxu1  ;;  %v12562_v35 = vadd.f32 %v9335_v13, %v15536_v43 }
0x11ae   :  { %v12547_v48 = vadd.f32 %v9266_v55, %v17082_v40  ;;  %13212 = vtanh.f32 %v9127_v27  ;;  %v12563_v8 = vadd.f32 %v9337_v18, %v17083_v59 }
0x11af   :  { %v9886_v7 = vmul.f32 -1.442695, %v12546_v49 }
0x11b0   :  { %v9887_v3 = vmul.f32 -1.442695, %v12547_v48  ;;  %v9888_v36 = vmul.f32 -1.442695, %v12563_v8 }
0x11b1   :  { %13214 = vpow2.f32 %v9886_v7 }
0x11b2   :  { %13216 = vpow2.f32 %v9887_v3 }
0x11b3   :  { %13218 = vpow2.f32 %v9888_v36 }
0x11b4   :  { %13220 = vtanh.f32 %v12562_v35 }
0x11b8   :  { %v13213_v45 = vpop.eup %13212 }
0x11b9   :  { %v9129_v54 = vmul.f32 %v13213_v45, %v13211_v56 }
0x11bb   :  { %v13215_v28 = vpop.eup %13214 }
0x11bc   :  { %v13217_v23 = vpop.eup %13216  ;;  %v9347_v46 = vadd.f32 1.0, %v13215_v28 }
0x11bd   :  { %v9353_v2 = vadd.f32 1.0, %v13217_v23  ;;  %v13219_v40 = vpop.eup %13218 }
0x11be   :  { %13222 = vrcp.f32 %v9347_v46  ;;  %v13221_v47 = vpop.eup %13220  ;;  %v9360_v59 = vadd.f32 1.0, %v13219_v40 }
0x11bf   :  { %13224 = vrcp.f32 %v9353_v2 }
0x11c0   :  { %13226 = vrcp.f32 %v9360_v59 }
0x11c8   :  { %v13223_v22 = vpop.eup %13222 }
0x11c9   :  { %v13225_v11 = vpop.eup %13224  ;;  %v9364_v30 = vmul.f32 %v13223_v22, %v13221_v47 }
0x11ca   :  { %v9363_v19 = vmul.f32 %v13225_v11, %v16497_v63  ;;  %v13227_v43 = vpop.eup %13226  ;;  %v17102_v63 = vld [vmem:[#allocation40_spill] sm:$0xff] }
0x11cc   :  { %v9365_v4 = vadd.f32 %v9364_v30, %v9363_v19 }
0x11ce   :  { %13228 = vtanh.f32 %v9365_v4 }
0x11d8   :  { %v13229_v60 = vpop.eup %13228 }
0x11d9   :  { %v9367_v62 = vmul.f32 %v13229_v60, %v13227_v43 }
0x11db   :  { %9526 = vmatprep.mubr.f32.mxu0 %v9367_v62 }
0x11dc   :  { %9527 = vmatmul.mubr.f32.vlgmr.msra.gmra.mrb[64].mxu0 %v17098_v39 }
0x11dd   :  { %9532 = vmatprep.mubr.f32.mxu0 %v16514_v53  ;;  %v17108_v53 = vld [vmem:[#allocation64_spill] sm:$0xff] }
0x11e0   :  { %9533 = vmatmul.mubr.f32.gmra.mrb[66].mxu0 %v17099_v12 }
0x11e1   :  { %9538 = vmatprep.mubr.f32.mxu0 %v16422_v50  ;;  %v9603_v50 = vld [vmem:[#allocation20 + $0x60] sm:$0xff] }
0x11e2   :  { %v12428_v61 = vpack.c.bf16 %v9604_v57, %v9603_v50 }
0x11e4   :  { %9539 = vmatmul.mubr.f32.gmra.mrb[68].mxu0 %v17100_v33  ;;  %12429 = vmatpush3.bf16.msra.mxu1 %v12428_v61 }
0x11e5   :  { %9544 = vmatprep.mubr.f32.mxu0 %v17101_v34  ;;  %12431 = vmatprep.subr.bf16.mxu1 %v12430_v26 }
0x11e8   :  { %9545 = vmatmul.mubr.f32.gmra.mrb[70].mxu0 %v17102_v63  ;;  %12433 = vmatpush3.bf16.msra.mxu1 %v12432_v29 }
0x11e9   :  { %9550 = vmatprep.mubr.f32.mxu0 %v17103_v38 }
0x11ec   :  { %9551 = vmatmul.mubr.f32.gmra.mrb[72].mxu0 %v17104_v16 }
0x11ed   :  { %9556 = vmatprep.mubr.f32.mxu0 %v17105_v15 }
0x11f0   :  { %9557 = vmatmul.mubr.f32.gmra.mrb[74].mxu0 %v17106_v6 }
0x11f1   :  { %9562 = vmatprep.mubr.f32.mxu0 %v17107_v10 }
0x11f4   :  { %9563 = vmatmul.mubr.f32.gmra.mrb[76].mxu0 %v16474_v17  ;;  %v17109_v17 = vld [vmem:[#allocation35_spill] sm:$0xff] }
0x11f5   :  { %9568 = vmatprep.mubr.f32.mxu0 %v17108_v53  ;;  %v9455_v5 = vrot.slane %v9450_v41, %v17109_v17  ;;  %v9889_v53 = vld [vmem:[%s16590_s16] ss:$0 sm:$0xff] }
0x11f8   :  { %9569 = vmatmul.mubr.f32.gmra.mrb[78].mxu0 %v9129_v54 }
0x12af   :  { %v9528_v51 = vpop.f32.mrb[64].mxu0 }
0x12b0   :  { %v9529_v32 = vadd.f32 %v9528_v51, %v9455_v5  ;;  %v9530_v21 = vpop.f32.mrb[65].mxu0 }
0x12b1   :  { %v9531_v52 = vadd.f32 %v9530_v21, %v9459_v1 }
0x12b2   :  { %v9575_v58 = vmax.f32 %v9529_v32, 0.0 }
0x12b3   :  { %v9576_v42 = vmax.f32 %v9531_v52, 0.0  ;;  %v9534_v37 = vpop.f32.mrb[66].mxu0 }
0x12b4   :  { %v9535_v25 = vadd.f32 %v9534_v37, %v9455_v5  ;;  %v9536_v24 = vpop.f32.mrb[67].mxu0 }
0x12b5   :  { %v9537_v44 = vadd.f32 %v9536_v24, %v9459_v1  ;;  %9694 = vmatprep.mubr.f32.mxu1 %v9576_v42 }
0x12b6   :  { %9695 = vmatmul.mubr.f32.vlgmr.msra.gmra.mrb[70].mxu1 %v9575_v58  ;;  %v9577_v49 = vmax.f32 %v9535_v25, 0.0 }
0x12b7   :  { %v9578_v13 = vmax.f32 %v9537_v44, 0.0  ;;  %v9540_v27 = vpop.f32.mrb[68].mxu0 }
0x12b8   :  { %v9541_v55 = vadd.f32 %v9540_v27, %v9455_v5  ;;  %v9542_v18 = vpop.f32.mrb[69].mxu0 }
0x12b9   :  { %v9543_v48 = vadd.f32 %v9542_v18, %v9459_v1  ;;  %9699 = vmatprep.mubr.f32.mxu1 %v9578_v13 }
0x12ba   :  { %9700 = vmatmul.mubr.f32.gmra.mrb[72].mxu1 %v9577_v49  ;;  %v9579_v8 = vmax.f32 %v9541_v55, 0.0 }
0x12bb   :  { %v9580_v7 = vmax.f32 %v9543_v48, 0.0  ;;  %v9546_v3 = vpop.f32.mrb[70].mxu0 }
0x12bc   :  { %v9547_v56 = vadd.f32 %v9546_v3, %v9455_v5  ;;  %v9548_v45 = vpop.f32.mrb[71].mxu0 }
0x12bd   :  { %v9549_v36 = vadd.f32 %v9548_v45, %v9459_v1  ;;  %9704 = vmatprep.mubr.f32.mxu1 %v9580_v7 }
0x12be   :  { %9705 = vmatmul.mubr.f32.gmra.mrb[74].mxu1 %v9579_v8  ;;  %v9581_v28 = vmax.f32 %v9547_v56, 0.0 }
0x12bf   :  { %v9582_v35 = vmax.f32 %v9549_v36, 0.0  ;;  %v9552_v54 = vpop.f32.mrb[72].mxu0 }
0x12c0   :  { %v9553_v23 = vadd.f32 %v9552_v54, %v9455_v5  ;;  %v9554_v46 = vpop.f32.mrb[73].mxu0 }
0x12c1   :  { %v9555_v2 = vadd.f32 %v9554_v46, %v9459_v1  ;;  %9709 = vmatprep.mubr.f32.mxu1 %v9582_v35 }
0x12c2   :  { %9710 = vmatmul.mubr.f32.gmra.mrb[76].mxu1 %v9581_v28  ;;  %v9583_v22 = vmax.f32 %v9553_v23, 0.0 }
0x12c3   :  { %v9584_v40 = vmax.f32 %v9555_v2, 0.0  ;;  %v9558_v47 = vpop.f32.mrb[74].mxu0 }
0x12c4   :  { %v9559_v11 = vadd.f32 %v9558_v47, %v9455_v5  ;;  %v9560_v30 = vpop.f32.mrb[75].mxu0 }
0x12c5   :  { %v9561_v59 = vadd.f32 %v9560_v30, %v9459_v1  ;;  %9714 = vmatprep.mubr.f32.mxu1 %v9584_v40 }
0x12c6   :  { %9715 = vmatmul.mubr.f32.gmra.mrb[78].mxu1 %v9583_v22  ;;  %v9585_v43 = vmax.f32 %v9559_v11, 0.0 }
0x12c7   :  { %v9586_v19 = vmax.f32 %v9561_v59, 0.0  ;;  %v9564_v4 = vpop.f32.mrb[76].mxu0 }
0x12c8   :  { %v9565_v60 = vadd.f32 %v9564_v4, %v9455_v5  ;;  %v9566_v62 = vpop.f32.mrb[77].mxu0 }
0x12c9   :  { %v9567_v39 = vadd.f32 %v9566_v62, %v9459_v1  ;;  %9719 = vmatprep.mubr.f32.mxu1 %v9586_v19 }
0x12ca   :  { %9720 = vmatmul.mubr.f32.gmra.mrb[80].mxu1 %v9585_v43  ;;  %v9587_v34 = vmax.f32 %v9565_v60, 0.0 }
0x12cb   :  { %v9588_v12 = vmax.f32 %v9567_v39, 0.0  ;;  %v9570_v33 = vpop.f32.mrb[78].mxu0 }
0x12cc   :  { %v9571_v63 = vadd.f32 %v9570_v33, %v9455_v5  ;;  %v9572_v38 = vpop.f32.mrb[79].mxu0 }
0x12cd   :  { %v9573_v16 = vadd.f32 %v9572_v38, %v9459_v1  ;;  %9724 = vmatprep.mubr.f32.mxu1 %v9588_v12 }
0x12ce   :  { %9725 = vmatmul.mubr.f32.gmra.mrb[82].mxu1 %v9587_v34  ;;  %v9589_v6 = vmax.f32 %v9571_v63, 0.0 }
0x12cf   :  { %v9590_v15 = vmax.f32 %v9573_v16, 0.0 }
0x12d1   :  { %9729 = vmatprep.mubr.f32.mxu1 %v9590_v15 }
0x12d2   :  { %9730 = vmatmul.mubr.f32.gmra.mrb[84].mxu1 %v9589_v6 }
0x1389   :  { %v9922_v10 = vpop.f32.mrb[70].mxu1 }
0x138a   :  { %v9923_v50 = vpop.f32.mrb[71].mxu1 }
0x138b   :  { %v9924_v57 = vadd.f32 %v9923_v50, %v9922_v10 }
0x138d   :  { %v9697_v61 = vadd.f32 %v9924_v57, %v9889_v53  ;;  %v9925_v14 = vpop.f32.mrb[72].mxu1 }
0x138e   :  { %v9926_v20 = vpop.f32.mrb[73].mxu1 }
0x138f   :  { %9735 = vst [vmem:[%s16591_s17] sm:$0xff] %v9697_v61  ;;  %v9927_v26 = vadd.f32 %v9926_v20, %v9925_v14 }
0x1391   :  { %v9702_v9 = vadd.f32 %v9927_v26, %v9889_v53  ;;  %v9928_v0 = vpop.f32.mrb[74].mxu1 }
0x1392   :  { %v9929_v29 = vpop.f32.mrb[75].mxu1 }
0x1393   :  { %9736 = vst [vmem:[%s16591_s17 + $0x8] sm:$0xff] %v9702_v9  ;;  %v9930_v41 = vadd.f32 %v9929_v29, %v9928_v0 }
0x1395   :  { %v9707_v17 = vadd.f32 %v9930_v41, %v9889_v53  ;;  %v9931_v5 = vpop.f32.mrb[76].mxu1 }
0x1396   :  { %v9932_v31 = vpop.f32.mrb[77].mxu1 }
0x1397   :  { %9737 = vst [vmem:[%s16591_s17 + $0x10] sm:$0xff] %v9707_v17  ;;  %v9933_v1 = vadd.f32 %v9932_v31, %v9931_v5 }
0x1399   :  { %v9712_v51 = vadd.f32 %v9933_v1, %v9889_v53  ;;  %v9934_v32 = vpop.f32.mrb[78].mxu1 }
0x139a   :  { %v9935_v21 = vpop.f32.mrb[79].mxu1 }
0x139b   :  { %9738 = vst [vmem:[%s16591_s17 + $0x18] sm:$0xff] %v9712_v51  ;;  %v9936_v52 = vadd.f32 %v9935_v21, %v9934_v32 }
0x139d   :  { %v9717_v42 = vadd.f32 %v9936_v52, %v9889_v53  ;;  %v9937_v37 = vpop.f32.mrb[80].mxu1 }
0x139e   :  { %v9938_v58 = vpop.f32.mrb[81].mxu1 }
0x139f   :  { %9739 = vst [vmem:[%s16591_s17 + $0x20] sm:$0xff] %v9717_v42  ;;  %v9939_v25 = vadd.f32 %v9938_v58, %v9937_v37 }
0x13a1   :  { %v9722_v24 = vadd.f32 %v9939_v25, %v9889_v53  ;;  %v9940_v44 = vpop.f32.mrb[82].mxu1 }
0x13a2   :  { %v9941_v13 = vpop.f32.mrb[83].mxu1 }
0x13a3   :  { %9740 = vst [vmem:[%s16591_s17 + $0x28] sm:$0xff] %v9722_v24  ;;  %v9942_v27 = vadd.f32 %v9941_v13, %v9940_v44 }
0x13a5   :  { %v9727_v49 = vadd.f32 %v9942_v27, %v9889_v53  ;;  %v9943_v55 = vpop.f32.mrb[84].mxu1 }
0x13a6   :  { %v9944_v18 = vpop.f32.mrb[85].mxu1 }
0x13a7   :  { %9741 = vst [vmem:[%s16591_s17 + $0x30] sm:$0xff] %v9727_v49  ;;  %v9945_v48 = vadd.f32 %v9944_v18, %v9943_v55 }
0x13a9   :  { %v9732_v7 = vadd.f32 %v9945_v48, %v9889_v53 }
0x13ab   :  { %9742 = vst [vmem:[%s16591_s17 + $0x38] sm:$0xff] %v9732_v7 }
0x13ac   :  { %9747 = vsyncpa [#allocation7], 1 }
0x13ad   :  { %9748 = vsyncpa [#allocation9], 1 }
0x13ae   :  { %9749 = vsyncpa [#allocation12], 1 }
0x13af   :  { %9750 = vsyncpa [#allocation15], 1 }
0x13b0   :  { %9751 = vsyncpa [#allocation18], 1 }
0x13b1   :  { %9752 = vsyncpa [#allocation21], 1 }

</bundles_post_ra>
